<compile_context>
chip_gen: v7x
topology: tpu7x:2x2x1
jax: 0.10.0
libtpu: 0.0.40
codegen_flags: <defaults>
</compile_context>

<pallas_src>
import jax
import jax.numpy as jnp
from jax.experimental import pallas as pl
from jax.experimental.pallas import tpu as pltpu

# Architecture constants (fc3.in_features == 2592 == 32*9*9 pins the input to 84x84;
# conv1: 84 -> 20 (k=8, s=4), conv2: 20 -> 9 (k=4, s=2)).
_A = 11        # conv1 output row-pair grid kept per tile: 10 valid + 1 pad (a = h // 2)
_BW = 10       # conv1 output column-pair grid                         (bw = w // 2)
_BC = 12       # 8x8 space-to-depth column blocks: 11 valid + 1 pad (slice headroom)
_OH = 10       # conv2 row grid kept in VMEM: rows 0..8 valid, row 9 pad
_OW = 9        # conv2 valid output rows / cols
_C1 = 16       # conv1 out channels
_C2 = 32       # conv2 out channels
_N2 = _OW * _C2            # 288 conv2 output lanes = (ow, c_out)
_F3 = _OW * _N2            # 2592 fc3 input features (NHWC flatten)
_H3 = 256                  # fc3 out features


def _round_up(v, m):
    return (v + m - 1) // m * m


# ----------------------------------------------------------------------------
# Fused kernel: conv1 -> conv2 -> fc3 -> fc4 for one tile of `bt` images.
# ----------------------------------------------------------------------------
def _fused_kernel(s_ref, w1_ref, b1_ref, w2_ref, b2_ref, w3_ref, b3_ref,
                  w4_ref, b4_ref, o_ref):
    f32, bf16 = jnp.float32, jnp.bfloat16
    bt = o_ref.shape[0]                 # images in this tile
    fk = s_ref.shape[1]                 # 64*C features per 8x8 space-to-depth block
    rows1 = _BW * _A * bt               # conv1 matmul rows, layout (bw, a, b)

    # conv1 (+ fused /255 via pre-scaled weights) + ReLU.
    # Accumulate over the four block offsets (da, dc) in {0,1}^2: each term is a
    # contiguous, sublane-aligned row slice of the space-to-depth input (rows become
    # (bw, a, b), representing block (bw+dc, a+da, b)) against a dense (fk, 64) weight
    # panel.  No duplicated im2col buffer is materialized; lanes out = (p, q, c1).
    def c1_term(j):                      # j = da*2 + dc
        start = (j % 2) * (_A * bt) + (j // 2) * bt
        return jnp.dot(s_ref[start:start + rows1, :],
                       w1_ref[j * fk:(j + 1) * fk, :],
                       preferred_element_type=f32)
    y1 = c1_term(0)
    for j in range(1, 4):
        y1 = y1 + c1_term(j)
    y1 = jnp.maximum(y1 + b1_ref[...], 0.0).astype(bf16)           # (rows1, 64)

    # conv2 + ReLU: for each (dh, bw) take a contiguous, sublane-aligned row slice of
    # y1 (rows become (oh, b)), concatenate along lanes -> (OH*bt, 1280), then one MXU
    # matmul against the block-sparse repacked weight -> (OH*bt, 288) = (oh,b)x(ow,c2).
    # (Known secondary inefficiency per review: 64-lane concat pieces / ~80% zero K.)
    parts2 = []
    for dh in range(2):
        for bw in range(_BW):
            start = bw * (_A * bt) + dh * bt
            parts2.append(y1[start:start + _OH * bt, :])
    lhs2 = jnp.concatenate(parts2, axis=1)                          # (OH*bt, 1280)
    y2 = jnp.dot(lhs2, w2_ref[...], preferred_element_type=f32)
    y2 = jnp.maximum(y2 + b2_ref[...], 0.0).astype(bf16)            # (OH*bt, 288)

    # fc3 (PyTorch NHWC flatten) + ReLU: accumulate over the 9 valid output rows;
    # each slice is the bt batch rows of this tile, K = 288 lanes, weight rows are
    # already in NHWC-flatten order.
    acc = jnp.zeros((bt, _H3), f32)
    for oh in range(_OW):
        acc = acc + jnp.dot(y2[oh * bt:(oh + 1) * bt, :],
                            w3_ref[oh * _N2:(oh + 1) * _N2, :],
                            preferred_element_type=f32)
    y3 = jnp.maximum(acc + b3_ref[...], 0.0).astype(bf16)           # (bt, 256)

    # fc4 (output lanes padded to a multiple of 128 -> lane-dense HBM store).
    o_ref[...] = jnp.dot(y3, w4_ref[...], preferred_element_type=f32) + b4_ref[...]


# ----------------------------------------------------------------------------
# One-time weight repacking (call once, outside the per-step jit).
# ----------------------------------------------------------------------------
def pack_params(params):
    f32, bf16 = jnp.float32, jnp.bfloat16

    # conv1: fold the /255 input scaling into the weight and remap it onto the 8x8
    # space-to-depth feature order.  K order: (da, dc, ci, sr, sc); N order: (p, q, c1),
    # where conv1 output (h, w) = (2a+p, 2bw+q) and input pixel 4h+kh = 8(a+da)+sr.
    w1 = params["w1"].astype(f32) / 255.0                            # (16, C, 8, 8)
    C = w1.shape[1]
    k8 = jnp.arange(8)
    # sub[d, p, s, k] = 1  iff  kernel offset k lands on sub-position s of block d
    # for output parity p  (k == s + 8*d - 4*p).
    sub = (k8[None, None, None, :] ==
           k8[None, None, :, None]
           + 8 * jnp.arange(2)[:, None, None, None]
           - 4 * jnp.arange(2)[None, :, None, None]).astype(f32)     # (2, 2, 8, 8)
    w1p = jnp.einsum("aprh,bqsw,oihw->abirspqo", sub, sub, w1)
    w1p = w1p.reshape(4 * 64 * C, 4 * _C1).astype(bf16)              # (256*C, 64)
    b1p = jnp.tile(params["b1"].astype(f32), 4)[None, :]             # (1, 64)

    # conv2: repack OIHW (32,16,4,4) into the block-sparse (1280, 288) operator whose
    # K order matches the in-kernel lane concat (dh, bw, p, q, c1), N order (ow, c2).
    w2r = params["w2"].astype(f32).reshape(_C2, _C1, 2, 2, 2, 2)     # (o,i,dh,p,dw,q)
    ow_i = jnp.arange(_OW)[:, None]
    bw_i = jnp.arange(_BW)[None, :]
    sel = jnp.stack([(bw_i == ow_i + d) for d in range(2)]).astype(f32)   # (dw,ow,bw)
    w2p = jnp.einsum("oihpdq,dwb->hbpqiwo", w2r, sel)
    w2p = w2p.reshape(2 * _BW * 4 * _C1, _N2).astype(bf16)           # (1280, 288)
    b2p = jnp.tile(params["b2"].astype(f32), _OW)[None, :]           # (1, 288)

    # fc3 / fc4: PyTorch flattens NHWC, so w3.T rows are already (oh, ow, c) ordered.
    w3p = params["w3"].astype(f32).T.astype(bf16)                    # (2592, 256)
    b3p = params["b3"].astype(f32)[None, :]                          # (1, 256)
    num_actions = params["w4"].shape[0]
    na = _round_up(max(num_actions, 1), 128)
    w4p = jnp.zeros((_H3, na), f32).at[:, :num_actions].set(
        params["w4"].astype(f32).T).astype(bf16)                     # (256, na)
    b4p = jnp.zeros((1, na), f32).at[0, :num_actions].set(params["b4"].astype(f32))
    return dict(w1=w1p, b1=b1p, w2=w2p, b2=b2p, w3=w3p, b3=b3p, w4=w4p, b4=b4p)


# ----------------------------------------------------------------------------
# Generation-aware tiling.
# ----------------------------------------------------------------------------
def _tile_config(batch):
    try:
        vmem_cap = pltpu.get_tpu_info().vmem_capacity_bytes
    except Exception:
        vmem_cap = 64 * 1024 * 1024
    if vmem_cap >= 100 * 1024 * 1024:          # v5e / v6e: 128 MiB VMEM
        bt, vmem_limit = 128, 100 * 1024 * 1024
    else:                                      # v7x (or unknown): 64 MiB VMEM
        bt, vmem_limit = 64, 56 * 1024 * 1024
    # Shrink the tile for small batches so there are >= 2 grid steps whenever the
    # batch allows it (v7x has 2 TensorCores; a single step also defeats pipelining),
    # while keeping bt a multiple of 8 (sublane alignment of every block).
    bt = max(8, min(bt, _round_up(pl.cdiv(batch, 2), 8)))
    return bt, vmem_limit


# ----------------------------------------------------------------------------
# Forward: cheap space-to-depth prologue + one pallas_call over batch tiles.
# ----------------------------------------------------------------------------
def nn_policy_forward_packed(x, packed, num_actions):
    """x: (B, C, 84, 84) float32 NCHW -> (B, num_actions) float32."""
    B, C, H, W = x.shape
    assert (H, W) == (84, 84), "fc3.in_features == 2592 forces 84x84 inputs"
    bf16 = jnp.bfloat16
    F = 64 * C                               # features per 8x8 space-to-depth block
    na = packed["w4"].shape[1]
    bt, vmem_limit = _tile_config(B)
    Bp = _round_up(B, bt)
    G = Bp // bt

    # 8x8 space-to-depth of the (zero-padded to 88x88) input: one transpose, no pixel
    # duplication.  Rows = (g, bc, ar, b_in_tile), lanes = (ci, sr, sc).  The kernel
    # re-assembles conv1 receptive fields from it with contiguous row slices.
    xb = jnp.pad(x.astype(bf16), ((0, Bp - B), (0, 0), (0, 4), (0, 4)))
    s = xb.reshape(G, bt, C, 11, 8, 11, 8)          # (g, b, ci, ar, sr, bc, sc)
    s = s.transpose(0, 5, 3, 1, 2, 4, 6)            # (g, bc, ar, b, ci, sr, sc)
    s = jnp.pad(s, ((0, 0), (0, _BC - 11), (0, 0), (0, 0), (0, 0), (0, 0), (0, 0)))
    s2d = s.reshape(G * _BC * _A * bt, F)

    rows_s2d = _BC * _A * bt
    rows1 = _BW * _A * bt
    flops = 2 * G * (rows1 * (4 * F) * (4 * _C1)
                     + (_OH * bt) * (2 * _BW * 4 * _C1) * _N2
                     + _OW * bt * _N2 * _H3
                     + bt * _H3 * na)
    bytes_accessed = (s2d.size * 2 + Bp * na * 4
                      + 2 * (packed["w1"].size + packed["w2"].size
                             + packed["w3"].size + packed["w4"].size)
                      + 4 * (packed["b1"].size + packed["b2"].size
                             + packed["b3"].size + packed["b4"].size))

    def _const(shape):
        # Grid-invariant operands: VMEM-resident, single-buffered (no dead per-step DMA).
        try:
            return pl.BlockSpec(shape, lambda i: (0, 0), pipeline_mode=pl.Buffered(1))
        except (TypeError, AttributeError):
            return pl.BlockSpec(shape, lambda i: (0, 0))

    out = pl.pallas_call(
        _fused_kernel,
        out_shape=jax.ShapeDtypeStruct((Bp, na), jnp.float32),
        grid=(G,),
        in_specs=[
            pl.BlockSpec((rows_s2d, F), lambda i: (i, 0)),   # activations: 1 tile / step
            _const((4 * F, 4 * _C1)),
            _const((1, 4 * _C1)),
            _const((2 * _BW * 4 * _C1, _N2)),
            _const((1, _N2)),
            _const((_F3, _H3)),
            _const((1, _H3)),
            _const((_H3, na)),
            _const((1, na)),
        ],
        out_specs=pl.BlockSpec((bt, na), lambda i: (i, 0)),
        compiler_params=pltpu.CompilerParams(
            dimension_semantics=("parallel",),
            vmem_limit_bytes=vmem_limit,
        ),
        cost_estimate=pl.CostEstimate(flops=flops, transcendentals=0,
                                      bytes_accessed=bytes_accessed),
    )(s2d, packed["w1"], packed["b1"], packed["w2"], packed["b2"],
      packed["w3"], packed["b3"], packed["w4"], packed["b4"])

    return out[:B, :num_actions]


def nn_policy_forward(x, params):
    """Convenience wrapper (prefer pack_params() once + nn_policy_forward_packed)."""
    return nn_policy_forward_packed(x, pack_params(params), params["w4"].shape[0])


# ----------------------------------------------------------------------------
# Deterministic PyTorch-shaped parameter construction + pure-JAX f32 reference.
# ----------------------------------------------------------------------------
def init_params(key, channels, num_actions):
    ks = jax.random.split(key, 8)

    def uniform(k, shape, fan_in):
        bound = 1.0 / jnp.sqrt(float(fan_in))
        return jax.random.uniform(k, shape, jnp.float32, -bound, bound)

    w1 = uniform(ks[0], (16, channels, 8, 8), channels * 8 * 8)
    b1 = uniform(ks[1], (16,), channels * 8 * 8)
    w2 = uniform(ks[2], (32, 16, 4, 4), 16 * 4 * 4)
    b2 = uniform(ks[3], (32,), 16 * 4 * 4)
    w3 = uniform(ks[4], (256, 2592), 2592)
    b3 = uniform(ks[5], (256,), 2592)
    w4 = uniform(ks[6], (num_actions, 256), 256)
    b4 = uniform(ks[7], (num_actions,), 256)
    return dict(w1=w1, b1=b1, w2=w2, b2=b2, w3=w3, b3=b3, w4=w4, b4=b4)


def _reference_forward(x, params):
    B = x.shape[0]
    xs = x / 255.0
    y1 = jax.lax.conv_general_dilated(xs, params["w1"], (4, 4), "VALID",
                                      dimension_numbers=("NCHW", "OIHW", "NCHW"))
    y1 = jax.nn.relu(y1 + params["b1"][None, :, None, None])
    y2 = jax.lax.conv_general_dilated(y1, params["w2"], (2, 2), "VALID",
                                      dimension_numbers=("NCHW", "OIHW", "NCHW"))
    y2 = jax.nn.relu(y2 + params["b2"][None, :, None, None])
    flat = jnp.transpose(y2, (0, 2, 3, 1)).reshape(B, -1)            # NHWC flatten
    y3 = jax.nn.relu(flat @ params["w3"].T + params["b3"])
    return y3 @ params["w4"].T + params["b4"]


if __name__ == "__main__":
    batch, channels, num_actions = 2, 4, 6
    # Spatial size is pinned to 84 by fc3.in_features == 2592 (= 32 * 9 * 9).
    key = jax.random.PRNGKey(0)
    kx, kp = jax.random.split(key)
    x = jax.random.uniform(kx, (batch, channels, 84, 84), jnp.float32, 0.0, 255.0)
    params = init_params(kp, channels, num_actions)

    packed = pack_params(params)                      # one-time weight repacking
    fwd = jax.jit(nn_policy_forward_packed, static_argnums=2)
    out = jax.block_until_ready(fwd(x, packed, num_actions))
    assert out.shape == (batch, num_actions), out.shape
    assert out.dtype == jnp.float32

    ref = jax.block_until_ready(_reference_forward(x, params))
    max_err = float(jnp.max(jnp.abs(out - ref)))
    assert jnp.allclose(out, ref, rtol=2e-2, atol=2e-2), (max_err,)

    print("KERNEL_OK")
</pallas_src>

<mosaic_0001>
module attributes {stable_mosaic.version = 11 : i64} {
  func.func @_fused_kernel(%arg0: i32, %arg1: memref<1056x256xbf16, #tpu.memory_space<vmem>>, %arg2: memref<1024x64xbf16, #tpu.memory_space<vmem>>, %arg3: memref<1x64xf32, #tpu.memory_space<vmem>>, %arg4: memref<1280x288xbf16, #tpu.memory_space<vmem>>, %arg5: memref<1x288xf32, #tpu.memory_space<vmem>>, %arg6: memref<2592x256xbf16, #tpu.memory_space<vmem>>, %arg7: memref<1x256xf32, #tpu.memory_space<vmem>>, %arg8: memref<256x128xbf16, #tpu.memory_space<vmem>>, %arg9: memref<1x128xf32, #tpu.memory_space<vmem>>, %arg10: memref<8x128xf32, #tpu.memory_space<vmem>>) attributes {dimension_semantics = [#tpu.dimension_semantics<parallel>], iteration_bounds = array<i64: 1>, scalar_prefetch = 0 : i64, scratch_operands = 0 : i64, tpu.core_type = #tpu.core_type<tc>, window_params = [{transform_indices = @transform_0, window_bounds = array<i64: 1056, 256>}, {pipeline_mode = #tpu.pipeline_mode<synchronous>, transform_indices = @transform_1, window_bounds = array<i64: 1024, 64>}, {pipeline_mode = #tpu.pipeline_mode<synchronous>, transform_indices = @transform_2, window_bounds = array<i64: 1, 64>}, {pipeline_mode = #tpu.pipeline_mode<synchronous>, transform_indices = @transform_3, window_bounds = array<i64: 1280, 288>}, {pipeline_mode = #tpu.pipeline_mode<synchronous>, transform_indices = @transform_4, window_bounds = array<i64: 1, 288>}, {pipeline_mode = #tpu.pipeline_mode<synchronous>, transform_indices = @transform_5, window_bounds = array<i64: 2592, 256>}, {pipeline_mode = #tpu.pipeline_mode<synchronous>, transform_indices = @transform_6, window_bounds = array<i64: 1, 256>}, {pipeline_mode = #tpu.pipeline_mode<synchronous>, transform_indices = @transform_7, window_bounds = array<i64: 256, 128>}, {pipeline_mode = #tpu.pipeline_mode<synchronous>, transform_indices = @transform_8, window_bounds = array<i64: 1, 128>}, {transform_indices = @transform_9, window_bounds = array<i64: 8, 128>}]} {
    %c0 = arith.constant 0 : index
    %c0_0 = arith.constant 0 : index
    %0 = vector.load %arg1[%c0, %c0_0] : memref<1056x256xbf16, #tpu.memory_space<vmem>>, vector<880x256xbf16>
    %c0_1 = arith.constant 0 : index
    %c0_2 = arith.constant 0 : index
    %1 = vector.load %arg2[%c0_1, %c0_2] : memref<1024x64xbf16, #tpu.memory_space<vmem>>, vector<256x64xbf16>
    %cst = arith.constant dense<0.000000e+00> : vector<880x64xf32>
    %2 = tpu.matmul %0, %1, %cst {dimension_numbers = #tpu.dot_dimension_numbers<[1], [0], [0], [1], [0, 0, 1, 1], [], []>} : vector<880x256xbf16>, vector<256x64xbf16>, vector<880x64xf32> -> vector<880x64xf32>
    %c88 = arith.constant 88 : index
    %c0_3 = arith.constant 0 : index
    %3 = vector.load %arg1[%c88, %c0_3] : memref<1056x256xbf16, #tpu.memory_space<vmem>>, vector<880x256xbf16>
    %c256 = arith.constant 256 : index
    %c0_4 = arith.constant 0 : index
    %4 = vector.load %arg2[%c256, %c0_4] : memref<1024x64xbf16, #tpu.memory_space<vmem>>, vector<256x64xbf16>
    %cst_5 = arith.constant dense<0.000000e+00> : vector<880x64xf32>
    %5 = tpu.matmul %3, %4, %cst_5 {dimension_numbers = #tpu.dot_dimension_numbers<[1], [0], [0], [1], [0, 0, 1, 1], [], []>} : vector<880x256xbf16>, vector<256x64xbf16>, vector<880x64xf32> -> vector<880x64xf32>
    %6 = arith.addf %2, %5 : vector<880x64xf32>
    %c8 = arith.constant 8 : index
    %c0_6 = arith.constant 0 : index
    %7 = vector.load %arg1[%c8, %c0_6] : memref<1056x256xbf16, #tpu.memory_space<vmem>>, vector<880x256xbf16>
    %c512 = arith.constant 512 : index
    %c0_7 = arith.constant 0 : index
    %8 = vector.load %arg2[%c512, %c0_7] : memref<1024x64xbf16, #tpu.memory_space<vmem>>, vector<256x64xbf16>
    %cst_8 = arith.constant dense<0.000000e+00> : vector<880x64xf32>
    %9 = tpu.matmul %7, %8, %cst_8 {dimension_numbers = #tpu.dot_dimension_numbers<[1], [0], [0], [1], [0, 0, 1, 1], [], []>} : vector<880x256xbf16>, vector<256x64xbf16>, vector<880x64xf32> -> vector<880x64xf32>
    %10 = arith.addf %6, %9 : vector<880x64xf32>
    %c96 = arith.constant 96 : index
    %c0_9 = arith.constant 0 : index
    %11 = vector.load %arg1[%c96, %c0_9] : memref<1056x256xbf16, #tpu.memory_space<vmem>>, vector<880x256xbf16>
    %c768 = arith.constant 768 : index
    %c0_10 = arith.constant 0 : index
    %12 = vector.load %arg2[%c768, %c0_10] : memref<1024x64xbf16, #tpu.memory_space<vmem>>, vector<256x64xbf16>
    %cst_11 = arith.constant dense<0.000000e+00> : vector<880x64xf32>
    %13 = tpu.matmul %11, %12, %cst_11 {dimension_numbers = #tpu.dot_dimension_numbers<[1], [0], [0], [1], [0, 0, 1, 1], [], []>} : vector<880x256xbf16>, vector<256x64xbf16>, vector<880x64xf32> -> vector<880x64xf32>
    %14 = arith.addf %10, %13 : vector<880x64xf32>
    %c0_12 = arith.constant 0 : index
    %c0_13 = arith.constant 0 : index
    %15 = vector.load %arg3[%c0_12, %c0_13] : memref<1x64xf32, #tpu.memory_space<vmem>>, vector<1x64xf32>
    %16 = vector.broadcast %15 : vector<1x64xf32> to vector<880x64xf32>
    %17 = arith.addf %14, %16 : vector<880x64xf32>
    %cst_14 = arith.constant 0.000000e+00 : f32
    %18 = vector.broadcast %cst_14 : f32 to vector<880x64xf32>
    %19 = arith.maximumf %17, %18 : vector<880x64xf32>
    %20 = arith.truncf %19 : vector<880x64xf32> to vector<880x64xbf16>
    %21 = vector.extract_strided_slice %20 {offsets = [0, 0], sizes = [80, 64], strides = [1, 1]} : vector<880x64xbf16> to vector<80x64xbf16>
    %22 = vector.extract_strided_slice %20 {offsets = [88, 0], sizes = [80, 64], strides = [1, 1]} : vector<880x64xbf16> to vector<80x64xbf16>
    %23 = vector.extract_strided_slice %20 {offsets = [176, 0], sizes = [80, 64], strides = [1, 1]} : vector<880x64xbf16> to vector<80x64xbf16>
    %24 = vector.extract_strided_slice %20 {offsets = [264, 0], sizes = [80, 64], strides = [1, 1]} : vector<880x64xbf16> to vector<80x64xbf16>
    %25 = vector.extract_strided_slice %20 {offsets = [352, 0], sizes = [80, 64], strides = [1, 1]} : vector<880x64xbf16> to vector<80x64xbf16>
    %26 = vector.extract_strided_slice %20 {offsets = [440, 0], sizes = [80, 64], strides = [1, 1]} : vector<880x64xbf16> to vector<80x64xbf16>
    %27 = vector.extract_strided_slice %20 {offsets = [528, 0], sizes = [80, 64], strides = [1, 1]} : vector<880x64xbf16> to vector<80x64xbf16>
    %28 = vector.extract_strided_slice %20 {offsets = [616, 0], sizes = [80, 64], strides = [1, 1]} : vector<880x64xbf16> to vector<80x64xbf16>
    %29 = vector.extract_strided_slice %20 {offsets = [704, 0], sizes = [80, 64], strides = [1, 1]} : vector<880x64xbf16> to vector<80x64xbf16>
    %30 = vector.extract_strided_slice %20 {offsets = [792, 0], sizes = [80, 64], strides = [1, 1]} : vector<880x64xbf16> to vector<80x64xbf16>
    %31 = vector.extract_strided_slice %20 {offsets = [8, 0], sizes = [80, 64], strides = [1, 1]} : vector<880x64xbf16> to vector<80x64xbf16>
    %32 = vector.extract_strided_slice %20 {offsets = [96, 0], sizes = [80, 64], strides = [1, 1]} : vector<880x64xbf16> to vector<80x64xbf16>
    %33 = vector.extract_strided_slice %20 {offsets = [184, 0], sizes = [80, 64], strides = [1, 1]} : vector<880x64xbf16> to vector<80x64xbf16>
    %34 = vector.extract_strided_slice %20 {offsets = [272, 0], sizes = [80, 64], strides = [1, 1]} : vector<880x64xbf16> to vector<80x64xbf16>
    %35 = vector.extract_strided_slice %20 {offsets = [360, 0], sizes = [80, 64], strides = [1, 1]} : vector<880x64xbf16> to vector<80x64xbf16>
    %36 = vector.extract_strided_slice %20 {offsets = [448, 0], sizes = [80, 64], strides = [1, 1]} : vector<880x64xbf16> to vector<80x64xbf16>
    %37 = vector.extract_strided_slice %20 {offsets = [536, 0], sizes = [80, 64], strides = [1, 1]} : vector<880x64xbf16> to vector<80x64xbf16>
    %38 = vector.extract_strided_slice %20 {offsets = [624, 0], sizes = [80, 64], strides = [1, 1]} : vector<880x64xbf16> to vector<80x64xbf16>
    %39 = vector.extract_strided_slice %20 {offsets = [712, 0], sizes = [80, 64], strides = [1, 1]} : vector<880x64xbf16> to vector<80x64xbf16>
    %40 = vector.extract_strided_slice %20 {offsets = [800, 0], sizes = [80, 64], strides = [1, 1]} : vector<880x64xbf16> to vector<80x64xbf16>
    %41 = tpu.concatenate %21, %22, %23, %24, %25, %26, %27, %28, %29, %30, %31, %32, %33, %34, %35, %36 in 1 : vector<80x64xbf16>, vector<80x64xbf16>, vector<80x64xbf16>, vector<80x64xbf16>, vector<80x64xbf16>, vector<80x64xbf16>, vector<80x64xbf16>, vector<80x64xbf16>, vector<80x64xbf16>, vector<80x64xbf16>, vector<80x64xbf16>, vector<80x64xbf16>, vector<80x64xbf16>, vector<80x64xbf16>, vector<80x64xbf16>, vector<80x64xbf16> -> vector<80x1024xbf16>
    %42 = tpu.concatenate %37, %38, %39, %40 in 1 : vector<80x64xbf16>, vector<80x64xbf16>, vector<80x64xbf16>, vector<80x64xbf16> -> vector<80x256xbf16>
    %43 = tpu.concatenate %41, %42 in 1 : vector<80x1024xbf16>, vector<80x256xbf16> -> vector<80x1280xbf16>
    %c0_15 = arith.constant 0 : index
    %c0_16 = arith.constant 0 : index
    %44 = vector.load %arg4[%c0_15, %c0_16] : memref<1280x288xbf16, #tpu.memory_space<vmem>>, vector<1280x288xbf16>
    %cst_17 = arith.constant dense<0.000000e+00> : vector<80x288xf32>
    %45 = tpu.matmul %43, %44, %cst_17 {dimension_numbers = #tpu.dot_dimension_numbers<[1], [0], [0], [1], [0, 0, 1, 1], [], []>} : vector<80x1280xbf16>, vector<1280x288xbf16>, vector<80x288xf32> -> vector<80x288xf32>
    %c0_18 = arith.constant 0 : index
    %c0_19 = arith.constant 0 : index
    %46 = vector.load %arg5[%c0_18, %c0_19] : memref<1x288xf32, #tpu.memory_space<vmem>>, vector<1x288xf32>
    %47 = vector.broadcast %46 : vector<1x288xf32> to vector<80x288xf32>
    %48 = arith.addf %45, %47 : vector<80x288xf32>
    %cst_20 = arith.constant 0.000000e+00 : f32
    %49 = vector.broadcast %cst_20 : f32 to vector<80x288xf32>
    %50 = arith.maximumf %48, %49 : vector<80x288xf32>
    %51 = arith.truncf %50 : vector<80x288xf32> to vector<80x288xbf16>
    %cst_21 = arith.constant 0.000000e+00 : f32
    %52 = vector.broadcast %cst_21 : f32 to vector<8x256xf32>
    %53 = vector.extract_strided_slice %51 {offsets = [0, 0], sizes = [8, 288], strides = [1, 1]} : vector<80x288xbf16> to vector<8x288xbf16>
    %c0_22 = arith.constant 0 : index
    %c0_23 = arith.constant 0 : index
    %54 = vector.load %arg6[%c0_22, %c0_23] : memref<2592x256xbf16, #tpu.memory_space<vmem>>, vector<288x256xbf16>
    %cst_24 = arith.constant dense<0.000000e+00> : vector<8x256xf32>
    %55 = tpu.matmul %53, %54, %cst_24 {dimension_numbers = #tpu.dot_dimension_numbers<[1], [0], [0], [1], [0, 0, 1, 1], [], []>} : vector<8x288xbf16>, vector<288x256xbf16>, vector<8x256xf32> -> vector<8x256xf32>
    %56 = arith.addf %52, %55 : vector<8x256xf32>
    %57 = vector.extract_strided_slice %51 {offsets = [8, 0], sizes = [8, 288], strides = [1, 1]} : vector<80x288xbf16> to vector<8x288xbf16>
    %c288 = arith.constant 288 : index
    %c0_25 = arith.constant 0 : index
    %58 = vector.load %arg6[%c288, %c0_25] : memref<2592x256xbf16, #tpu.memory_space<vmem>>, vector<288x256xbf16>
    %cst_26 = arith.constant dense<0.000000e+00> : vector<8x256xf32>
    %59 = tpu.matmul %57, %58, %cst_26 {dimension_numbers = #tpu.dot_dimension_numbers<[1], [0], [0], [1], [0, 0, 1, 1], [], []>} : vector<8x288xbf16>, vector<288x256xbf16>, vector<8x256xf32> -> vector<8x256xf32>
    %60 = arith.addf %56, %59 : vector<8x256xf32>
    %61 = vector.extract_strided_slice %51 {offsets = [16, 0], sizes = [8, 288], strides = [1, 1]} : vector<80x288xbf16> to vector<8x288xbf16>
    %c576 = arith.constant 576 : index
    %c0_27 = arith.constant 0 : index
    %62 = vector.load %arg6[%c576, %c0_27] : memref<2592x256xbf16, #tpu.memory_space<vmem>>, vector<288x256xbf16>
    %cst_28 = arith.constant dense<0.000000e+00> : vector<8x256xf32>
    %63 = tpu.matmul %61, %62, %cst_28 {dimension_numbers = #tpu.dot_dimension_numbers<[1], [0], [0], [1], [0, 0, 1, 1], [], []>} : vector<8x288xbf16>, vector<288x256xbf16>, vector<8x256xf32> -> vector<8x256xf32>
    %64 = arith.addf %60, %63 : vector<8x256xf32>
    %65 = vector.extract_strided_slice %51 {offsets = [24, 0], sizes = [8, 288], strides = [1, 1]} : vector<80x288xbf16> to vector<8x288xbf16>
    %c864 = arith.constant 864 : index
    %c0_29 = arith.constant 0 : index
    %66 = vector.load %arg6[%c864, %c0_29] : memref<2592x256xbf16, #tpu.memory_space<vmem>>, vector<288x256xbf16>
    %cst_30 = arith.constant dense<0.000000e+00> : vector<8x256xf32>
    %67 = tpu.matmul %65, %66, %cst_30 {dimension_numbers = #tpu.dot_dimension_numbers<[1], [0], [0], [1], [0, 0, 1, 1], [], []>} : vector<8x288xbf16>, vector<288x256xbf16>, vector<8x256xf32> -> vector<8x256xf32>
    %68 = arith.addf %64, %67 : vector<8x256xf32>
    %69 = vector.extract_strided_slice %51 {offsets = [32, 0], sizes = [8, 288], strides = [1, 1]} : vector<80x288xbf16> to vector<8x288xbf16>
    %c1152 = arith.constant 1152 : index
    %c0_31 = arith.constant 0 : index
    %70 = vector.load %arg6[%c1152, %c0_31] : memref<2592x256xbf16, #tpu.memory_space<vmem>>, vector<288x256xbf16>
    %cst_32 = arith.constant dense<0.000000e+00> : vector<8x256xf32>
    %71 = tpu.matmul %69, %70, %cst_32 {dimension_numbers = #tpu.dot_dimension_numbers<[1], [0], [0], [1], [0, 0, 1, 1], [], []>} : vector<8x288xbf16>, vector<288x256xbf16>, vector<8x256xf32> -> vector<8x256xf32>
    %72 = arith.addf %68, %71 : vector<8x256xf32>
    %73 = vector.extract_strided_slice %51 {offsets = [40, 0], sizes = [8, 288], strides = [1, 1]} : vector<80x288xbf16> to vector<8x288xbf16>
    %c1440 = arith.constant 1440 : index
    %c0_33 = arith.constant 0 : index
    %74 = vector.load %arg6[%c1440, %c0_33] : memref<2592x256xbf16, #tpu.memory_space<vmem>>, vector<288x256xbf16>
    %cst_34 = arith.constant dense<0.000000e+00> : vector<8x256xf32>
    %75 = tpu.matmul %73, %74, %cst_34 {dimension_numbers = #tpu.dot_dimension_numbers<[1], [0], [0], [1], [0, 0, 1, 1], [], []>} : vector<8x288xbf16>, vector<288x256xbf16>, vector<8x256xf32> -> vector<8x256xf32>
    %76 = arith.addf %72, %75 : vector<8x256xf32>
    %77 = vector.extract_strided_slice %51 {offsets = [48, 0], sizes = [8, 288], strides = [1, 1]} : vector<80x288xbf16> to vector<8x288xbf16>
    %c1728 = arith.constant 1728 : index
    %c0_35 = arith.constant 0 : index
    %78 = vector.load %arg6[%c1728, %c0_35] : memref<2592x256xbf16, #tpu.memory_space<vmem>>, vector<288x256xbf16>
    %cst_36 = arith.constant dense<0.000000e+00> : vector<8x256xf32>
    %79 = tpu.matmul %77, %78, %cst_36 {dimension_numbers = #tpu.dot_dimension_numbers<[1], [0], [0], [1], [0, 0, 1, 1], [], []>} : vector<8x288xbf16>, vector<288x256xbf16>, vector<8x256xf32> -> vector<8x256xf32>
    %80 = arith.addf %76, %79 : vector<8x256xf32>
    %81 = vector.extract_strided_slice %51 {offsets = [56, 0], sizes = [8, 288], strides = [1, 1]} : vector<80x288xbf16> to vector<8x288xbf16>
    %c2016 = arith.constant 2016 : index
    %c0_37 = arith.constant 0 : index
    %82 = vector.load %arg6[%c2016, %c0_37] : memref<2592x256xbf16, #tpu.memory_space<vmem>>, vector<288x256xbf16>
    %cst_38 = arith.constant dense<0.000000e+00> : vector<8x256xf32>
    %83 = tpu.matmul %81, %82, %cst_38 {dimension_numbers = #tpu.dot_dimension_numbers<[1], [0], [0], [1], [0, 0, 1, 1], [], []>} : vector<8x288xbf16>, vector<288x256xbf16>, vector<8x256xf32> -> vector<8x256xf32>
    %84 = arith.addf %80, %83 : vector<8x256xf32>
    %85 = vector.extract_strided_slice %51 {offsets = [64, 0], sizes = [8, 288], strides = [1, 1]} : vector<80x288xbf16> to vector<8x288xbf16>
    %c2304 = arith.constant 2304 : index
    %c0_39 = arith.constant 0 : index
    %86 = vector.load %arg6[%c2304, %c0_39] : memref<2592x256xbf16, #tpu.memory_space<vmem>>, vector<288x256xbf16>
    %cst_40 = arith.constant dense<0.000000e+00> : vector<8x256xf32>
    %87 = tpu.matmul %85, %86, %cst_40 {dimension_numbers = #tpu.dot_dimension_numbers<[1], [0], [0], [1], [0, 0, 1, 1], [], []>} : vector<8x288xbf16>, vector<288x256xbf16>, vector<8x256xf32> -> vector<8x256xf32>
    %88 = arith.addf %84, %87 : vector<8x256xf32>
    %c0_41 = arith.constant 0 : index
    %c0_42 = arith.constant 0 : index
    %89 = vector.load %arg7[%c0_41, %c0_42] : memref<1x256xf32, #tpu.memory_space<vmem>>, vector<1x256xf32>
    %90 = vector.broadcast %89 : vector<1x256xf32> to vector<8x256xf32>
    %91 = arith.addf %88, %90 : vector<8x256xf32>
    %cst_43 = arith.constant 0.000000e+00 : f32
    %92 = vector.broadcast %cst_43 : f32 to vector<8x256xf32>
    %93 = arith.maximumf %91, %92 : vector<8x256xf32>
    %94 = arith.truncf %93 : vector<8x256xf32> to vector<8x256xbf16>
    %c0_44 = arith.constant 0 : index
    %c0_45 = arith.constant 0 : index
    %95 = vector.load %arg8[%c0_44, %c0_45] : memref<256x128xbf16, #tpu.memory_space<vmem>>, vector<256x128xbf16>
    %cst_46 = arith.constant dense<0.000000e+00> : vector<8x128xf32>
    %96 = tpu.matmul %94, %95, %cst_46 {dimension_numbers = #tpu.dot_dimension_numbers<[1], [0], [0], [1], [0, 0, 1, 1], [], []>} : vector<8x256xbf16>, vector<256x128xbf16>, vector<8x128xf32> -> vector<8x128xf32>
    %c0_47 = arith.constant 0 : index
    %c0_48 = arith.constant 0 : index
    %97 = vector.load %arg9[%c0_47, %c0_48] : memref<1x128xf32, #tpu.memory_space<vmem>>, vector<1x128xf32>
    %98 = vector.broadcast %97 : vector<1x128xf32> to vector<8x128xf32>
    %99 = arith.addf %96, %98 : vector<8x128xf32>
    %c0_49 = arith.constant 0 : index
    %c0_50 = arith.constant 0 : index
    %100 = vector.load %arg10[%c0_49, %c0_50] : memref<8x128xf32, #tpu.memory_space<vmem>>, vector<8x128xf32>
    tpu.vector_store %arg10[%c0_49, %c0_50], %99 {strides = array<i32>} : memref<8x128xf32, #tpu.memory_space<vmem>>, vector<8x128xf32>,
    return
  }
  func.func @transform_0(%arg0: i32) -> (i32, i32) {
    %c0_i32 = arith.constant 0 : i32
    %c0_i32_0 = arith.constant 0 : i32
    return %arg0, %c0_i32 : i32, i32
  }
  func.func @transform_1(%arg0: i32) -> (i32, i32) {
    %c0_i32 = arith.constant 0 : i32
    %c0_i32_0 = arith.constant 0 : i32
    %c0_i32_1 = arith.constant 0 : i32
    return %c0_i32, %c0_i32_0 : i32, i32
  }
  func.func @transform_2(%arg0: i32) -> (i32, i32) {
    %c0_i32 = arith.constant 0 : i32
    %c0_i32_0 = arith.constant 0 : i32
    %c0_i32_1 = arith.constant 0 : i32
    return %c0_i32, %c0_i32_0 : i32, i32
  }
  func.func @transform_3(%arg0: i32) -> (i32, i32) {
    %c0_i32 = arith.constant 0 : i32
    %c0_i32_0 = arith.constant 0 : i32
    %c0_i32_1 = arith.constant 0 : i32
    return %c0_i32, %c0_i32_0 : i32, i32
  }
  func.func @transform_4(%arg0: i32) -> (i32, i32) {
    %c0_i32 = arith.constant 0 : i32
    %c0_i32_0 = arith.constant 0 : i32
    %c0_i32_1 = arith.constant 0 : i32
    return %c0_i32, %c0_i32_0 : i32, i32
  }
  func.func @transform_5(%arg0: i32) -> (i32, i32) {
    %c0_i32 = arith.constant 0 : i32
    %c0_i32_0 = arith.constant 0 : i32
    %c0_i32_1 = arith.constant 0 : i32
    return %c0_i32, %c0_i32_0 : i32, i32
  }
  func.func @transform_6(%arg0: i32) -> (i32, i32) {
    %c0_i32 = arith.constant 0 : i32
    %c0_i32_0 = arith.constant 0 : i32
    %c0_i32_1 = arith.constant 0 : i32
    return %c0_i32, %c0_i32_0 : i32, i32
  }
  func.func @transform_7(%arg0: i32) -> (i32, i32) {
    %c0_i32 = arith.constant 0 : i32
    %c0_i32_0 = arith.constant 0 : i32
    %c0_i32_1 = arith.constant 0 : i32
    return %c0_i32, %c0_i32_0 : i32, i32
  }
  func.func @transform_8(%arg0: i32) -> (i32, i32) {
    %c0_i32 = arith.constant 0 : i32
    %c0_i32_0 = arith.constant 0 : i32
    %c0_i32_1 = arith.constant 0 : i32
    return %c0_i32, %c0_i32_0 : i32, i32
  }
  func.func @transform_9(%arg0: i32) -> (i32, i32) {
    %c0_i32 = arith.constant 0 : i32
    %c0_i32_0 = arith.constant 0 : i32
    return %arg0, %c0_i32 : i32, i32
  }
}

</mosaic_0001>

<bundles_post_ra>
// kernel: nn_policy_forward_packed.1
= control target key start
LH: loop header
LB: loop body
LE: loop exit
PB: predicated region body
PF: predicated region fallthrough
CT: control target
= control target key end

     0   :  { %v18902_v0 = vmov 0   ;;  %vm5189_vm0 = vcmask 1043456   ;;  %s13812_s24 = smov 64   ;;  %vm5394_vm1 = vcmask 523264   ;;  %vm8319_vm2 = vcmask 261120   ;;  %s18892_s1 = inlined_call_operand.vmem [shape: bf16[1024,64], index: 1, kind: input, shape index: {}]   ;;  %s18893_s0 = inlined_call_operand.vmem [shape: bf16[1056,256], index: 0, kind: input, shape index: {}]   ;;  %s18894_s3 = inlined_call_operand.vmem [shape: bf16[1280,288], index: 3, kind: input, shape index: {}]   ;;  %s18895_s2 = inlined_call_operand.vmem [shape: f32[1,64], index: 2, kind: input, shape index: {}]   ;;  %s18896_s4 = inlined_call_operand.vmem [shape: f32[1,288], index: 4, kind: input, shape index: {}]   ;;  %s18897_s5 = inlined_call_operand.vmem [shape: bf16[2592,256], index: 5, kind: input, shape index: {}]   ;;  %s18898_s7 = inlined_call_operand.vmem [shape: bf16[256,128], index: 7, kind: input, shape index: {}]   ;;  %s18899_s6 = inlined_call_operand.vmem [shape: f32[1,256], index: 6, kind: input, shape index: {}]   ;;  %s18900_s8 = inlined_call_operand.vmem [shape: f32[1,128], index: 8, kind: input, shape index: {}]   ;;  %s18901_s9 = inlined_call_operand.vmem [shape: f32[8,128], index: 9, kind: output, shape index: {}]  }
   0x1   :  { %864 = vmatprep.subr.bf16.mxu0 %v18902_v0  ;;  %1686 = vmatprep.subr.bf16.mxu1 %v18902_v0  ;;  %v12462_v1 = vld [vmem:[%s18892_s1 + $0x80] sm:$0xff]   ;;  %v12464_v3 = vld [vmem:[%s18892_s1 + $0x88] sm:$0xff]   ;;  %v12466_v5 = vld [vmem:[%s18892_s1 + $0x90] sm:$0xff]  }
   0x2   :  { %v12463_v2 = vld [vmem:[%s18892_s1] sm:$0xff]   ;;  %865 = vmatpush1.bf16.msra.mxu0 %v12462_v1  ;;  %v12465_v4 = vld [vmem:[%s18892_s1 + $0x8] sm:$0xff]   ;;  %v12467_v6 = vld [vmem:[%s18892_s1 + $0x10] sm:$0xff]  }
   0x3   :  { %1687 = vmatpush1.bf16.msra.mxu1 %v12463_v2  ;;  %866 = vmatprep.subr.bf16.mxu0 %v18902_v0  ;;  %v12468_v7 = vld [vmem:[%s18892_s1 + $0x98] sm:$0xff]   ;;  %v12470_v9 = vld [vmem:[%s18892_s1 + $0xa0] sm:$0xff]   ;;  %v12472_v11 = vld [vmem:[%s18892_s1 + $0xa8] sm:$0xff]  }
   0x4   :  { %1688 = vmatprep.subr.bf16.mxu1 %v18902_v0  ;;  %v12469_v8 = vld [vmem:[%s18892_s1 + $0x18] sm:$0xff]   ;;  %v12471_v10 = vld [vmem:[%s18892_s1 + $0x20] sm:$0xff]   ;;  %v12473_v12 = vld [vmem:[%s18892_s1 + $0x28] sm:$0xff]  }
   0x5   :  { %v12474_v13 = vld [vmem:[%s18892_s1 + $0xb0] sm:$0xff]   ;;  %v12476_v15 = vld [vmem:[%s18892_s1 + $0xb8] sm:$0xff]   ;;  %v12478_v17 = vld [vmem:[%s18892_s1 + $0xc0] sm:$0xff]  }
   0x6   :  { %867 = vmatpush1.bf16.msra.mxu0 %v12464_v3  ;;  %v12475_v14 = vld [vmem:[%s18892_s1 + $0x30] sm:$0xff]   ;;  %v12477_v16 = vld [vmem:[%s18892_s1 + $0x38] sm:$0xff]   ;;  %v12479_v18 = vld [vmem:[%s18892_s1 + $0x40] sm:$0xff]  }
   0x7   :  { %1689 = vmatpush1.bf16.msra.mxu1 %v12465_v4  ;;  %868 = vmatprep.subr.bf16.mxu0 %v18902_v0  ;;  %v13938_v19 = vld [vmem:[%s18893_s0 + $0x58] sm:$0xff]  ;;  %v13943_v20 = vld [vmem:[%s18893_s0 + $0x60] sm:$0xff]  ;;  %v12480_v23 = vld [vmem:[%s18892_s1 + $0xc8] sm:$0xff]  }
   0x8   :  { %1690 = vmatprep.subr.bf16.mxu1 %v18902_v0  ;;  %v11014_v21 = vcombine.high %v13938_v19, %v13943_v20  ;;  %v12497_v22 = vld [vmem:[%s18893_s0 + $0x4] ss:$8 sps:$4 sm:$0xff]   ;;  %v12482_v25 = vld [vmem:[%s18892_s1 + $0xd0] sm:$0xff]   ;;  %v12484_v27 = vld [vmem:[%s18892_s1 + $0xd8] sm:$0xff]   ;;  %v11013_v41 = vcombine.low %v13938_v19, %v13943_v20 }
   0x9   :  { %v12481_v24 = vld [vmem:[%s18892_s1 + $0x48] sm:$0xff]   ;;  %1718 = vmatprep.mubr.bf16.mxu1 %v12497_v22  ;;  %v12483_v26 = vld [vmem:[%s18892_s1 + $0x50] sm:$0xff]   ;;  %v12485_v28 = vld [vmem:[%s18892_s1 + $0x58] sm:$0xff]  }
   0xa   :  { %869 = vmatpush1.bf16.msra.mxu0 %v12466_v5  ;;  %896 = vmatprep.mubr.bf16.mxu0 %v11014_v21  ;;  %v12486_v29 = vld [vmem:[%s18892_s1 + $0xe0] sm:$0xff]   ;;  %v12488_v31 = vld [vmem:[%s18892_s1 + $0xe8] sm:$0xff]   ;;  %v12490_v33 = vld [vmem:[%s18892_s1 + $0xf0] sm:$0xff]  }
   0xb   :  { %1691 = vmatpush1.bf16.msra.mxu1 %v12467_v6  ;;  %870 = vmatprep.subr.bf16.mxu0 %v18902_v0  ;;  %v12487_v30 = vld [vmem:[%s18892_s1 + $0x60] sm:$0xff]   ;;  %v12489_v32 = vld [vmem:[%s18892_s1 + $0x68] sm:$0xff]   ;;  %v12491_v34 = vld [vmem:[%s18892_s1 + $0x70] sm:$0xff]  }
   0xc   :  { %1692 = vmatprep.subr.bf16.mxu1 %v18902_v0  ;;  %v12492_v35 = vld [vmem:[%s18892_s1 + $0xf8] sm:$0xff]   ;;  %v14008_v37 = vld [vmem:[%s18893_s0 + $0x68] sm:$0xff]  ;;  %v12499_v39 = vld [vmem:[%s18892_s1 + $0x100] sm:$0xff]  }
   0xd   :  { %v12493_v36 = vld [vmem:[%s18892_s1 + $0x78] sm:$0xff]   ;;  %v12495_v38 = vld [vmem:[%s18893_s0] ss:$8 sps:$4 sm:$0xff]   ;;  %v14020_v40 = vld [vmem:[%s18893_s0 + $0x70] sm:$0xff] }
   0xe   :  { %871 = vmatpush1.bf16.msra.mxu0 %v12468_v7  ;;  %v12500_v42 = vld [vmem:[%s18892_s1 + $0x180] sm:$0xff]   ;;  %v12502_v43 = vld [vmem:[%s18893_s0 + $0x14] ss:$8 sps:$4 sm:$0xff]   ;;  %v11016_v44 = vcombine.high %v14008_v37, %v14020_v40  ;;  %v12516_v47 = vld [vmem:[%s18892_s1 + $0x108] sm:$0xff]   ;;  %v11015_v50 = vcombine.low %v14008_v37, %v14020_v40 }
   0xf   :  { %1693 = vmatpush1.bf16.msra.mxu1 %v12469_v8  ;;  %872 = vmatprep.subr.bf16.mxu0 %v18902_v0  ;;  %v14037_v45 = vld [vmem:[%s18893_s0 + $0x78] sm:$0xff]  ;;  %v14042_v46 = vld [vmem:[%s18893_s0 + $0x80] sm:$0xff]  ;;  %v12520_v48 = vld [vmem:[%s18892_s1 + $0x188] sm:$0xff]  }
  0x10   :  { %1694 = vmatprep.subr.bf16.mxu1 %v18902_v0  ;;  %v12505_v49 = vld [vmem:[%s18893_s0 + $0x10] ss:$8 sps:$4 sm:$0xff]   ;;  %v12507_v51 = vld [vmem:[%s18893_s0 + $0x24] ss:$8 sps:$4 sm:$0xff]   ;;  %v11018_v53 = vcombine.high %v14037_v45, %v14042_v46  ;;  %v12510_v59 = vld [vmem:[%s18893_s0 + $0x20] ss:$8 sps:$4 sm:$0xff]   ;;  %v11017_v60 = vcombine.low %v14037_v45, %v14042_v46 }
  0x11   :  { %v12535_v52 = vld [vmem:[%s18892_s1 + $0x110] sm:$0xff]   ;;  %v14073_v55 = vld [vmem:[%s18893_s0 + $0x88] sm:$0xff]  ;;  %v12549_v57 = vld [vmem:[%s18892_s1 + $0x118] sm:$0xff]  }
  0x12   :  { %873 = vmatpush1.bf16.msra.mxu0 %v12470_v9  ;;  %v12536_v54 = vld [vmem:[%s18892_s1 + $0x190] sm:$0xff]   ;;  %v12550_v58 = vld [vmem:[%s18892_s1 + $0x198] sm:$0xff]   ;;  %v12565_v62 = vld [vmem:[%s18892_s1 + $0x120] sm:$0xff]  }
  0x13   :  { %1695 = vmatpush1.bf16.msra.mxu1 %v12471_v10  ;;  %874 = vmatprep.subr.bf16.mxu0 %v18902_v0  ;;  %v14078_v56 = vld [vmem:[%s18893_s0 + $0x90] sm:$0xff]  ;;  %v12568_v1 = vld [vmem:[%s18892_s1 + $0x1a0] sm:$0xff]   ;;  %v14108_v2 = vld [vmem:[%s18893_s0 + $0x98] sm:$0xff] }
  0x14   :  { %1696 = vmatprep.subr.bf16.mxu1 %v18902_v0  ;;  %v12512_v61 = vld [vmem:[%s18893_s0 + $0x34] ss:$8 sps:$4 sm:$0xff]   ;;  %v11020_v63 = vcombine.high %v14073_v55, %v14078_v56  ;;  %v14113_v3 = vld [vmem:[%s18893_s0 + $0xa0] sm:$0xff]  ;;  %v12581_v4 = vld [vmem:[%s18892_s1 + $0x128] sm:$0xff]   ;;  %v11019_v7 = vcombine.low %v14073_v55, %v14078_v56 }
  0x15   :  { %v12582_v5 = vld [vmem:[%s18892_s1 + $0x1a8] sm:$0xff]   ;;  %v12515_v6 = vld [vmem:[%s18893_s0 + $0x30] ss:$8 sps:$4 sm:$0xff]   ;;  %v11022_v8 = vcombine.high %v14108_v2, %v14113_v3  ;;  %v14168_v21 = vld [vmem:[%s18893_s0 + $0xc0] sm:$0xff] }
  0x16   :  { %875 = vmatpush1.bf16.msra.mxu0 %v12472_v11  ;;  %v12518_v9 = vld [vmem:[%s18893_s0 + $0x44] ss:$8 sps:$4 sm:$0xff]   ;;  %v14144_v11 = vld [vmem:[%s18893_s0 + $0xb0] sm:$0xff] }
  0x17   :  { %1697 = vmatpush1.bf16.msra.mxu1 %v12473_v12  ;;  %876 = vmatprep.subr.bf16.mxu0 %v18902_v0  ;;  %v14139_v10 = vld [vmem:[%s18893_s0 + $0xa8] sm:$0xff]  ;;  %v43_v12 = vld [vmem:[%s18893_s0 + $0x50] sm:$0xff] }
  0x18   :  { %1698 = vmatprep.subr.bf16.mxu1 %v18902_v0  ;;  %v11023_v22 = vcombine.low %v14139_v10, %v14144_v11 }
  0x1a   :  { %877 = vmatpush1.bf16.msra.mxu0 %v12474_v13  ;;  %v11021_v13 = vcombine.low %v14108_v2, %v14113_v3 }
  0x1b   :  { %1699 = vmatpush1.bf16.msra.mxu1 %v12475_v14  ;;  %878 = vmatprep.subr.bf16.mxu0 %v18902_v0  ;;  %v12522_v14 = vld [vmem:[%s18893_s0 + $0x40] ss:$8 sps:$4 sm:$0xff]  }
  0x1c   :  { %1700 = vmatprep.subr.bf16.mxu1 %v18902_v0 }
  0x1e   :  { %879 = vmatpush1.bf16.msra.mxu0 %v12476_v15  ;;  %v11024_v15 = vcombine.high %v14139_v10, %v14144_v11 }
  0x1f   :  { %1701 = vmatpush1.bf16.msra.mxu1 %v12477_v16  ;;  %880 = vmatprep.subr.bf16.mxu0 %v18902_v0  ;;  %v11150_v16 = vcombine.high %v43_v12, %v13938_v19 }
  0x20   :  { %1702 = vmatprep.subr.bf16.mxu1 %v18902_v0 }
  0x22   :  { %881 = vmatpush1.bf16.msra.mxu0 %v12478_v17  ;;  %v12595_v17 = vld [vmem:[%s18892_s1 + $0x130] sm:$0xff]  }
  0x23   :  { %1703 = vmatpush1.bf16.msra.mxu1 %v12479_v18  ;;  %882 = vmatprep.subr.bf16.mxu0 %v18902_v0  ;;  %v14163_v18 = vld [vmem:[%s18893_s0 + $0xb8] sm:$0xff] }
  0x24   :  { %1704 = vmatprep.subr.bf16.mxu1 %v18902_v0 }
  0x26   :  { %883 = vmatpush1.bf16.msra.mxu0 %v12480_v23  ;;  %v11149_v23 = vcombine.low %v43_v12, %v13938_v19  ;;  %v14189_v19 = vld [vmem:[%s18893_s0 + $0xd0] sm:$0xff] }
  0x27   :  { %1705 = vmatpush1.bf16.msra.mxu1 %v12481_v24  ;;  %884 = vmatprep.subr.bf16.mxu0 %v18902_v0  ;;  %v11026_v24 = vcombine.high %v14163_v18, %v14168_v21 }
  0x28   :  { %1706 = vmatprep.subr.bf16.mxu1 %v18902_v0 }
  0x2a   :  { %885 = vmatpush1.bf16.msra.mxu0 %v12482_v25  ;;  %v11152_v25 = vcombine.high %v13943_v20, %v14008_v37 }
  0x2b   :  { %1707 = vmatpush1.bf16.msra.mxu1 %v12483_v26  ;;  %886 = vmatprep.subr.bf16.mxu0 %v18902_v0  ;;  %v12600_v26 = vld [vmem:[%s18892_s1 + $0x1b0] sm:$0xff]  }
  0x2c   :  { %1708 = vmatprep.subr.bf16.mxu1 %v18902_v0 }
  0x2e   :  { %887 = vmatpush1.bf16.msra.mxu0 %v12484_v27  ;;  %v14184_v27 = vld [vmem:[%s18893_s0 + $0xc8] sm:$0xff] }
  0x2f   :  { %1709 = vmatpush1.bf16.msra.mxu1 %v12485_v28  ;;  %888 = vmatprep.subr.bf16.mxu0 %v18902_v0  ;;  %v11025_v28 = vcombine.low %v14163_v18, %v14168_v21 }
  0x30   :  { %1710 = vmatprep.subr.bf16.mxu1 %v18902_v0 }
  0x32   :  { %889 = vmatpush1.bf16.msra.mxu0 %v12486_v29  ;;  %v11151_v29 = vcombine.low %v13943_v20, %v14008_v37  ;;  %v11027_v20 = vcombine.low %v14184_v27, %v14189_v19  ;;  %v14221_v37 = vld [vmem:[%s18893_s0 + $0xe8] sm:$0xff] }
  0x33   :  { %1711 = vmatpush1.bf16.msra.mxu1 %v12487_v30  ;;  %890 = vmatprep.subr.bf16.mxu0 %v18902_v0  ;;  %v11028_v30 = vcombine.high %v14184_v27, %v14189_v19 }
  0x34   :  { %1712 = vmatprep.subr.bf16.mxu1 %v18902_v0 }
  0x36   :  { %891 = vmatpush1.bf16.msra.mxu0 %v12488_v31  ;;  %v11154_v31 = vcombine.high %v14020_v40, %v14037_v45 }
  0x37   :  { %1713 = vmatpush1.bf16.msra.mxu1 %v12489_v32  ;;  %892 = vmatprep.subr.bf16.mxu0 %v18902_v0  ;;  %v14203_v32 = vld [vmem:[%s18893_s0 + $0xd8] sm:$0xff] }
  0x38   :  { %1714 = vmatprep.subr.bf16.mxu1 %v18902_v0 }
  0x3a   :  { %893 = vmatpush1.bf16.msra.mxu0 %v12490_v33  ;;  %v14208_v33 = vld [vmem:[%s18893_s0 + $0xe0] sm:$0xff] }
  0x3b   :  { %1715 = vmatpush1.bf16.msra.mxu1 %v12491_v34  ;;  %894 = vmatprep.subr.bf16.mxu0 %v18902_v0  ;;  %v11153_v34 = vcombine.low %v14020_v40, %v14037_v45  ;;  %v11155_v40 = vcombine.low %v14042_v46, %v14073_v55  ;;  %v14245_v45 = vld [vmem:[%s18893_s0 + $0xf8] sm:$0xff] }
  0x3c   :  { %1716 = vmatprep.subr.bf16.mxu1 %v18902_v0 }
  0x3e   :  { %895 = vmatpush1.bf16.msra.mxu0 %v12492_v35  ;;  %v11030_v35 = vcombine.high %v14203_v32, %v14208_v33 }
  0x3f   :  { %1717 = vmatpush1.bf16.msra.mxu1 %v12493_v36  ;;  %2947 = vmatprep.subr.bf16.mxu0 %v18902_v0  ;;  %v11156_v36 = vcombine.high %v14042_v46, %v14073_v55  ;;  %v14250_v46 = vld [vmem:[%s18893_s0 + $0x100] sm:$0xff] }
  0x40   :  { %4318 = vmatprep.subr.bf16.mxu1 %v18902_v0 }
  0x41   :  { %897 = vmatmul.mubr.bf16.vlgmr.msra.gmra.mrb[0].mxu0 %v11013_v41 }
  0x42   :  { %1719 = vmatmul.mubr.bf16.vlgmr.msra.gmra.mrb[0].mxu1 %v12495_v38  ;;  %2948 = vmatpush1.bf16.msra.mxu0 %v12499_v39  ;;  %v14226_v38 = vld [vmem:[%s18893_s0 + $0xf0] sm:$0xff]  ;;  %v11029_v39 = vcombine.low %v14203_v32, %v14208_v33 }
  0x43   :  { %4319 = vmatpush1.bf16.msra.mxu1 %v12500_v42  ;;  %904 = vmatprep.mubr.bf16.mxu0 %v11016_v44  ;;  %v11032_v41 = vcombine.high %v14221_v37, %v14226_v38  ;;  %v11158_v42 = vcombine.high %v14078_v56, %v14108_v2  ;;  %v12614_v44 = vld [vmem:[%s18892_s1 + $0x1b8] sm:$0xff]  }
  0x44   :  { %1726 = vmatprep.mubr.bf16.mxu1 %v12502_v43  ;;  %2949 = vmatprep.subr.bf16.mxu0 %v18902_v0  ;;  %v12613_v43 = vld [vmem:[%s18892_s1 + $0x138] sm:$0xff]  }
  0x45   :  { %4320 = vmatprep.subr.bf16.mxu1 %v18902_v0 }
  0x46   :  { %2950 = vmatpush1.bf16.msra.mxu0 %v12516_v47  ;;  %v11031_v47 = vcombine.low %v14221_v37, %v14226_v38 }
  0x47   :  { %4321 = vmatpush1.bf16.msra.mxu1 %v12520_v48  ;;  %2951 = vmatprep.subr.bf16.mxu0 %v18902_v0  ;;  %v11157_v48 = vcombine.low %v14078_v56, %v14108_v2  ;;  %v11162_v56 = vcombine.high %v14144_v11, %v14163_v18 }
  0x48   :  { %4322 = vmatprep.subr.bf16.mxu1 %v18902_v0 }
  0x49   :  { %905 = vmatmul.mubr.bf16.gmra.mrb[4].mxu0 %v11015_v50  ;;  %v11160_v50 = vcombine.high %v14113_v3, %v14139_v10 }
  0x4a   :  { %1727 = vmatmul.mubr.bf16.gmra.mrb[4].mxu1 %v12505_v49  ;;  %912 = vmatprep.mubr.bf16.mxu0 %v11018_v53  ;;  %v11034_v49 = vcombine.high %v14245_v45, %v14250_v46  ;;  %v11033_v53 = vcombine.low %v14245_v45, %v14250_v46 }
  0x4b   :  { %1734 = vmatprep.mubr.bf16.mxu1 %v12507_v51  ;;  %2952 = vmatpush1.bf16.msra.mxu0 %v12535_v52  ;;  %v14265_v51 = vld [vmem:[%s18893_s0 + $0x108] sm:$0xff]  ;;  %v14270_v52 = vld [vmem:[%s18893_s0 + $0x110] sm:$0xff] }
  0x4c   :  { %4323 = vmatpush1.bf16.msra.mxu1 %v12536_v54  ;;  %2953 = vmatprep.subr.bf16.mxu0 %v18902_v0  ;;  %v11159_v54 = vcombine.low %v14113_v3, %v14139_v10  ;;  %v11036_v55 = vcombine.high %v14265_v51, %v14270_v52  ;;  %v11163_v3 = vcombine.low %v14168_v21, %v14184_v27 }
  0x4d   :  { %4324 = vmatprep.subr.bf16.mxu1 %v18902_v0 }
  0x4f   :  { %2954 = vmatpush1.bf16.msra.mxu0 %v12549_v57  ;;  %v14283_v57 = vld [vmem:[%s18893_s0 + $0x118] sm:$0xff] }
  0x50   :  { %4325 = vmatpush1.bf16.msra.mxu1 %v12550_v58  ;;  %2955 = vmatprep.subr.bf16.mxu0 %v18902_v0  ;;  %v14288_v58 = vld [vmem:[%s18893_s0 + $0x120] sm:$0xff] }
  0x51   :  { %913 = vmatmul.mubr.bf16.gmra.mrb[8].mxu0 %v11017_v60  ;;  %4326 = vmatprep.subr.bf16.mxu1 %v18902_v0  ;;  %v11161_v60 = vcombine.low %v14144_v11, %v14163_v18  ;;  %v11037_v2 = vcombine.low %v14283_v57, %v14288_v58  ;;  %v11165_v11 = vcombine.low %v14189_v19, %v14203_v32 }
  0x52   :  { %1735 = vmatmul.mubr.bf16.gmra.mrb[8].mxu1 %v12510_v59  ;;  %920 = vmatprep.mubr.bf16.mxu0 %v11020_v63  ;;  %v11035_v59 = vcombine.low %v14265_v51, %v14270_v52  ;;  %v14301_v63 = vld [vmem:[%s18893_s0 + $0x128] sm:$0xff] }
  0x53   :  { %1742 = vmatprep.mubr.bf16.mxu1 %v12512_v61  ;;  %2956 = vmatpush1.bf16.msra.mxu0 %v12565_v62  ;;  %v11038_v61 = vcombine.high %v14283_v57, %v14288_v58  ;;  %v11164_v62 = vcombine.high %v14168_v21, %v14184_v27  ;;  %v11170_v21 = vcombine.high %v14226_v38, %v14245_v45 }
  0x54   :  { %4327 = vmatpush1.bf16.msra.mxu1 %v12568_v1  ;;  %2957 = vmatprep.subr.bf16.mxu0 %v18902_v0  ;;  %v14306_v1 = vld [vmem:[%s18893_s0 + $0x130] sm:$0xff]  ;;  %v11172_v27 = vcombine.high %v14250_v46, %v14265_v51 }
  0x55   :  { %4328 = vmatprep.subr.bf16.mxu1 %v18902_v0  ;;  %v11039_v10 = vcombine.low %v14301_v63, %v14306_v1 }
  0x57   :  { %2958 = vmatpush1.bf16.msra.mxu0 %v12581_v4  ;;  %v11040_v4 = vcombine.high %v14301_v63, %v14306_v1 }
  0x58   :  { %4329 = vmatpush1.bf16.msra.mxu1 %v12582_v5  ;;  %2959 = vmatprep.subr.bf16.mxu0 %v18902_v0  ;;  %v11166_v5 = vcombine.high %v14189_v19, %v14203_v32  ;;  %v12645_v19 = vld [vmem:[%s18892_s1 + $0x148] sm:$0xff]   ;;  %v11171_v32 = vcombine.low %v14250_v46, %v14265_v51  ;;  %v14443_v46 = vld [vmem:[%s18893_s0 + $0x198] sm:$0xff]  ;;  %v12659_v51 = vld [vmem:[%s18892_s1 + $0x150] sm:$0xff]  }
  0x59   :  { %921 = vmatmul.mubr.bf16.gmra.mrb[12].mxu0 %v11019_v7  ;;  %4330 = vmatprep.subr.bf16.mxu1 %v18902_v0  ;;  %v12630_v7 = vld [vmem:[%s18892_s1 + $0x1c0] sm:$0xff]  }
  0x5a   :  { %1743 = vmatmul.mubr.bf16.gmra.mrb[12].mxu1 %v12515_v6  ;;  %928 = vmatprep.mubr.bf16.mxu0 %v11022_v8  ;;  %v12627_v6 = vld [vmem:[%s18892_s1 + $0x140] sm:$0xff]   ;;  %v14325_v8 = vld [vmem:[%s18893_s0 + $0x138] sm:$0xff] }
  0x5b   :  { %1750 = vmatprep.mubr.bf16.mxu1 %v12518_v9  ;;  %2960 = vmatpush1.bf16.msra.mxu0 %v12595_v17  ;;  %v14330_v9 = vld [vmem:[%s18893_s0 + $0x140] sm:$0xff]  ;;  %v11167_v17 = vcombine.low %v14208_v33, %v14221_v37 }
  0x5c   :  { %2961 = vmatprep.subr.bf16.mxu0 %v18902_v0  ;;  %4331 = vmatpush1.bf16.msra.mxu1 %v12600_v26  ;;  %v11042_v12 = vcombine.high %v14325_v8, %v14330_v9 }
  0x5d   :  { %4332 = vmatprep.subr.bf16.mxu1 %v18902_v0 }
  0x5f   :  { %2962 = vmatpush1.bf16.msra.mxu0 %v12613_v43  ;;  %v11175_v43 = vcombine.low %v14288_v58, %v14301_v63 }
  0x60   :  { %4333 = vmatpush1.bf16.msra.mxu1 %v12614_v44  ;;  %2963 = vmatprep.subr.bf16.mxu0 %v18902_v0 }
  0x61   :  { %929 = vmatmul.mubr.bf16.gmra.mrb[16].mxu0 %v11021_v13  ;;  %4334 = vmatprep.subr.bf16.mxu1 %v18902_v0  ;;  %v11168_v13 = vcombine.high %v14208_v33, %v14221_v37  ;;  %v11173_v37 = vcombine.low %v14270_v52, %v14283_v57 }
  0x62   :  { %1751 = vmatmul.mubr.bf16.gmra.mrb[16].mxu1 %v12522_v14  ;;  %936 = vmatprep.mubr.bf16.mxu0 %v11024_v15  ;;  %v14345_v14 = vld [vmem:[%s18893_s0 + $0x148] sm:$0xff]  ;;  %v14350_v15 = vld [vmem:[%s18893_s0 + $0x150] sm:$0xff] }
  0x63   :  { %1758 = vmatprep.mubr.bf16.mxu1 %v11150_v16  ;;  %2964 = vmatpush1.bf16.msra.mxu0 %v12627_v6  ;;  %v11041_v16 = vcombine.low %v14325_v8, %v14330_v9  ;;  %v11044_v18 = vcombine.high %v14345_v14, %v14350_v15 }
  0x64   :  { %4335 = vmatpush1.bf16.msra.mxu1 %v12630_v7  ;;  %2965 = vmatprep.subr.bf16.mxu0 %v18902_v0 }
  0x65   :  { %4336 = vmatprep.subr.bf16.mxu1 %v18902_v0 }
  0x67   :  { %2966 = vmatpush1.bf16.msra.mxu0 %v12645_v19 }
  0x68   :  { %2967 = vmatprep.subr.bf16.mxu0 %v18902_v0 }
  0x69   :  { %937 = vmatmul.mubr.bf16.gmra.mrb[20].mxu0 %v11023_v22  ;;  %v14363_v22 = vld [vmem:[%s18893_s0 + $0x158] sm:$0xff] }
  0x6a   :  { %1759 = vmatmul.mubr.bf16.gmra.mrb[20].mxu1 %v11149_v23  ;;  %944 = vmatprep.mubr.bf16.mxu0 %v11026_v24  ;;  %v14368_v23 = vld [vmem:[%s18893_s0 + $0x160] sm:$0xff]  ;;  %v11043_v24 = vcombine.low %v14345_v14, %v14350_v15 }
  0x6b   :  { %1766 = vmatprep.mubr.bf16.mxu1 %v11152_v25  ;;  %v11169_v25 = vcombine.low %v14226_v38, %v14245_v45  ;;  %v11046_v26 = vcombine.high %v14363_v22, %v14368_v23  ;;  %v11178_v45 = vcombine.high %v14306_v1, %v14325_v8  ;;  %2968 = vmatpush1.bf16.msra.mxu0 %v12659_v51 }
  0x6c   :  { %2969 = vmatprep.subr.bf16.mxu0 %v18902_v0 }
  0x71   :  { %945 = vmatmul.mubr.bf16.gmra.mrb[24].mxu0 %v11025_v28  ;;  %v14384_v28 = vld [vmem:[%s18893_s0 + $0x168] sm:$0xff] }
  0x72   :  { %1767 = vmatmul.mubr.bf16.gmra.mrb[24].mxu1 %v11151_v29  ;;  %952 = vmatprep.mubr.bf16.mxu0 %v11028_v30  ;;  %v14389_v29 = vld [vmem:[%s18893_s0 + $0x170] sm:$0xff]  ;;  %v11045_v30 = vcombine.low %v14363_v22, %v14368_v23  ;;  %v11183_v6 = vcombine.low %v14368_v23, %v14384_v28 }
  0x73   :  { %1774 = vmatprep.mubr.bf16.mxu1 %v11154_v31  ;;  %v12646_v31 = vld [vmem:[%s18892_s1 + $0x1c8] sm:$0xff]   ;;  %v11048_v33 = vcombine.high %v14384_v28, %v14389_v29 }
  0x74   :  { %4337 = vmatpush1.bf16.msra.mxu1 %v12646_v31  ;;  %v14590_v31 = vld [vmem:[%s18893_s0 + $0x210] sm:$0xff] }
  0x75   :  { %4338 = vmatprep.subr.bf16.mxu1 %v18902_v0 }
  0x79   :  { %953 = vmatmul.mubr.bf16.gmra.mrb[28].mxu0 %v11027_v20  ;;  %v11174_v20 = vcombine.high %v14270_v52, %v14283_v57  ;;  %v11180_v52 = vcombine.high %v14330_v9, %v14345_v14  ;;  %v11179_v57 = vcombine.low %v14330_v9, %v14345_v14  ;;  %v12677_v9 = vld [vmem:[%s18892_s1 + $0x158] sm:$0xff]  }
  0x7a   :  { %1775 = vmatmul.mubr.bf16.gmra.mrb[28].mxu1 %v11153_v34  ;;  %960 = vmatprep.mubr.bf16.mxu0 %v11030_v35  ;;  %v14407_v34 = vld [vmem:[%s18893_s0 + $0x178] sm:$0xff]  ;;  %v14412_v35 = vld [vmem:[%s18893_s0 + $0x180] sm:$0xff] }
  0x7b   :  { %1782 = vmatprep.mubr.bf16.mxu1 %v11156_v36  ;;  %v11047_v36 = vcombine.low %v14384_v28, %v14389_v29  ;;  %v11050_v38 = vcombine.high %v14407_v34, %v14412_v35  ;;  %2970 = vmatpush1.bf16.msra.mxu0 %v12677_v9  ;;  %v11185_v14 = vcombine.low %v14389_v29, %v14407_v34  ;;  %v14655_v9 = vld [vmem:[%s18893_s0 + $0x238] sm:$0xff] }
  0x7c   :  { %2971 = vmatprep.subr.bf16.mxu0 %v18902_v0 }
  0x81   :  { %961 = vmatmul.mubr.bf16.gmra.mrb[32].mxu0 %v11029_v39  ;;  %v11176_v39 = vcombine.high %v14288_v58, %v14301_v63  ;;  %v11181_v63 = vcombine.low %v14350_v15, %v14363_v22 }
  0x82   :  { %1783 = vmatmul.mubr.bf16.gmra.mrb[32].mxu1 %v11155_v40  ;;  %968 = vmatprep.mubr.bf16.mxu0 %v11032_v41  ;;  %v14425_v40 = vld [vmem:[%s18893_s0 + $0x188] sm:$0xff]  ;;  %v14430_v41 = vld [vmem:[%s18893_s0 + $0x190] sm:$0xff] }
  0x83   :  { %1790 = vmatprep.mubr.bf16.mxu1 %v11158_v42  ;;  %v11049_v42 = vcombine.low %v14407_v34, %v14412_v35  ;;  %v11052_v44 = vcombine.high %v14425_v40, %v14430_v41  ;;  %v11189_v19 = vcombine.low %v14430_v41, %v14443_v46 }
  0x89   :  { %969 = vmatmul.mubr.bf16.gmra.mrb[36].mxu0 %v11031_v47  ;;  %v14448_v47 = vld [vmem:[%s18893_s0 + $0x1a0] sm:$0xff] }
  0x8a   :  { %1791 = vmatmul.mubr.bf16.gmra.mrb[36].mxu1 %v11157_v48  ;;  %976 = vmatprep.mubr.bf16.mxu0 %v11034_v49  ;;  %v11051_v48 = vcombine.low %v14425_v40, %v14430_v41  ;;  %v11177_v49 = vcombine.low %v14306_v1, %v14325_v8  ;;  %v11186_v8 = vcombine.high %v14389_v29, %v14407_v34 }
  0x8b   :  { %1798 = vmatprep.mubr.bf16.mxu1 %v11160_v50  ;;  %v11054_v50 = vcombine.high %v14443_v46, %v14448_v47 }
  0x91   :  { %977 = vmatmul.mubr.bf16.gmra.mrb[40].mxu0 %v11033_v53  ;;  %v12660_v53 = vld [vmem:[%s18892_s1 + $0x1d0] sm:$0xff]  }
  0x92   :  { %1799 = vmatmul.mubr.bf16.gmra.mrb[40].mxu1 %v11159_v54  ;;  %984 = vmatprep.mubr.bf16.mxu0 %v11036_v55  ;;  %v14468_v54 = vld [vmem:[%s18893_s0 + $0x1a8] sm:$0xff]  ;;  %v14473_v55 = vld [vmem:[%s18893_s0 + $0x1b0] sm:$0xff] }
  0x93   :  { %1806 = vmatprep.mubr.bf16.mxu1 %v11162_v56  ;;  %4339 = vmatpush1.bf16.msra.mxu1 %v12660_v53  ;;  %v11053_v56 = vcombine.low %v14443_v46, %v14448_v47  ;;  %v11056_v58 = vcombine.high %v14468_v54, %v14473_v55  ;;  %v11192_v29 = vcombine.high %v14448_v47, %v14468_v54  ;;  %v14633_v53 = vld [vmem:[%s18893_s0 + $0x228] sm:$0xff] }
  0x94   :  { %4340 = vmatprep.subr.bf16.mxu1 %v18902_v0 }
  0x99   :  { %985 = vmatmul.mubr.bf16.gmra.mrb[44].mxu0 %v11035_v59  ;;  %v11182_v59 = vcombine.high %v14350_v15, %v14363_v22  ;;  %v11187_v22 = vcombine.low %v14412_v35, %v14425_v40 }
  0x9a   :  { %1807 = vmatmul.mubr.bf16.gmra.mrb[44].mxu1 %v11161_v60  ;;  %992 = vmatprep.mubr.bf16.mxu0 %v11038_v61  ;;  %v14487_v60 = vld [vmem:[%s18893_s0 + $0x1b8] sm:$0xff]  ;;  %v14492_v61 = vld [vmem:[%s18893_s0 + $0x1c0] sm:$0xff] }
  0x9b   :  { %1814 = vmatprep.mubr.bf16.mxu1 %v11164_v62  ;;  %v11055_v62 = vcombine.low %v14468_v54, %v14473_v55  ;;  %v11058_v1 = vcombine.high %v14487_v60, %v14492_v61 }
  0xa1   :  { %993 = vmatmul.mubr.bf16.gmra.mrb[48].mxu0 %v11037_v2  ;;  %v11184_v2 = vcombine.high %v14368_v23, %v14384_v28 }
  0xa2   :  { %1815 = vmatmul.mubr.bf16.gmra.mrb[48].mxu1 %v11163_v3  ;;  %1000 = vmatprep.mubr.bf16.mxu0 %v11040_v4  ;;  %v14505_v3 = vld [vmem:[%s18893_s0 + $0x1c8] sm:$0xff]  ;;  %v14510_v4 = vld [vmem:[%s18893_s0 + $0x1d0] sm:$0xff] }
  0xa3   :  { %1822 = vmatprep.mubr.bf16.mxu1 %v11166_v5  ;;  %v11057_v5 = vcombine.low %v14487_v60, %v14492_v61  ;;  %v11060_v7 = vcombine.high %v14505_v3, %v14510_v4 }
  0xa9   :  { %1001 = vmatmul.mubr.bf16.gmra.mrb[52].mxu0 %v11039_v10  ;;  %v12678_v10 = vld [vmem:[%s18892_s1 + $0x1d8] sm:$0xff]  }
  0xaa   :  { %1823 = vmatmul.mubr.bf16.gmra.mrb[52].mxu1 %v11165_v11  ;;  %1008 = vmatprep.mubr.bf16.mxu0 %v11042_v12  ;;  %v14529_v11 = vld [vmem:[%s18893_s0 + $0x1d8] sm:$0xff]  ;;  %v14534_v12 = vld [vmem:[%s18893_s0 + $0x1e0] sm:$0xff] }
  0xab   :  { %1830 = vmatprep.mubr.bf16.mxu1 %v11168_v13  ;;  %4341 = vmatpush1.bf16.msra.mxu1 %v12678_v10  ;;  %v11059_v13 = vcombine.low %v14505_v3, %v14510_v4  ;;  %v11062_v15 = vcombine.high %v14529_v11, %v14534_v12 }
  0xac   :  { %4342 = vmatprep.subr.bf16.mxu1 %v18902_v0 }
  0xb1   :  { %1009 = vmatmul.mubr.bf16.gmra.mrb[56].mxu0 %v11041_v16  ;;  %v11188_v16 = vcombine.high %v14412_v35, %v14425_v40  ;;  %v11194_v35 = vcombine.high %v14473_v55, %v14487_v60 }
  0xb2   :  { %1831 = vmatmul.mubr.bf16.gmra.mrb[56].mxu1 %v11167_v17  ;;  %1016 = vmatprep.mubr.bf16.mxu0 %v11044_v18  ;;  %v14549_v17 = vld [vmem:[%s18893_s0 + $0x1e8] sm:$0xff]  ;;  %v14554_v18 = vld [vmem:[%s18893_s0 + $0x1f0] sm:$0xff] }
  0xb3   :  { %1838 = vmatprep.mubr.bf16.mxu1 %v11170_v21  ;;  %v11061_v21 = vcombine.low %v14529_v11, %v14534_v12  ;;  %v11064_v23 = vcombine.high %v14549_v17, %v14554_v18 }
  0xb9   :  { %1017 = vmatmul.mubr.bf16.gmra.mrb[60].mxu0 %v11043_v24  ;;  %v11190_v24 = vcombine.high %v14430_v41, %v14443_v46  ;;  %v11193_v46 = vcombine.low %v14473_v55, %v14487_v60 }
  0xba   :  { %1839 = vmatmul.mubr.bf16.gmra.mrb[60].mxu1 %v11169_v25  ;;  %1024 = vmatprep.mubr.bf16.mxu0 %v11046_v26  ;;  %v14567_v25 = vld [vmem:[%s18893_s0 + $0x1f8] sm:$0xff]  ;;  %v14572_v26 = vld [vmem:[%s18893_s0 + $0x200] sm:$0xff] }
  0xbb   :  { %1846 = vmatprep.mubr.bf16.mxu1 %v11172_v27  ;;  %v11063_v27 = vcombine.low %v14549_v17, %v14554_v18  ;;  %v11066_v28 = vcombine.high %v14567_v25, %v14572_v26 }
  0xc1   :  { %1025 = vmatmul.mubr.bf16.gmra.mrb[64].mxu0 %v11045_v30  ;;  %v14585_v30 = vld [vmem:[%s18893_s0 + $0x208] sm:$0xff] }
  0xc2   :  { %1847 = vmatmul.mubr.bf16.gmra.mrb[64].mxu1 %v11171_v32  ;;  %1032 = vmatprep.mubr.bf16.mxu0 %v11048_v33  ;;  %v11065_v32 = vcombine.low %v14567_v25, %v14572_v26  ;;  %v12691_v33 = vld [vmem:[%s18892_s1 + $0x160] sm:$0xff]   ;;  %v11068_v34 = vcombine.high %v14585_v30, %v14590_v31 }
  0xc3   :  { %1854 = vmatprep.mubr.bf16.mxu1 %v11174_v20  ;;  %v11191_v20 = vcombine.low %v14448_v47, %v14468_v54  ;;  %2972 = vmatpush1.bf16.msra.mxu0 %v12691_v33  ;;  %v14638_v54 = vld [vmem:[%s18893_s0 + $0x230] sm:$0xff] }
  0xc4   :  { %2973 = vmatprep.subr.bf16.mxu0 %v18902_v0  ;;  %v14688_v33 = vld [vmem:[%s18893_s0 + $0x250] sm:$0xff] }
  0xc9   :  { %1033 = vmatmul.mubr.bf16.gmra.mrb[68].mxu0 %v11047_v36  ;;  %v12692_v36 = vld [vmem:[%s18892_s1 + $0x1e0] sm:$0xff]  }
  0xca   :  { %1855 = vmatmul.mubr.bf16.gmra.mrb[68].mxu1 %v11173_v37  ;;  %1040 = vmatprep.mubr.bf16.mxu0 %v11050_v38  ;;  %v14610_v37 = vld [vmem:[%s18893_s0 + $0x218] sm:$0xff]  ;;  %v14615_v38 = vld [vmem:[%s18893_s0 + $0x220] sm:$0xff] }
  0xcb   :  { %1862 = vmatprep.mubr.bf16.mxu1 %v11176_v39  ;;  %4343 = vmatpush1.bf16.msra.mxu1 %v12692_v36  ;;  %v11070_v47 = vcombine.high %v14610_v37, %v14615_v38 }
  0xcc   :  { %4344 = vmatprep.subr.bf16.mxu1 %v18902_v0 }
  0xd1   :  { %1041 = vmatmul.mubr.bf16.gmra.mrb[72].mxu0 %v11049_v42  ;;  %v11067_v42 = vcombine.low %v14585_v30, %v14590_v31 }
  0xd2   :  { %1863 = vmatmul.mubr.bf16.gmra.mrb[72].mxu1 %v11175_v43  ;;  %1048 = vmatprep.mubr.bf16.mxu0 %v11052_v44 }
  0xd3   :  { %1870 = vmatprep.mubr.bf16.mxu1 %v11178_v45 }
  0xd9   :  { %1049 = vmatmul.mubr.bf16.gmra.mrb[76].mxu0 %v11051_v48 }
  0xda   :  { %1871 = vmatmul.mubr.bf16.gmra.mrb[76].mxu1 %v11177_v49  ;;  %1056 = vmatprep.mubr.bf16.mxu0 %v11054_v50  ;;  %v11196_v50 = vcombine.high %v14492_v61, %v14505_v3 }
  0xdb   :  { %1878 = vmatprep.mubr.bf16.mxu1 %v11180_v52 }
  0xe1   :  { %1057 = vmatmul.mubr.bf16.gmra.mrb[80].mxu0 %v11053_v56 }
  0xe2   :  { %1879 = vmatmul.mubr.bf16.gmra.mrb[80].mxu1 %v11179_v57  ;;  %1064 = vmatprep.mubr.bf16.mxu0 %v11056_v58  ;;  %v11069_v58 = vcombine.low %v14610_v37, %v14615_v38 }
  0xe3   :  { %1886 = vmatprep.mubr.bf16.mxu1 %v11182_v59 }
  0xe9   :  { %1065 = vmatmul.mubr.bf16.gmra.mrb[84].mxu0 %v11055_v62 }
  0xea   :  { %1887 = vmatmul.mubr.bf16.gmra.mrb[84].mxu1 %v11181_v63  ;;  %1072 = vmatprep.mubr.bf16.mxu0 %v11058_v1  ;;  %v11195_v63 = vcombine.low %v14492_v61, %v14505_v3  ;;  %v11072_v1 = vcombine.high %v14633_v53, %v14638_v54  ;;  %v14660_v61 = vld [vmem:[%s18893_s0 + $0x240] sm:$0xff] }
  0xeb   :  { %1894 = vmatprep.mubr.bf16.mxu1 %v11184_v2  ;;  %v11073_v36 = vcombine.low %v14655_v9, %v14660_v61 }
  0xf1   :  { %1073 = vmatmul.mubr.bf16.gmra.mrb[88].mxu0 %v11057_v5 }
  0xf2   :  { %1895 = vmatmul.mubr.bf16.gmra.mrb[88].mxu1 %v11183_v6  ;;  %1080 = vmatprep.mubr.bf16.mxu0 %v11060_v7  ;;  %v11198_v6 = vcombine.high %v14510_v4, %v14529_v11 }
  0xf3   :  { %1902 = vmatprep.mubr.bf16.mxu1 %v11186_v8 }
  0xf9   :  { %1081 = vmatmul.mubr.bf16.gmra.mrb[92].mxu0 %v11059_v13 }
  0xfa   :  { %1903 = vmatmul.mubr.bf16.gmra.mrb[92].mxu1 %v11185_v14  ;;  %1088 = vmatprep.mubr.bf16.mxu0 %v11062_v15  ;;  %v11071_v14 = vcombine.low %v14633_v53, %v14638_v54 }
  0xfb   :  { %1910 = vmatprep.mubr.bf16.mxu1 %v11188_v16 }
 0x101   :  { %1089 = vmatmul.mubr.bf16.gmra.mrb[96].mxu0 %v11061_v21 }
 0x102   :  { %1911 = vmatmul.mubr.bf16.gmra.mrb[96].mxu1 %v11187_v22  ;;  %1096 = vmatprep.mubr.bf16.mxu0 %v11064_v23  ;;  %v11197_v22 = vcombine.low %v14510_v4, %v14529_v11  ;;  %v11074_v23 = vcombine.high %v14655_v9, %v14660_v61  ;;  %v12710_v4 = vld [vmem:[%s18892_s1 + $0x1e8] sm:$0xff]  }
 0x103   :  { %1918 = vmatprep.mubr.bf16.mxu1 %v11190_v24  ;;  %v14683_v11 = vld [vmem:[%s18893_s0 + $0x248] sm:$0xff]  ;;  %4345 = vmatpush1.bf16.msra.mxu1 %v12710_v4 }
 0x104   :  { %4346 = vmatprep.subr.bf16.mxu1 %v18902_v0 }
 0x109   :  { %1097 = vmatmul.mubr.bf16.gmra.mrb[100].mxu0 %v11063_v27 }
 0x10a   :  { %1919 = vmatmul.mubr.bf16.gmra.mrb[100].mxu1 %v11189_v19  ;;  %1104 = vmatprep.mubr.bf16.mxu0 %v11066_v28  ;;  %v11200_v19 = vcombine.high %v14534_v12, %v14549_v17 }
 0x10b   :  { %1926 = vmatprep.mubr.bf16.mxu1 %v11192_v29 }
 0x111   :  { %1105 = vmatmul.mubr.bf16.gmra.mrb[104].mxu0 %v11065_v32  ;;  %v12707_v32 = vld [vmem:[%s18892_s1 + $0x168] sm:$0xff]  }
 0x112   :  { %1927 = vmatmul.mubr.bf16.gmra.mrb[104].mxu1 %v11191_v20  ;;  %1112 = vmatprep.mubr.bf16.mxu0 %v11068_v34 }
 0x113   :  { %1934 = vmatprep.mubr.bf16.mxu1 %v11194_v35  ;;  %2974 = vmatpush1.bf16.msra.mxu0 %v12707_v32 }
 0x114   :  { %v898_v39 = vpop.f32.mrb[0].mxu0  ;;  %2975 = vmatprep.subr.bf16.mxu0 %v18902_v0 }
 0x115   :  { %v1720_v40 = vpop.f32.mrb[0].mxu1  ;;  %v900_v41 = vpop.f32.mrb[1].mxu0 }
 0x116   :  { %v14620_v43 = vadd.f32 %v1720_v40, %v898_v39  ;;  %v1722_v44 = vpop.f32.mrb[1].mxu1  ;;  %v901_v45 = vpop.f32.mrb[2].mxu0 }
 0x117   :  { %v1723_v48 = vpop.f32.mrb[2].mxu1  ;;  %v903_v49 = vpop.f32.mrb[3].mxu0  ;;  %v11076_v44 = vcombine.high %v14683_v11, %v14688_v33 }
 0x118   :  { %v14628_v51 = vadd.f32 %v1723_v48, %v901_v45  ;;  %v1725_v52 = vpop.f32.mrb[3].mxu1 }
 0x119   :  { %1113 = vmatmul.mubr.bf16.gmra.mrb[108].mxu0 %v11067_v42  ;;  %v11199_v42 = vcombine.low %v14534_v12, %v14549_v17  ;;  %v14712_v12 = vld [vmem:[%s18893_s0 + $0x260] sm:$0xff] }
 0x11a   :  { %1935 = vmatmul.mubr.bf16.gmra.mrb[108].mxu1 %v11193_v46  ;;  %1120 = vmatprep.mubr.bf16.mxu0 %v11070_v47  ;;  %v11202_v47 = vcombine.high %v14554_v18, %v14567_v25 }
 0x11b   :  { %1942 = vmatprep.mubr.bf16.mxu1 %v11196_v50  ;;  %v14707_v50 = vld [vmem:[%s18893_s0 + $0x258] sm:$0xff] }
 0x11c   :  { %v906_v55 = vpop.f32.mrb[4].mxu0 }
 0x11d   :  { %v1728_v56 = vpop.f32.mrb[4].mxu1  ;;  %v908_v57 = vpop.f32.mrb[5].mxu0 }
 0x11e   :  { %v14642_v59 = vadd.f32 %v1728_v56, %v906_v55  ;;  %v1730_v60 = vpop.f32.mrb[5].mxu1  ;;  %v909_v62 = vpop.f32.mrb[6].mxu0  ;;  %v11075_v56 = vcombine.low %v14683_v11, %v14688_v33 }
 0x11f   :  { %v1731_v2 = vpop.f32.mrb[6].mxu1  ;;  %v911_v5 = vpop.f32.mrb[7].mxu0  ;;  %v11201_v60 = vcombine.low %v14554_v18, %v14567_v25  ;;  %v14729_v18 = vld [vmem:[%s18893_s0 + $0x268] sm:$0xff]  ;;  %v14734_v25 = vld [vmem:[%s18893_s0 + $0x270] sm:$0xff] }
 0x120   :  { %v14650_v7 = vadd.f32 %v1731_v2, %v909_v62  ;;  %v1733_v8 = vpop.f32.mrb[7].mxu1  ;;  %v11078_v62 = vcombine.high %v14707_v50, %v14712_v12  ;;  %v11204_v5 = vcombine.high %v14572_v26, %v14585_v30 }
 0x121   :  { %1121 = vmatmul.mubr.bf16.gmra.mrb[112].mxu0 %v11069_v58 }
 0x122   :  { %1943 = vmatmul.mubr.bf16.gmra.mrb[112].mxu1 %v11195_v63  ;;  %1128 = vmatprep.mubr.bf16.mxu0 %v11072_v1 }
 0x123   :  { %1950 = vmatprep.mubr.bf16.mxu1 %v11198_v6 }
 0x124   :  { %v914_v3 = vpop.f32.mrb[8].mxu0 }
 0x125   :  { %v1736_v10 = vpop.f32.mrb[8].mxu1  ;;  %v916_v13 = vpop.f32.mrb[9].mxu0 }
 0x126   :  { %v14664_v15 = vadd.f32 %v1736_v10, %v914_v3  ;;  %v1738_v16 = vpop.f32.mrb[9].mxu1  ;;  %v917_v21 = vpop.f32.mrb[10].mxu0 }
 0x127   :  { %v1739_v24 = vpop.f32.mrb[10].mxu1  ;;  %v919_v27 = vpop.f32.mrb[11].mxu0 }
 0x128   :  { %v14672_v28 = vadd.f32 %v1739_v24, %v917_v21  ;;  %v1741_v29 = vpop.f32.mrb[11].mxu1 }
 0x129   :  { %1129 = vmatmul.mubr.bf16.gmra.mrb[116].mxu0 %v11071_v14  ;;  %v11077_v14 = vcombine.low %v14707_v50, %v14712_v12  ;;  %v11206_v29 = vcombine.high %v14590_v31, %v14610_v37 }
 0x12a   :  { %1951 = vmatmul.mubr.bf16.gmra.mrb[116].mxu1 %v11197_v22  ;;  %1136 = vmatprep.mubr.bf16.mxu0 %v11074_v23  ;;  %v11203_v22 = vcombine.low %v14572_v26, %v14585_v30  ;;  %v11080_v23 = vcombine.high %v14729_v18, %v14734_v25  ;;  %v12723_v26 = vld [vmem:[%s18892_s1 + $0x170] sm:$0xff]   ;;  %v14754_v30 = vld [vmem:[%s18893_s0 + $0x278] sm:$0xff] }
 0x12b   :  { %1958 = vmatprep.mubr.bf16.mxu1 %v11200_v19  ;;  %2976 = vmatpush1.bf16.msra.mxu0 %v12723_v26  ;;  %v11209_v26 = vcombine.low %v14638_v54, %v14655_v9 }
 0x12c   :  { %v922_v20 = vpop.f32.mrb[12].mxu0  ;;  %2977 = vmatprep.subr.bf16.mxu0 %v18902_v0 }
 0x12d   :  { %v1744_v34 = vpop.f32.mrb[12].mxu1  ;;  %v924_v35 = vpop.f32.mrb[13].mxu0 }
 0x12e   :  { %v14694_v39 = vadd.f32 %v1744_v34, %v922_v20  ;;  %v1746_v40 = vpop.f32.mrb[13].mxu1  ;;  %v925_v41 = vpop.f32.mrb[14].mxu0  ;;  %v14759_v20 = vld [vmem:[%s18893_s0 + $0x280] sm:$0xff] }
 0x12f   :  { %v1747_v45 = vpop.f32.mrb[14].mxu1  ;;  %v927_v46 = vpop.f32.mrb[15].mxu0  ;;  %v11079_v40 = vcombine.low %v14729_v18, %v14734_v25 }
 0x130   :  { %v14702_v48 = vadd.f32 %v1747_v45, %v925_v41  ;;  %v1749_v49 = vpop.f32.mrb[15].mxu1  ;;  %v11082_v45 = vcombine.high %v14754_v30, %v14759_v20  ;;  %v12724_v46 = vld [vmem:[%s18892_s1 + $0x1f0] sm:$0xff]  }
 0x131   :  { %1137 = vmatmul.mubr.bf16.gmra.mrb[120].mxu0 %v11073_v36  ;;  %4347 = vmatpush1.bf16.msra.mxu1 %v12724_v46 }
 0x132   :  { %1959 = vmatmul.mubr.bf16.gmra.mrb[120].mxu1 %v11199_v42  ;;  %1144 = vmatprep.mubr.bf16.mxu0 %v11076_v44  ;;  %v11205_v44 = vcombine.low %v14590_v31, %v14610_v37  ;;  %v14781_v31 = vld [vmem:[%s18893_s0 + $0x288] sm:$0xff]  ;;  %v14786_v37 = vld [vmem:[%s18893_s0 + $0x290] sm:$0xff] }
 0x133   :  { %1966 = vmatprep.mubr.bf16.mxu1 %v11202_v47  ;;  %4348 = vmatprep.subr.bf16.mxu1 %v18902_v0 }
 0x134   :  { %v930_v17 = vpop.f32.mrb[16].mxu0 }
 0x135   :  { %v1752_v52 = vpop.f32.mrb[16].mxu1  ;;  %v932_v55 = vpop.f32.mrb[17].mxu0 }
 0x136   :  { %v1754_v57 = vpop.f32.mrb[17].mxu1  ;;  %v933_v58 = vpop.f32.mrb[18].mxu0  ;;  %v14720_v63 = vadd.f32 %v1752_v52, %v930_v17  ;;  %v11208_v52 = vcombine.high %v14615_v38, %v14633_v53 }
 0x137   :  { %v1755_v1 = vpop.f32.mrb[18].mxu1  ;;  %v935_v2 = vpop.f32.mrb[19].mxu0 }
 0x138   :  { %v1757_v6 = vpop.f32.mrb[19].mxu1  ;;  %v14724_v8 = vadd.f32 %v1755_v1, %v933_v58 }
 0x139   :  { %1145 = vmatmul.mubr.bf16.gmra.mrb[124].mxu0 %v11075_v56  ;;  %v11084_v6 = vcombine.high %v14781_v31, %v14786_v37 }
 0x13a   :  { %1967 = vmatmul.mubr.bf16.gmra.mrb[124].mxu1 %v11201_v60  ;;  %1152 = vmatprep.mubr.bf16.mxu0 %v11078_v62  ;;  %v11081_v62 = vcombine.low %v14754_v30, %v14759_v20 }
 0x13b   :  { %1974 = vmatprep.mubr.bf16.mxu1 %v11204_v5  ;;  %v11207_v5 = vcombine.low %v14615_v38, %v14633_v53  ;;  %v14803_v38 = vld [vmem:[%s18893_s0 + $0x298] sm:$0xff]  ;;  %v14808_v53 = vld [vmem:[%s18893_s0 + $0x2a0] sm:$0xff] }
 0x13c   :  { %v938_v3 = vpop.f32.mrb[20].mxu0 }
 0x13d   :  { %v1760_v10 = vpop.f32.mrb[20].mxu1  ;;  %v940_v13 = vpop.f32.mrb[21].mxu0 }
 0x13e   :  { %v1762_v16 = vpop.f32.mrb[21].mxu1  ;;  %v941_v21 = vpop.f32.mrb[22].mxu0  ;;  %v14742_v24 = vadd.f32 %v1760_v10, %v938_v3 }
 0x13f   :  { %v1763_v27 = vpop.f32.mrb[22].mxu1  ;;  %v943_v19 = vpop.f32.mrb[23].mxu0 }
 0x140   :  { %v1765_v32 = vpop.f32.mrb[23].mxu1  ;;  %v14746_v4 = vadd.f32 %v1763_v27, %v941_v21  ;;  %v11083_v19 = vcombine.low %v14781_v31, %v14786_v37 }
 0x141   :  { %1153 = vmatmul.mubr.bf16.gmra.mrb[128].mxu0 %v11077_v14  ;;  %v11210_v14 = vcombine.high %v14638_v54, %v14655_v9  ;;  %v14825_v54 = vld [vmem:[%s18893_s0 + $0x2a8] sm:$0xff]  ;;  %v14830_v9 = vld [vmem:[%s18893_s0 + $0x2b0] sm:$0xff] }
 0x142   :  { %1975 = vmatmul.mubr.bf16.gmra.mrb[128].mxu1 %v11203_v22  ;;  %1160 = vmatprep.mubr.bf16.mxu0 %v11080_v23 }
 0x143   :  { %1982 = vmatprep.mubr.bf16.mxu1 %v11206_v29 }
 0x144   :  { %v946_v34 = vpop.f32.mrb[24].mxu0 }
 0x145   :  { %v1768_v35 = vpop.f32.mrb[24].mxu1  ;;  %v948_v36 = vpop.f32.mrb[25].mxu0 }
 0x146   :  { %v1770_v41 = vpop.f32.mrb[25].mxu1  ;;  %v949_v42 = vpop.f32.mrb[26].mxu0  ;;  %v14771_v47 = vadd.f32 %v1768_v35, %v946_v34  ;;  %v11086_v34 = vcombine.high %v14803_v38, %v14808_v53 }
 0x147   :  { %v1771_v49 = vpop.f32.mrb[26].mxu1  ;;  %v951_v17 = vpop.f32.mrb[27].mxu0  ;;  %v11212_v41 = vcombine.high %v14660_v61, %v14683_v11 }
 0x148   :  { %v1773_v55 = vpop.f32.mrb[27].mxu1  ;;  %v14775_v56 = vadd.f32 %v1771_v49, %v949_v42  ;;  %v11085_v17 = vcombine.low %v14803_v38, %v14808_v53 }
 0x149   :  { %1161 = vmatmul.mubr.bf16.gmra.mrb[132].mxu0 %v11079_v40 }
 0x14a   :  { %1983 = vmatmul.mubr.bf16.gmra.mrb[132].mxu1 %v11205_v44  ;;  %1168 = vmatprep.mubr.bf16.mxu0 %v11082_v45 }
 0x14b   :  { %1990 = vmatprep.mubr.bf16.mxu1 %v11208_v52 }
 0x14c   :  { %v954_v57 = vpop.f32.mrb[28].mxu0 }
 0x14d   :  { %v1776_v58 = vpop.f32.mrb[28].mxu1  ;;  %v956_v60 = vpop.f32.mrb[29].mxu0 }
 0x14e   :  { %v1778_v1 = vpop.f32.mrb[29].mxu1  ;;  %v957_v2 = vpop.f32.mrb[30].mxu0  ;;  %v14794_v3 = vadd.f32 %v1776_v58, %v954_v57  ;;  %v11211_v57 = vcombine.low %v14660_v61, %v14683_v11  ;;  %v11088_v58 = vcombine.high %v14825_v54, %v14830_v9  ;;  %v12745_v61 = vld [vmem:[%s18892_s1 + $0x1f8] sm:$0xff]  }
 0x14f   :  { %v1779_v10 = vpop.f32.mrb[30].mxu1  ;;  %v959_v13 = vpop.f32.mrb[31].mxu0  ;;  %v14853_v11 = vld [vmem:[%s18893_s0 + $0x2b8] sm:$0xff]  ;;  %4349 = vmatpush1.bf16.msra.mxu1 %v12745_v61 }
 0x150   :  { %v1781_v16 = vpop.f32.mrb[31].mxu1  ;;  %v14798_v21 = vadd.f32 %v1779_v10, %v957_v2  ;;  %v11214_v2 = vcombine.high %v14688_v33, %v14707_v50  ;;  %v14858_v13 = vld [vmem:[%s18893_s0 + $0x2c0] sm:$0xff] }
 0x151   :  { %1169 = vmatmul.mubr.bf16.gmra.mrb[136].mxu0 %v11081_v62 }
 0x152   :  { %1991 = vmatmul.mubr.bf16.gmra.mrb[136].mxu1 %v11207_v5  ;;  %1176 = vmatprep.mubr.bf16.mxu0 %v11084_v6  ;;  %v12739_v6 = vld [vmem:[%s18892_s1 + $0x178] sm:$0xff]  }
 0x153   :  { %1998 = vmatprep.mubr.bf16.mxu1 %v11210_v14  ;;  %2978 = vmatpush1.bf16.msra.mxu0 %v12739_v6 }
 0x154   :  { %v962_v22 = vpop.f32.mrb[32].mxu0 }
 0x155   :  { %v1784_v23 = vpop.f32.mrb[32].mxu1  ;;  %v964_v27 = vpop.f32.mrb[33].mxu0 }
 0x156   :  { %v1786_v29 = vpop.f32.mrb[33].mxu1  ;;  %v965_v32 = vpop.f32.mrb[34].mxu0  ;;  %v14816_v35 = vadd.f32 %v1784_v23, %v962_v22  ;;  %v11087_v23 = vcombine.low %v14825_v54, %v14830_v9 }
 0x157   :  { %v1787_v36 = vpop.f32.mrb[34].mxu1  ;;  %v967_v40 = vpop.f32.mrb[35].mxu0  ;;  %v11213_v29 = vcombine.low %v14688_v33, %v14707_v50  ;;  %v14875_v33 = vld [vmem:[%s18893_s0 + $0x2c8] sm:$0xff]  ;;  %v14880_v50 = vld [vmem:[%s18893_s0 + $0x2d0] sm:$0xff] }
 0x158   :  { %v1789_v42 = vpop.f32.mrb[35].mxu1  ;;  %v14820_v44 = vadd.f32 %v1787_v36, %v965_v32  ;;  %v11090_v32 = vcombine.high %v14853_v11, %v14858_v13  ;;  %v11216_v40 = vcombine.high %v14712_v12, %v14729_v18 }
 0x159   :  { %1177 = vmatmul.mubr.bf16.gmra.mrb[140].mxu0 %v11083_v19 }
 0x15a   :  { %1999 = vmatmul.mubr.bf16.gmra.mrb[140].mxu1 %v11209_v26  ;;  %1184 = vmatprep.mubr.bf16.mxu0 %v11086_v34 }
 0x15b   :  { %2006 = vmatprep.mubr.bf16.mxu1 %v11212_v41 }
 0x15c   :  { %v970_v45 = vpop.f32.mrb[36].mxu0 }
 0x15d   :  { %v1792_v46 = vpop.f32.mrb[36].mxu1  ;;  %v972_v49 = vpop.f32.mrb[37].mxu0 }
 0x15e   :  { %v1794_v52 = vpop.f32.mrb[37].mxu1  ;;  %v973_v55 = vpop.f32.mrb[38].mxu0  ;;  %v14838_v60 = vadd.f32 %v1792_v46, %v970_v45 }
 0x15f   :  { %v1795_v62 = vpop.f32.mrb[38].mxu1  ;;  %v975_v1 = vpop.f32.mrb[39].mxu0 }
 0x160   :  { %v1797_v5 = vpop.f32.mrb[39].mxu1  ;;  %v14845_v10 = vadd.f32 %v1795_v62, %v973_v55 }
 0x161   :  { %1185 = vmatmul.mubr.bf16.gmra.mrb[144].mxu0 %v11085_v17  ;;  %v11089_v17 = vcombine.low %v14853_v11, %v14858_v13  ;;  %v11218_v5 = vcombine.high %v14734_v25, %v14754_v30 }
 0x162   :  { %2007 = vmatmul.mubr.bf16.gmra.mrb[144].mxu1 %v11211_v57  ;;  %1192 = vmatprep.mubr.bf16.mxu0 %v11088_v58  ;;  %v11215_v57 = vcombine.low %v14712_v12, %v14729_v18  ;;  %v11092_v58 = vcombine.high %v14875_v33, %v14880_v50  ;;  %v14897_v12 = vld [vmem:[%s18893_s0 + $0x2d8] sm:$0xff]  ;;  %v14902_v18 = vld [vmem:[%s18893_s0 + $0x2e0] sm:$0xff] }
 0x163   :  { %2014 = vmatprep.mubr.bf16.mxu1 %v11214_v2 }
 0x164   :  { %v978_v14 = vpop.f32.mrb[40].mxu0 }
 0x165   :  { %v1800_v16 = vpop.f32.mrb[40].mxu1  ;;  %v980_v22 = vpop.f32.mrb[41].mxu0 }
 0x166   :  { %v1802_v27 = vpop.f32.mrb[41].mxu1  ;;  %v981_v19 = vpop.f32.mrb[42].mxu0  ;;  %v14866_v26 = vadd.f32 %v1800_v16, %v978_v14 }
 0x167   :  { %v1803_v34 = vpop.f32.mrb[42].mxu1  ;;  %v983_v36 = vpop.f32.mrb[43].mxu0 }
 0x168   :  { %v1805_v41 = vpop.f32.mrb[43].mxu1  ;;  %v14870_v42 = vadd.f32 %v1803_v34, %v981_v19 }
 0x169   :  { %1193 = vmatmul.mubr.bf16.gmra.mrb[148].mxu0 %v11087_v23  ;;  %v11091_v23 = vcombine.low %v14875_v33, %v14880_v50  ;;  %v11220_v41 = vcombine.high %v14759_v20, %v14781_v31 }
 0x16a   :  { %2015 = vmatmul.mubr.bf16.gmra.mrb[148].mxu1 %v11213_v29  ;;  %1200 = vmatprep.mubr.bf16.mxu0 %v11090_v32  ;;  %v11217_v29 = vcombine.low %v14734_v25, %v14754_v30  ;;  %v11094_v32 = vcombine.high %v14897_v12, %v14902_v18  ;;  %v14919_v25 = vld [vmem:[%s18893_s0 + $0x2e8] sm:$0xff]  ;;  %v14924_v30 = vld [vmem:[%s18893_s0 + $0x2f0] sm:$0xff] }
 0x16b   :  { %2022 = vmatprep.mubr.bf16.mxu1 %v11216_v40 }
 0x16c   :  { %v986_v45 = vpop.f32.mrb[44].mxu0 }
 0x16d   :  { %v1808_v46 = vpop.f32.mrb[44].mxu1  ;;  %v988_v49 = vpop.f32.mrb[45].mxu0 }
 0x16e   :  { %v1810_v52 = vpop.f32.mrb[45].mxu1  ;;  %v989_v55 = vpop.f32.mrb[46].mxu0  ;;  %v14888_v62 = vadd.f32 %v1808_v46, %v986_v45 }
 0x16f   :  { %v1811_v1 = vpop.f32.mrb[46].mxu1  ;;  %v991_v2 = vpop.f32.mrb[47].mxu0 }
 0x170   :  { %v1813_v6 = vpop.f32.mrb[47].mxu1  ;;  %v14892_v61 = vadd.f32 %v1811_v1, %v989_v55  ;;  %v11093_v55 = vcombine.low %v14897_v12, %v14902_v18  ;;  %v11219_v1 = vcombine.low %v14759_v20, %v14781_v31  ;;  %v11096_v2 = vcombine.high %v14919_v25, %v14924_v30  ;;  %v14941_v20 = vld [vmem:[%s18893_s0 + $0x2f8] sm:$0xff]  ;;  %v14946_v31 = vld [vmem:[%s18893_s0 + $0x300] sm:$0xff] }
 0x171   :  { %1201 = vmatmul.mubr.bf16.gmra.mrb[152].mxu0 %v11089_v17 }
 0x172   :  { %2023 = vmatmul.mubr.bf16.gmra.mrb[152].mxu1 %v11215_v57  ;;  %1208 = vmatprep.mubr.bf16.mxu0 %v11092_v58 }
 0x173   :  { %2030 = vmatprep.mubr.bf16.mxu1 %v11218_v5 }
 0x174   :  { %v994_v14 = vpop.f32.mrb[48].mxu0 }
 0x175   :  { %v1816_v16 = vpop.f32.mrb[48].mxu1  ;;  %v996_v22 = vpop.f32.mrb[49].mxu0 }
 0x176   :  { %v1818_v27 = vpop.f32.mrb[49].mxu1  ;;  %v997_v19 = vpop.f32.mrb[50].mxu0  ;;  %v14910_v34 = vadd.f32 %v1816_v16, %v994_v14  ;;  %v11222_v16 = vcombine.high %v14786_v37, %v14803_v38 }
 0x177   :  { %v1819_v36 = vpop.f32.mrb[50].mxu1  ;;  %v999_v40 = vpop.f32.mrb[51].mxu0 }
 0x178   :  { %v1821_v45 = vpop.f32.mrb[51].mxu1  ;;  %v14914_v46 = vadd.f32 %v1819_v36, %v997_v19 }
 0x179   :  { %1209 = vmatmul.mubr.bf16.gmra.mrb[156].mxu0 %v11091_v23  ;;  %v11098_v45 = vcombine.high %v14941_v20, %v14946_v31 }
 0x17a   :  { %2031 = vmatmul.mubr.bf16.gmra.mrb[156].mxu1 %v11217_v29  ;;  %1216 = vmatprep.mubr.bf16.mxu0 %v11094_v32  ;;  %v11095_v32 = vcombine.low %v14919_v25, %v14924_v30 }
 0x17b   :  { %2038 = vmatprep.mubr.bf16.mxu1 %v11220_v41  ;;  %v11221_v41 = vcombine.low %v14786_v37, %v14803_v38  ;;  %v14963_v37 = vld [vmem:[%s18893_s0 + $0x308] sm:$0xff]  ;;  %v14968_v38 = vld [vmem:[%s18893_s0 + $0x310] sm:$0xff] }
 0x17c   :  { %v1002_v49 = vpop.f32.mrb[52].mxu0 }
 0x17d   :  { %v1824_v17 = vpop.f32.mrb[52].mxu1  ;;  %v1004_v52 = vpop.f32.mrb[53].mxu0 }
 0x17e   :  { %v1826_v57 = vpop.f32.mrb[53].mxu1  ;;  %v1005_v58 = vpop.f32.mrb[54].mxu0  ;;  %v14932_v5 = vadd.f32 %v1824_v17, %v1002_v49 }
 0x17f   :  { %v1827_v6 = vpop.f32.mrb[54].mxu1  ;;  %v1007_v14 = vpop.f32.mrb[55].mxu0 }
 0x180   :  { %v1829_v22 = vpop.f32.mrb[55].mxu1  ;;  %v14936_v23 = vadd.f32 %v1827_v6, %v1005_v58  ;;  %v11097_v14 = vcombine.low %v14941_v20, %v14946_v31 }
 0x181   :  { %1217 = vmatmul.mubr.bf16.gmra.mrb[160].mxu0 %v11093_v55  ;;  %v11224_v55 = vcombine.high %v14808_v53, %v14825_v54 }
 0x182   :  { %2039 = vmatmul.mubr.bf16.gmra.mrb[160].mxu1 %v11219_v1  ;;  %1224 = vmatprep.mubr.bf16.mxu0 %v11096_v2 }
 0x183   :  { %2046 = vmatprep.mubr.bf16.mxu1 %v11222_v16 }
 0x184   :  { %v1010_v27 = vpop.f32.mrb[56].mxu0 }
 0x185   :  { %v1832_v19 = vpop.f32.mrb[56].mxu1  ;;  %v1012_v29 = vpop.f32.mrb[57].mxu0 }
 0x186   :  { %v1834_v36 = vpop.f32.mrb[57].mxu1  ;;  %v1013_v40 = vpop.f32.mrb[58].mxu0  ;;  %v14954_v49 = vadd.f32 %v1832_v19, %v1010_v27  ;;  %v11223_v27 = vcombine.low %v14808_v53, %v14825_v54  ;;  %v11100_v19 = vcombine.high %v14963_v37, %v14968_v38  ;;  %v14985_v53 = vld [vmem:[%s18893_s0 + $0x318] sm:$0xff]  ;;  %v14990_v54 = vld [vmem:[%s18893_s0 + $0x320] sm:$0xff] }
 0x187   :  { %v1835_v17 = vpop.f32.mrb[58].mxu1  ;;  %v1015_v52 = vpop.f32.mrb[59].mxu0 }
 0x188   :  { %v1837_v57 = vpop.f32.mrb[59].mxu1  ;;  %v14958_v58 = vadd.f32 %v1835_v17, %v1013_v40  ;;  %v11226_v40 = vcombine.high %v14830_v9, %v14853_v11 }
 0x189   :  { %1225 = vmatmul.mubr.bf16.gmra.mrb[164].mxu0 %v11095_v32  ;;  %v11099_v57 = vcombine.low %v14963_v37, %v14968_v38 }
 0x18a   :  { %2047 = vmatmul.mubr.bf16.gmra.mrb[164].mxu1 %v11221_v41  ;;  %1232 = vmatprep.mubr.bf16.mxu0 %v11098_v45 }
 0x18b   :  { %2054 = vmatprep.mubr.bf16.mxu1 %v11224_v55 }
 0x18c   :  { %v1018_v1 = vpop.f32.mrb[60].mxu0 }
 0x18d   :  { %v1840_v2 = vpop.f32.mrb[60].mxu1  ;;  %v1020_v6 = vpop.f32.mrb[61].mxu0 }
 0x18e   :  { %v1842_v16 = vpop.f32.mrb[61].mxu1  ;;  %v1021_v22 = vpop.f32.mrb[62].mxu0  ;;  %v14976_v29 = vadd.f32 %v1840_v2, %v1018_v1  ;;  %v11225_v6 = vcombine.low %v14830_v9, %v14853_v11  ;;  %v15007_v9 = vld [vmem:[%s18893_s0 + $0x328] sm:$0xff]  ;;  %v15012_v11 = vld [vmem:[%s18893_s0 + $0x330] sm:$0xff] }
 0x18f   :  { %v1843_v32 = vpop.f32.mrb[62].mxu1  ;;  %v1023_v36 = vpop.f32.mrb[63].mxu0 }
 0x190   :  { %v1845_v41 = vpop.f32.mrb[63].mxu1  ;;  %v14980_v45 = vadd.f32 %v1843_v32, %v1021_v22 }
 0x191   :  { %1233 = vmatmul.mubr.bf16.gmra.mrb[168].mxu0 %v11097_v14  ;;  %v11102_v14 = vcombine.high %v14985_v53, %v14990_v54 }
 0x192   :  { %2055 = vmatmul.mubr.bf16.gmra.mrb[168].mxu1 %v11223_v27  ;;  %1240 = vmatprep.mubr.bf16.mxu0 %v11100_v19  ;;  %v11228_v19 = vcombine.high %v14858_v13, %v14875_v33 }
 0x193   :  { %2062 = vmatprep.mubr.bf16.mxu1 %v11226_v40 }
 0x194   :  { %v1026_v17 = vpop.f32.mrb[64].mxu0 }
 0x195   :  { %v1848_v52 = vpop.f32.mrb[64].mxu1  ;;  %v1028_v55 = vpop.f32.mrb[65].mxu0 }
 0x196   :  { %v1850_v1 = vpop.f32.mrb[65].mxu1  ;;  %v1029_v2 = vpop.f32.mrb[66].mxu0  ;;  %v14998_v16 = vadd.f32 %v1848_v52, %v1026_v17  ;;  %v11101_v52 = vcombine.low %v14985_v53, %v14990_v54 }
 0x197   :  { %v1851_v22 = vpop.f32.mrb[66].mxu1  ;;  %v1031_v27 = vpop.f32.mrb[67].mxu0  ;;  %v11227_v1 = vcombine.low %v14858_v13, %v14875_v33  ;;  %v15029_v13 = vld [vmem:[%s18893_s0 + $0x338] sm:$0xff]  ;;  %v15034_v33 = vld [vmem:[%s18893_s0 + $0x340] sm:$0xff] }
 0x198   :  { %v1853_v32 = vpop.f32.mrb[67].mxu1  ;;  %v15002_v36 = vadd.f32 %v1851_v22, %v1029_v2  ;;  %v11104_v2 = vcombine.high %v15007_v9, %v15012_v11  ;;  %v11230_v27 = vcombine.high %v14880_v50, %v14897_v12 }
 0x199   :  { %1241 = vmatmul.mubr.bf16.gmra.mrb[172].mxu0 %v11099_v57 }
 0x19a   :  { %2063 = vmatmul.mubr.bf16.gmra.mrb[172].mxu1 %v11225_v6  ;;  %1248 = vmatprep.mubr.bf16.mxu0 %v11102_v14 }
 0x19b   :  { %2070 = vmatprep.mubr.bf16.mxu1 %v11228_v19 }
 0x19c   :  { %v1034_v40 = vpop.f32.mrb[68].mxu0 }
 0x19d   :  { %v1856_v41 = vpop.f32.mrb[68].mxu1  ;;  %v1036_v17 = vpop.f32.mrb[69].mxu0 }
 0x19e   :  { %v1858_v55 = vpop.f32.mrb[69].mxu1  ;;  %v1037_v57 = vpop.f32.mrb[70].mxu0  ;;  %v15020_v6 = vadd.f32 %v1856_v41, %v1034_v40 }
 0x19f   :  { %v1859_v14 = vpop.f32.mrb[70].mxu1  ;;  %v1039_v22 = vpop.f32.mrb[71].mxu0  ;;  %v11103_v55 = vcombine.low %v15007_v9, %v15012_v11 }
 0x1a0   :  { %18907 = vst [vmem:[#allocation2_spill] sm:$0xff] %v15020_v6  ;;  %v1861_v19 = vpop.f32.mrb[71].mxu1  ;;  %v15024_v32 = vadd.f32 %v1859_v14, %v1037_v57 }
 0x1a1   :  { %1249 = vmatmul.mubr.bf16.gmra.mrb[176].mxu0 %v11101_v52  ;;  %v11232_v19 = vcombine.high %v14902_v18, %v14919_v25 }
 0x1a2   :  { %18908 = vst [vmem:[#allocation3_spill] sm:$0xff] %v15024_v32  ;;  %2071 = vmatmul.mubr.bf16.gmra.mrb[176].mxu1 %v11227_v1  ;;  %1256 = vmatprep.mubr.bf16.mxu0 %v11104_v2  ;;  %v11229_v1 = vcombine.low %v14880_v50, %v14897_v12  ;;  %v11106_v2 = vcombine.high %v15029_v13, %v15034_v33  ;;  %v15051_v50 = vld [vmem:[%s18893_s0 + $0x348] sm:$0xff]  ;;  %v15056_v12 = vld [vmem:[%s18893_s0 + $0x350] sm:$0xff] }
 0x1a3   :  { %2078 = vmatprep.mubr.bf16.mxu1 %v11230_v27 }
 0x1a4   :  { %v1042_v40 = vpop.f32.mrb[72].mxu0 }
 0x1a5   :  { %v1864_v41 = vpop.f32.mrb[72].mxu1  ;;  %v1044_v17 = vpop.f32.mrb[73].mxu0 }
 0x1a6   :  { %v1866_v52 = vpop.f32.mrb[73].mxu1  ;;  %v1045_v57 = vpop.f32.mrb[74].mxu0  ;;  %v15042_v14 = vadd.f32 %v1864_v41, %v1042_v40 }
 0x1a7   :  { %v1867_v22 = vpop.f32.mrb[74].mxu1  ;;  %v1047_v27 = vpop.f32.mrb[75].mxu0 }
 0x1a8   :  { %18909 = vst [vmem:[#allocation4_spill] sm:$0xff] %v15042_v14  ;;  %v1869_v0 = vpop.f32.mrb[75].mxu1  ;;  %v15046_v17 = vadd.f32 %v1867_v22, %v1045_v57 }
 0x1a9   :  { %1257 = vmatmul.mubr.bf16.gmra.mrb[180].mxu0 %v11103_v55  ;;  %v11105_v0 = vcombine.low %v15029_v13, %v15034_v33 }
 0x1aa   :  { %18910 = vst [vmem:[#allocation5_spill] sm:$0xff] %v15046_v17  ;;  %2079 = vmatmul.mubr.bf16.gmra.mrb[180].mxu1 %v11229_v1  ;;  %1264 = vmatprep.mubr.bf16.mxu0 %v11106_v2  ;;  %v11231_v1 = vcombine.low %v14902_v18, %v14919_v25  ;;  %v11108_v2 = vcombine.high %v15051_v50, %v15056_v12  ;;  %v15073_v18 = vld [vmem:[%s18893_s0 + $0x358] sm:$0xff]  ;;  %v15078_v25 = vld [vmem:[%s18893_s0 + $0x360] sm:$0xff] }
 0x1ab   :  { %2086 = vmatprep.mubr.bf16.mxu1 %v11232_v19  ;;  %v11234_v17 = vcombine.high %v14924_v30, %v14941_v20 }
 0x1ac   :  { %v1050_v40 = vpop.f32.mrb[76].mxu0 }
 0x1ad   :  { %v1872_v41 = vpop.f32.mrb[76].mxu1  ;;  %v1052_v52 = vpop.f32.mrb[77].mxu0 }
 0x1ae   :  { %v1874_v55 = vpop.f32.mrb[77].mxu1  ;;  %v1053_v57 = vpop.f32.mrb[78].mxu0  ;;  %v15064_v22 = vadd.f32 %v1872_v41, %v1050_v40 }
 0x1af   :  { %v1875_v27 = vpop.f32.mrb[78].mxu1  ;;  %v1055_v19 = vpop.f32.mrb[79].mxu0 }
 0x1b0   :  { %18911 = vst [vmem:[#allocation6_spill] sm:$0xff] %v15064_v22  ;;  %v1877_v14 = vpop.f32.mrb[79].mxu1  ;;  %v15068_v52 = vadd.f32 %v1875_v27, %v1053_v57 }
 0x1b1   :  { %1265 = vmatmul.mubr.bf16.gmra.mrb[184].mxu0 %v11105_v0  ;;  %v11107_v14 = vcombine.low %v15051_v50, %v15056_v12 }
 0x1b2   :  { %18912 = vst [vmem:[#allocation7_spill] sm:$0xff] %v15068_v52  ;;  %2087 = vmatmul.mubr.bf16.gmra.mrb[184].mxu1 %v11231_v1  ;;  %1272 = vmatprep.mubr.bf16.mxu0 %v11108_v2  ;;  %v11110_v1 = vcombine.high %v15073_v18, %v15078_v25  ;;  %v11236_v52 = vcombine.high %v14946_v31, %v14963_v37 }
 0x1b3   :  { %2094 = vmatprep.mubr.bf16.mxu1 %v11234_v17  ;;  %v11233_v17 = vcombine.low %v14924_v30, %v14941_v20  ;;  %v15095_v30 = vld [vmem:[%s18893_s0 + $0x368] sm:$0xff]  ;;  %v175_v20 = vld [vmem:[%s18893_s0 + $0x370] sm:$0xff] }
 0x1b4   :  { %v1058_v40 = vpop.f32.mrb[80].mxu0 }
 0x1b5   :  { %v1880_v41 = vpop.f32.mrb[80].mxu1  ;;  %v1060_v55 = vpop.f32.mrb[81].mxu0 }
 0x1b6   :  { %v1882_v0 = vpop.f32.mrb[81].mxu1  ;;  %v1061_v57 = vpop.f32.mrb[82].mxu0  ;;  %v15086_v2 = vadd.f32 %v1880_v41, %v1058_v40 }
 0x1b7   :  { %v1883_v27 = vpop.f32.mrb[82].mxu1  ;;  %v1063_v19 = vpop.f32.mrb[83].mxu0 }
 0x1b8   :  { %18913 = vst [vmem:[#allocation8_spill] sm:$0xff] %v15086_v2  ;;  %v1885_v22 = vpop.f32.mrb[83].mxu1  ;;  %v15090_v55 = vadd.f32 %v1883_v27, %v1061_v57 }
 0x1b9   :  { %1273 = vmatmul.mubr.bf16.gmra.mrb[188].mxu0 %v11107_v14  ;;  %v11109_v22 = vcombine.low %v15073_v18, %v15078_v25 }
 0x1ba   :  { %18914 = vst [vmem:[#allocation9_spill] sm:$0xff] %v15090_v55  ;;  %2095 = vmatmul.mubr.bf16.gmra.mrb[188].mxu1 %v11233_v17  ;;  %1280 = vmatprep.mubr.bf16.mxu0 %v11110_v1  ;;  %v11112_v17 = vcombine.high %v15095_v30, %v175_v20  ;;  %v11238_v55 = vcombine.high %v14968_v38, %v14985_v53 }
 0x1bb   :  { %2102 = vmatprep.mubr.bf16.mxu1 %v11236_v52  ;;  %v11235_v52 = vcombine.low %v14946_v31, %v14963_v37  ;;  %v11111_v31 = vcombine.low %v15095_v30, %v175_v20 }
 0x1bc   :  { %v1066_v40 = vpop.f32.mrb[84].mxu0 }
 0x1bd   :  { %v1888_v41 = vpop.f32.mrb[84].mxu1  ;;  %v1068_v0 = vpop.f32.mrb[85].mxu0 }
 0x1be   :  { %v1890_v57 = vpop.f32.mrb[85].mxu1  ;;  %v1069_v14 = vpop.f32.mrb[86].mxu0  ;;  %v15105_v1 = vadd.f32 %v1888_v41, %v1066_v40  ;;  %v11237_v41 = vcombine.low %v14968_v38, %v14985_v53 }
 0x1bf   :  { %v1891_v27 = vpop.f32.mrb[86].mxu1  ;;  %v1071_v19 = vpop.f32.mrb[87].mxu0 }
 0x1c0   :  { %18915 = vst [vmem:[#allocation10_spill] sm:$0xff] %v15105_v1  ;;  %v1893_v2 = vpop.f32.mrb[87].mxu1  ;;  %v15109_v32 = vadd.f32 %v1891_v27, %v1069_v14  ;;  %v12732_v27 = vld [vmem:[%s18893_s0 + $0x378] ss:$8 sps:$4 sm:$0xff]  }
 0x1c1   :  { %1281 = vmatmul.mubr.bf16.gmra.mrb[192].mxu0 %v11109_v22  ;;  %v12729_v2 = vld [vmem:[%s18893_s0 + $0x37c] ss:$8 sps:$4 sm:$0xff]  }
 0x1c2   :  { %18916 = vst [vmem:[#allocation11_spill] sm:$0xff] %v15109_v32  ;;  %2103 = vmatmul.mubr.bf16.gmra.mrb[192].mxu1 %v11235_v52  ;;  %1288 = vmatprep.mubr.bf16.mxu0 %v11112_v17 }
 0x1c3   :  { %2110 = vmatprep.mubr.bf16.mxu1 %v11238_v55  ;;  %v11240_v55 = vcombine.high %v14990_v54, %v15007_v9 }
 0x1c4   :  { %v1074_v0 = vpop.f32.mrb[88].mxu0 }
 0x1c5   :  { %v1896_v57 = vpop.f32.mrb[88].mxu1  ;;  %v1076_v6 = vpop.f32.mrb[89].mxu0 }
 0x1c6   :  { %v1898_v37 = vpop.f32.mrb[89].mxu1  ;;  %v1077_v40 = vpop.f32.mrb[90].mxu0  ;;  %v15117_v14 = vadd.f32 %v1896_v57, %v1074_v0  ;;  %v11239_v57 = vcombine.low %v14990_v54, %v15007_v9 }
 0x1c7   :  { %v1899_v22 = vpop.f32.mrb[90].mxu1  ;;  %v1079_v52 = vpop.f32.mrb[91].mxu0  ;;  %v12734_v37 = vld [vmem:[%s18893_s0 + $0x38c] ss:$8 sps:$4 sm:$0xff]  }
 0x1c8   :  { %18917 = vst [vmem:[#allocation12_spill] sm:$0xff] %v15117_v14  ;;  %v1901_v17 = vpop.f32.mrb[91].mxu1  ;;  %v15121_v6 = vadd.f32 %v1899_v22, %v1077_v40 }
 0x1c9   :  { %1289 = vmatmul.mubr.bf16.gmra.mrb[196].mxu0 %v11111_v31  ;;  %v12737_v17 = vld [vmem:[%s18893_s0 + $0x388] ss:$8 sps:$4 sm:$0xff]  }
 0x1ca   :  { %18918 = vst [vmem:[#allocation13_spill] sm:$0xff] %v15121_v6  ;;  %2111 = vmatmul.mubr.bf16.gmra.mrb[196].mxu1 %v11237_v41  ;;  %1296 = vmatprep.mubr.bf16.mxu0 %v12729_v2  ;;  %v11242_v2 = vcombine.high %v15012_v11, %v15029_v13  ;;  %v15327_v6 = vld [vmem:[%s18893_s0 + $0xc0] sm:$0xff] }
 0x1cb   :  { %2118 = vmatprep.mubr.bf16.mxu1 %v11240_v55 }
 0x1cc   :  { %v1082_v20 = vpop.f32.mrb[92].mxu0 }
 0x1cd   :  { %v1904_v38 = vpop.f32.mrb[92].mxu1  ;;  %v1084_v53 = vpop.f32.mrb[93].mxu0 }
 0x1ce   :  { %v1906_v19 = vpop.f32.mrb[93].mxu1  ;;  %v1085_v0 = vpop.f32.mrb[94].mxu0  ;;  %v15131_v31 = vadd.f32 %v1904_v38, %v1082_v20  ;;  %v11241_v53 = vcombine.low %v15012_v11, %v15029_v13 }
 0x1cf   :  { %v1907_v40 = vpop.f32.mrb[94].mxu1  ;;  %v1087_v41 = vpop.f32.mrb[95].mxu0  ;;  %v12740_v19 = vld [vmem:[%s18893_s0 + $0x39c] ss:$8 sps:$4 sm:$0xff]  }
 0x1d0   :  { %18919 = vst [vmem:[#allocation14_spill] sm:$0xff] %v15131_v31  ;;  %v1909_v22 = vpop.f32.mrb[95].mxu1  ;;  %v15135_v52 = vadd.f32 %v1907_v40, %v1085_v0 }
 0x1d1   :  { %1297 = vmatmul.mubr.bf16.gmra.mrb[200].mxu0 %v12732_v27  ;;  %v12743_v22 = vld [vmem:[%s18893_s0 + $0x398] ss:$8 sps:$4 sm:$0xff]  }
 0x1d2   :  { %18920 = vst [vmem:[#allocation15_spill] sm:$0xff] %v15135_v52  ;;  %2119 = vmatmul.mubr.bf16.gmra.mrb[200].mxu1 %v11239_v57  ;;  %1304 = vmatprep.mubr.bf16.mxu0 %v12734_v37  ;;  %v11244_v37 = vcombine.high %v15034_v33, %v15051_v50 }
 0x1d3   :  { %2126 = vmatprep.mubr.bf16.mxu1 %v11242_v2 }
 0x1d4   :  { %v1090_v55 = vpop.f32.mrb[96].mxu0 }
 0x1d5   :  { %v1912_v54 = vpop.f32.mrb[96].mxu1  ;;  %v1092_v9 = vpop.f32.mrb[97].mxu0 }
 0x1d6   :  { %v1914_v20 = vpop.f32.mrb[97].mxu1  ;;  %v1093_v38 = vpop.f32.mrb[98].mxu0  ;;  %v15145_v27 = vadd.f32 %v1912_v54, %v1090_v55  ;;  %v11243_v9 = vcombine.low %v15034_v33, %v15051_v50 }
 0x1d7   :  { %v1915_v0 = vpop.f32.mrb[98].mxu1  ;;  %v1095_v57 = vpop.f32.mrb[99].mxu0  ;;  %v12746_v20 = vld [vmem:[%s18893_s0 + $0x3ac] ss:$8 sps:$4 sm:$0xff]  }
 0x1d8   :  { %18921 = vst [vmem:[#allocation16_spill] sm:$0xff] %v15145_v27  ;;  %v1917_v40 = vpop.f32.mrb[99].mxu1  ;;  %v15149_v41 = vadd.f32 %v1915_v0, %v1093_v38 }
 0x1d9   :  { %1305 = vmatmul.mubr.bf16.gmra.mrb[204].mxu0 %v12737_v17  ;;  %v12749_v40 = vld [vmem:[%s18893_s0 + $0x3a8] ss:$8 sps:$4 sm:$0xff]  }
 0x1da   :  { %18922 = vst [vmem:[#allocation17_spill] sm:$0xff] %v15149_v41  ;;  %2127 = vmatmul.mubr.bf16.gmra.mrb[204].mxu1 %v11241_v53  ;;  %1312 = vmatprep.mubr.bf16.mxu0 %v12740_v19  ;;  %v11246_v19 = vcombine.high %v15056_v12, %v15073_v18 }
 0x1db   :  { %2134 = vmatprep.mubr.bf16.mxu1 %v11244_v37 }
 0x1dc   :  { %v1098_v2 = vpop.f32.mrb[100].mxu0 }
 0x1dd   :  { %v1920_v11 = vpop.f32.mrb[100].mxu1  ;;  %v1100_v13 = vpop.f32.mrb[101].mxu0 }
 0x1de   :  { %v1922_v55 = vpop.f32.mrb[101].mxu1  ;;  %v1101_v54 = vpop.f32.mrb[102].mxu0  ;;  %v15159_v17 = vadd.f32 %v1920_v11, %v1098_v2  ;;  %v11245_v13 = vcombine.low %v15056_v12, %v15073_v18  ;;  %v15182_v12 = vld [vmem:[%s18893_s0 + $0x60] sm:$0xff]  ;;  %v15187_v18 = vld [vmem:[%s18893_s0 + $0x68] sm:$0xff] }
 0x1df   :  { %v1923_v38 = vpop.f32.mrb[102].mxu1  ;;  %v1103_v53 = vpop.f32.mrb[103].mxu0  ;;  %v12751_v55 = vld [vmem:[%s18893_s0 + $0x3bc] ss:$8 sps:$4 sm:$0xff]  }
 0x1e0   :  { %18923 = vst [vmem:[#allocation18_spill] sm:$0xff] %v15159_v17  ;;  %v1925_v0 = vpop.f32.mrb[103].mxu1  ;;  %v15163_v57 = vadd.f32 %v1923_v38, %v1101_v54  ;;  %v15278_v17 = vld [vmem:[%s18893_s0 + $0xa0] sm:$0xff] }
 0x1e1   :  { %1313 = vmatmul.mubr.bf16.gmra.mrb[208].mxu0 %v12743_v22 }
 0x1e2   :  { %18924 = vst [vmem:[#allocation19_spill] sm:$0xff] %v15163_v57  ;;  %2135 = vmatmul.mubr.bf16.gmra.mrb[208].mxu1 %v11243_v9  ;;  %1320 = vmatprep.mubr.bf16.mxu0 %v12746_v20  ;;  %v11248_v20 = vcombine.high %v15078_v25, %v15095_v30 }
 0x1e3   :  { %2142 = vmatprep.mubr.bf16.mxu1 %v11246_v19 }
 0x1e4   :  { %v1106_v37 = vpop.f32.mrb[104].mxu0 }
 0x1e5   :  { %v1928_v33 = vpop.f32.mrb[104].mxu1  ;;  %v1108_v50 = vpop.f32.mrb[105].mxu0 }
 0x1e6   :  { %v1930_v2 = vpop.f32.mrb[105].mxu1  ;;  %v1109_v11 = vpop.f32.mrb[106].mxu0  ;;  %v15173_v22 = vadd.f32 %v1928_v33, %v1106_v37  ;;  %v12754_v33 = vld [vmem:[%s18893_s0 + $0x3b8] ss:$8 sps:$4 sm:$0xff]  }
 0x1e7   :  { %v1931_v54 = vpop.f32.mrb[106].mxu1  ;;  %v1111_v9 = vpop.f32.mrb[107].mxu0  ;;  %v11247_v2 = vcombine.low %v15078_v25, %v15095_v30  ;;  %v15206_v25 = vld [vmem:[%s18893_s0 + $0x70] sm:$0xff]  ;;  %v15211_v30 = vld [vmem:[%s18893_s0 + $0x78] sm:$0xff] }
 0x1e8   :  { %18925 = vst [vmem:[#allocation20_spill] sm:$0xff] %v15173_v22  ;;  %v1933_v38 = vpop.f32.mrb[107].mxu1  ;;  %v15177_v53 = vadd.f32 %v1931_v54, %v1109_v11  ;;  %v12758_v11 = vld [vmem:[%s18893_s0 + $0xc] ss:$8 sps:$4 sm:$0xff]   ;;  %v11392_v9 = vcombine.high %v15182_v12, %v15187_v18 }
 0x1e9   :  { %1321 = vmatmul.mubr.bf16.gmra.mrb[212].mxu0 %v12749_v40  ;;  %v15254_v22 = vld [vmem:[%s18893_s0 + $0x90] sm:$0xff] }
 0x1ea   :  { %18926 = vst [vmem:[#allocation21_spill] sm:$0xff] %v15177_v53  ;;  %2143 = vmatmul.mubr.bf16.gmra.mrb[212].mxu1 %v11245_v13  ;;  %1328 = vmatprep.mubr.bf16.mxu0 %v12751_v55 }
 0x1eb   :  { %2150 = vmatprep.mubr.bf16.mxu1 %v11248_v20 }
 0x1ec   :  { %v1114_v19 = vpop.f32.mrb[108].mxu0 }
 0x1ed   :  { %v1936_v0 = vpop.f32.mrb[108].mxu1  ;;  %v1116_v37 = vpop.f32.mrb[109].mxu0 }
 0x1ee   :  { %v1938_v50 = vpop.f32.mrb[109].mxu1  ;;  %v1117_v40 = vpop.f32.mrb[110].mxu0  ;;  %v15197_v13 = vadd.f32 %v1936_v0, %v1114_v19 }
 0x1ef   :  { %v1939_v55 = vpop.f32.mrb[110].mxu1  ;;  %v1119_v54 = vpop.f32.mrb[111].mxu0 }
 0x1f0   :  { %18927 = vst [vmem:[#allocation22_spill] sm:$0xff] %v15197_v13  ;;  %v1941_v20 = vpop.f32.mrb[111].mxu1  ;;  %v15201_v38 = vadd.f32 %v1939_v55, %v1117_v40  ;;  %v15230_v13 = vld [vmem:[%s18893_s0 + $0x80] sm:$0xff] }
 0x1f1   :  { %1329 = vmatmul.mubr.bf16.gmra.mrb[216].mxu0 %v12754_v33  ;;  %v12756_v33 = vld [vmem:[%s18893_s0 + $0x8] ss:$8 sps:$4 sm:$0xff]   ;;  %v11394_v20 = vcombine.high %v15206_v25, %v15211_v30 }
 0x1f2   :  { %18928 = vst [vmem:[#allocation23_spill] sm:$0xff] %v15201_v38  ;;  %2151 = vmatmul.mubr.bf16.gmra.mrb[216].mxu1 %v11247_v2  ;;  %2979 = vmatprep.mubr.bf16.mxu0 %v12758_v11  ;;  %v11391_v2 = vcombine.low %v15182_v12, %v15187_v18  ;;  %v12761_v11 = vld [vmem:[%s18893_s0 + $0x1c] ss:$8 sps:$4 sm:$0xff]  }
 0x1f3   :  { %4350 = vmatprep.mubr.bf16.mxu1 %v11392_v9 }
 0x1f4   :  { %v1122_v37 = vpop.f32.mrb[112].mxu0 }
 0x1f5   :  { %v1944_v19 = vpop.f32.mrb[112].mxu1  ;;  %v1124_v0 = vpop.f32.mrb[113].mxu0 }
 0x1f6   :  { %v1946_v50 = vpop.f32.mrb[113].mxu1  ;;  %v1125_v40 = vpop.f32.mrb[114].mxu0  ;;  %v15221_v55 = vadd.f32 %v1944_v19, %v1122_v37  ;;  %v15235_v37 = vld [vmem:[%s18893_s0 + $0x88] sm:$0xff] }
 0x1f7   :  { %v1947_v54 = vpop.f32.mrb[114].mxu1  ;;  %v1127_v9 = vpop.f32.mrb[115].mxu0 }
 0x1f8   :  { %18929 = vst [vmem:[#allocation24_spill] sm:$0xff] %v15221_v55  ;;  %v1949_v0 = vpop.f32.mrb[115].mxu1  ;;  %v15225_v38 = vadd.f32 %v1947_v54, %v1125_v40  ;;  %v12766_v54 = vld [vmem:[%s18893_s0 + $0x2c] ss:$8 sps:$4 sm:$0xff]  }
 0x1f9   :  { %2980 = vmatmul.mubr.bf16.vlgmr.msra.gmra.mrb[220].mxu0 %v12756_v33  ;;  %v12764_v33 = vld [vmem:[%s18893_s0 + $0x18] ss:$8 sps:$4 sm:$0xff]  }
 0x1fa   :  { %18930 = vst [vmem:[#allocation25_spill] sm:$0xff] %v15225_v38  ;;  %4351 = vmatmul.mubr.bf16.vlgmr.msra.gmra.mrb[220].mxu1 %v11391_v2  ;;  %2987 = vmatprep.mubr.bf16.mxu0 %v12761_v11  ;;  %v11393_v11 = vcombine.low %v15206_v25, %v15211_v30 }
 0x1fb   :  { %4358 = vmatprep.mubr.bf16.mxu1 %v11394_v20 }
 0x1fc   :  { %v1130_v50 = vpop.f32.mrb[116].mxu0 }
 0x1fd   :  { %v1952_v19 = vpop.f32.mrb[116].mxu1  ;;  %v1132_v9 = vpop.f32.mrb[117].mxu0 }
 0x1fe   :  { %v1954_v40 = vpop.f32.mrb[117].mxu1  ;;  %v1133_v2 = vpop.f32.mrb[118].mxu0  ;;  %v15245_v20 = vadd.f32 %v1952_v19, %v1130_v50  ;;  %v11396_v9 = vcombine.high %v15230_v13, %v15235_v37 }
 0x1ff   :  { %v1955_v0 = vpop.f32.mrb[118].mxu1  ;;  %v1135_v38 = vpop.f32.mrb[119].mxu0 }
 0x200   :  { %18931 = vst [vmem:[#allocation26_spill] sm:$0xff] %v15245_v20  ;;  %v1957_v55 = vpop.f32.mrb[119].mxu1  ;;  %v15249_v53 = vadd.f32 %v1955_v0, %v1133_v2  ;;  %v15259_v38 = vld [vmem:[%s18893_s0 + $0x98] sm:$0xff] }
 0x201   :  { %2988 = vmatmul.mubr.bf16.gmra.mrb[224].mxu0 %v12764_v33  ;;  %v12769_v55 = vld [vmem:[%s18893_s0 + $0x28] ss:$8 sps:$4 sm:$0xff]  }
 0x202   :  { %18932 = vst [vmem:[#allocation27_spill] sm:$0xff] %v15249_v53  ;;  %4359 = vmatmul.mubr.bf16.gmra.mrb[224].mxu1 %v11393_v11  ;;  %2995 = vmatprep.mubr.bf16.mxu0 %v12766_v54  ;;  %v11395_v11 = vcombine.low %v15230_v13, %v15235_v37  ;;  %v12771_v54 = vld [vmem:[%s18893_s0 + $0x3c] ss:$8 sps:$4 sm:$0xff]  }
 0x203   :  { %4366 = vmatprep.mubr.bf16.mxu1 %v11396_v9 }
 0x204   :  { %v1138_v40 = vpop.f32.mrb[120].mxu0 }
 0x205   :  { %v1960_v50 = vpop.f32.mrb[120].mxu1  ;;  %v1140_v19 = vpop.f32.mrb[121].mxu0 }
 0x206   :  { %v1962_v33 = vpop.f32.mrb[121].mxu1  ;;  %v1141_v2 = vpop.f32.mrb[122].mxu0  ;;  %v15269_v0 = vadd.f32 %v1960_v50, %v1138_v40  ;;  %v11398_v19 = vcombine.high %v15254_v22, %v15259_v38 }
 0x207   :  { %v1963_v9 = vpop.f32.mrb[122].mxu1  ;;  %v1143_v53 = vpop.f32.mrb[123].mxu0 }
 0x208   :  { %18933 = vst [vmem:[#allocation28_spill] sm:$0xff] %v15269_v0  ;;  %v1965_v20 = vpop.f32.mrb[123].mxu1  ;;  %v15273_v57 = vadd.f32 %v1963_v9, %v1141_v2  ;;  %v15283_v53 = vld [vmem:[%s18893_s0 + $0xa8] sm:$0xff] }
 0x209   :  { %2996 = vmatmul.mubr.bf16.gmra.mrb[228].mxu0 %v12769_v55  ;;  %v12774_v20 = vld [vmem:[%s18893_s0 + $0x38] ss:$8 sps:$4 sm:$0xff]  }
 0x20a   :  { %18934 = vst [vmem:[#allocation29_spill] sm:$0xff] %v15273_v57  ;;  %4367 = vmatmul.mubr.bf16.gmra.mrb[228].mxu1 %v11395_v11  ;;  %3003 = vmatprep.mubr.bf16.mxu0 %v12771_v54  ;;  %v11397_v11 = vcombine.low %v15254_v22, %v15259_v38  ;;  %v12776_v54 = vld [vmem:[%s18893_s0 + $0x4c] ss:$8 sps:$4 sm:$0xff]  }
 0x20b   :  { %4374 = vmatprep.mubr.bf16.mxu1 %v11398_v19 }
 0x20c   :  { %v1146_v33 = vpop.f32.mrb[124].mxu0 }
 0x20d   :  { %v1968_v40 = vpop.f32.mrb[124].mxu1  ;;  %v1148_v50 = vpop.f32.mrb[125].mxu0 }
 0x20e   :  { %v1970_v55 = vpop.f32.mrb[125].mxu1  ;;  %v1149_v2 = vpop.f32.mrb[126].mxu0  ;;  %v15293_v9 = vadd.f32 %v1968_v40, %v1146_v33  ;;  %v11400_v50 = vcombine.high %v15278_v17, %v15283_v53  ;;  %v15305_v33 = vld [vmem:[%s18893_s0 + $0xb0] sm:$0xff] }
 0x20f   :  { %v1971_v19 = vpop.f32.mrb[126].mxu1  ;;  %v1151_v57 = vpop.f32.mrb[127].mxu0  ;;  %v2169_v55 = vld [vmem:[%s18893_s0 + $0x58] sm:$0xff] }
 0x210   :  { %18935 = vst [vmem:[#allocation30_spill] sm:$0xff] %v15293_v9  ;;  %v1973_v0 = vpop.f32.mrb[127].mxu1  ;;  %v15297_v41 = vadd.f32 %v1971_v19, %v1149_v2  ;;  %v15310_v57 = vld [vmem:[%s18893_s0 + $0xb8] sm:$0xff]  ;;  %v11276_v19 = vcombine.high %v2169_v55, %v15182_v12 }
 0x211   :  { %3004 = vmatmul.mubr.bf16.gmra.mrb[232].mxu0 %v12774_v20  ;;  %v12779_v20 = vld [vmem:[%s18893_s0 + $0x48] ss:$8 sps:$4 sm:$0xff]   ;;  %v11402_v52 = vcombine.high %v15305_v33, %v15310_v57 }
 0x212   :  { %18936 = vst [vmem:[#allocation31_spill] sm:$0xff] %v15297_v41  ;;  %4375 = vmatmul.mubr.bf16.gmra.mrb[232].mxu1 %v11397_v11  ;;  %3011 = vmatprep.mubr.bf16.mxu0 %v12776_v54  ;;  %v11399_v54 = vcombine.low %v15278_v17, %v15283_v53 }
 0x213   :  { %4382 = vmatprep.mubr.bf16.mxu1 %v11400_v50 }
 0x214   :  { %v1154_v27 = vpop.f32.mrb[128].mxu0 }
 0x215   :  { %v1976_v0 = vpop.f32.mrb[128].mxu1  ;;  %v1156_v40 = vpop.f32.mrb[129].mxu0 }
 0x216   :  { %v1978_v2 = vpop.f32.mrb[129].mxu1  ;;  %v1157_v11 = vpop.f32.mrb[130].mxu0  ;;  %v15318_v50 = vadd.f32 %v1976_v0, %v1154_v27  ;;  %v15332_v27 = vld [vmem:[%s18893_s0 + $0xc8] sm:$0xff] }
 0x217   :  { %v1979_v41 = vpop.f32.mrb[130].mxu1  ;;  %v1159_v9 = vpop.f32.mrb[131].mxu0 }
 0x218   :  { %18937 = vst [vmem:[#allocation32_spill] sm:$0xff] %v15318_v50  ;;  %v1981_v31 = vpop.f32.mrb[131].mxu1  ;;  %v15322_v40 = vadd.f32 %v1979_v41, %v1157_v11  ;;  %v11278_v11 = vcombine.high %v15187_v18, %v15206_v25  ;;  %v11404_v50 = vcombine.high %v15327_v6, %v15332_v27 }
 0x219   :  { %3012 = vmatmul.mubr.bf16.gmra.mrb[236].mxu0 %v12779_v20  ;;  %v11275_v31 = vcombine.low %v2169_v55, %v15182_v12  ;;  %v15348_v55 = vld [vmem:[%s18893_s0 + $0xd0] sm:$0xff] }
 0x21a   :  { %18938 = vst [vmem:[#allocation33_spill] sm:$0xff] %v15322_v40  ;;  %4383 = vmatmul.mubr.bf16.gmra.mrb[236].mxu1 %v11399_v54  ;;  %3019 = vmatprep.mubr.bf16.mxu0 %v11276_v19 }
 0x21b   :  { %4390 = vmatprep.mubr.bf16.mxu1 %v11402_v52  ;;  %v11401_v52 = vcombine.low %v15305_v33, %v15310_v57 }
 0x21c   :  { %v1162_v2 = vpop.f32.mrb[132].mxu0 }
 0x21d   :  { %v1984_v9 = vpop.f32.mrb[132].mxu1  ;;  %v1164_v0 = vpop.f32.mrb[133].mxu0 }
 0x21e   :  { %v1986_v41 = vpop.f32.mrb[133].mxu1  ;;  %v1165_v20 = vpop.f32.mrb[134].mxu0  ;;  %v15339_v54 = vadd.f32 %v1984_v9, %v1162_v2 }
 0x21f   :  { %v1987_v19 = vpop.f32.mrb[134].mxu1  ;;  %v1167_v40 = vpop.f32.mrb[135].mxu0  ;;  %v11280_v41 = vcombine.high %v15211_v30, %v15230_v13 }
 0x220   :  { %18939 = vst [vmem:[#allocation34_spill] sm:$0xff] %v15339_v54  ;;  %v1989_v14 = vpop.f32.mrb[135].mxu1  ;;  %v15343_v32 = vadd.f32 %v1987_v19, %v1165_v20  ;;  %v15353_v40 = vld [vmem:[%s18893_s0 + $0xd8] sm:$0xff] }
 0x221   :  { %3020 = vmatmul.mubr.bf16.gmra.mrb[240].mxu0 %v11275_v31  ;;  %v11277_v14 = vcombine.low %v15187_v18, %v15206_v25  ;;  %v11406_v19 = vcombine.high %v15348_v55, %v15353_v40  ;;  %v12853_v18 = vld [vmem:[%s18894_s3] ss:$12 sps:$4 sm:$0xff]  }
 0x222   :  { %18940 = vst [vmem:[#allocation35_spill] sm:$0xff] %v15343_v32  ;;  %4391 = vmatmul.mubr.bf16.gmra.mrb[240].mxu1 %v11401_v52  ;;  %3027 = vmatprep.mubr.bf16.mxu0 %v11278_v11  ;;  %v15373_v25 = vld [vmem:[%s18893_s0 + $0xe0] sm:$0xff] }
 0x223   :  { %4398 = vmatprep.mubr.bf16.mxu1 %v11404_v50  ;;  %v11403_v50 = vcombine.low %v15327_v6, %v15332_v27 }
 0x224   :  { %v1170_v12 = vpop.f32.mrb[136].mxu0 }
 0x225   :  { %v1992_v2 = vpop.f32.mrb[136].mxu1  ;;  %v1172_v9 = vpop.f32.mrb[137].mxu0 }
 0x226   :  { %v1994_v0 = vpop.f32.mrb[137].mxu1  ;;  %v1173_v31 = vpop.f32.mrb[138].mxu0  ;;  %v15361_v20 = vadd.f32 %v1992_v2, %v1170_v12  ;;  %v15378_v12 = vld [vmem:[%s18893_s0 + $0xe8] sm:$0xff] }
 0x227   :  { %v1995_v52 = vpop.f32.mrb[138].mxu1  ;;  %v1175_v11 = vpop.f32.mrb[139].mxu0 }
 0x228   :  { %18941 = vst [vmem:[#allocation36_spill] sm:$0xff] %v15361_v20  ;;  %v1997_v32 = vpop.f32.mrb[139].mxu1  ;;  %v15365_v9 = vadd.f32 %v1995_v52, %v1173_v31  ;;  %v11279_v31 = vcombine.low %v15211_v30, %v15230_v13  ;;  %v11405_v52 = vcombine.low %v15348_v55, %v15353_v40  ;;  %v11282_v11 = vcombine.high %v15235_v37, %v15254_v22  ;;  %v15398_v13 = vld [vmem:[%s18893_s0 + $0xf0] sm:$0xff]  ;;  %v15403_v30 = vld [vmem:[%s18893_s0 + $0xf8] sm:$0xff] }
 0x229   :  { %3028 = vmatmul.mubr.bf16.gmra.mrb[244].mxu0 %v11277_v14  ;;  %v12855_v32 = vld [vmem:[%s18894_s3 + $0x4] ss:$12 sps:$4 sm:$0xff]  }
 0x22a   :  { %18942 = vst [vmem:[#allocation37_spill] sm:$0xff] %v15365_v9  ;;  %4399 = vmatmul.mubr.bf16.gmra.mrb[244].mxu1 %v11403_v50  ;;  %3035 = vmatprep.mubr.bf16.mxu0 %v11280_v41 }
 0x22b   :  { %4406 = vmatprep.mubr.bf16.mxu1 %v11406_v19  ;;  %7234 = vmatprep.subr.bf16.mxu0 %v12855_v32  ;;  %v11408_v32 = vcombine.high %v15373_v25, %v15378_v12 }
 0x22c   :  { %v1178_v2 = vpop.f32.mrb[140].mxu0  ;;  %7235 = vmatpush1.bf16.msra.mxu0 %v12853_v18 }
 0x22d   :  { %v2000_v14 = vpop.f32.mrb[140].mxu1  ;;  %v1180_v0 = vpop.f32.mrb[141].mxu0 }
 0x22e   :  { %v2002_v50 = vpop.f32.mrb[141].mxu1  ;;  %v1181_v41 = vpop.f32.mrb[142].mxu0  ;;  %v15389_v9 = vadd.f32 %v2000_v14, %v1178_v2 }
 0x22f   :  { %v2003_v20 = vpop.f32.mrb[142].mxu1  ;;  %v1183_v19 = vpop.f32.mrb[143].mxu0 }
 0x230   :  { %18943 = vst [vmem:[#allocation38_spill] sm:$0xff] %v15389_v9  ;;  %v2005_v0 = vpop.f32.mrb[143].mxu1  ;;  %v15393_v54 = vadd.f32 %v2003_v20, %v1181_v41  ;;  %v11281_v20 = vcombine.low %v15235_v37, %v15254_v22  ;;  %v11407_v41 = vcombine.low %v15373_v25, %v15378_v12  ;;  %v15420_v22 = vld [vmem:[%s18893_s0 + $0x100] sm:$0xff]  ;;  %v15425_v37 = vld [vmem:[%s18893_s0 + $0x108] sm:$0xff] }
 0x231   :  { %3036 = vmatmul.mubr.bf16.gmra.mrb[248].mxu0 %v11279_v31 }
 0x232   :  { %18944 = vst [vmem:[#allocation39_spill] sm:$0xff] %v15393_v54  ;;  %4407 = vmatmul.mubr.bf16.gmra.mrb[248].mxu1 %v11405_v52  ;;  %3043 = vmatprep.mubr.bf16.mxu0 %v11282_v11  ;;  %v11284_v52 = vcombine.high %v15259_v38, %v15278_v17 }
 0x233   :  { %4414 = vmatprep.mubr.bf16.mxu1 %v11408_v32  ;;  %v11410_v32 = vcombine.high %v15398_v13, %v15403_v30 }
 0x234   :  { %v1186_v18 = vpop.f32.mrb[144].mxu0 }
 0x235   :  { %v2008_v2 = vpop.f32.mrb[144].mxu1  ;;  %v1188_v14 = vpop.f32.mrb[145].mxu0 }
 0x236   :  { %v2010_v31 = vpop.f32.mrb[145].mxu1  ;;  %v1189_v50 = vpop.f32.mrb[146].mxu0  ;;  %v15411_v11 = vadd.f32 %v2008_v2, %v1186_v18 }
 0x237   :  { %v2011_v19 = vpop.f32.mrb[146].mxu1  ;;  %v1191_v0 = vpop.f32.mrb[147].mxu0 }
 0x238   :  { %18945 = vst [vmem:[#allocation40_spill] sm:$0xff] %v15411_v11  ;;  %v2013_v54 = vpop.f32.mrb[147].mxu1  ;;  %v15415_v14 = vadd.f32 %v2011_v19, %v1189_v50 }
 0x239   :  { %3044 = vmatmul.mubr.bf16.gmra.mrb[252].mxu0 %v11281_v20  ;;  %v11283_v54 = vcombine.low %v15259_v38, %v15278_v17  ;;  %v15442_v17 = vld [vmem:[%s18893_s0 + $0x110] sm:$0xff]  ;;  %v15447_v38 = vld [vmem:[%s18893_s0 + $0x118] sm:$0xff] }
 0x23a   :  { %18946 = vst [vmem:[#allocation41_spill] sm:$0xff] %v15415_v14  ;;  %4415 = vmatmul.mubr.bf16.gmra.mrb[252].mxu1 %v11407_v41  ;;  %3051 = vmatprep.mubr.bf16.mxu0 %v11284_v52  ;;  %v11409_v41 = vcombine.low %v15398_v13, %v15403_v30  ;;  %v11286_v52 = vcombine.high %v15283_v53, %v15305_v33 }
 0x23b   :  { %4422 = vmatprep.mubr.bf16.mxu1 %v11410_v32  ;;  %v11412_v32 = vcombine.high %v15420_v22, %v15425_v37 }
 0x23c   :  { %v1194_v18 = vpop.f32.mrb[148].mxu0 }
 0x23d   :  { %v2016_v2 = vpop.f32.mrb[148].mxu1  ;;  %v1196_v31 = vpop.f32.mrb[149].mxu0 }
 0x23e   :  { %v2018_v20 = vpop.f32.mrb[149].mxu1  ;;  %v1197_v50 = vpop.f32.mrb[150].mxu0  ;;  %v15433_v19 = vadd.f32 %v2016_v2, %v1194_v18 }
 0x23f   :  { %v2019_v0 = vpop.f32.mrb[150].mxu1  ;;  %v1199_v14 = vpop.f32.mrb[151].mxu0  ;;  %v12870_v20 = vld [vmem:[%s18894_s3 + $0x1c] ss:$12 sps:$4 sm:$0xff]  }
 0x240   :  { %18947 = vst [vmem:[#allocation42_spill] sm:$0xff] %v15433_v19  ;;  %v2021_v11 = vpop.f32.mrb[151].mxu1  ;;  %v15437_v31 = vadd.f32 %v2019_v0, %v1197_v50  ;;  %v11288_v0 = vcombine.high %v15310_v57, %v15327_v6  ;;  %7236 = vmatprep.subr.bf16.mxu0 %v12870_v20 }
 0x241   :  { %3052 = vmatmul.mubr.bf16.gmra.mrb[0].mxu0 %v11283_v54  ;;  %v11285_v11 = vcombine.low %v15283_v53, %v15305_v33  ;;  %v12868_v54 = vld [vmem:[%s18894_s3 + $0x18] ss:$12 sps:$4 sm:$0xff]   ;;  %v11414_v33 = vcombine.high %v15442_v17, %v15447_v38 }
 0x242   :  { %18948 = vst [vmem:[#allocation43_spill] sm:$0xff] %v15437_v31  ;;  %4423 = vmatmul.mubr.bf16.gmra.mrb[0].mxu1 %v11409_v41  ;;  %3059 = vmatprep.mubr.bf16.mxu0 %v11286_v52  ;;  %v11411_v52 = vcombine.low %v15420_v22, %v15425_v37 }
 0x243   :  { %4430 = vmatprep.mubr.bf16.mxu1 %v11412_v32  ;;  %7237 = vmatpush1.bf16.msra.mxu0 %v12868_v54  ;;  %v11287_v54 = vcombine.low %v15310_v57, %v15327_v6  ;;  %v15492_v6 = vld [vmem:[%s18893_s0 + $0x130] sm:$0xff]  ;;  %v15497_v57 = vld [vmem:[%s18893_s0 + $0x138] sm:$0xff] }
 0x244   :  { %v1202_v14 = vpop.f32.mrb[152].mxu0 }
 0x245   :  { %v2024_v18 = vpop.f32.mrb[152].mxu1  ;;  %v1204_v2 = vpop.f32.mrb[153].mxu0 }
 0x246   :  { %v2026_v50 = vpop.f32.mrb[153].mxu1  ;;  %v1205_v41 = vpop.f32.mrb[154].mxu0  ;;  %v15461_v32 = vadd.f32 %v2024_v18, %v1202_v14  ;;  %v15475_v14 = vld [vmem:[%s18893_s0 + $0x128] sm:$0xff] }
 0x247   :  { %v2027_v2 = vpop.f32.mrb[154].mxu1  ;;  %v1207_v53 = vpop.f32.mrb[155].mxu0  ;;  %v15470_v50 = vld [vmem:[%s18893_s0 + $0x120] sm:$0xff] }
 0x248   :  { %18949 = vst [vmem:[#allocation44_spill] sm:$0xff] %v15461_v32  ;;  %v2029_v31 = vpop.f32.mrb[155].mxu1  ;;  %v15465_v19 = vadd.f32 %v2027_v2, %v1205_v41 }
 0x249   :  { %3060 = vmatmul.mubr.bf16.gmra.mrb[4].mxu0 %v11285_v11 }
 0x24a   :  { %18950 = vst [vmem:[#allocation45_spill] sm:$0xff] %v15465_v19  ;;  %4431 = vmatmul.mubr.bf16.gmra.mrb[4].mxu1 %v11411_v52  ;;  %3067 = vmatprep.mubr.bf16.mxu0 %v11288_v0  ;;  %v11413_v52 = vcombine.low %v15442_v17, %v15447_v38  ;;  %v11290_v0 = vcombine.high %v15332_v27, %v15348_v55 }
 0x24b   :  { %4438 = vmatprep.mubr.bf16.mxu1 %v11414_v33  ;;  %v11416_v33 = vcombine.high %v15470_v50, %v15475_v14 }
 0x24c   :  { %v1210_v18 = vpop.f32.mrb[156].mxu0 }
 0x24d   :  { %v2032_v20 = vpop.f32.mrb[156].mxu1  ;;  %v1212_v31 = vpop.f32.mrb[157].mxu0 }
 0x24e   :  { %v2034_v11 = vpop.f32.mrb[157].mxu1  ;;  %v1213_v41 = vpop.f32.mrb[158].mxu0  ;;  %v15483_v2 = vadd.f32 %v2032_v20, %v1210_v18 }
 0x24f   :  { %v2035_v53 = vpop.f32.mrb[158].mxu1  ;;  %v1215_v19 = vpop.f32.mrb[159].mxu0 }
 0x250   :  { %18951 = vst [vmem:[#allocation46_spill] sm:$0xff] %v15483_v2  ;;  %v2037_v32 = vpop.f32.mrb[159].mxu1  ;;  %v15487_v31 = vadd.f32 %v2035_v53, %v1213_v41  ;;  %v11415_v41 = vcombine.low %v15470_v50, %v15475_v14 }
 0x251   :  { %3068 = vmatmul.mubr.bf16.gmra.mrb[8].mxu0 %v11287_v54  ;;  %v11289_v32 = vcombine.low %v15332_v27, %v15348_v55  ;;  %v15514_v27 = vld [vmem:[%s18893_s0 + $0x140] sm:$0xff]  ;;  %v15519_v55 = vld [vmem:[%s18893_s0 + $0x148] sm:$0xff] }
 0x252   :  { %18952 = vst [vmem:[#allocation47_spill] sm:$0xff] %v15487_v31  ;;  %4439 = vmatmul.mubr.bf16.gmra.mrb[8].mxu1 %v11413_v52  ;;  %3075 = vmatprep.mubr.bf16.mxu0 %v11290_v0  ;;  %v11292_v52 = vcombine.high %v15353_v40, %v15373_v25 }
 0x253   :  { %4446 = vmatprep.mubr.bf16.mxu1 %v11416_v33  ;;  %v11418_v33 = vcombine.high %v15492_v6, %v15497_v57 }
 0x254   :  { %v1218_v19 = vpop.f32.mrb[160].mxu0 }
 0x255   :  { %v2040_v18 = vpop.f32.mrb[160].mxu1  ;;  %v1220_v20 = vpop.f32.mrb[161].mxu0 }
 0x256   :  { %v2042_v54 = vpop.f32.mrb[161].mxu1  ;;  %v1221_v11 = vpop.f32.mrb[162].mxu0  ;;  %v15505_v0 = vadd.f32 %v2040_v18, %v1218_v19 }
 0x257   :  { %v2043_v53 = vpop.f32.mrb[162].mxu1  ;;  %v1223_v31 = vpop.f32.mrb[163].mxu0 }
 0x258   :  { %18953 = vst [vmem:[#allocation48_spill] sm:$0xff] %v15505_v0  ;;  %v2045_v2 = vpop.f32.mrb[163].mxu1  ;;  %v15509_v20 = vadd.f32 %v2043_v53, %v1221_v11  ;;  %v11417_v11 = vcombine.low %v15492_v6, %v15497_v57 }
 0x259   :  { %3076 = vmatmul.mubr.bf16.gmra.mrb[12].mxu0 %v11289_v32  ;;  %v11291_v2 = vcombine.low %v15353_v40, %v15373_v25  ;;  %v15536_v40 = vld [vmem:[%s18893_s0 + $0x150] sm:$0xff]  ;;  %v15541_v25 = vld [vmem:[%s18893_s0 + $0x158] sm:$0xff] }
 0x25a   :  { %18954 = vst [vmem:[#allocation49_spill] sm:$0xff] %v15509_v20  ;;  %4447 = vmatmul.mubr.bf16.gmra.mrb[12].mxu1 %v11415_v41  ;;  %3083 = vmatprep.mubr.bf16.mxu0 %v11292_v52  ;;  %v11294_v41 = vcombine.high %v15378_v12, %v15398_v13 }
 0x25b   :  { %4454 = vmatprep.mubr.bf16.mxu1 %v11418_v33  ;;  %v11420_v33 = vcombine.high %v15514_v27, %v15519_v55 }
 0x25c   :  { %v1226_v31 = vpop.f32.mrb[164].mxu0 }
 0x25d   :  { %v2048_v19 = vpop.f32.mrb[164].mxu1  ;;  %v1228_v18 = vpop.f32.mrb[165].mxu0 }
 0x25e   :  { %v2050_v32 = vpop.f32.mrb[165].mxu1  ;;  %v1229_v54 = vpop.f32.mrb[166].mxu0  ;;  %v15527_v52 = vadd.f32 %v2048_v19, %v1226_v31 }
 0x25f   :  { %v2051_v53 = vpop.f32.mrb[166].mxu1  ;;  %v1231_v20 = vpop.f32.mrb[167].mxu0  ;;  %v12885_v32 = vld [vmem:[%s18894_s3 + $0x34] ss:$12 sps:$4 sm:$0xff]  }
 0x260   :  { %18955 = vst [vmem:[#allocation50_spill] sm:$0xff] %v15527_v52  ;;  %v2053_v0 = vpop.f32.mrb[167].mxu1  ;;  %v15531_v18 = vadd.f32 %v2051_v53, %v1229_v54  ;;  %v11296_v53 = vcombine.high %v15403_v30, %v15420_v22  ;;  %7238 = vmatprep.subr.bf16.mxu0 %v12885_v32 }
 0x261   :  { %3084 = vmatmul.mubr.bf16.gmra.mrb[16].mxu0 %v11291_v2  ;;  %v11293_v0 = vcombine.low %v15378_v12, %v15398_v13  ;;  %v12883_v2 = vld [vmem:[%s18894_s3 + $0x30] ss:$12 sps:$4 sm:$0xff]   ;;  %v11422_v13 = vcombine.high %v15536_v40, %v15541_v25 }
 0x262   :  { %18956 = vst [vmem:[#allocation51_spill] sm:$0xff] %v15531_v18  ;;  %4455 = vmatmul.mubr.bf16.gmra.mrb[16].mxu1 %v11417_v11  ;;  %3091 = vmatprep.mubr.bf16.mxu0 %v11294_v41  ;;  %v11419_v41 = vcombine.low %v15514_v27, %v15519_v55 }
 0x263   :  { %4462 = vmatprep.mubr.bf16.mxu1 %v11420_v33  ;;  %7239 = vmatpush1.bf16.msra.mxu0 %v12883_v2  ;;  %v11295_v2 = vcombine.low %v15403_v30, %v15420_v22  ;;  %v15586_v30 = vld [vmem:[%s18893_s0 + $0x170] sm:$0xff]  ;;  %v15591_v22 = vld [vmem:[%s18893_s0 + $0x178] sm:$0xff] }
 0x264   :  { %v1234_v20 = vpop.f32.mrb[168].mxu0 }
 0x265   :  { %v2056_v31 = vpop.f32.mrb[168].mxu1  ;;  %v1236_v19 = vpop.f32.mrb[169].mxu0 }
 0x266   :  { %v2058_v54 = vpop.f32.mrb[169].mxu1  ;;  %v1237_v11 = vpop.f32.mrb[170].mxu0  ;;  %v15555_v33 = vadd.f32 %v2056_v31, %v1234_v20  ;;  %v15569_v20 = vld [vmem:[%s18893_s0 + $0x168] sm:$0xff] }
 0x267   :  { %v2059_v19 = vpop.f32.mrb[170].mxu1  ;;  %v1239_v12 = vpop.f32.mrb[171].mxu0  ;;  %v15564_v54 = vld [vmem:[%s18893_s0 + $0x160] sm:$0xff] }
 0x268   :  { %18957 = vst [vmem:[#allocation52_spill] sm:$0xff] %v15555_v33  ;;  %v2061_v18 = vpop.f32.mrb[171].mxu1  ;;  %v15559_v52 = vadd.f32 %v2059_v19, %v1237_v11 }
 0x269   :  { %3092 = vmatmul.mubr.bf16.gmra.mrb[20].mxu0 %v11293_v0 }
 0x26a   :  { %18958 = vst [vmem:[#allocation53_spill] sm:$0xff] %v15559_v52  ;;  %4463 = vmatmul.mubr.bf16.gmra.mrb[20].mxu1 %v11419_v41  ;;  %3099 = vmatprep.mubr.bf16.mxu0 %v11296_v53  ;;  %v11421_v41 = vcombine.low %v15536_v40, %v15541_v25  ;;  %v11298_v53 = vcombine.high %v15425_v37, %v15442_v17 }
 0x26b   :  { %4470 = vmatprep.mubr.bf16.mxu1 %v11422_v13  ;;  %v11424_v13 = vcombine.high %v15564_v54, %v15569_v20 }
 0x26c   :  { %v1242_v31 = vpop.f32.mrb[172].mxu0 }
 0x26d   :  { %v2064_v32 = vpop.f32.mrb[172].mxu1  ;;  %v1244_v18 = vpop.f32.mrb[173].mxu0 }
 0x26e   :  { %v2066_v0 = vpop.f32.mrb[173].mxu1  ;;  %v1245_v11 = vpop.f32.mrb[174].mxu0  ;;  %v15577_v19 = vadd.f32 %v2064_v32, %v1242_v31 }
 0x26f   :  { %v2067_v12 = vpop.f32.mrb[174].mxu1  ;;  %v1247_v52 = vpop.f32.mrb[175].mxu0 }
 0x270   :  { %18959 = vst [vmem:[#allocation54_spill] sm:$0xff] %v15577_v19  ;;  %v2069_v33 = vpop.f32.mrb[175].mxu1  ;;  %v15581_v18 = vadd.f32 %v2067_v12, %v1245_v11  ;;  %v11423_v11 = vcombine.low %v15564_v54, %v15569_v20 }
 0x271   :  { %3100 = vmatmul.mubr.bf16.gmra.mrb[24].mxu0 %v11295_v2  ;;  %v11297_v33 = vcombine.low %v15425_v37, %v15442_v17  ;;  %v15608_v37 = vld [vmem:[%s18893_s0 + $0x180] sm:$0xff]  ;;  %v15613_v17 = vld [vmem:[%s18893_s0 + $0x188] sm:$0xff] }
 0x272   :  { %18960 = vst [vmem:[#allocation55_spill] sm:$0xff] %v15581_v18  ;;  %4471 = vmatmul.mubr.bf16.gmra.mrb[24].mxu1 %v11421_v41  ;;  %3107 = vmatprep.mubr.bf16.mxu0 %v11298_v53  ;;  %v11300_v41 = vcombine.high %v15447_v38, %v15470_v50 }
 0x273   :  { %4478 = vmatprep.mubr.bf16.mxu1 %v11424_v13  ;;  %v11426_v13 = vcombine.high %v15586_v30, %v15591_v22 }
 0x274   :  { %v1250_v52 = vpop.f32.mrb[176].mxu0 }
 0x275   :  { %v2072_v31 = vpop.f32.mrb[176].mxu1  ;;  %v1252_v32 = vpop.f32.mrb[177].mxu0 }
 0x276   :  { %v2074_v2 = vpop.f32.mrb[177].mxu1  ;;  %v1253_v0 = vpop.f32.mrb[178].mxu0  ;;  %v15599_v53 = vadd.f32 %v2072_v31, %v1250_v52 }
 0x277   :  { %v2075_v12 = vpop.f32.mrb[178].mxu1  ;;  %v1255_v18 = vpop.f32.mrb[179].mxu0  ;;  %v12904_v2 = vld [vmem:[%s18894_s3 + $0x4c] ss:$12 sps:$4 sm:$0xff]  }
 0x278   :  { %18961 = vst [vmem:[#allocation56_spill] sm:$0xff] %v15599_v53  ;;  %v2077_v19 = vpop.f32.mrb[179].mxu1  ;;  %v15603_v32 = vadd.f32 %v2075_v12, %v1253_v0  ;;  %v11302_v12 = vcombine.high %v15475_v14, %v15492_v6  ;;  %7240 = vmatprep.subr.bf16.mxu0 %v12904_v2 }
 0x279   :  { %3108 = vmatmul.mubr.bf16.gmra.mrb[28].mxu0 %v11297_v33  ;;  %v11299_v19 = vcombine.low %v15447_v38, %v15470_v50  ;;  %v12902_v33 = vld [vmem:[%s18894_s3 + $0x48] ss:$12 sps:$4 sm:$0xff]   ;;  %v11428_v50 = vcombine.high %v15608_v37, %v15613_v17 }
 0x27a   :  { %18962 = vst [vmem:[#allocation57_spill] sm:$0xff] %v15603_v32  ;;  %4479 = vmatmul.mubr.bf16.gmra.mrb[28].mxu1 %v11423_v11  ;;  %3115 = vmatprep.mubr.bf16.mxu0 %v11300_v41  ;;  %v11425_v41 = vcombine.low %v15586_v30, %v15591_v22 }
 0x27b   :  { %4486 = vmatprep.mubr.bf16.mxu1 %v11426_v13  ;;  %7241 = vmatpush1.bf16.msra.mxu0 %v12902_v33  ;;  %v11301_v33 = vcombine.low %v15475_v14, %v15492_v6  ;;  %v15658_v14 = vld [vmem:[%s18893_s0 + $0x1a0] sm:$0xff]  ;;  %v15663_v6 = vld [vmem:[%s18893_s0 + $0x1a8] sm:$0xff] }
 0x27c   :  { %v1258_v18 = vpop.f32.mrb[180].mxu0 }
 0x27d   :  { %v2080_v52 = vpop.f32.mrb[180].mxu1  ;;  %v1260_v31 = vpop.f32.mrb[181].mxu0 }
 0x27e   :  { %v2082_v0 = vpop.f32.mrb[181].mxu1  ;;  %v1261_v11 = vpop.f32.mrb[182].mxu0  ;;  %v15627_v13 = vadd.f32 %v2080_v52, %v1258_v18  ;;  %v15641_v18 = vld [vmem:[%s18893_s0 + $0x198] sm:$0xff] }
 0x27f   :  { %v2083_v31 = vpop.f32.mrb[182].mxu1  ;;  %v1263_v38 = vpop.f32.mrb[183].mxu0  ;;  %v15636_v0 = vld [vmem:[%s18893_s0 + $0x190] sm:$0xff] }
 0x280   :  { %18963 = vst [vmem:[#allocation58_spill] sm:$0xff] %v15627_v13  ;;  %v2085_v32 = vpop.f32.mrb[183].mxu1  ;;  %v15631_v53 = vadd.f32 %v2083_v31, %v1261_v11 }
 0x281   :  { %3116 = vmatmul.mubr.bf16.gmra.mrb[32].mxu0 %v11299_v19 }
 0x282   :  { %18964 = vst [vmem:[#allocation59_spill] sm:$0xff] %v15631_v53  ;;  %4487 = vmatmul.mubr.bf16.gmra.mrb[32].mxu1 %v11425_v41  ;;  %3123 = vmatprep.mubr.bf16.mxu0 %v11302_v12  ;;  %v11427_v41 = vcombine.low %v15608_v37, %v15613_v17  ;;  %v11304_v12 = vcombine.high %v15497_v57, %v15514_v27 }
 0x283   :  { %4494 = vmatprep.mubr.bf16.mxu1 %v11428_v50  ;;  %v11430_v50 = vcombine.high %v15636_v0, %v15641_v18 }
 0x284   :  { %v1266_v52 = vpop.f32.mrb[184].mxu0 }
 0x285   :  { %v2088_v2 = vpop.f32.mrb[184].mxu1  ;;  %v1268_v32 = vpop.f32.mrb[185].mxu0 }
 0x286   :  { %v2090_v19 = vpop.f32.mrb[185].mxu1  ;;  %v1269_v11 = vpop.f32.mrb[186].mxu0  ;;  %v15649_v31 = vadd.f32 %v2088_v2, %v1266_v52 }
 0x287   :  { %v2091_v38 = vpop.f32.mrb[186].mxu1  ;;  %v1271_v53 = vpop.f32.mrb[187].mxu0 }
 0x288   :  { %18965 = vst [vmem:[#allocation60_spill] sm:$0xff] %v15649_v31  ;;  %v2093_v13 = vpop.f32.mrb[187].mxu1  ;;  %v15653_v32 = vadd.f32 %v2091_v38, %v1269_v11  ;;  %v11429_v11 = vcombine.low %v15636_v0, %v15641_v18 }
 0x289   :  { %3124 = vmatmul.mubr.bf16.gmra.mrb[36].mxu0 %v11301_v33  ;;  %v11303_v13 = vcombine.low %v15497_v57, %v15514_v27  ;;  %v15680_v57 = vld [vmem:[%s18893_s0 + $0x1b0] sm:$0xff]  ;;  %v15685_v27 = vld [vmem:[%s18893_s0 + $0x1b8] sm:$0xff] }
 0x28a   :  { %18966 = vst [vmem:[#allocation61_spill] sm:$0xff] %v15653_v32  ;;  %4495 = vmatmul.mubr.bf16.gmra.mrb[36].mxu1 %v11427_v41  ;;  %3131 = vmatprep.mubr.bf16.mxu0 %v11304_v12  ;;  %v11306_v41 = vcombine.high %v15519_v55, %v15536_v40 }
 0x28b   :  { %4502 = vmatprep.mubr.bf16.mxu1 %v11430_v50  ;;  %v11432_v50 = vcombine.high %v15658_v14, %v15663_v6 }
 0x28c   :  { %v1274_v53 = vpop.f32.mrb[188].mxu0 }
 0x28d   :  { %v2096_v52 = vpop.f32.mrb[188].mxu1  ;;  %v1276_v2 = vpop.f32.mrb[189].mxu0 }
 0x28e   :  { %v2098_v33 = vpop.f32.mrb[189].mxu1  ;;  %v1277_v19 = vpop.f32.mrb[190].mxu0  ;;  %v15671_v12 = vadd.f32 %v2096_v52, %v1274_v53 }
 0x28f   :  { %v2099_v38 = vpop.f32.mrb[190].mxu1  ;;  %v1279_v32 = vpop.f32.mrb[191].mxu0 }
 0x290   :  { %18967 = vst [vmem:[#allocation62_spill] sm:$0xff] %v15671_v12  ;;  %v2101_v31 = vpop.f32.mrb[191].mxu1  ;;  %v15675_v2 = vadd.f32 %v2099_v38, %v1277_v19  ;;  %v11431_v19 = vcombine.low %v15658_v14, %v15663_v6 }
 0x291   :  { %3132 = vmatmul.mubr.bf16.gmra.mrb[40].mxu0 %v11303_v13  ;;  %v11305_v31 = vcombine.low %v15519_v55, %v15536_v40  ;;  %v12914_v55 = vld [vmem:[%s18894_s3 + $0x8] ss:$12 sps:$4 sm:$0xff]  }
 0x292   :  { %18968 = vst [vmem:[#allocation63_spill] sm:$0xff] %v15675_v2  ;;  %4503 = vmatmul.mubr.bf16.gmra.mrb[40].mxu1 %v11429_v11  ;;  %3139 = vmatprep.mubr.bf16.mxu0 %v11306_v41  ;;  %v11308_v11 = vcombine.high %v15541_v25, %v15564_v54 }
 0x293   :  { %4510 = vmatprep.mubr.bf16.mxu1 %v11432_v50  ;;  %v11434_v50 = vcombine.high %v15680_v57, %v15685_v27 }
 0x294   :  { %v1282_v32 = vpop.f32.mrb[192].mxu0 }
 0x295   :  { %v2104_v53 = vpop.f32.mrb[192].mxu1  ;;  %v1284_v52 = vpop.f32.mrb[193].mxu0 }
 0x296   :  { %v2106_v13 = vpop.f32.mrb[193].mxu1  ;;  %v1285_v33 = vpop.f32.mrb[194].mxu0  ;;  %v15693_v41 = vadd.f32 %v2104_v53, %v1282_v32  ;;  %v12913_v52 = vld [vmem:[%s18894_s3 + $0xc8] ss:$12 sps:$4 sm:$0xff]  }
 0x297   :  { %v2107_v38 = vpop.f32.mrb[194].mxu1  ;;  %v1287_v2 = vpop.f32.mrb[195].mxu0  ;;  %12108 = vmatprep.subr.bf16.mxu1 %v12913_v52  ;;  %v15713_v32 = vld [vmem:[%s18893_s0 + $0x1c8] sm:$0xff]  ;;  %v11310_v52 = vcombine.high %v15569_v20, %v15586_v30 }
 0x298   :  { %18969 = vst [vmem:[#allocation64_spill] sm:$0xff] %v15693_v41  ;;  %v2109_v40 = vpop.f32.mrb[195].mxu1  ;;  %v15703_v13 = vadd.f32 %v2107_v38, %v1285_v33  ;;  %v15708_v2 = vld [vmem:[%s18893_s0 + $0x1c0] sm:$0xff]  ;;  %12109 = vmatpush3.bf16.msra.mxu1 %v12914_v55  ;;  %v11433_v38 = vcombine.low %v15680_v57, %v15685_v27 }
 0x299   :  { %3140 = vmatmul.mubr.bf16.gmra.mrb[44].mxu0 %v11305_v31  ;;  %v11307_v31 = vcombine.low %v15541_v25, %v15564_v54  ;;  %v12919_v55 = vld [vmem:[%s18894_s3 + $0x60] ss:$12 sps:$4 sm:$0xff]   ;;  %v12921_v25 = vld [vmem:[%s18894_s3 + $0x64] ss:$12 sps:$4 sm:$0xff]  }
 0x29a   :  { %18970 = vst [vmem:[#allocation65_spill] sm:$0xff] %v15703_v13  ;;  %4511 = vmatmul.mubr.bf16.gmra.mrb[44].mxu1 %v11431_v19  ;;  %3147 = vmatprep.mubr.bf16.mxu0 %v11308_v11 }
 0x29b   :  { %4518 = vmatprep.mubr.bf16.mxu1 %v11434_v50  ;;  %v11436_v50 = vcombine.high %v15708_v2, %v15713_v32  ;;  %7242 = vmatprep.subr.bf16.mxu0 %v12921_v25  ;;  %v11312_v25 = vcombine.high %v15591_v22, %v15608_v37 }
 0x29c   :  { %v1290_v53 = vpop.f32.mrb[196].mxu0  ;;  %7243 = vmatpush1.bf16.msra.mxu0 %v12919_v55 }
 0x29d   :  { %v2112_v40 = vpop.f32.mrb[196].mxu1  ;;  %v1292_v33 = vpop.f32.mrb[197].mxu0 }
 0x29e   :  { %v2114_v19 = vpop.f32.mrb[197].mxu1  ;;  %v1293_v11 = vpop.f32.mrb[198].mxu0  ;;  %v15721_v13 = vadd.f32 %v2112_v40, %v1290_v53  ;;  %v15741_v53 = vld [vmem:[%s18893_s0 + $0x1d8] sm:$0xff] }
 0x29f   :  { %v2115_v41 = vpop.f32.mrb[198].mxu1  ;;  %v1295_v12 = vpop.f32.mrb[199].mxu0 }
 0x2a0   :  { %18971 = vst [vmem:[#allocation66_spill] sm:$0xff] %v15721_v13  ;;  %v2117_v54 = vpop.f32.mrb[199].mxu1  ;;  %v15731_v33 = vadd.f32 %v2115_v41, %v1293_v11  ;;  %v15736_v12 = vld [vmem:[%s18893_s0 + $0x1d0] sm:$0xff] }
 0x2a1   :  { %3148 = vmatmul.mubr.bf16.gmra.mrb[48].mxu0 %v11307_v31  ;;  %v11309_v31 = vcombine.low %v15569_v20, %v15586_v30  ;;  %v15758_v30 = vld [vmem:[%s18893_s0 + $0x1e0] sm:$0xff] }
 0x2a2   :  { %18972 = vst [vmem:[#allocation67_spill] sm:$0xff] %v15731_v33  ;;  %4519 = vmatmul.mubr.bf16.gmra.mrb[48].mxu1 %v11433_v38  ;;  %3155 = vmatprep.mubr.bf16.mxu0 %v11310_v52  ;;  %v11435_v52 = vcombine.low %v15708_v2, %v15713_v32  ;;  %v11324_v9 = vcombine.high %v15741_v53, %v15758_v30 }
 0x2a3   :  { %4526 = vmatprep.mubr.bf16.mxu1 %v11436_v50  ;;  %v11438_v50 = vcombine.high %v15736_v12, %v15741_v53 }
 0x2a4   :  { %v1298_v40 = vpop.f32.mrb[200].mxu0 }
 0x2a5   :  { %v2120_v19 = vpop.f32.mrb[200].mxu1  ;;  %v1300_v41 = vpop.f32.mrb[201].mxu0 }
 0x2a6   :  { %v2122_v11 = vpop.f32.mrb[201].mxu1  ;;  %v1301_v38 = vpop.f32.mrb[202].mxu0  ;;  %v15749_v54 = vadd.f32 %v2120_v19, %v1298_v40 }
 0x2a7   :  { %v2123_v33 = vpop.f32.mrb[202].mxu1  ;;  %v1303_v13 = vpop.f32.mrb[203].mxu0 }
 0x2a8   :  { %18973 = vst [vmem:[#allocation68_spill] sm:$0xff] %v15749_v54  ;;  %v2125_v55 = vpop.f32.mrb[203].mxu1  ;;  %v15753_v41 = vadd.f32 %v2123_v33, %v1301_v38  ;;  %v15763_v13 = vld [vmem:[%s18893_s0 + $0x1e8] sm:$0xff]  ;;  %v11311_v33 = vcombine.low %v15591_v22, %v15608_v37  ;;  %v11437_v38 = vcombine.low %v15736_v12, %v15741_v53  ;;  %v15780_v37 = vld [vmem:[%s18893_s0 + $0x1f0] sm:$0xff] }
 0x2a9   :  { %3156 = vmatmul.mubr.bf16.gmra.mrb[52].mxu0 %v11309_v31 }
 0x2aa   :  { %18974 = vst [vmem:[#allocation69_spill] sm:$0xff] %v15753_v41  ;;  %4527 = vmatmul.mubr.bf16.gmra.mrb[52].mxu1 %v11435_v52  ;;  %3163 = vmatprep.mubr.bf16.mxu0 %v11312_v25  ;;  %v11314_v52 = vcombine.high %v15613_v17, %v15636_v0  ;;  %v11440_v41 = vcombine.high %v15758_v30, %v15763_v13 }
 0x2ab   :  { %4534 = vmatprep.mubr.bf16.mxu1 %v11438_v50 }
 0x2ac   :  { %v1306_v20 = vpop.f32.mrb[204].mxu0 }
 0x2ad   :  { %v2128_v40 = vpop.f32.mrb[204].mxu1  ;;  %v1308_v19 = vpop.f32.mrb[205].mxu0 }
 0x2ae   :  { %v2130_v31 = vpop.f32.mrb[205].mxu1  ;;  %v1309_v11 = vpop.f32.mrb[206].mxu0  ;;  %v15771_v25 = vadd.f32 %v2128_v40, %v1306_v20  ;;  %v15785_v20 = vld [vmem:[%s18893_s0 + $0x1f8] sm:$0xff] }
 0x2af   :  { %v2131_v50 = vpop.f32.mrb[206].mxu1  ;;  %v1311_v55 = vpop.f32.mrb[207].mxu0 }
 0x2b0   :  { %18975 = vst [vmem:[#allocation70_spill] sm:$0xff] %v15771_v25  ;;  %v2133_v54 = vpop.f32.mrb[207].mxu1  ;;  %v15775_v19 = vadd.f32 %v2131_v50, %v1309_v11  ;;  %v11316_v50 = vcombine.high %v15641_v18, %v15658_v14 }
 0x2b1   :  { %3164 = vmatmul.mubr.bf16.gmra.mrb[56].mxu0 %v11311_v33  ;;  %v11313_v54 = vcombine.low %v15613_v17, %v15636_v0  ;;  %v12940_v33 = vld [vmem:[%s18894_s3 + $0x7c] ss:$12 sps:$4 sm:$0xff]   ;;  %v11442_v0 = vcombine.high %v15780_v37, %v15785_v20 }
 0x2b2   :  { %18976 = vst [vmem:[#allocation71_spill] sm:$0xff] %v15775_v19  ;;  %4535 = vmatmul.mubr.bf16.gmra.mrb[56].mxu1 %v11437_v38  ;;  %3171 = vmatprep.mubr.bf16.mxu0 %v11314_v52  ;;  %v11439_v52 = vcombine.low %v15758_v30, %v15763_v13 }
 0x2b3   :  { %4542 = vmatprep.mubr.bf16.mxu1 %v11440_v41  ;;  %v12938_v41 = vld [vmem:[%s18894_s3 + $0x78] ss:$12 sps:$4 sm:$0xff]   ;;  %7244 = vmatprep.subr.bf16.mxu0 %v12940_v33 }
 0x2b4   :  { %v1314_v22 = vpop.f32.mrb[208].mxu0  ;;  %7245 = vmatpush1.bf16.msra.mxu0 %v12938_v41  ;;  %v11315_v41 = vcombine.low %v15641_v18, %v15658_v14  ;;  %v15830_v14 = vld [vmem:[%s18893_s0 + $0x210] sm:$0xff] }
 0x2b5   :  { %v2136_v40 = vpop.f32.mrb[208].mxu1  ;;  %v1316_v31 = vpop.f32.mrb[209].mxu0 }
 0x2b6   :  { %v2138_v11 = vpop.f32.mrb[209].mxu1  ;;  %v1317_v38 = vpop.f32.mrb[210].mxu0  ;;  %v15799_v55 = vadd.f32 %v2136_v40, %v1314_v22  ;;  %v15808_v22 = vld [vmem:[%s18893_s0 + $0x200] sm:$0xff]  ;;  %v15813_v40 = vld [vmem:[%s18893_s0 + $0x208] sm:$0xff] }
 0x2b7   :  { %v2139_v31 = vpop.f32.mrb[210].mxu1  ;;  %v1319_v17 = vpop.f32.mrb[211].mxu0 }
 0x2b8   :  { %18977 = vst [vmem:[#allocation72_spill] sm:$0xff] %v15799_v55  ;;  %v2141_v19 = vpop.f32.mrb[211].mxu1  ;;  %v15803_v25 = vadd.f32 %v2139_v31, %v1317_v38 }
 0x2b9   :  { %3172 = vmatmul.mubr.bf16.gmra.mrb[60].mxu0 %v11313_v54 }
 0x2ba   :  { %18978 = vst [vmem:[#allocation73_spill] sm:$0xff] %v15803_v25  ;;  %4543 = vmatmul.mubr.bf16.gmra.mrb[60].mxu1 %v11439_v52  ;;  %3179 = vmatprep.mubr.bf16.mxu0 %v11316_v50  ;;  %v11441_v52 = vcombine.low %v15780_v37, %v15785_v20  ;;  %v11318_v50 = vcombine.high %v15663_v6, %v15680_v57 }
 0x2bb   :  { %4550 = vmatprep.mubr.bf16.mxu1 %v11442_v0  ;;  %v11444_v25 = vcombine.high %v15808_v22, %v15813_v40 }
 0x2bc   :  { %v1322_v11 = vpop.f32.mrb[212].mxu0 }
 0x2bd   :  { %v2144_v33 = vpop.f32.mrb[212].mxu1  ;;  %v1324_v19 = vpop.f32.mrb[213].mxu0 }
 0x2be   :  { %v2146_v54 = vpop.f32.mrb[213].mxu1  ;;  %v1325_v38 = vpop.f32.mrb[214].mxu0  ;;  %v15821_v31 = vadd.f32 %v2144_v33, %v1322_v11  ;;  %v15835_v11 = vld [vmem:[%s18893_s0 + $0x218] sm:$0xff] }
 0x2bf   :  { %v2147_v17 = vpop.f32.mrb[214].mxu1  ;;  %v1327_v0 = vpop.f32.mrb[215].mxu0 }
 0x2c0   :  { %18979 = vst [vmem:[#allocation74_spill] sm:$0xff] %v15821_v31  ;;  %v2149_v55 = vpop.f32.mrb[215].mxu1  ;;  %v15825_v19 = vadd.f32 %v2147_v17, %v1325_v38 }
 0x2c1   :  { %3180 = vmatmul.mubr.bf16.gmra.mrb[64].mxu0 %v11315_v41  ;;  %v11317_v55 = vcombine.low %v15663_v6, %v15680_v57  ;;  %v12949_v6 = vld [vmem:[%s18894_s3 + $0xe0] ss:$12 sps:$4 sm:$0xff]  }
 0x2c2   :  { %18980 = vst [vmem:[#allocation75_spill] sm:$0xff] %v15825_v19  ;;  %4551 = vmatmul.mubr.bf16.gmra.mrb[64].mxu1 %v11441_v52  ;;  %3187 = vmatprep.mubr.bf16.mxu0 %v11318_v50  ;;  %v11320_v52 = vcombine.high %v15685_v27, %v15708_v2  ;;  %v11446_v19 = vcombine.high %v15830_v14, %v15835_v11 }
 0x2c3   :  { %4558 = vmatprep.mubr.bf16.mxu1 %v11444_v25  ;;  %v11443_v25 = vcombine.low %v15808_v22, %v15813_v40  ;;  %12110 = vmatprep.subr.bf16.mxu1 %v12949_v6 }
 0x2c4   :  { %v1330_v18 = vpop.f32.mrb[216].mxu0 }
 0x2c5   :  { %v2152_v33 = vpop.f32.mrb[216].mxu1  ;;  %v1332_v54 = vpop.f32.mrb[217].mxu0 }
 0x2c6   :  { %v2154_v41 = vpop.f32.mrb[217].mxu1  ;;  %v1333_v38 = vpop.f32.mrb[218].mxu0  ;;  %v15843_v50 = vadd.f32 %v2152_v33, %v1330_v18  ;;  %v15855_v18 = vld [vmem:[%s18893_s0 + $0x220] sm:$0xff] }
 0x2c7   :  { %v2155_v17 = vpop.f32.mrb[218].mxu1  ;;  %v1335_v0 = vpop.f32.mrb[219].mxu0 }
 0x2c8   :  { %18981 = vst [vmem:[#allocation76_spill] sm:$0xff] %v15843_v50  ;;  %v2157_v31 = vpop.f32.mrb[219].mxu1  ;;  %v15847_v54 = vadd.f32 %v2155_v17, %v1333_v38  ;;  %v12950_v38 = vld [vmem:[%s18894_s3 + $0x20] ss:$12 sps:$4 sm:$0xff]   ;;  %v11445_v17 = vcombine.low %v15830_v14, %v15835_v11  ;;  %v11322_v0 = vcombine.high %v15713_v32, %v15736_v12 }
 0x2c9   :  { %3188 = vmatmul.mubr.bf16.gmra.mrb[68].mxu0 %v11317_v55  ;;  %v15860_v31 = vld [vmem:[%s18893_s0 + $0x228] sm:$0xff]  ;;  %12111 = vmatpush3.bf16.msra.mxu1 %v12950_v38 }
 0x2ca   :  { %18982 = vst [vmem:[#allocation77_spill] sm:$0xff] %v15847_v54  ;;  %4559 = vmatmul.mubr.bf16.gmra.mrb[68].mxu1 %v11443_v25  ;;  %3195 = vmatprep.mubr.bf16.mxu0 %v11320_v52 }
 0x2cb   :  { %4566 = vmatprep.mubr.bf16.mxu1 %v11446_v19  ;;  %v11319_v19 = vcombine.low %v15685_v27, %v15708_v2 }
 0x2cc   :  { %v2981_v57 = vpop.f32.mrb[220].mxu0 }
 0x2cd   :  { %v3420_v33 = vadd.f32 %v2981_v57, %v14620_v43  ;;  %v4352_v55 = vpop.f32.mrb[220].mxu1  ;;  %v2983_v41 = vpop.f32.mrb[221].mxu0  ;;  %v15875_v43 = vld [vmem:[%s18895_s2] ss:$0 sm:$0xff]  ;;  %v11448_v57 = vcombine.high %v15855_v18, %v15860_v31 }
 0x2ce   :  { %v4354_v25 = vpop.f32.mrb[221].mxu1  ;;  %v2984_v52 = vpop.f32.mrb[222].mxu0 }
 0x2cf   :  { %v4791_v54 = vadd.f32 %v4352_v55, %v3420_v33  ;;  %v3421_v27 = vadd.f32 %v2984_v52, %v14628_v51  ;;  %v4355_v2 = vpop.f32.mrb[222].mxu1  ;;  %v2986_v6 = vpop.f32.mrb[223].mxu0  ;;  %v12955_v51 = vld [vmem:[%s18894_s3 + $0x90] ss:$12 sps:$4 sm:$0xff]   ;;  %v12957_v55 = vld [vmem:[%s18894_s3 + $0x94] ss:$12 sps:$4 sm:$0xff]  }
 0x2d0   :  { %v4357_v41 = vpop.f32.mrb[223].mxu1  ;;  %7246 = vmatprep.subr.bf16.mxu0 %v12957_v55 }
 0x2d1   :  { %v4792_v25 = vadd.f32 %v4355_v2, %v3421_v27  ;;  %3196 = vmatmul.mubr.bf16.gmra.mrb[72].mxu0 %v11319_v19  ;;  %v4908_v50 = vadd.f32 %v15875_v43, %v4791_v54  ;;  %v15891_v19 = vld [vmem:[%s18893_s0 + $0x230] sm:$0xff]  ;;  %v15896_v54 = vld [vmem:[%s18893_s0 + $0x238] sm:$0xff]  ;;  %v11321_v2 = vcombine.low %v15713_v32, %v15736_v12 }
 0x2d2   :  { %4567 = vmatmul.mubr.bf16.gmra.mrb[72].mxu1 %v11445_v17  ;;  %3203 = vmatprep.mubr.bf16.mxu0 %v11322_v0 }
 0x2d3   :  { %v4909_v33 = vadd.f32 %v15875_v43, %v4792_v25  ;;  %4574 = vmatprep.mubr.bf16.mxu1 %v11448_v57  ;;  %v5018_v6 = vmax.f32 %v4908_v50, 0.0  ;;  %v11447_v25 = vcombine.low %v15855_v18, %v15860_v31  ;;  %7247 = vmatpush1.bf16.msra.mxu0 %v12955_v51 }
 0x2d4   :  { %v2989_v52 = vpop.f32.mrb[224].mxu0 }
 0x2d5   :  { %v5019_v38 = vmax.f32 %v4909_v33, 0.0  ;;  %v3422_v17 = vadd.f32 %v2989_v52, %v14642_v59  ;;  %v4360_v0 = vpop.f32.mrb[224].mxu1  ;;  %v2991_v27 = vpop.f32.mrb[225].mxu0 }
 0x2d6   :  { %v4362_v57 = vpop.f32.mrb[225].mxu1  ;;  %v2992_v41 = vpop.f32.mrb[226].mxu0  ;;  %v11450_v27 = vcombine.high %v15891_v19, %v15896_v54 }
 0x2d7   :  { %v4793_v1 = vadd.f32 %v4360_v0, %v3422_v17  ;;  %v3423_v33 = vadd.f32 %v2992_v41, %v14650_v7  ;;  %v4363_v59 = vpop.f32.mrb[226].mxu1  ;;  %v2994_v52 = vpop.f32.mrb[227].mxu0  ;;  %v15908_v12 = vpack.c.bf16 %v5019_v38, %v5018_v6  ;;  %v15915_v7 = vld [vmem:[%s18893_s0 + $0x240] sm:$0xff]  ;;  %v15920_v38 = vld [vmem:[%s18893_s0 + $0x248] sm:$0xff] }
 0x2d8   :  { %v4365_v32 = vpop.f32.mrb[227].mxu1 }
 0x2d9   :  { %v4794_v50 = vadd.f32 %v4363_v59, %v3423_v33  ;;  %3204 = vmatmul.mubr.bf16.gmra.mrb[76].mxu0 %v11321_v2  ;;  %v4910_v55 = vadd.f32 %v15875_v43, %v4793_v1  ;;  %v11449_v33 = vcombine.low %v15891_v19, %v15896_v54  ;;  %v11326_v59 = vcombine.high %v15763_v13, %v15780_v37 }
 0x2da   :  { %4575 = vmatmul.mubr.bf16.gmra.mrb[76].mxu1 %v11447_v25  ;;  %3211 = vmatprep.mubr.bf16.mxu0 %v11324_v9  ;;  %v11323_v9 = vcombine.low %v15741_v53, %v15758_v30 }
 0x2db   :  { %v4911_v57 = vadd.f32 %v15875_v43, %v4794_v50  ;;  %4582 = vmatprep.mubr.bf16.mxu1 %v11450_v27  ;;  %v5020_v6 = vmax.f32 %v4910_v55, 0.0 }
 0x2dc   :  { %v2997_v51 = vpop.f32.mrb[228].mxu0 }
 0x2dd   :  { %v5021_v17 = vmax.f32 %v4911_v57, 0.0  ;;  %v3424_v0 = vadd.f32 %v2997_v51, %v14664_v15  ;;  %v4368_v1 = vpop.f32.mrb[228].mxu1  ;;  %v2999_v2 = vpop.f32.mrb[229].mxu0  ;;  %v11452_v15 = vcombine.high %v15915_v7, %v15920_v38 }
 0x2de   :  { %v4370_v41 = vpop.f32.mrb[229].mxu1  ;;  %v3000_v25 = vpop.f32.mrb[230].mxu0 }
 0x2df   :  { %v4795_v52 = vadd.f32 %v4368_v1, %v3424_v0  ;;  %v3425_v27 = vadd.f32 %v3000_v25, %v14672_v28  ;;  %v4371_v32 = vpop.f32.mrb[230].mxu1  ;;  %v3002_v50 = vpop.f32.mrb[231].mxu0  ;;  %v15932_v51 = vpack.c.bf16 %v5021_v17, %v5020_v6  ;;  %v15939_v28 = vld [vmem:[%s18893_s0 + $0x250] sm:$0xff]  ;;  %v15944_v17 = vld [vmem:[%s18893_s0 + $0x258] sm:$0xff]  ;;  %v11325_v41 = vcombine.low %v15763_v13, %v15780_v37 }
 0x2e0   :  { %v4373_v57 = vpop.f32.mrb[231].mxu1 }
 0x2e1   :  { %v4796_v53 = vadd.f32 %v4371_v32, %v3425_v27  ;;  %3212 = vmatmul.mubr.bf16.gmra.mrb[80].mxu0 %v11323_v9  ;;  %v4912_v30 = vadd.f32 %v15875_v43, %v4795_v52  ;;  %v11451_v52 = vcombine.low %v15915_v7, %v15920_v38  ;;  %v11328_v27 = vcombine.high %v15785_v20, %v15808_v22 }
 0x2e2   :  { %4583 = vmatmul.mubr.bf16.gmra.mrb[80].mxu1 %v11449_v33  ;;  %3219 = vmatprep.mubr.bf16.mxu0 %v11326_v59 }
 0x2e3   :  { %v4913_v55 = vadd.f32 %v15875_v43, %v4796_v53  ;;  %4590 = vmatprep.mubr.bf16.mxu1 %v11452_v15  ;;  %v5022_v25 = vmax.f32 %v4912_v30, 0.0 }
 0x2e4   :  { %v3005_v0 = vpop.f32.mrb[232].mxu0 }
 0x2e5   :  { %v5023_v1 = vmax.f32 %v4913_v55, 0.0  ;;  %v3426_v2 = vadd.f32 %v3005_v0, %v14694_v39  ;;  %v4376_v9 = vpop.f32.mrb[232].mxu1  ;;  %v3007_v6 = vpop.f32.mrb[233].mxu0  ;;  %v11454_v39 = vcombine.high %v15939_v28, %v15944_v17 }
 0x2e6   :  { %v4378_v33 = vpop.f32.mrb[233].mxu1  ;;  %v3008_v59 = vpop.f32.mrb[234].mxu0 }
 0x2e7   :  { %v4797_v32 = vadd.f32 %v4376_v9, %v3426_v2  ;;  %v3427_v50 = vadd.f32 %v3008_v59, %v14702_v48  ;;  %v4379_v15 = vpop.f32.mrb[234].mxu1  ;;  %v3010_v57 = vpop.f32.mrb[235].mxu0  ;;  %v15956_v55 = vpack.c.bf16 %v5023_v1, %v5022_v25  ;;  %v15963_v48 = vld [vmem:[%s18893_s0 + $0x260] sm:$0xff]  ;;  %v15968_v1 = vld [vmem:[%s18893_s0 + $0x268] sm:$0xff]  ;;  %v11327_v25 = vcombine.low %v15785_v20, %v15808_v22 }
 0x2e8   :  { %v4381_v53 = vpop.f32.mrb[235].mxu1  ;;  %v12974_v20 = vld [vmem:[%s18894_s3 + $0xa8] ss:$12 sps:$4 sm:$0xff]   ;;  %v12976_v22 = vld [vmem:[%s18894_s3 + $0xac] ss:$12 sps:$4 sm:$0xff]  }
 0x2e9   :  { %v4798_v13 = vadd.f32 %v4379_v15, %v3427_v50  ;;  %3220 = vmatmul.mubr.bf16.gmra.mrb[84].mxu0 %v11325_v41  ;;  %v4914_v37 = vadd.f32 %v15875_v43, %v4797_v32  ;;  %v11330_v32 = vcombine.high %v15813_v40, %v15830_v14  ;;  %7248 = vmatprep.subr.bf16.mxu0 %v12976_v22 }
 0x2ea   :  { %4591 = vmatmul.mubr.bf16.gmra.mrb[84].mxu1 %v11451_v52  ;;  %3227 = vmatprep.mubr.bf16.mxu0 %v11328_v27  ;;  %v11453_v27 = vcombine.low %v15939_v28, %v15944_v17 }
 0x2eb   :  { %v4915_v30 = vadd.f32 %v15875_v43, %v4798_v13  ;;  %4598 = vmatprep.mubr.bf16.mxu1 %v11454_v39  ;;  %v5024_v33 = vmax.f32 %v4914_v37, 0.0  ;;  %7249 = vmatpush1.bf16.msra.mxu0 %v12974_v20 }
 0x2ec   :  { %v3013_v0 = vpop.f32.mrb[236].mxu0 }
 0x2ed   :  { %v5025_v2 = vmax.f32 %v4915_v30, 0.0  ;;  %v3428_v9 = vadd.f32 %v3013_v0, %v14720_v63  ;;  %v4384_v6 = vpop.f32.mrb[236].mxu1  ;;  %v3015_v41 = vpop.f32.mrb[237].mxu0  ;;  %v11456_v63 = vcombine.high %v15963_v48, %v15968_v1 }
 0x2ee   :  { %v4386_v59 = vpop.f32.mrb[237].mxu1  ;;  %v3016_v52 = vpop.f32.mrb[238].mxu0 }
 0x2ef   :  { %v4799_v50 = vadd.f32 %v4384_v6, %v3428_v9  ;;  %v3429_v15 = vadd.f32 %v3016_v52, %v14724_v8  ;;  %v4387_v57 = vpop.f32.mrb[238].mxu1  ;;  %v3018_v39 = vpop.f32.mrb[239].mxu0  ;;  %v15986_v13 = vpack.c.bf16 %v5025_v2, %v5024_v33  ;;  %v15993_v9 = vld [vmem:[%s18893_s0 + $0x270] sm:$0xff]  ;;  %v15998_v2 = vld [vmem:[%s18893_s0 + $0x278] sm:$0xff]  ;;  %v11329_v59 = vcombine.low %v15813_v40, %v15830_v14 }
 0x2f0   :  { %v4389_v53 = vpop.f32.mrb[239].mxu1 }
 0x2f1   :  { %v4800_v37 = vadd.f32 %v4387_v57, %v3429_v15  ;;  %3228 = vmatmul.mubr.bf16.gmra.mrb[88].mxu0 %v11327_v25  ;;  %v4916_v8 = vadd.f32 %v15875_v43, %v4799_v50  ;;  %v11455_v50 = vcombine.low %v15963_v48, %v15968_v1  ;;  %v11332_v15 = vcombine.high %v15835_v11, %v15855_v18 }
 0x2f2   :  { %4599 = vmatmul.mubr.bf16.gmra.mrb[88].mxu1 %v11453_v27  ;;  %3235 = vmatprep.mubr.bf16.mxu0 %v11330_v32 }
 0x2f3   :  { %v4917_v30 = vadd.f32 %v15875_v43, %v4800_v37  ;;  %4606 = vmatprep.mubr.bf16.mxu1 %v11456_v63  ;;  %v5026_v52 = vmax.f32 %v4916_v8, 0.0 }
 0x2f4   :  { %v3021_v0 = vpop.f32.mrb[240].mxu0 }
 0x2f5   :  { %v5027_v6 = vmax.f32 %v4917_v30, 0.0  ;;  %v3430_v41 = vadd.f32 %v3021_v0, %v14742_v24  ;;  %v4392_v25 = vpop.f32.mrb[240].mxu1  ;;  %v3023_v33 = vpop.f32.mrb[241].mxu0  ;;  %v11458_v24 = vcombine.high %v15993_v9, %v15998_v2  ;;  %v16022_v30 = vld [vmem:[%s18893_s0 + $0x288] sm:$0xff] }
 0x2f6   :  { %v4394_v27 = vpop.f32.mrb[241].mxu1  ;;  %v3024_v32 = vpop.f32.mrb[242].mxu0 }
 0x2f7   :  { %v4801_v57 = vadd.f32 %v4392_v25, %v3430_v41  ;;  %v3431_v39 = vadd.f32 %v3024_v32, %v14746_v4  ;;  %v4395_v63 = vpop.f32.mrb[242].mxu1  ;;  %v3026_v20 = vpop.f32.mrb[243].mxu0  ;;  %v16010_v53 = vpack.c.bf16 %v5027_v6, %v5026_v52  ;;  %v16017_v4 = vld [vmem:[%s18893_s0 + $0x280] sm:$0xff]  ;;  %v11457_v32 = vcombine.low %v15993_v9, %v15998_v2 }
 0x2f8   :  { %v4397_v22 = vpop.f32.mrb[243].mxu1 }
 0x2f9   :  { %v4918_v40 = vadd.f32 %v15875_v43, %v4801_v57  ;;  %v4802_v14 = vadd.f32 %v4395_v63, %v3431_v39  ;;  %3236 = vmatmul.mubr.bf16.gmra.mrb[92].mxu0 %v11329_v59  ;;  %v11331_v59 = vcombine.low %v15835_v11, %v15855_v18 }
 0x2fa   :  { %4607 = vmatmul.mubr.bf16.gmra.mrb[92].mxu1 %v11455_v50  ;;  %3243 = vmatprep.mubr.bf16.mxu0 %v11332_v15  ;;  %v11334_v50 = vcombine.high %v15860_v31, %v15891_v19 }
 0x2fb   :  { %v4919_v37 = vadd.f32 %v15875_v43, %v4802_v14  ;;  %4614 = vmatprep.mubr.bf16.mxu1 %v11458_v24  ;;  %v5028_v0 = vmax.f32 %v4918_v40, 0.0  ;;  %v12986_v40 = vld [vmem:[%s18894_s3 + $0x38] ss:$12 sps:$4 sm:$0xff]  }
 0x2fc   :  { %v3029_v8 = vpop.f32.mrb[244].mxu0 }
 0x2fd   :  { %v5029_v6 = vmax.f32 %v4919_v37, 0.0  ;;  %v3432_v41 = vadd.f32 %v3029_v8, %v14771_v47  ;;  %v4400_v25 = vpop.f32.mrb[244].mxu1  ;;  %v3031_v33 = vpop.f32.mrb[245].mxu0  ;;  %v11460_v47 = vcombine.high %v16017_v4, %v16022_v30  ;;  %v16047_v37 = vld [vmem:[%s18893_s0 + $0x290] sm:$0xff]  ;;  %v16052_v8 = vld [vmem:[%s18893_s0 + $0x298] sm:$0xff] }
 0x2fe   :  { %v4402_v52 = vpop.f32.mrb[245].mxu1  ;;  %v3032_v27 = vpop.f32.mrb[246].mxu0 }
 0x2ff   :  { %v4803_v15 = vadd.f32 %v4400_v25, %v3432_v41  ;;  %v3433_v57 = vadd.f32 %v3032_v27, %v14775_v56  ;;  %v4403_v39 = vpop.f32.mrb[246].mxu1  ;;  %v3034_v63 = vpop.f32.mrb[247].mxu0  ;;  %v16034_v20 = vpack.c.bf16 %v5029_v6, %v5028_v0  ;;  %v12985_v56 = vld [vmem:[%s18894_s3 + $0xf8] ss:$12 sps:$4 sm:$0xff]  }
 0x300   :  { %v4405_v24 = vpop.f32.mrb[247].mxu1  ;;  %12112 = vmatprep.subr.bf16.mxu1 %v12985_v56  ;;  %v16077_v56 = vld [vmem:[%s18893_s0 + $0x2a0] sm:$0xff] }
 0x301   :  { %v4920_v11 = vadd.f32 %v15875_v43, %v4803_v15  ;;  %v4804_v18 = vadd.f32 %v4403_v39, %v3433_v57  ;;  %3244 = vmatmul.mubr.bf16.gmra.mrb[96].mxu0 %v11331_v59  ;;  %v11333_v59 = vcombine.low %v15860_v31, %v15891_v19  ;;  %12113 = vmatpush3.bf16.msra.mxu1 %v12986_v40  ;;  %v16082_v40 = vld [vmem:[%s18893_s0 + $0x2a8] sm:$0xff] }
 0x302   :  { %4615 = vmatmul.mubr.bf16.gmra.mrb[96].mxu1 %v11457_v32  ;;  %3251 = vmatprep.mubr.bf16.mxu0 %v11334_v50  ;;  %v11459_v32 = vcombine.low %v16017_v4, %v16022_v30  ;;  %v11336_v50 = vcombine.high %v15896_v54, %v15915_v7  ;;  %v11462_v31 = vcombine.high %v16047_v37, %v16052_v8 }
 0x303   :  { %v4921_v22 = vadd.f32 %v15875_v43, %v4804_v18  ;;  %4622 = vmatprep.mubr.bf16.mxu1 %v11460_v47  ;;  %v5030_v0 = vmax.f32 %v4920_v11, 0.0  ;;  %v12991_v18 = vld [vmem:[%s18894_s3 + $0xc0] ss:$12 sps:$4 sm:$0xff]  }
 0x304   :  { %v3037_v14 = vpop.f32.mrb[248].mxu0 }
 0x305   :  { %v5031_v6 = vmax.f32 %v4921_v22, 0.0  ;;  %v3434_v41 = vadd.f32 %v3037_v14, %v14794_v3  ;;  %v4408_v25 = vpop.f32.mrb[248].mxu1  ;;  %v3039_v33 = vpop.f32.mrb[249].mxu0 }
 0x306   :  { %v4410_v52 = vpop.f32.mrb[249].mxu1  ;;  %v3040_v27 = vpop.f32.mrb[250].mxu0  ;;  %v11335_v33 = vcombine.low %v15896_v54, %v15915_v7  ;;  %v11464_v54 = vcombine.high %v16077_v56, %v16082_v40 }
 0x307   :  { %v16061_v15 = vpack.c.bf16 %v5031_v6, %v5030_v0  ;;  %v4805_v57 = vadd.f32 %v4408_v25, %v3434_v41  ;;  %v3435_v3 = vadd.f32 %v3040_v27, %v14798_v21  ;;  %v4411_v39 = vpop.f32.mrb[250].mxu1  ;;  %v3042_v63 = vpop.f32.mrb[251].mxu0  ;;  %v12993_v21 = vld [vmem:[%s18894_s3 + $0xc4] ss:$12 sps:$4 sm:$0xff]   ;;  %v11461_v27 = vcombine.low %v16047_v37, %v16052_v8 }
 0x308   :  { %v4413_v19 = vpop.f32.mrb[251].mxu1  ;;  %7250 = vmatprep.subr.bf16.mxu0 %v12993_v21 }
 0x309   :  { %v4922_v47 = vadd.f32 %v15875_v43, %v4805_v57  ;;  %v4806_v24 = vadd.f32 %v4411_v39, %v3435_v3  ;;  %3252 = vmatmul.mubr.bf16.gmra.mrb[100].mxu0 %v11333_v59 }
 0x30a   :  { %4623 = vmatmul.mubr.bf16.gmra.mrb[100].mxu1 %v11459_v32  ;;  %3259 = vmatprep.mubr.bf16.mxu0 %v11336_v50  ;;  %v11338_v32 = vcombine.high %v15920_v38, %v15939_v28 }
 0x30b   :  { %v4923_v11 = vadd.f32 %v15875_v43, %v4806_v24  ;;  %4630 = vmatprep.mubr.bf16.mxu1 %v11462_v31  ;;  %v5032_v14 = vmax.f32 %v4922_v47, 0.0  ;;  %7251 = vmatpush1.bf16.msra.mxu0 %v12991_v18  ;;  %v16106_v24 = vld [vmem:[%s18893_s0 + $0x2b8] sm:$0xff] }
 0x30c   :  { %v3045_v22 = vpop.f32.mrb[252].mxu0 }
 0x30d   :  { %v5033_v0 = vmax.f32 %v4923_v11, 0.0  ;;  %v3436_v6 = vadd.f32 %v3045_v22, %v14816_v35  ;;  %v4416_v41 = vpop.f32.mrb[252].mxu1  ;;  %v3047_v25 = vpop.f32.mrb[253].mxu0 }
 0x30e   :  { %v4418_v59 = vpop.f32.mrb[253].mxu1  ;;  %v3048_v52 = vpop.f32.mrb[254].mxu0  ;;  %v11463_v25 = vcombine.low %v16077_v56, %v16082_v40 }
 0x30f   :  { %v16091_v50 = vpack.c.bf16 %v5033_v0, %v5032_v14  ;;  %v4807_v57 = vadd.f32 %v4416_v41, %v3436_v6  ;;  %v3437_v35 = vadd.f32 %v3048_v52, %v14820_v44  ;;  %v4419_v3 = vpop.f32.mrb[254].mxu1  ;;  %v3050_v39 = vpop.f32.mrb[255].mxu0  ;;  %v16101_v44 = vld [vmem:[%s18893_s0 + $0x2b0] sm:$0xff]  ;;  %v11337_v0 = vcombine.low %v15920_v38, %v15939_v28 }
 0x310   :  { %v4421_v7 = vpop.f32.mrb[255].mxu1 }
 0x311   :  { %v4924_v63 = vadd.f32 %v15875_v43, %v4807_v57  ;;  %v4808_v31 = vadd.f32 %v4419_v3, %v3437_v35  ;;  %3260 = vmatmul.mubr.bf16.gmra.mrb[104].mxu0 %v11335_v33  ;;  %v11340_v33 = vcombine.high %v15944_v17, %v15963_v48  ;;  %v11466_v57 = vcombine.high %v16101_v44, %v16106_v24 }
 0x312   :  { %4631 = vmatmul.mubr.bf16.gmra.mrb[104].mxu1 %v11461_v27  ;;  %3267 = vmatprep.mubr.bf16.mxu0 %v11338_v32 }
 0x313   :  { %v4925_v19 = vadd.f32 %v15875_v43, %v4808_v31  ;;  %4638 = vmatprep.mubr.bf16.mxu1 %v11464_v54  ;;  %v5034_v11 = vmax.f32 %v4924_v63, 0.0  ;;  %v16130_v54 = vld [vmem:[%s18893_s0 + $0x2c8] sm:$0xff] }
 0x314   :  { %v3053_v47 = vpop.f32.mrb[0].mxu0 }
 0x315   :  { %v5035_v18 = vmax.f32 %v4925_v19, 0.0  ;;  %v3438_v21 = vadd.f32 %v3053_v47, %v14838_v60  ;;  %v4424_v22 = vpop.f32.mrb[0].mxu1  ;;  %v3055_v14 = vpop.f32.mrb[1].mxu0 }
 0x316   :  { %v4426_v6 = vpop.f32.mrb[1].mxu1  ;;  %v3056_v41 = vpop.f32.mrb[2].mxu0  ;;  %v11342_v14 = vcombine.high %v15968_v1, %v15993_v9 }
 0x317   :  { %v16115_v59 = vpack.c.bf16 %v5035_v18, %v5034_v11  ;;  %v4809_v52 = vadd.f32 %v4424_v22, %v3438_v21  ;;  %v3439_v27 = vadd.f32 %v3056_v41, %v14845_v10  ;;  %v4427_v32 = vpop.f32.mrb[2].mxu1  ;;  %v3058_v60 = vpop.f32.mrb[3].mxu0  ;;  %v16125_v10 = vld [vmem:[%s18893_s0 + $0x2c0] sm:$0xff]  ;;  %v11339_v11 = vcombine.low %v15944_v17, %v15963_v48 }
 0x318   :  { %v4429_v35 = vpop.f32.mrb[3].mxu1  ;;  %v11465_v22 = vcombine.low %v16101_v44, %v16106_v24  ;;  %v16154_v60 = vld [vmem:[%s18893_s0 + $0x2d8] sm:$0xff] }
 0x319   :  { %v4926_v38 = vadd.f32 %v15875_v43, %v4809_v52  ;;  %v4810_v28 = vadd.f32 %v4427_v32, %v3439_v27  ;;  %3268 = vmatmul.mubr.bf16.gmra.mrb[108].mxu0 %v11337_v0 }
 0x31a   :  { %4639 = vmatmul.mubr.bf16.gmra.mrb[108].mxu1 %v11463_v25  ;;  %3275 = vmatprep.mubr.bf16.mxu0 %v11340_v33  ;;  %v11468_v33 = vcombine.high %v16125_v10, %v16130_v54 }
 0x31b   :  { %v4927_v3 = vadd.f32 %v15875_v43, %v4810_v28  ;;  %4646 = vmatprep.mubr.bf16.mxu1 %v11466_v57  ;;  %v5036_v7 = vmax.f32 %v4926_v38, 0.0 }
 0x31c   :  { %v3061_v39 = vpop.f32.mrb[4].mxu0 }
 0x31d   :  { %v5037_v63 = vmax.f32 %v4927_v3, 0.0  ;;  %v3440_v31 = vadd.f32 %v3061_v39, %v14866_v26  ;;  %v4432_v19 = vpop.f32.mrb[4].mxu1  ;;  %v3063_v47 = vpop.f32.mrb[5].mxu0  ;;  %v11341_v39 = vcombine.low %v15968_v1, %v15993_v9  ;;  %v13011_v9 = vld [vmem:[%s18894_s3 + $0xd8] ss:$12 sps:$4 sm:$0xff]  }
 0x31e   :  { %v4434_v18 = vpop.f32.mrb[5].mxu1  ;;  %v3064_v21 = vpop.f32.mrb[6].mxu0  ;;  %v13013_v47 = vld [vmem:[%s18894_s3 + $0xdc] ss:$12 sps:$4 sm:$0xff]  }
 0x31f   :  { %v16139_v0 = vpack.c.bf16 %v5037_v63, %v5036_v7  ;;  %v4811_v6 = vadd.f32 %v4432_v19, %v3440_v31  ;;  %v3441_v41 = vadd.f32 %v3064_v21, %v14870_v42  ;;  %v4435_v25 = vpop.f32.mrb[6].mxu1  ;;  %v3066_v26 = vpop.f32.mrb[7].mxu0  ;;  %v16149_v42 = vld [vmem:[%s18893_s0 + $0x2d0] sm:$0xff]  ;;  %v11467_v31 = vcombine.low %v16125_v10, %v16130_v54  ;;  %7252 = vmatprep.subr.bf16.mxu0 %v13013_v47 }
 0x320   :  { %v4437_v52 = vpop.f32.mrb[7].mxu1  ;;  %v11344_v19 = vcombine.high %v15998_v2, %v16017_v4  ;;  %v11470_v1 = vcombine.high %v16149_v42, %v16154_v60  ;;  %7253 = vmatpush1.bf16.msra.mxu0 %v13011_v9  ;;  %v16179_v26 = vld [vmem:[%s18893_s0 + $0x2e0] sm:$0xff] }
 0x321   :  { %v4928_v17 = vadd.f32 %v15875_v43, %v4811_v6  ;;  %v4812_v48 = vadd.f32 %v4435_v25, %v3441_v41  ;;  %3276 = vmatmul.mubr.bf16.gmra.mrb[112].mxu0 %v11339_v11 }
 0x322   :  { %4647 = vmatmul.mubr.bf16.gmra.mrb[112].mxu1 %v11465_v22  ;;  %3283 = vmatprep.mubr.bf16.mxu0 %v11342_v14 }
 0x323   :  { %v4929_v27 = vadd.f32 %v15875_v43, %v4812_v48  ;;  %4654 = vmatprep.mubr.bf16.mxu1 %v11468_v33  ;;  %v5038_v57 = vmax.f32 %v4928_v17, 0.0  ;;  %v16184_v33 = vld [vmem:[%s18893_s0 + $0x2e8] sm:$0xff] }
 0x324   :  { %v3069_v32 = vpop.f32.mrb[8].mxu0 }
 0x325   :  { %v5039_v35 = vmax.f32 %v4929_v27, 0.0  ;;  %v3442_v38 = vadd.f32 %v3069_v32, %v14888_v62  ;;  %v4440_v28 = vpop.f32.mrb[8].mxu1  ;;  %v3071_v3 = vpop.f32.mrb[9].mxu0 }
 0x326   :  { %v4442_v7 = vpop.f32.mrb[9].mxu1  ;;  %v3072_v63 = vpop.f32.mrb[10].mxu0  ;;  %v11346_v3 = vcombine.high %v16022_v30, %v16047_v37 }
 0x327   :  { %v16166_v11 = vpack.c.bf16 %v5039_v35, %v5038_v57  ;;  %v4813_v62 = vadd.f32 %v4440_v28, %v3442_v38  ;;  %v3443_v18 = vadd.f32 %v3072_v63, %v14892_v61  ;;  %v4443_v21 = vpop.f32.mrb[10].mxu1  ;;  %v3074_v22 = vpop.f32.mrb[11].mxu0  ;;  %v11343_v57 = vcombine.low %v15998_v2, %v16017_v4 }
 0x328   :  { %v4445_v14 = vpop.f32.mrb[11].mxu1  ;;  %v11469_v28 = vcombine.low %v16149_v42, %v16154_v60 }
 0x329   :  { %v4930_v6 = vadd.f32 %v15875_v43, %v4813_v62  ;;  %v4814_v41 = vadd.f32 %v4443_v21, %v3443_v18  ;;  %3284 = vmatmul.mubr.bf16.gmra.mrb[116].mxu0 %v11341_v39  ;;  %v16208_v21 = vld [vmem:[%s18893_s0 + $0x2f8] sm:$0xff] }
 0x32a   :  { %4655 = vmatmul.mubr.bf16.gmra.mrb[116].mxu1 %v11467_v31  ;;  %3291 = vmatprep.mubr.bf16.mxu0 %v11344_v19 }
 0x32b   :  { %v4931_v25 = vadd.f32 %v15875_v43, %v4814_v41  ;;  %4662 = vmatprep.mubr.bf16.mxu1 %v11470_v1  ;;  %v5040_v52 = vmax.f32 %v4930_v6, 0.0  ;;  %v11345_v41 = vcombine.low %v16022_v30, %v16047_v37  ;;  %v13022_v30 = vld [vmem:[%s18894_s3 + $0x110] ss:$12 sps:$4 sm:$0xff]  }
 0x32c   :  { %v3077_v61 = vpop.f32.mrb[12].mxu0  ;;  %12114 = vmatprep.subr.bf16.mxu1 %v13022_v30 }
 0x32d   :  { %v5041_v17 = vmax.f32 %v4931_v25, 0.0  ;;  %v3444_v48 = vadd.f32 %v3077_v61, %v14910_v34  ;;  %v4448_v27 = vpop.f32.mrb[12].mxu1  ;;  %v3079_v32 = vpop.f32.mrb[13].mxu0  ;;  %v11472_v34 = vcombine.high %v16179_v26, %v16184_v33 }
 0x32e   :  { %v4450_v35 = vpop.f32.mrb[13].mxu1  ;;  %v3080_v38 = vpop.f32.mrb[14].mxu0 }
 0x32f   :  { %v4815_v39 = vadd.f32 %v4448_v27, %v3444_v48  ;;  %v3445_v7 = vadd.f32 %v3080_v38, %v14914_v46  ;;  %v4451_v63 = vpop.f32.mrb[14].mxu1  ;;  %v3082_v31 = vpop.f32.mrb[15].mxu0  ;;  %v16196_v19 = vpack.c.bf16 %v5041_v17, %v5040_v52  ;;  %v16203_v46 = vld [vmem:[%s18893_s0 + $0x2f0] sm:$0xff]  ;;  %v11471_v52 = vcombine.low %v16179_v26, %v16184_v33 }
 0x330   :  { %v4453_v47 = vpop.f32.mrb[15].mxu1  ;;  %v11348_v17 = vcombine.high %v16052_v8, %v16077_v56 }
 0x331   :  { %v4932_v2 = vadd.f32 %v15875_v43, %v4815_v39  ;;  %v4816_v4 = vadd.f32 %v4451_v63, %v3445_v7  ;;  %3292 = vmatmul.mubr.bf16.gmra.mrb[120].mxu0 %v11343_v57  ;;  %v16233_v7 = vld [vmem:[%s18893_s0 + $0x300] sm:$0xff]  ;;  %v16238_v63 = vld [vmem:[%s18893_s0 + $0x308] sm:$0xff] }
 0x332   :  { %4663 = vmatmul.mubr.bf16.gmra.mrb[120].mxu1 %v11469_v28  ;;  %3299 = vmatprep.mubr.bf16.mxu0 %v11346_v3  ;;  %v13023_v3 = vld [vmem:[%s18894_s3 + $0x50] ss:$12 sps:$4 sm:$0xff]  }
 0x333   :  { %v4933_v62 = vadd.f32 %v15875_v43, %v4816_v4  ;;  %4670 = vmatprep.mubr.bf16.mxu1 %v11472_v34  ;;  %v5042_v22 = vmax.f32 %v4932_v2, 0.0  ;;  %12115 = vmatpush3.bf16.msra.mxu1 %v13023_v3 }
 0x334   :  { %v3085_v18 = vpop.f32.mrb[16].mxu0 }
 0x335   :  { %v5043_v1 = vmax.f32 %v4933_v62, 0.0  ;;  %v3446_v9 = vadd.f32 %v3085_v18, %v14932_v5  ;;  %v4456_v14 = vpop.f32.mrb[16].mxu1  ;;  %v3087_v6 = vpop.f32.mrb[17].mxu0  ;;  %v11474_v5 = vcombine.high %v16203_v46, %v16208_v21  ;;  %v11347_v62 = vcombine.low %v16052_v8, %v16077_v56  ;;  %v13024_v8 = vld [vmem:[%s18894_s3 + $0xf0] ss:$12 sps:$4 sm:$0xff]  }
 0x336   :  { %v4458_v25 = vpop.f32.mrb[17].mxu1  ;;  %v3088_v61 = vpop.f32.mrb[18].mxu0  ;;  %v13026_v56 = vld [vmem:[%s18894_s3 + $0xf4] ss:$12 sps:$4 sm:$0xff]  }
 0x337   :  { %v4817_v48 = vadd.f32 %v4456_v14, %v3446_v9  ;;  %v3447_v27 = vadd.f32 %v3088_v61, %v14936_v23  ;;  %v4459_v32 = vpop.f32.mrb[18].mxu1  ;;  %v3090_v57 = vpop.f32.mrb[19].mxu0  ;;  %v16223_v37 = vpack.c.bf16 %v5043_v1, %v5042_v22  ;;  %v11473_v1 = vcombine.low %v16203_v46, %v16208_v21  ;;  %7254 = vmatprep.subr.bf16.mxu0 %v13026_v56  ;;  %v13034_v56 = vld [vmem:[%s18894_s3 + $0x68] ss:$12 sps:$4 sm:$0xff]  }
 0x338   :  { %v4461_v35 = vpop.f32.mrb[19].mxu1  ;;  %v11350_v9 = vcombine.high %v16082_v40, %v16101_v44  ;;  %7255 = vmatpush1.bf16.msra.mxu0 %v13024_v8  ;;  %v16268_v57 = vld [vmem:[%s18893_s0 + $0x318] sm:$0xff]  ;;  %v13030_v8 = vld [vmem:[%s18894_s3 + $0x120] ss:$12 sps:$4 sm:$0xff]  }
 0x339   :  { %v4934_v38 = vadd.f32 %v15875_v43, %v4817_v48  ;;  %v4818_v28 = vadd.f32 %v4459_v32, %v3447_v27  ;;  %3300 = vmatmul.mubr.bf16.gmra.mrb[124].mxu0 %v11345_v41  ;;  %v16263_v32 = vld [vmem:[%s18893_s0 + $0x310] sm:$0xff] }
 0x33a   :  { %4671 = vmatmul.mubr.bf16.gmra.mrb[124].mxu1 %v11471_v52  ;;  %3307 = vmatprep.mubr.bf16.mxu0 %v11348_v17 }
 0x33b   :  { %v4935_v23 = vadd.f32 %v15875_v43, %v4818_v28  ;;  %4678 = vmatprep.mubr.bf16.mxu1 %v11474_v5  ;;  %v5044_v31 = vmax.f32 %v4934_v38, 0.0 }
 0x33c   :  { %v3093_v39 = vpop.f32.mrb[20].mxu0 }
 0x33d   :  { %v5045_v34 = vmax.f32 %v4935_v23, 0.0  ;;  %v3448_v47 = vadd.f32 %v3093_v39, %v14954_v49  ;;  %v4464_v2 = vpop.f32.mrb[20].mxu1  ;;  %v3095_v4 = vpop.f32.mrb[21].mxu0  ;;  %v11476_v49 = vcombine.high %v16233_v7, %v16238_v63  ;;  %v11349_v23 = vcombine.low %v16082_v40, %v16101_v44  ;;  %v13029_v40 = vld [vmem:[%s18894_s3 + $0x10c] ss:$12 sps:$4 sm:$0xff]  }
 0x33e   :  { %v4466_v18 = vpop.f32.mrb[21].mxu1  ;;  %v3096_v22 = vpop.f32.mrb[22].mxu0  ;;  %7256 = vmatprep.subr.bf16.mxu0 %v13029_v40  ;;  %v16341_v40 = vld [vmem:[%s18893_s0 + $0x330] sm:$0xff] }
 0x33f   :  { %v4819_v14 = vadd.f32 %v4464_v2, %v3448_v47  ;;  %v3449_v6 = vadd.f32 %v3096_v22, %v14958_v58  ;;  %v4467_v41 = vpop.f32.mrb[22].mxu1  ;;  %v3098_v25 = vpop.f32.mrb[23].mxu0  ;;  %v16256_v61 = vpack.c.bf16 %v5045_v34, %v5044_v31  ;;  %v11475_v31 = vcombine.low %v16233_v7, %v16238_v63  ;;  %v13027_v22 = vld [vmem:[%s18894_s3 + $0x108] ss:$12 sps:$4 sm:$0xff]  }
 0x340   :  { %v4469_v52 = vpop.f32.mrb[23].mxu1  ;;  %v11352_v34 = vcombine.high %v16106_v24, %v16125_v10  ;;  %7257 = vmatpush1.bf16.msra.mxu0 %v13027_v22  ;;  %v13043_v22 = vld [vmem:[%s18894_s3 + $0x158] ss:$12 sps:$4 sm:$0xff]  }
 0x341   :  { %v4936_v17 = vadd.f32 %v15875_v43, %v4819_v14  ;;  %v4820_v48 = vadd.f32 %v4467_v41, %v3449_v6  ;;  %3308 = vmatmul.mubr.bf16.gmra.mrb[128].mxu0 %v11347_v62  ;;  %v16293_v14 = vld [vmem:[%s18893_s0 + $0x320] sm:$0xff]  ;;  %v13033_v41 = vld [vmem:[%s18894_s3 + $0x128] ss:$12 sps:$4 sm:$0xff]  }
 0x342   :  { %4679 = vmatmul.mubr.bf16.gmra.mrb[128].mxu1 %v11473_v1  ;;  %3315 = vmatprep.mubr.bf16.mxu0 %v11350_v9  ;;  %v13032_v6 = vld [vmem:[%s18894_s3 + $0x124] ss:$12 sps:$4 sm:$0xff]  }
 0x343   :  { %v4937_v58 = vadd.f32 %v15875_v43, %v4820_v48  ;;  %4686 = vmatprep.mubr.bf16.mxu1 %v11476_v49  ;;  %v5046_v5 = vmax.f32 %v4936_v17, 0.0  ;;  %v16304_v49 = vld [vmem:[%s18893_s0 + $0x328] sm:$0xff]  ;;  %7258 = vmatprep.subr.bf16.mxu0 %v13032_v6 }
 0x344   :  { %v3101_v27 = vpop.f32.mrb[24].mxu0  ;;  %12116 = vmatprep.subr.bf16.mxu1 %v13033_v41  ;;  %7259 = vmatpush1.bf16.msra.mxu0 %v13030_v8 }
 0x345   :  { %v5047_v30 = vmax.f32 %v4937_v58, 0.0  ;;  %v3450_v35 = vadd.f32 %v3101_v27, %v14976_v29  ;;  %v4472_v38 = vpop.f32.mrb[24].mxu1  ;;  %v3103_v28 = vpop.f32.mrb[25].mxu0  ;;  %v11478_v29 = vcombine.high %v16263_v32, %v16268_v57  ;;  %12117 = vmatpush3.bf16.msra.mxu1 %v13034_v56 }
 0x346   :  { %v4474_v3 = vpop.f32.mrb[25].mxu1  ;;  %v3104_v39 = vpop.f32.mrb[26].mxu0  ;;  %v11354_v28 = vcombine.high %v16130_v54, %v16149_v42 }
 0x347   :  { %v4821_v47 = vadd.f32 %v4472_v38, %v3450_v35  ;;  %v3451_v2 = vadd.f32 %v3104_v39, %v14980_v45  ;;  %v4475_v4 = vpop.f32.mrb[26].mxu1  ;;  %v3106_v62 = vpop.f32.mrb[27].mxu0  ;;  %v16283_v44 = vpack.c.bf16 %v5047_v30, %v5046_v5  ;;  %v11351_v5 = vcombine.low %v16106_v24, %v16125_v10  ;;  %v13037_v24 = vld [vmem:[%s18894_s3 + $0x13c] ss:$12 sps:$4 sm:$0xff]   ;;  %v13038_v10 = vld [vmem:[%s18894_s3 + $0x140] ss:$12 sps:$4 sm:$0xff]  }
 0x348   :  { %v4477_v18 = vpop.f32.mrb[27].mxu1  ;;  %v11477_v38 = vcombine.low %v16263_v32, %v16268_v57  ;;  %7260 = vmatprep.subr.bf16.mxu0 %v13037_v24  ;;  %12118 = vmatprep.subr.bf16.mxu1 %v13038_v10  ;;  %v16384_v24 = vld [vmem:[%s18895_s2] ss:$0 sm:$0xff] }
 0x349   :  { %v4938_v1 = vadd.f32 %v15875_v43, %v4821_v47  ;;  %v4822_v9 = vadd.f32 %v4475_v4, %v3451_v2  ;;  %3316 = vmatmul.mubr.bf16.gmra.mrb[132].mxu0 %v11349_v23  ;;  %v13039_v2 = vld [vmem:[%s18894_s3 + $0x80] ss:$12 sps:$4 sm:$0xff]  }
 0x34a   :  { %4687 = vmatmul.mubr.bf16.gmra.mrb[132].mxu1 %v11475_v31  ;;  %3323 = vmatprep.mubr.bf16.mxu0 %v11352_v34  ;;  %v11480_v31 = vcombine.high %v16293_v14, %v16304_v49  ;;  %v13042_v18 = vld [vmem:[%s18894_s3 + $0x154] ss:$12 sps:$4 sm:$0xff]  }
 0x34b   :  { %v4939_v45 = vadd.f32 %v15875_v43, %v4822_v9  ;;  %4694 = vmatprep.mubr.bf16.mxu1 %v11478_v29  ;;  %v5048_v52 = vmax.f32 %v4938_v1, 0.0  ;;  %12119 = vmatpush3.bf16.msra.mxu1 %v13039_v2  ;;  %v13040_v9 = vld [vmem:[%s18894_s3 + $0x150] ss:$12 sps:$4 sm:$0xff]  }
 0x34c   :  { %v3109_v25 = vpop.f32.mrb[28].mxu0  ;;  %12120 = vmatprep.subr.bf16.mxu1 %v13043_v22 }
 0x34d   :  { %v5049_v17 = vmax.f32 %v4939_v45, 0.0  ;;  %v3452_v48 = vadd.f32 %v3109_v25, %v14998_v16  ;;  %v4480_v58 = vpop.f32.mrb[28].mxu1  ;;  %v3111_v27 = vpop.f32.mrb[29].mxu0  ;;  %v13044_v45 = vld [vmem:[%s18894_s3 + $0x98] ss:$12 sps:$4 sm:$0xff]  }
 0x34e   :  { %v4482_v30 = vpop.f32.mrb[29].mxu1  ;;  %v3112_v35 = vpop.f32.mrb[30].mxu0  ;;  %v18983_v25 = vld [vmem:[#allocation2_spill] sm:$0xff]  ;;  %v11479_v27 = vcombine.low %v16293_v14, %v16304_v49 }
 0x34f   :  { %v4823_v23 = vadd.f32 %v4480_v58, %v3452_v48  ;;  %v3453_v3 = vadd.f32 %v3112_v35, %v15002_v36  ;;  %v4483_v16 = vpop.f32.mrb[30].mxu1  ;;  %v3114_v39 = vpop.f32.mrb[31].mxu0  ;;  %v16328_v34 = vpack.c.bf16 %v5049_v17, %v5048_v52  ;;  %v13035_v36 = vld [vmem:[%s18894_s3 + $0x138] ss:$12 sps:$4 sm:$0xff]   ;;  %v11353_v17 = vcombine.low %v16130_v54, %v16149_v42  ;;  %v18984_v35 = vld [vmem:[#allocation3_spill] sm:$0xff]  ;;  %12121 = vmatpush3.bf16.msra.mxu1 %v13044_v45 }
 0x350   :  { %v4485_v47 = vpop.f32.mrb[31].mxu1  ;;  %7261 = vmatpush1.bf16.msra.mxu0 %v13035_v36  ;;  %v13047_v54 = vld [vmem:[%s18894_s3 + $0x16c] ss:$12 sps:$4 sm:$0xff]   ;;  %v13045_v39 = vld [vmem:[%s18894_s3 + $0x168] ss:$12 sps:$4 sm:$0xff]  }
 0x351   :  { %v4940_v4 = vadd.f32 %v15875_v43, %v4823_v23  ;;  %v4824_v62 = vadd.f32 %v4483_v16, %v3453_v3  ;;  %3324 = vmatmul.mubr.bf16.gmra.mrb[136].mxu0 %v11351_v5  ;;  %7262 = vmatprep.subr.bf16.mxu0 %v13042_v18  ;;  %v11356_v5 = vcombine.high %v16154_v60, %v16179_v26  ;;  %v13049_v36 = vld [vmem:[%s18894_s3 + $0xb0] ss:$12 sps:$4 sm:$0xff]  }
 0x352   :  { %4695 = vmatmul.mubr.bf16.gmra.mrb[136].mxu1 %v11477_v38  ;;  %3331 = vmatprep.mubr.bf16.mxu0 %v11354_v28 }
 0x353   :  { %v4941_v29 = vadd.f32 %v15875_v43, %v4824_v62  ;;  %4702 = vmatprep.mubr.bf16.mxu1 %v11480_v31  ;;  %v16352_v43 = vld [vmem:[%s18893_s0 + $0x338] sm:$0xff]  ;;  %v5050_v6 = vmax.f32 %v4940_v4, 0.0  ;;  %v16394_v62 = vld [vmem:[%s18893_s0 + $0x340] sm:$0xff] }
 0x354   :  { %v3117_v1 = vpop.f32.mrb[32].mxu0  ;;  %v11482_v3 = vcombine.high %v16341_v40, %v16352_v43  ;;  %7263 = vmatpush1.bf16.msra.mxu0 %v13040_v9  ;;  %v13048_v31 = vld [vmem:[%s18894_s3 + $0x170] ss:$12 sps:$4 sm:$0xff]  }
 0x355   :  { %v5051_v41 = vmax.f32 %v4941_v29, 0.0  ;;  %v3454_v8 = vadd.f32 %v3117_v1, %v18983_v25  ;;  %v4488_v56 = vpop.f32.mrb[32].mxu1  ;;  %v3119_v52 = vpop.f32.mrb[33].mxu0  ;;  %7264 = vmatprep.subr.bf16.mxu0 %v13047_v54  ;;  %12122 = vmatprep.subr.bf16.mxu1 %v13048_v31  ;;  %v16399_v29 = vld [vmem:[%s18893_s0 + $0x348] sm:$0xff]  ;;  %v18985_v1 = vld [vmem:[#allocation4_spill] sm:$0xff]  ;;  %v16429_v31 = vld [vmem:[%s18893_s0 + $0x358] sm:$0xff] }
 0x356   :  { %v4490_v48 = vpop.f32.mrb[33].mxu1  ;;  %v3120_v58 = vpop.f32.mrb[34].mxu0  ;;  %12123 = vmatpush3.bf16.msra.mxu1 %v13049_v36  ;;  %v11358_v52 = vcombine.high %v16184_v33, %v16203_v46 }
 0x357   :  { %v4825_v30 = vadd.f32 %v4488_v56, %v3454_v8  ;;  %v3455_v38 = vadd.f32 %v3120_v58, %v18984_v35  ;;  %v4491_v28 = vpop.f32.mrb[34].mxu1  ;;  %v3122_v23 = vpop.f32.mrb[35].mxu0  ;;  %v16370_v16 = vpack.c.bf16 %v5051_v41, %v5050_v6  ;;  %v11355_v41 = vcombine.low %v16154_v60, %v16179_v26  ;;  %v18986_v48 = vld [vmem:[#allocation5_spill] sm:$0xff] }
 0x358   :  { %v4493_v42 = vpop.f32.mrb[35].mxu1  ;;  %7265 = vmatpush1.bf16.msra.mxu0 %v13045_v39  ;;  %v11481_v56 = vcombine.low %v16341_v40, %v16352_v43  ;;  %v11484_v35 = vcombine.high %v16394_v62, %v16399_v29  ;;  %v16424_v39 = vld [vmem:[%s18893_s0 + $0x350] sm:$0xff] }
 0x359   :  { %v4942_v10 = vadd.f32 %v16384_v24, %v4825_v30  ;;  %v4826_v47 = vadd.f32 %v4491_v28, %v3455_v38  ;;  %3332 = vmatmul.mubr.bf16.gmra.mrb[140].mxu0 %v11353_v17  ;;  %v18904_v28 = vrot.slane %v16370_v16, 4  ;;  %v5191_v42 = vrot.slane %v16061_v15, 4 }
 0x35a   :  { %4703 = vmatmul.mubr.bf16.gmra.mrb[140].mxu1 %v11479_v27  ;;  %3339 = vmatprep.mubr.bf16.mxu0 %v11356_v5 }
 0x35b   :  { %v4943_v2 = vadd.f32 %v16384_v24, %v4826_v47  ;;  %4710 = vmatprep.mubr.bf16.mxu1 %v11482_v3  ;;  %v5052_v18 = vmax.f32 %v4942_v10, 0.0  ;;  %v11357_v47 = vcombine.low %v16184_v33, %v16203_v46  ;;  %v18988_v46 = vld [vmem:[#allocation7_spill] sm:$0xff] }
 0x35c   :  { %v3125_v4 = vpop.f32.mrb[36].mxu0 }
 0x35d   :  { %v5053_v22 = vmax.f32 %v4943_v2, 0.0  ;;  %v3456_v9 = vadd.f32 %v3125_v4, %v18985_v1  ;;  %v4496_v45 = vpop.f32.mrb[36].mxu1  ;;  %v3127_v6 = vpop.f32.mrb[37].mxu0  ;;  %v18987_v4 = vld [vmem:[#allocation6_spill] sm:$0xff] }
 0x35e   :  { %v4498_v25 = vpop.f32.mrb[37].mxu1  ;;  %v3128_v8 = vpop.f32.mrb[38].mxu0 }
 0x35f   :  { %v4827_v17 = vadd.f32 %v4496_v45, %v3456_v9  ;;  %v3457_v58 = vadd.f32 %v3128_v8, %v18986_v48  ;;  %v4499_v27 = vpop.f32.mrb[38].mxu1  ;;  %v3130_v5 = vpop.f32.mrb[39].mxu0  ;;  %v16409_v30 = vpack.c.bf16 %v5053_v22, %v5052_v18  ;;  %v18906_v9 = vrot.slane %v16034_v20, 4 }
 0x360   :  { %v4501_v38 = vpop.f32.mrb[39].mxu1  ;;  %v11360_v25 = vcombine.high %v16208_v21, %v16233_v7  ;;  %v11486_v8 = vcombine.high %v16424_v39, %v16429_v31 }
 0x361   :  { %v4944_v60 = vadd.f32 %v16384_v24, %v4827_v17  ;;  %v4828_v26 = vadd.f32 %v4499_v27, %v3457_v58  ;;  %3340 = vmatmul.mubr.bf16.gmra.mrb[144].mxu0 %v11355_v41  ;;  %v5218_v23 = vrot.slane %v16409_v30, 4  ;;  %v11483_v41 = vcombine.low %v16394_v62, %v16399_v29 }
 0x362   :  { %4711 = vmatmul.mubr.bf16.gmra.mrb[144].mxu1 %v11481_v56  ;;  %3347 = vmatprep.mubr.bf16.mxu0 %v11358_v52  ;;  %v5192_v48 = vsel %vm5189_vm0, %v18906_v9, %v5191_v42 }
 0x363   :  { %v4945_v3 = vadd.f32 %v16384_v24, %v4828_v26  ;;  %v5219_v54 = vsel %vm5189_vm0, %v18904_v28, %v5218_v23  ;;  %4718 = vmatprep.mubr.bf16.mxu1 %v11484_v35  ;;  %v5054_v36 = vmax.f32 %v4944_v60, 0.0  ;;  %v5193_v60 = vrot.slane %v16091_v50, 4 }
 0x364   :  { %v3133_v10 = vpop.f32.mrb[40].mxu0  ;;  %5228 = vrot.lane.b32.xlu0 %v5219_v54, %s13812_s24  ;;  %v16457_v54 = vld [vmem:[%s18893_s0 + $0x360] sm:$0xff] }
 0x365   :  { %v5055_v2 = vmax.f32 %v4945_v3, 0.0  ;;  %v3458_v18 = vadd.f32 %v3133_v10, %v18987_v4  ;;  %v4504_v22 = vpop.f32.mrb[40].mxu1  ;;  %v3135_v1 = vpop.f32.mrb[41].mxu0  ;;  %v16462_v10 = vld [vmem:[%s18893_s0 + $0x368] sm:$0xff]  ;;  %v18989_v4 = vld [vmem:[#allocation8_spill] sm:$0xff] }
 0x366   :  { %v4506_v45 = vpop.f32.mrb[41].mxu1  ;;  %v3136_v6 = vpop.f32.mrb[42].mxu0  ;;  %v11359_v1 = vcombine.low %v16208_v21, %v16233_v7  ;;  %v5195_v7 = vrot.slane %v16115_v59, 4 }
 0x367   :  { %v4829_v33 = vadd.f32 %v4504_v22, %v3458_v18  ;;  %v3459_v56 = vadd.f32 %v3136_v6, %v18988_v46  ;;  %v4507_v52 = vpop.f32.mrb[42].mxu1  ;;  %v3138_v17 = vpop.f32.mrb[43].mxu0  ;;  %v16446_v58 = vpack.c.bf16 %v5055_v2, %v5054_v36 }
 0x368   :  { %v4509_v27 = vpop.f32.mrb[43].mxu1  ;;  %5201 = vrot.lane.b32.xlu0 %v5192_v48, %s13812_s24 }
 0x369   :  { %v4946_v5 = vadd.f32 %v16384_v24, %v4829_v33  ;;  %v4830_v35 = vadd.f32 %v4507_v52, %v3459_v56  ;;  %3348 = vmatmul.mubr.bf16.gmra.mrb[148].mxu0 %v11357_v47  ;;  %v5220_v38 = vrot.slane %v16446_v58, 4  ;;  %v11488_v33 = vcombine.high %v16457_v54, %v16462_v10  ;;  %v18990_v52 = vld [vmem:[#allocation9_spill] sm:$0xff] }
 0x36a   :  { %4719 = vmatmul.mubr.bf16.gmra.mrb[148].mxu1 %v11483_v41  ;;  %3355 = vmatprep.mubr.bf16.mxu0 %v11360_v25  ;;  %v11485_v41 = vcombine.low %v16424_v39, %v16429_v31  ;;  %v5194_v25 = vsel %vm5189_vm0, %v5191_v42, %v5193_v60 }
 0x36b   :  { %v4947_v26 = vadd.f32 %v16384_v24, %v4830_v35  ;;  %v5221_v3 = vsel %vm5189_vm0, %v5218_v23, %v5220_v38  ;;  %4726 = vmatprep.mubr.bf16.mxu1 %v11486_v8  ;;  %v5056_v36 = vmax.f32 %v4946_v5, 0.0  ;;  %v11362_v8 = vcombine.high %v16238_v63, %v16263_v32 }
 0x36c   :  { %v3141_v47 = vpop.f32.mrb[44].mxu0  ;;  %5230 = vrot.lane.b32.xlu1 %v5221_v3, %s13812_s24 }
 0x36d   :  { %v5057_v2 = vmax.f32 %v4947_v26, 0.0  ;;  %v3460_v18 = vadd.f32 %v3141_v47, %v18989_v4  ;;  %v4512_v22 = vpop.f32.mrb[44].mxu1  ;;  %v3143_v23 = vpop.f32.mrb[45].mxu0  ;;  %v5197_v26 = vrot.slane %v16139_v0, 4  ;;  %v5196_v47 = vsel %vm5189_vm0, %v5193_v60, %v5195_v7  ;;  %v3629_v4 = vld [vmem:[%s18893_s0 + $0x378] sm:$0xff]  ;;  %v18991_v60 = vld [vmem:[#allocation10_spill] sm:$0xff] }
 0x36e   :  { %v4514_v45 = vpop.f32.mrb[45].mxu1  ;;  %v3144_v6 = vpop.f32.mrb[46].mxu0 }
 0x36f   :  { %v16475_v46 = vpack.c.bf16 %v5057_v2, %v5056_v36  ;;  %v4831_v56 = vadd.f32 %v4512_v22, %v3460_v18  ;;  %v3461_v17 = vadd.f32 %v3144_v6, %v18990_v52  ;;  %v4515_v48 = vpop.f32.mrb[46].mxu1  ;;  %v3146_v21 = vpop.f32.mrb[47].mxu0  ;;  %v16489_v2 = vld [vmem:[%s18893_s0 + $0x370] sm:$0xff]  ;;  %v11361_v6 = vcombine.low %v16238_v63, %v16263_v32 }
 0x370   :  { %v4517_v27 = vpop.f32.mrb[47].mxu1  ;;  %5203 = vrot.lane.b32.xlu1 %v5194_v25, %s13812_s24  ;;  %v11490_v52 = vcombine.high %v16489_v2, %v3629_v4  ;;  %v18992_v21 = vld [vmem:[#allocation11_spill] sm:$0xff]  ;;  %v5199_v63 = vrot.slane %v16166_v11, 4 }
 0x371   :  { %v4948_v42 = vadd.f32 %v16384_v24, %v4831_v56  ;;  %v4832_v5 = vadd.f32 %v4515_v48, %v3461_v17  ;;  %3356 = vmatmul.mubr.bf16.gmra.mrb[152].mxu0 %v11359_v1  ;;  %v5222_v35 = vrot.slane %v16475_v46, 4  ;;  %v11364_v56 = vcombine.high %v16268_v57, %v16293_v14 }
 0x372   :  { %4727 = vmatmul.mubr.bf16.gmra.mrb[152].mxu1 %v11485_v41  ;;  %3363 = vmatprep.mubr.bf16.mxu0 %v11362_v8  ;;  %v11487_v8 = vcombine.low %v16457_v54, %v16462_v10 }
 0x373   :  { %v4949_v3 = vadd.f32 %v16384_v24, %v4832_v5  ;;  %v5223_v36 = vsel %vm5189_vm0, %v5220_v38, %v5222_v35  ;;  %4734 = vmatprep.mubr.bf16.mxu1 %v11488_v33  ;;  %v5058_v22 = vmax.f32 %v4948_v42, 0.0  ;;  %v5198_v33 = vsel %vm5189_vm0, %v5195_v7, %v5197_v26 }
 0x374   :  { %v3149_v18 = vpop.f32.mrb[48].mxu0  ;;  %5205 = vrot.lane.b32.xlu1 %v5196_v47, %s13812_s24  ;;  %5232 = vrot.lane.b32.xlu0 %v5223_v36, %s13812_s24 }
 0x375   :  { %v5059_v23 = vmax.f32 %v4949_v3, 0.0  ;;  %v3462_v1 = vadd.f32 %v3149_v18, %v18991_v60  ;;  %v4520_v38 = vpop.f32.mrb[48].mxu1  ;;  %v3151_v45 = vpop.f32.mrb[49].mxu0  ;;  %v5200_v18 = vsel %vm5189_vm0, %v5197_v26, %v5199_v63  ;;  %v11489_v26 = vcombine.low %v16489_v2, %v3629_v4 }
 0x376   :  { %v4522_v41 = vpop.f32.mrb[49].mxu1  ;;  %v3152_v25 = vpop.f32.mrb[50].mxu0 }
 0x377   :  { %v16505_v17 = vpack.c.bf16 %v5059_v23, %v5058_v22  ;;  %v4833_v48 = vadd.f32 %v4520_v38, %v3462_v1  ;;  %v3463_v27 = vadd.f32 %v3152_v25, %v18992_v21  ;;  %v4523_v42 = vpop.f32.mrb[50].mxu1  ;;  %v3154_v5 = vpop.f32.mrb[51].mxu0  ;;  %v18993_v38 = vld [vmem:[#allocation12_spill] sm:$0xff]  ;;  %v11363_v25 = vcombine.low %v16268_v57, %v16293_v14 }
 0x378   :  { %v4525_v32 = vpop.f32.mrb[51].mxu1  ;;  %5207 = vrot.lane.b32.xlu1 %v5198_v33, %s13812_s24  ;;  %v12998_v5 = vld [vmem:[%s18893_s0 + $0x384] ss:$8 sps:$4 sm:$0xff]  }
 0x379   :  { %v4950_v3 = vadd.f32 %v16384_v24, %v4833_v48  ;;  %v4834_v7 = vadd.f32 %v4523_v42, %v3463_v27  ;;  %3364 = vmatmul.mubr.bf16.gmra.mrb[156].mxu0 %v11361_v6  ;;  %v5224_v47 = vrot.slane %v16505_v17, 4  ;;  %v18994_v48 = vld [vmem:[#allocation13_spill] sm:$0xff] }
 0x37a   :  { %4735 = vmatmul.mubr.bf16.gmra.mrb[156].mxu1 %v11487_v8  ;;  %3371 = vmatprep.mubr.bf16.mxu0 %v11364_v56 }
 0x37b   :  { %v4951_v36 = vadd.f32 %v16384_v24, %v4834_v7  ;;  %v5225_v22 = vsel %vm5189_vm0, %v5222_v35, %v5224_v47  ;;  %4742 = vmatprep.mubr.bf16.mxu1 %v11490_v52  ;;  %v5060_v60 = vmax.f32 %v4950_v3, 0.0  ;;  %v11366_v35 = vcombine.high %v16304_v49, %v16341_v40 }
 0x37c   :  { %v3157_v23 = vpop.f32.mrb[52].mxu0  ;;  %5209 = vrot.lane.b32.xlu1 %v5200_v18, %s13812_s24  ;;  %5234 = vrot.lane.b32.xlu0 %v5225_v22, %s13812_s24  ;;  %v18995_v22 = vld [vmem:[#allocation14_spill] sm:$0xff] }
 0x37d   :  { %v5061_v1 = vmax.f32 %v4951_v36, 0.0  ;;  %v3464_v45 = vadd.f32 %v3157_v23, %v18993_v38  ;;  %v4528_v6 = vpop.f32.mrb[52].mxu1  ;;  %v3159_v41 = vpop.f32.mrb[53].mxu0  ;;  %v11365_v38 = vcombine.low %v16304_v49, %v16341_v40 }
 0x37e   :  { %v4530_v8 = vpop.f32.mrb[53].mxu1  ;;  %v3160_v33 = vpop.f32.mrb[54].mxu0  ;;  %v12996_v41 = vld [vmem:[%s18893_s0 + $0x380] ss:$8 sps:$4 sm:$0xff]  }
 0x37f   :  { %v16523_v56 = vpack.c.bf16 %v5061_v1, %v5060_v60  ;;  %v4835_v52 = vadd.f32 %v4528_v6, %v3464_v45  ;;  %v3465_v21 = vadd.f32 %v3160_v33, %v18994_v48  ;;  %v4531_v27 = vpop.f32.mrb[54].mxu1  ;;  %v3162_v42 = vpop.f32.mrb[55].mxu0  ;;  %v18996_v8 = vld [vmem:[#allocation15_spill] sm:$0xff] }
 0x380   :  { %v4533_v63 = vpop.f32.mrb[55].mxu1 }
 0x381   :  { %v4952_v57 = vadd.f32 %v16384_v24, %v4835_v52  ;;  %v4836_v14 = vadd.f32 %v4531_v27, %v3465_v21  ;;  %3372 = vmatmul.mubr.bf16.gmra.mrb[160].mxu0 %v11363_v25  ;;  %v5226_v4 = vrot.slane %v16523_v56, 4  ;;  %v13003_v52 = vld [vmem:[%s18893_s0 + $0x394] ss:$8 sps:$4 sm:$0xff]  }
 0x382   :  { %4743 = vmatmul.mubr.bf16.gmra.mrb[160].mxu1 %v11489_v26  ;;  %3379 = vmatprep.mubr.bf16.mxu0 %v11366_v35 }
 0x383   :  { %v4953_v32 = vadd.f32 %v16384_v24, %v4836_v14  ;;  %v5227_v3 = vsel %vm5189_vm0, %v5224_v47, %v5226_v4  ;;  %4750 = vmatprep.mubr.bf16.mxu1 %v12998_v5  ;;  %v5062_v36 = vmax.f32 %v4952_v57, 0.0  ;;  %v11368_v47 = vcombine.high %v16352_v43, %v16394_v62  ;;  %v18997_v57 = vld [vmem:[#allocation16_spill] sm:$0xff] }
 0x384   :  { %v3165_v7 = vpop.f32.mrb[56].mxu0  ;;  %5236 = vrot.lane.b32.xlu0 %v5227_v3, %s13812_s24  ;;  %v11367_v3 = vcombine.low %v16352_v43, %v16394_v62 }
 0x385   :  { %v5063_v18 = vmax.f32 %v4953_v32, 0.0  ;;  %v3466_v23 = vadd.f32 %v3165_v7, %v18995_v22  ;;  %v4536_v60 = vpop.f32.mrb[56].mxu1  ;;  %v3167_v1 = vpop.f32.mrb[57].mxu0  ;;  %v11370_v22 = vcombine.high %v16399_v29, %v16424_v39 }
 0x386   :  { %v4538_v45 = vpop.f32.mrb[57].mxu1  ;;  %v3168_v6 = vpop.f32.mrb[58].mxu0 }
 0x387   :  { %v4837_v25 = vadd.f32 %v4536_v60, %v3466_v23  ;;  %v3467_v33 = vadd.f32 %v3168_v6, %v18996_v8  ;;  %v4539_v26 = vpop.f32.mrb[58].mxu1  ;;  %v3170_v35 = vpop.f32.mrb[59].mxu0  ;;  %v16546_v48 = vpack.c.bf16 %v5063_v18, %v5062_v36  ;;  %v13001_v18 = vld [vmem:[%s18893_s0 + $0x390] ss:$8 sps:$4 sm:$0xff]   ;;  %v13008_v6 = vld [vmem:[%s18893_s0 + $0x3a4] ss:$8 sps:$4 sm:$0xff]  }
 0x388   :  { %v4541_v49 = vpop.f32.mrb[59].mxu1  ;;  %v18998_v60 = vld [vmem:[#allocation17_spill] sm:$0xff]  ;;  %v18999_v35 = vld [vmem:[#allocation18_spill] sm:$0xff] }
 0x389   :  { %v4954_v40 = vadd.f32 %v16384_v24, %v4837_v25  ;;  %v4838_v21 = vadd.f32 %v4539_v26, %v3467_v33  ;;  %3380 = vmatmul.mubr.bf16.gmra.mrb[164].mxu0 %v11365_v38 }
 0x38a   :  { %4751 = vmatmul.mubr.bf16.gmra.mrb[164].mxu1 %v12996_v41  ;;  %3387 = vmatprep.mubr.bf16.mxu0 %v11368_v47 }
 0x38b   :  { %v4955_v27 = vadd.f32 %v16384_v24, %v4838_v21  ;;  %4758 = vmatprep.mubr.bf16.mxu1 %v13003_v52  ;;  %v5064_v5 = vmax.f32 %v4954_v40, 0.0  ;;  %v11369_v21 = vcombine.low %v16399_v29, %v16424_v39 }
 0x38c   :  { %v3173_v42 = vpop.f32.mrb[60].mxu0 }
 0x38d   :  { %v5065_v63 = vmax.f32 %v4955_v27, 0.0  ;;  %v3468_v14 = vadd.f32 %v3173_v42, %v18997_v57  ;;  %v4544_v4 = vpop.f32.mrb[60].mxu1  ;;  %v3175_v32 = vpop.f32.mrb[61].mxu0 }
 0x38e   :  { %v4546_v7 = vpop.f32.mrb[61].mxu1  ;;  %v3176_v36 = vpop.f32.mrb[62].mxu0 }
 0x38f   :  { %v4839_v23 = vadd.f32 %v4544_v4, %v3468_v14  ;;  %v3469_v1 = vadd.f32 %v3176_v36, %v18998_v60  ;;  %v4547_v38 = vpop.f32.mrb[62].mxu1  ;;  %v3178_v45 = vpop.f32.mrb[63].mxu0  ;;  %v16562_v41 = vpack.c.bf16 %v5065_v63, %v5064_v5  ;;  %v13006_v5 = vld [vmem:[%s18893_s0 + $0x3a0] ss:$8 sps:$4 sm:$0xff]   ;;  %v11372_v63 = vcombine.high %v16429_v31, %v16457_v54  ;;  %v13016_v7 = vld [vmem:[%s18893_s0 + $0x3b4] ss:$8 sps:$4 sm:$0xff]  }
 0x390   :  { %v4549_v43 = vpop.f32.mrb[63].mxu1  ;;  %v19000_v14 = vld [vmem:[#allocation19_spill] sm:$0xff] }
 0x391   :  { %v4956_v62 = vadd.f32 %v16384_v24, %v4839_v23  ;;  %v4840_v47 = vadd.f32 %v4547_v38, %v3469_v1  ;;  %3388 = vmatmul.mubr.bf16.gmra.mrb[168].mxu0 %v11367_v3  ;;  %v19001_v38 = vld [vmem:[#allocation20_spill] sm:$0xff] }
 0x392   :  { %4759 = vmatmul.mubr.bf16.gmra.mrb[168].mxu1 %v13001_v18  ;;  %3395 = vmatprep.mubr.bf16.mxu0 %v11370_v22 }
 0x393   :  { %v4957_v25 = vadd.f32 %v16384_v24, %v4840_v47  ;;  %4766 = vmatprep.mubr.bf16.mxu1 %v13008_v6  ;;  %v5066_v33 = vmax.f32 %v4956_v62, 0.0  ;;  %v11371_v62 = vcombine.low %v16429_v31, %v16457_v54 }
 0x394   :  { %v3181_v8 = vpop.f32.mrb[64].mxu0 }
 0x395   :  { %v5067_v26 = vmax.f32 %v4957_v25, 0.0  ;;  %v3470_v52 = vadd.f32 %v3181_v8, %v18999_v35  ;;  %v4552_v49 = vpop.f32.mrb[64].mxu1  ;;  %v3183_v40 = vpop.f32.mrb[65].mxu0  ;;  %v13014_v8 = vld [vmem:[%s18893_s0 + $0x3b0] ss:$8 sps:$4 sm:$0xff]  }
 0x396   :  { %v4554_v27 = vpop.f32.mrb[65].mxu1  ;;  %v3184_v42 = vpop.f32.mrb[66].mxu0  ;;  %v19002_v35 = vld [vmem:[#allocation21_spill] sm:$0xff] }
 0x397   :  { %v4841_v57 = vadd.f32 %v4552_v49, %v3470_v52  ;;  %v3471_v4 = vadd.f32 %v3184_v42, %v19000_v14  ;;  %v4555_v32 = vpop.f32.mrb[66].mxu1  ;;  %v3186_v3 = vpop.f32.mrb[67].mxu0  ;;  %v16578_v36 = vpack.c.bf16 %v5067_v26, %v5066_v33  ;;  %v11374_v33 = vcombine.high %v16462_v10, %v16489_v2 }
 0x398   :  { %v4557_v29 = vpop.f32.mrb[67].mxu1 }
 0x399   :  { %v4958_v39 = vadd.f32 %v16384_v24, %v4841_v57  ;;  %v4842_v18 = vadd.f32 %v4555_v32, %v3471_v4  ;;  %3396 = vmatmul.mubr.bf16.gmra.mrb[172].mxu0 %v11369_v21  ;;  %v13021_v21 = vld [vmem:[%s18893_s0 + $0x3c4] ss:$8 sps:$4 sm:$0xff]   ;;  %v11373_v29 = vcombine.low %v16462_v10, %v16489_v2 }
 0x39a   :  { %4767 = vmatmul.mubr.bf16.gmra.mrb[172].mxu1 %v13006_v5  ;;  %3403 = vmatprep.mubr.bf16.mxu0 %v11372_v63  ;;  %v19003_v4 = vld [vmem:[#allocation22_spill] sm:$0xff] }
 0x39b   :  { %v4959_v22 = vadd.f32 %v16384_v24, %v4842_v18  ;;  %4774 = vmatprep.mubr.bf16.mxu1 %v13016_v7  ;;  %v5068_v60 = vmax.f32 %v4958_v39, 0.0 }
 0x39c   :  { %v3189_v23 = vpop.f32.mrb[68].mxu0 }
 0x39d   :  { %v5069_v1 = vmax.f32 %v4959_v22, 0.0  ;;  %v3472_v45 = vadd.f32 %v3189_v23, %v19001_v38  ;;  %v4560_v6 = vpop.f32.mrb[68].mxu1  ;;  %v3191_v43 = vpop.f32.mrb[69].mxu0  ;;  %v13019_v22 = vld [vmem:[%s18893_s0 + $0x3c0] ss:$8 sps:$4 sm:$0xff]  }
 0x39e   :  { %v4562_v47 = vpop.f32.mrb[69].mxu1  ;;  %v3192_v25 = vpop.f32.mrb[70].mxu0 }
 0x39f   :  { %v4843_v26 = vadd.f32 %v4560_v6, %v3472_v45  ;;  %v3473_v52 = vadd.f32 %v3192_v25, %v19002_v35  ;;  %v4563_v49 = vpop.f32.mrb[70].mxu1  ;;  %v3194_v40 = vpop.f32.mrb[71].mxu0  ;;  %v16594_v27 = vpack.c.bf16 %v5069_v1, %v5068_v60  ;;  %v19004_v60 = vld [vmem:[#allocation23_spill] sm:$0xff] }
 0x3a0   :  { %v4565_v31 = vpop.f32.mrb[71].mxu1 }
 0x3a1   :  { %v4960_v54 = vadd.f32 %v16384_v24, %v4843_v26  ;;  %v4844_v42 = vadd.f32 %v4563_v49, %v3473_v52  ;;  %3404 = vmatmul.mubr.bf16.gmra.mrb[176].mxu0 %v11371_v62 }
 0x3a2   :  { %4775 = vmatmul.mubr.bf16.gmra.mrb[176].mxu1 %v13014_v8  ;;  %3411 = vmatprep.mubr.bf16.mxu0 %v11374_v33  ;;  %v19005_v33 = vld [vmem:[#allocation24_spill] sm:$0xff] }
 0x3a3   :  { %v4961_v5 = vadd.f32 %v16384_v24, %v4844_v42  ;;  %4782 = vmatprep.mubr.bf16.mxu1 %v13021_v21  ;;  %v5070_v57 = vmax.f32 %v4960_v54, 0.0  ;;  %v19006_v54 = vld [vmem:[#allocation25_spill] sm:$0xff] }
 0x3a4   :  { %v3197_v63 = vpop.f32.mrb[72].mxu0 }
 0x3a5   :  { %v5071_v14 = vmax.f32 %v4961_v5, 0.0  ;;  %v3474_v32 = vadd.f32 %v3197_v63, %v19003_v4  ;;  %v4568_v3 = vpop.f32.mrb[72].mxu1  ;;  %v3199_v7 = vpop.f32.mrb[73].mxu0 }
 0x3a6   :  { %v4570_v39 = vpop.f32.mrb[73].mxu1  ;;  %v3200_v18 = vpop.f32.mrb[74].mxu0 }
 0x3a7   :  { %v4845_v23 = vadd.f32 %v4568_v3, %v3474_v32  ;;  %v3475_v1 = vadd.f32 %v3200_v18, %v19004_v60  ;;  %v4571_v38 = vpop.f32.mrb[74].mxu1  ;;  %v3202_v45 = vpop.f32.mrb[75].mxu0  ;;  %v16605_v6 = vpack.c.bf16 %v5071_v14, %v5070_v57  ;;  %v19007_v39 = vld [vmem:[#allocation26_spill] sm:$0xff] }
 0x3a8   :  { %v4573_v43 = vpop.f32.mrb[75].mxu1 }
 0x3a9   :  { %v4962_v62 = vadd.f32 %v16384_v24, %v4845_v23  ;;  %v4846_v47 = vadd.f32 %v4571_v38, %v3475_v1  ;;  %3412 = vmatmul.mubr.bf16.gmra.mrb[180].mxu0 %v11373_v29  ;;  %v19008_v43 = vld [vmem:[#allocation27_spill] sm:$0xff] }
 0x3aa   :  { %4783 = vmatmul.mubr.bf16.gmra.mrb[180].mxu1 %v13019_v22 }
 0x3ab   :  { %v4963_v10 = vadd.f32 %v16384_v24, %v4846_v47  ;;  %v5072_v25 = vmax.f32 %v4962_v62, 0.0 }
 0x3ac   :  { %v3205_v2 = vpop.f32.mrb[76].mxu0 }
 0x3ad   :  { %v5073_v8 = vmax.f32 %v4963_v10, 0.0  ;;  %v3476_v26 = vadd.f32 %v3205_v2, %v19005_v33  ;;  %v4576_v35 = vpop.f32.mrb[76].mxu1  ;;  %v3207_v52 = vpop.f32.mrb[77].mxu0 }
 0x3ae   :  { %v4578_v49 = vpop.f32.mrb[77].mxu1  ;;  %v3208_v40 = vpop.f32.mrb[78].mxu0 }
 0x3af   :  { %v16610_v21 = vpack.c.bf16 %v5073_v8, %v5072_v25  ;;  %v4847_v31 = vadd.f32 %v4576_v35, %v3476_v26  ;;  %v3477_v42 = vadd.f32 %v3208_v40, %v19006_v54  ;;  %v4579_v5 = vpop.f32.mrb[78].mxu1  ;;  %v3210_v63 = vpop.f32.mrb[79].mxu0  ;;  %v19009_v54 = vld [vmem:[#allocation28_spill] sm:$0xff] }
 0x3b0   :  { %v4581_v57 = vpop.f32.mrb[79].mxu1 }
 0x3b1   :  { %v4964_v14 = vadd.f32 %v16384_v24, %v4847_v31  ;;  %v4848_v4 = vadd.f32 %v4579_v5, %v3477_v42  ;;  %v18905_v25 = vrot.slane %v16610_v21, 4 }
 0x3b3   :  { %v4965_v32 = vadd.f32 %v16384_v24, %v4848_v4  ;;  %v5074_v7 = vmax.f32 %v4964_v14, 0.0 }
 0x3b4   :  { %v3213_v3 = vpop.f32.mrb[80].mxu0 }
 0x3b5   :  { %v5075_v29 = vmax.f32 %v4965_v32, 0.0  ;;  %v3478_v18 = vadd.f32 %v3213_v3, %v19007_v39  ;;  %v4584_v22 = vpop.f32.mrb[80].mxu1  ;;  %v3215_v23 = vpop.f32.mrb[81].mxu0  ;;  %v19010_v3 = vld [vmem:[#allocation29_spill] sm:$0xff] }
 0x3b6   :  { %v4586_v60 = vpop.f32.mrb[81].mxu1  ;;  %v3216_v1 = vpop.f32.mrb[82].mxu0 }
 0x3b7   :  { %v16616_v38 = vpack.c.bf16 %v5075_v29, %v5074_v7  ;;  %v4849_v45 = vadd.f32 %v4584_v22, %v3478_v18  ;;  %v3479_v62 = vadd.f32 %v3216_v1, %v19008_v43  ;;  %v4587_v47 = vpop.f32.mrb[82].mxu1  ;;  %v3218_v10 = vpop.f32.mrb[83].mxu0 }
 0x3b8   :  { %v4589_v2 = vpop.f32.mrb[83].mxu1  ;;  %v19011_v10 = vld [vmem:[#allocation30_spill] sm:$0xff] }
 0x3b9   :  { %v4966_v8 = vadd.f32 %v16384_v24, %v4849_v45  ;;  %v4850_v33 = vadd.f32 %v4587_v47, %v3479_v62  ;;  %v5245_v26 = vrot.slane %v16616_v38, 4 }
 0x3bb   :  { %v4967_v35 = vadd.f32 %v16384_v24, %v4850_v33  ;;  %v5246_v52 = vsel %vm5189_vm0, %v18905_v25, %v5245_v26  ;;  %v5076_v40 = vmax.f32 %v4966_v8, 0.0 }
 0x3bc   :  { %v3221_v49 = vpop.f32.mrb[84].mxu0  ;;  %5255 = vrot.lane.b32.xlu1 %v5246_v52, %s13812_s24 }
 0x3bd   :  { %v5077_v31 = vmax.f32 %v4967_v35, 0.0  ;;  %v3480_v42 = vadd.f32 %v3221_v49, %v19009_v54  ;;  %v4592_v5 = vpop.f32.mrb[84].mxu1  ;;  %v3223_v63 = vpop.f32.mrb[85].mxu0 }
 0x3be   :  { %v4594_v57 = vpop.f32.mrb[85].mxu1  ;;  %v3224_v14 = vpop.f32.mrb[86].mxu0 }
 0x3bf   :  { %v16628_v4 = vpack.c.bf16 %v5077_v31, %v5076_v40  ;;  %v4851_v32 = vadd.f32 %v4592_v5, %v3480_v42  ;;  %v3481_v7 = vadd.f32 %v3224_v14, %v19010_v3  ;;  %v4595_v29 = vpop.f32.mrb[86].mxu1  ;;  %v3226_v39 = vpop.f32.mrb[87].mxu0  ;;  %v19012_v31 = vld [vmem:[#allocation31_spill] sm:$0xff] }
 0x3c0   :  { %v4597_v18 = vpop.f32.mrb[87].mxu1 }
 0x3c1   :  { %v4968_v22 = vadd.f32 %v16384_v24, %v4851_v32  ;;  %v4852_v23 = vadd.f32 %v4595_v29, %v3481_v7  ;;  %v5247_v60 = vrot.slane %v16628_v4, 4  ;;  %v13052_v32 = vld [vmem:[%s18894_s3 + $0x184] ss:$12 sps:$4 sm:$0xff]  }
 0x3c2   :  { %7317 = vmatprep.subr.bf16.mxu0 %v13052_v32 }
 0x3c3   :  { %v4969_v1 = vadd.f32 %v16384_v24, %v4852_v23  ;;  %v5248_v45 = vsel %vm5189_vm0, %v5245_v26, %v5247_v60  ;;  %v5078_v62 = vmax.f32 %v4968_v22, 0.0  ;;  %v19013_v22 = vld [vmem:[#allocation32_spill] sm:$0xff] }
 0x3c4   :  { %v3229_v43 = vpop.f32.mrb[88].mxu0  ;;  %5257 = vrot.lane.b32.xlu1 %v5248_v45, %s13812_s24 }
 0x3c5   :  { %v5079_v47 = vmax.f32 %v4969_v1, 0.0  ;;  %v3482_v2 = vadd.f32 %v3229_v43, %v19011_v10  ;;  %v4600_v8 = vpop.f32.mrb[88].mxu1  ;;  %v3231_v33 = vpop.f32.mrb[89].mxu0 }
 0x3c6   :  { %v4602_v35 = vpop.f32.mrb[89].mxu1  ;;  %v3232_v52 = vpop.f32.mrb[90].mxu0 }
 0x3c7   :  { %v16637_v49 = vpack.c.bf16 %v5079_v47, %v5078_v62  ;;  %v4853_v40 = vadd.f32 %v4600_v8, %v3482_v2  ;;  %v3483_v54 = vadd.f32 %v3232_v52, %v19012_v31  ;;  %v4603_v42 = vpop.f32.mrb[90].mxu1  ;;  %v3234_v5 = vpop.f32.mrb[91].mxu0  ;;  %v19014_v2 = vld [vmem:[#allocation33_spill] sm:$0xff] }
 0x3c8   :  { %v4605_v63 = vpop.f32.mrb[91].mxu1 }
 0x3c9   :  { %v4970_v26 = vadd.f32 %v16384_v24, %v4853_v40  ;;  %v4854_v57 = vadd.f32 %v4603_v42, %v3483_v54  ;;  %v5249_v14 = vrot.slane %v16637_v49, 4 }
 0x3cb   :  { %v4971_v3 = vadd.f32 %v16384_v24, %v4854_v57  ;;  %v5250_v7 = vsel %vm5189_vm0, %v5247_v60, %v5249_v14  ;;  %v5080_v39 = vmax.f32 %v4970_v26, 0.0  ;;  %v19015_v57 = vld [vmem:[#allocation34_spill] sm:$0xff] }
 0x3cc   :  { %v3237_v29 = vpop.f32.mrb[92].mxu0  ;;  %5259 = vrot.lane.b32.xlu1 %v5250_v7, %s13812_s24 }
 0x3cd   :  { %v5081_v18 = vmax.f32 %v4971_v3, 0.0  ;;  %v3484_v23 = vadd.f32 %v3237_v29, %v19013_v22  ;;  %v4608_v1 = vpop.f32.mrb[92].mxu1  ;;  %v3239_v45 = vpop.f32.mrb[93].mxu0 }
 0x3ce   :  { %v4610_v43 = vpop.f32.mrb[93].mxu1  ;;  %v3240_v62 = vpop.f32.mrb[94].mxu0 }
 0x3cf   :  { %v16649_v47 = vpack.c.bf16 %v5081_v18, %v5080_v39  ;;  %v4855_v10 = vadd.f32 %v4608_v1, %v3484_v23  ;;  %v3485_v8 = vadd.f32 %v3240_v62, %v19014_v2  ;;  %v4611_v33 = vpop.f32.mrb[94].mxu1  ;;  %v3242_v35 = vpop.f32.mrb[95].mxu0  ;;  %v19016_v23 = vld [vmem:[#allocation35_spill] sm:$0xff] }
 0x3d0   :  { %v4613_v60 = vpop.f32.mrb[95].mxu1  ;;  %v13050_v35 = vld [vmem:[%s18894_s3 + $0x180] ss:$12 sps:$4 sm:$0xff]  }
 0x3d1   :  { %v4972_v52 = vadd.f32 %v16384_v24, %v4855_v10  ;;  %v4856_v40 = vadd.f32 %v4611_v33, %v3485_v8  ;;  %v5251_v31 = vrot.slane %v16649_v47, 4 }
 0x3d3   :  { %v4973_v54 = vadd.f32 %v16384_v24, %v4856_v40  ;;  %v5252_v42 = vsel %vm5189_vm0, %v5249_v14, %v5251_v31  ;;  %v5082_v63 = vmax.f32 %v4972_v52, 0.0 }
 0x3d4   :  { %v3245_v5 = vpop.f32.mrb[96].mxu0  ;;  %5261 = vrot.lane.b32.xlu1 %v5252_v42, %s13812_s24 }
 0x3d5   :  { %v5083_v26 = vmax.f32 %v4973_v54, 0.0  ;;  %v3486_v32 = vadd.f32 %v3245_v5, %v19015_v57  ;;  %v4616_v3 = vpop.f32.mrb[96].mxu1  ;;  %v3247_v7 = vpop.f32.mrb[97].mxu0  ;;  %v13055_v54 = vld [vmem:[%s18894_s3 + $0x19c] ss:$12 sps:$4 sm:$0xff]   ;;  %v19017_v57 = vld [vmem:[#allocation36_spill] sm:$0xff] }
 0x3d6   :  { %v4618_v29 = vpop.f32.mrb[97].mxu1  ;;  %v3248_v39 = vpop.f32.mrb[98].mxu0 }
 0x3d7   :  { %v16658_v18 = vpack.c.bf16 %v5083_v26, %v5082_v63  ;;  %v4857_v22 = vadd.f32 %v4616_v3, %v3486_v32  ;;  %v3487_v1 = vadd.f32 %v3248_v39, %v19016_v23  ;;  %v4619_v45 = vpop.f32.mrb[98].mxu1  ;;  %v5229_v43 = vpop.permute.xlu0 %5228  ;;  %v13053_v39 = vld [vmem:[%s18894_s3 + $0x198] ss:$12 sps:$4 sm:$0xff]  }
 0x3d8   :  { %v3250_v14 = vpop.f32.mrb[99].mxu0  ;;  %v4621_v62 = vpop.f32.mrb[99].mxu1  ;;  %v5417_v10 = vsel %vm5394_vm1, %v16196_v19, %v5229_v43 }
 0x3d9   :  { %v4974_v2 = vadd.f32 %v16384_v24, %v4857_v22  ;;  %v4858_v8 = vadd.f32 %v4619_v45, %v3487_v1  ;;  %7266 = vmatprep.mubr.bf16.mxu0 %v5417_v10  ;;  %7681 = vmatprep.mubr.bf16.mxu1 %v5417_v10  ;;  %v5253_v33 = vrot.slane %v16658_v18, 4  ;;  %v19018_v1 = vld [vmem:[#allocation37_spill] sm:$0xff]  ;;  %v13058_v62 = vld [vmem:[%s18894_s3 + $0x1b4] ss:$12 sps:$4 sm:$0xff]  }
 0x3db   :  { %v4975_v60 = vadd.f32 %v16384_v24, %v4858_v8  ;;  %v5202_v52 = vpop.permute.xlu0 %5201  ;;  %v5254_v40 = vsel %vm5189_vm0, %v5251_v31, %v5253_v33  ;;  %v5084_v63 = vmax.f32 %v4974_v2, 0.0 }
 0x3dc   :  { %v5397_v42 = vsel %vm5394_vm1, %v15908_v12, %v5202_v52  ;;  %v3253_v5 = vpop.f32.mrb[100].mxu0  ;;  %5263 = vrot.lane.b32.xlu1 %v5254_v40, %s13812_s24 }
 0x3dd   :  { %v5085_v26 = vmax.f32 %v4975_v60, 0.0  ;;  %v3488_v32 = vadd.f32 %v3253_v5, %v19017_v57  ;;  %v4624_v3 = vpop.f32.mrb[100].mxu1  ;;  %7267 = vmatmul.mubr.bf16.vlgmr.msra.gmra.mrb[184].mxu0 %v5397_v42  ;;  %7682 = vmatmul.mubr.bf16.vlgmr.msra.gmra.mrb[184].mxu1 %v5397_v42  ;;  %v3255_v7 = vpop.f32.mrb[101].mxu0  ;;  %v13056_v60 = vld [vmem:[%s18894_s3 + $0x1b0] ss:$12 sps:$4 sm:$0xff]   ;;  %v19019_v57 = vld [vmem:[#allocation38_spill] sm:$0xff] }
 0x3de   :  { %v4626_v29 = vpop.f32.mrb[101].mxu1  ;;  %v3256_v31 = vpop.f32.mrb[102].mxu0  ;;  %7318 = vmatpush1.bf16.msra.mxu0 %v13050_v35 }
 0x3df   :  { %v16680_v22 = vpack.c.bf16 %v5085_v26, %v5084_v63  ;;  %v4859_v23 = vadd.f32 %v4624_v3, %v3488_v32  ;;  %v3489_v45 = vadd.f32 %v3256_v31, %v19018_v1  ;;  %v4627_v43 = vpop.f32.mrb[102].mxu1  ;;  %v5231_v14 = vpop.permute.xlu1 %5230  ;;  %7319 = vmatprep.subr.bf16.mxu0 %v13055_v54  ;;  %v13061_v54 = vld [vmem:[%s18894_s3 + $0x1cc] ss:$12 sps:$4 sm:$0xff]  }
 0x3e0   :  { %v3258_v10 = vpop.f32.mrb[103].mxu0  ;;  %v4629_v2 = vpop.f32.mrb[103].mxu1  ;;  %v5421_v8 = vsel %vm5394_vm1, %v16223_v37, %v5231_v14  ;;  %v19020_v1 = vld [vmem:[#allocation39_spill] sm:$0xff] }
 0x3e1   :  { %v4976_v33 = vadd.f32 %v16384_v24, %v4859_v23  ;;  %v4860_v35 = vadd.f32 %v4627_v43, %v3489_v45  ;;  %7276 = vmatprep.mubr.bf16.mxu0 %v5421_v8  ;;  %7689 = vmatprep.mubr.bf16.mxu1 %v5421_v8  ;;  %v13059_v14 = vld [vmem:[%s18894_s3 + $0x1c8] ss:$12 sps:$4 sm:$0xff]   ;;  %v13064_v2 = vld [vmem:[%s18894_s3 + $0x1e4] ss:$12 sps:$4 sm:$0xff]  }
 0x3e2   :  { %7320 = vmatpush1.bf16.msra.mxu0 %v13053_v39 }
 0x3e3   :  { %v4977_v52 = vadd.f32 %v16384_v24, %v4860_v35  ;;  %v5204_v40 = vpop.permute.xlu1 %5203  ;;  %7321 = vmatprep.subr.bf16.mxu0 %v13058_v62  ;;  %v5086_v63 = vmax.f32 %v4976_v33, 0.0 }
 0x3e4   :  { %v5401_v42 = vsel %vm5394_vm1, %v15932_v51, %v5204_v40  ;;  %v3261_v5 = vpop.f32.mrb[104].mxu0  ;;  %v13077_v40 = vld [vmem:[%s18894_s3 + $0x248] ss:$12 sps:$4 sm:$0xff]  }
 0x3e5   :  { %v5087_v26 = vmax.f32 %v4977_v52, 0.0  ;;  %v3490_v32 = vadd.f32 %v3261_v5, %v19019_v57  ;;  %v4632_v3 = vpop.f32.mrb[104].mxu1  ;;  %7277 = vmatmul.mubr.bf16.gmra.mrb[188].mxu0 %v5401_v42  ;;  %7690 = vmatmul.mubr.bf16.gmra.mrb[188].mxu1 %v5401_v42  ;;  %v3263_v7 = vpop.f32.mrb[105].mxu0  ;;  %v13062_v5 = vld [vmem:[%s18894_s3 + $0x1e0] ss:$12 sps:$4 sm:$0xff]  }
 0x3e6   :  { %v4634_v29 = vpop.f32.mrb[105].mxu1  ;;  %v3264_v31 = vpop.f32.mrb[106].mxu0  ;;  %7322 = vmatpush1.bf16.msra.mxu0 %v13056_v60  ;;  %12154 = vmatprep.subr.bf16.mxu1 %v13077_v40  ;;  %v13067_v57 = vld [vmem:[%s18894_s3 + $0x1fc] ss:$12 sps:$4 sm:$0xff]   ;;  %v19021_v7 = vld [vmem:[#allocation40_spill] sm:$0xff] }
 0x3e7   :  { %v16699_v39 = vpack.c.bf16 %v5087_v26, %v5086_v63  ;;  %v4861_v23 = vadd.f32 %v4632_v3, %v3490_v32  ;;  %v3491_v45 = vadd.f32 %v3264_v31, %v19020_v1  ;;  %v4635_v43 = vpop.f32.mrb[106].mxu1  ;;  %7323 = vmatprep.subr.bf16.mxu0 %v13061_v54  ;;  %v5233_v62 = vpop.permute.xlu0 %5232  ;;  %v13078_v54 = vld [vmem:[%s18894_s3 + $0x188] ss:$12 sps:$4 sm:$0xff]  }
 0x3e8   :  { %v3266_v10 = vpop.f32.mrb[107].mxu0  ;;  %v5206_v35 = vpop.permute.xlu1 %5205  ;;  %v5425_v52 = vsel %vm5394_vm1, %v16256_v61, %v5233_v62  ;;  %12155 = vmatpush3.bf16.msra.mxu1 %v13078_v54  ;;  %v19022_v62 = vld [vmem:[#allocation41_spill] sm:$0xff]  ;;  %v16745_v54 = vld [vmem:[%s18895_s2] ss:$0 sm:$0xff] }
 0x3e9   :  { %v4978_v8 = vadd.f32 %v16384_v24, %v4861_v23  ;;  %v4862_v33 = vadd.f32 %v4635_v43, %v3491_v45  ;;  %v4637_v60 = vpop.f32.mrb[107].mxu1  ;;  %7286 = vmatprep.mubr.bf16.mxu0 %v5425_v52  ;;  %7697 = vmatprep.mubr.bf16.mxu1 %v5425_v52  ;;  %v5405_v63 = vsel %vm5394_vm1, %v15956_v55, %v5206_v35  ;;  %v13082_v45 = vld [vmem:[%s18894_s3 + $0x260] ss:$12 sps:$4 sm:$0xff]  }
 0x3ea   :  { %7324 = vmatpush1.bf16.msra.mxu0 %v13059_v14  ;;  %v13070_v52 = vld [vmem:[%s18894_s3 + $0x214] ss:$12 sps:$4 sm:$0xff]   ;;  %12156 = vmatprep.subr.bf16.mxu1 %v13082_v45 }
 0x3eb   :  { %v4979_v42 = vadd.f32 %v16384_v24, %v4862_v33  ;;  %7325 = vmatprep.subr.bf16.mxu0 %v13064_v2  ;;  %v5088_v32 = vmax.f32 %v4978_v8, 0.0  ;;  %v13065_v8 = vld [vmem:[%s18894_s3 + $0x1f8] ss:$12 sps:$4 sm:$0xff]   ;;  %v13083_v33 = vld [vmem:[%s18894_s3 + $0x1a0] ss:$12 sps:$4 sm:$0xff]  }
 0x3ec   :  { %v3269_v26 = vpop.f32.mrb[108].mxu0  ;;  %v5208_v40 = vpop.permute.xlu1 %5207  ;;  %12157 = vmatpush3.bf16.msra.mxu1 %v13083_v33  ;;  %v19023_v45 = vld [vmem:[#allocation42_spill] sm:$0xff]  ;;  %v13092_v33 = vld [vmem:[%s18894_s3 + $0x290] ss:$12 sps:$4 sm:$0xff]  }
 0x3ed   :  { %v5089_v3 = vmax.f32 %v4979_v42, 0.0  ;;  %v3492_v24 = vadd.f32 %v3269_v26, %v19021_v7  ;;  %v4640_v29 = vpop.f32.mrb[108].mxu1  ;;  %7287 = vmatmul.mubr.bf16.gmra.mrb[192].mxu0 %v5405_v63  ;;  %7698 = vmatmul.mubr.bf16.gmra.mrb[192].mxu1 %v5405_v63  ;;  %v3271_v31 = vpop.f32.mrb[109].mxu0  ;;  %v13068_v7 = vld [vmem:[%s18894_s3 + $0x210] ss:$12 sps:$4 sm:$0xff]  }
 0x3ee   :  { %v4642_v23 = vpop.f32.mrb[109].mxu1  ;;  %v3272_v1 = vpop.f32.mrb[110].mxu0  ;;  %7326 = vmatpush1.bf16.msra.mxu0 %v13062_v5  ;;  %v13073_v31 = vld [vmem:[%s18894_s3 + $0x22c] ss:$12 sps:$4 sm:$0xff]  }
 0x3ef   :  { %v16730_v43 = vpack.c.bf16 %v5089_v3, %v5088_v32  ;;  %v4863_v14 = vadd.f32 %v4640_v29, %v3492_v24  ;;  %v3493_v10 = vadd.f32 %v3272_v1, %v19022_v62  ;;  %v4643_v2 = vpop.f32.mrb[110].mxu1  ;;  %v5235_v35 = vpop.permute.xlu0 %5234  ;;  %7327 = vmatprep.subr.bf16.mxu0 %v13067_v57  ;;  %v13087_v57 = vld [vmem:[%s18894_s3 + $0x278] ss:$12 sps:$4 sm:$0xff]   ;;  %v5409_v24 = vsel %vm5394_vm1, %v15986_v13, %v5208_v40 }
 0x3f0   :  { %v3274_v60 = vpop.f32.mrb[111].mxu0  ;;  %v4645_v63 = vpop.f32.mrb[111].mxu1  ;;  %v5429_v26 = vsel %vm5394_vm1, %v16283_v44, %v5235_v35  ;;  %v13088_v32 = vld [vmem:[%s18894_s3 + $0x1b8] ss:$12 sps:$4 sm:$0xff]   ;;  %12158 = vmatprep.subr.bf16.mxu1 %v13087_v57 }
 0x3f1   :  { %v4980_v42 = vadd.f32 %v16745_v54, %v4863_v14  ;;  %v4864_v5 = vadd.f32 %v4643_v2, %v3493_v10  ;;  %7296 = vmatprep.mubr.bf16.mxu0 %v5429_v26  ;;  %7705 = vmatprep.mubr.bf16.mxu1 %v5429_v26  ;;  %v13071_v63 = vld [vmem:[%s18894_s3 + $0x228] ss:$12 sps:$4 sm:$0xff]   ;;  %v13093_v26 = vld [vmem:[%s18894_s3 + $0x1d0] ss:$12 sps:$4 sm:$0xff]  }
 0x3f2   :  { %7328 = vmatpush1.bf16.msra.mxu0 %v13065_v8  ;;  %12159 = vmatpush3.bf16.msra.mxu1 %v13088_v32 }
 0x3f3   :  { %v4981_v3 = vadd.f32 %v16745_v54, %v4864_v5  ;;  %7329 = vmatprep.subr.bf16.mxu0 %v13070_v52  ;;  %v5090_v23 = vmax.f32 %v4980_v42, 0.0  ;;  %v19024_v52 = vld [vmem:[#allocation43_spill] sm:$0xff]  ;;  %12160 = vmatprep.subr.bf16.mxu1 %v13092_v33 }
 0x3f4   :  { %v3277_v29 = vpop.f32.mrb[112].mxu0 }
 0x3f5   :  { %v5091_v1 = vmax.f32 %v4981_v3, 0.0  ;;  %v3494_v14 = vadd.f32 %v3277_v29, %v19023_v45  ;;  %v4648_v62 = vpop.f32.mrb[112].mxu1  ;;  %7297 = vmatmul.mubr.bf16.gmra.mrb[196].mxu0 %v5409_v24  ;;  %7706 = vmatmul.mubr.bf16.gmra.mrb[196].mxu1 %v5409_v24  ;;  %v3279_v10 = vpop.f32.mrb[113].mxu0  ;;  %v13076_v24 = vld [vmem:[%s18894_s3 + $0x244] ss:$12 sps:$4 sm:$0xff]  }
 0x3f6   :  { %v4650_v2 = vpop.f32.mrb[113].mxu1  ;;  %v3280_v8 = vpop.f32.mrb[114].mxu0  ;;  %7330 = vmatpush1.bf16.msra.mxu0 %v13068_v7  ;;  %12161 = vmatpush3.bf16.msra.mxu1 %v13093_v26  ;;  %v13102_v26 = vld [vmem:[%s18894_s3 + $0x2c0] ss:$12 sps:$4 sm:$0xff]  }
 0x3f7   :  { %v16769_v35 = vpack.c.bf16 %v5091_v1, %v5090_v23  ;;  %v4865_v60 = vadd.f32 %v4648_v62, %v3494_v14  ;;  %v3495_v40 = vadd.f32 %v3280_v8, %v19024_v52  ;;  %v4651_v42 = vpop.f32.mrb[114].mxu1  ;;  %v5237_v5 = vpop.permute.xlu0 %5236  ;;  %7331 = vmatprep.subr.bf16.mxu0 %v13073_v31  ;;  %v13097_v1 = vld [vmem:[%s18894_s3 + $0x2a8] ss:$12 sps:$4 sm:$0xff]   ;;  %v13074_v14 = vld [vmem:[%s18894_s3 + $0x240] ss:$12 sps:$4 sm:$0xff]  }
 0x3f8   :  { %v3282_v57 = vpop.f32.mrb[115].mxu0  ;;  %v4653_v32 = vpop.f32.mrb[115].mxu1  ;;  %v5433_v3 = vsel %vm5394_vm1, %v16328_v34, %v5237_v5  ;;  %v13098_v31 = vld [vmem:[%s18894_s3 + $0x1e8] ss:$12 sps:$4 sm:$0xff]   ;;  %12162 = vmatprep.subr.bf16.mxu1 %v13097_v1  ;;  %v13103_v1 = vld [vmem:[%s18894_s3 + $0x200] ss:$12 sps:$4 sm:$0xff]  }
 0x3f9   :  { %v5210_v7 = vpop.permute.xlu1 %5209  ;;  %v4982_v29 = vadd.f32 %v16745_v54, %v4865_v60  ;;  %v4866_v23 = vadd.f32 %v4651_v42, %v3495_v40  ;;  %7306 = vmatprep.mubr.bf16.mxu0 %v5433_v3  ;;  %7713 = vmatprep.mubr.bf16.mxu1 %v5433_v3  ;;  %v13081_v2 = vld [vmem:[%s18894_s3 + $0x25c] ss:$12 sps:$4 sm:$0xff]   ;;  %v19025_v60 = vld [vmem:[#allocation44_spill] sm:$0xff] }
 0x3fa   :  { %7332 = vmatpush1.bf16.msra.mxu0 %v13071_v63  ;;  %v5413_v62 = vsel %vm5394_vm1, %v16010_v53, %v5210_v7  ;;  %12163 = vmatpush3.bf16.msra.mxu1 %v13098_v31  ;;  %v19026_v3 = vld [vmem:[#allocation45_spill] sm:$0xff] }
 0x3fb   :  { %v4983_v45 = vadd.f32 %v16745_v54, %v4866_v23  ;;  %7333 = vmatprep.subr.bf16.mxu0 %v13076_v24  ;;  %v5092_v8 = vmax.f32 %v4982_v29, 0.0  ;;  %v13079_v23 = vld [vmem:[%s18894_s3 + $0x258] ss:$12 sps:$4 sm:$0xff]   ;;  %12164 = vmatprep.subr.bf16.mxu1 %v13102_v26 }
 0x3fc   :  { %v3285_v10 = vpop.f32.mrb[116].mxu0 }
 0x3fd   :  { %v5093_v33 = vmax.f32 %v4983_v45, 0.0  ;;  %v3496_v52 = vadd.f32 %v3285_v10, %v19025_v60  ;;  %v4656_v40 = vpop.f32.mrb[116].mxu1  ;;  %7307 = vmatmul.mubr.bf16.gmra.mrb[200].mxu0 %v5413_v62  ;;  %7714 = vmatmul.mubr.bf16.gmra.mrb[200].mxu1 %v5413_v62  ;;  %v3287_v42 = vpop.f32.mrb[117].mxu0  ;;  %v13086_v45 = vld [vmem:[%s18894_s3 + $0x274] ss:$12 sps:$4 sm:$0xff]  }
 0x3fe   :  { %v4658_v5 = vpop.f32.mrb[117].mxu1  ;;  %v3288_v63 = vpop.f32.mrb[118].mxu0  ;;  %7334 = vmatpush1.bf16.msra.mxu0 %v13074_v14  ;;  %v13107_v14 = vld [vmem:[%s18894_s3 + $0x2d8] ss:$12 sps:$4 sm:$0xff]   ;;  %12165 = vmatpush3.bf16.msra.mxu1 %v13103_v1  ;;  %v19028_v1 = vld [vmem:[#allocation47_spill] sm:$0xff] }
 0x3ff   :  { %v16803_v57 = vpack.c.bf16 %v5093_v33, %v5092_v8  ;;  %v4867_v32 = vadd.f32 %v4656_v40, %v3496_v52  ;;  %v3497_v24 = vadd.f32 %v3288_v63, %v19026_v3  ;;  %v4659_v7 = vpop.f32.mrb[118].mxu1  ;;  %v3290_v29 = vpop.f32.mrb[119].mxu0  ;;  %7335 = vmatprep.subr.bf16.mxu0 %v13081_v2  ;;  %v13108_v8 = vld [vmem:[%s18894_s3 + $0x218] ss:$12 sps:$4 sm:$0xff]   ;;  %v13084_v2 = vld [vmem:[%s18894_s3 + $0x270] ss:$12 sps:$4 sm:$0xff]   ;;  %12166 = vmatprep.subr.bf16.mxu1 %v13107_v14 }
 0x400   :  { %v4661_v31 = vpop.f32.mrb[119].mxu1  ;;  %v13091_v52 = vld [vmem:[%s18894_s3 + $0x28c] ss:$12 sps:$4 sm:$0xff]   ;;  %v19027_v5 = vld [vmem:[#allocation46_spill] sm:$0xff]  ;;  %v13113_v14 = vld [vmem:[%s18894_s3 + $0x230] ss:$12 sps:$4 sm:$0xff]  }
 0x401   :  { %v4984_v62 = vadd.f32 %v16745_v54, %v4867_v32  ;;  %v4868_v10 = vadd.f32 %v4659_v7, %v3497_v24  ;;  %v13112_v7 = vld [vmem:[%s18894_s3 + $0x2f0] ss:$12 sps:$4 sm:$0xff]  }
 0x402   :  { %7336 = vmatpush1.bf16.msra.mxu0 %v13079_v23  ;;  %12167 = vmatpush3.bf16.msra.mxu1 %v13108_v8 }
 0x403   :  { %v4985_v33 = vadd.f32 %v16745_v54, %v4868_v10  ;;  %7337 = vmatprep.subr.bf16.mxu0 %v13086_v45  ;;  %v5094_v40 = vmax.f32 %v4984_v62, 0.0  ;;  %v13089_v62 = vld [vmem:[%s18894_s3 + $0x288] ss:$12 sps:$4 sm:$0xff]   ;;  %12168 = vmatprep.subr.bf16.mxu1 %v13112_v7 }
 0x404   :  { %v3293_v60 = vpop.f32.mrb[120].mxu0 }
 0x405   :  { %v5095_v42 = vmax.f32 %v4985_v33, 0.0  ;;  %v3498_v63 = vadd.f32 %v3293_v60, %v19027_v5  ;;  %v4664_v26 = vpop.f32.mrb[120].mxu1  ;;  %v3295_v32 = vpop.f32.mrb[121].mxu0  ;;  %v13096_v33 = vld [vmem:[%s18894_s3 + $0x2a4] ss:$12 sps:$4 sm:$0xff]  }
 0x406   :  { %v4666_v3 = vpop.f32.mrb[121].mxu1  ;;  %v3296_v24 = vpop.f32.mrb[122].mxu0  ;;  %7338 = vmatpush1.bf16.msra.mxu0 %v13084_v2  ;;  %12169 = vmatpush3.bf16.msra.mxu1 %v13113_v14  ;;  %v19029_v32 = vld [vmem:[#allocation48_spill] sm:$0xff] }
 0x407   :  { %v16833_v29 = vpack.c.bf16 %v5095_v42, %v5094_v40  ;;  %v4869_v23 = vadd.f32 %v4664_v26, %v3498_v63  ;;  %v3499_v31 = vadd.f32 %v3296_v24, %v19028_v1  ;;  %v4667_v45 = vpop.f32.mrb[122].mxu1  ;;  %v3298_v10 = vpop.f32.mrb[123].mxu0  ;;  %7339 = vmatprep.subr.bf16.mxu0 %v13091_v52  ;;  %v13094_v42 = vld [vmem:[%s18894_s3 + $0x2a0] ss:$12 sps:$4 sm:$0xff]   ;;  %v13101_v52 = vld [vmem:[%s18894_s3 + $0x2bc] ss:$12 sps:$4 sm:$0xff]  }
 0x408   :  { %v4669_v8 = vpop.f32.mrb[123].mxu1  ;;  %v19030_v10 = vld [vmem:[#allocation49_spill] sm:$0xff] }
 0x409   :  { %v4986_v60 = vadd.f32 %v16745_v54, %v4869_v23  ;;  %v4870_v40 = vadd.f32 %v4667_v45, %v3499_v31 }
 0x40a   :  { %7340 = vmatpush1.bf16.msra.mxu0 %v13089_v62 }
 0x40b   :  { %v4987_v2 = vadd.f32 %v16745_v54, %v4870_v40  ;;  %7341 = vmatprep.subr.bf16.mxu0 %v13096_v33  ;;  %v5096_v63 = vmax.f32 %v4986_v60, 0.0  ;;  %v13099_v33 = vld [vmem:[%s18894_s3 + $0x2b8] ss:$12 sps:$4 sm:$0xff]   ;;  %v13106_v60 = vld [vmem:[%s18894_s3 + $0x2d4] ss:$12 sps:$4 sm:$0xff]  }
 0x40c   :  { %v3301_v5 = vpop.f32.mrb[124].mxu0 }
 0x40d   :  { %v5097_v26 = vmax.f32 %v4987_v2, 0.0  ;;  %v3500_v3 = vadd.f32 %v3301_v5, %v19029_v32  ;;  %v4672_v24 = vpop.f32.mrb[124].mxu1  ;;  %v3303_v7 = vpop.f32.mrb[125].mxu0 }
 0x40e   :  { %v4674_v23 = vpop.f32.mrb[125].mxu1  ;;  %v3304_v1 = vpop.f32.mrb[126].mxu0  ;;  %7342 = vmatpush1.bf16.msra.mxu0 %v13094_v42 }
 0x40f   :  { %v5167_v31 = vpack.c.bf16 %v5097_v26, %v5096_v63  ;;  %v4871_v45 = vadd.f32 %v4672_v24, %v3500_v3  ;;  %v3501_v62 = vadd.f32 %v3304_v1, %v19030_v10  ;;  %v4675_v14 = vpop.f32.mrb[126].mxu1  ;;  %v3306_v8 = vpop.f32.mrb[127].mxu0  ;;  %7343 = vmatprep.subr.bf16.mxu0 %v13101_v52  ;;  %v5271_v26 = vrot.slane %v16833_v29, 4  ;;  %v13104_v52 = vld [vmem:[%s18894_s3 + $0x2d0] ss:$12 sps:$4 sm:$0xff]   ;;  %v19031_v1 = vld [vmem:[#allocation50_spill] sm:$0xff] }
 0x410   :  { %v4677_v40 = vpop.f32.mrb[127].mxu1  ;;  %v13111_v24 = vld [vmem:[%s18894_s3 + $0x2ec] ss:$12 sps:$4 sm:$0xff]  }
 0x411   :  { %v16861_v2 = vrot.slane %v5167_v31, 4  ;;  %v4988_v5 = vadd.f32 %v16745_v54, %v4871_v45  ;;  %v4872_v63 = vadd.f32 %v4675_v14, %v3501_v62  ;;  %v19032_v40 = vld [vmem:[#allocation51_spill] sm:$0xff] }
 0x412   :  { %7344 = vmatpush1.bf16.msra.mxu0 %v13099_v33 }
 0x413   :  { %v4989_v32 = vadd.f32 %v16745_v54, %v4872_v63  ;;  %v5273_v42 = vsel %vm5189_vm0, %v5271_v26, %v16861_v2  ;;  %7345 = vmatprep.subr.bf16.mxu0 %v13106_v60  ;;  %v5098_v7 = vmax.f32 %v4988_v5, 0.0  ;;  %v13109_v60 = vld [vmem:[%s18894_s3 + $0x2e8] ss:$12 sps:$4 sm:$0xff]  }
 0x414   :  { %v3309_v3 = vpop.f32.mrb[128].mxu0  ;;  %5282 = vrot.lane.b32.xlu0 %v5273_v42, %s13812_s24 }
 0x415   :  { %v5099_v23 = vmax.f32 %v4989_v32, 0.0  ;;  %v3502_v31 = vadd.f32 %v3309_v3, %v19031_v1  ;;  %v4680_v45 = vpop.f32.mrb[128].mxu1  ;;  %v3311_v10 = vpop.f32.mrb[129].mxu0 }
 0x416   :  { %v4682_v62 = vpop.f32.mrb[129].mxu1  ;;  %v3312_v14 = vpop.f32.mrb[130].mxu0  ;;  %7346 = vmatpush1.bf16.msra.mxu0 %v13104_v52 }
 0x417   :  { %v5168_v8 = vpack.c.bf16 %v5099_v23, %v5098_v7  ;;  %v4873_v33 = vadd.f32 %v4680_v45, %v3502_v31  ;;  %v3503_v63 = vadd.f32 %v3312_v14, %v19032_v40  ;;  %v4683_v26 = vpop.f32.mrb[130].mxu1  ;;  %v3314_v28 = vpop.f32.mrb[131].mxu0  ;;  %7347 = vmatprep.subr.bf16.mxu0 %v13111_v24  ;;  %v19033_v31 = vld [vmem:[#allocation52_spill] sm:$0xff] }
 0x418   :  { %v4685_v42 = vpop.f32.mrb[131].mxu1 }
 0x419   :  { %v5274_v5 = vrot.slane %v5168_v8, 4  ;;  %v4990_v32 = vadd.f32 %v16745_v54, %v4873_v33  ;;  %v4874_v3 = vadd.f32 %v4683_v26, %v3503_v63  ;;  %v13116_v8 = vld [vmem:[%s18894_s3 + $0x304] ss:$12 sps:$4 sm:$0xff]   ;;  %v19034_v63 = vld [vmem:[#allocation53_spill] sm:$0xff] }
 0x41a   :  { %7348 = vmatpush1.bf16.msra.mxu0 %v13109_v60 }
 0x41b   :  { %v4991_v1 = vadd.f32 %v16745_v54, %v4874_v3  ;;  %v5275_v7 = vsel %vm5189_vm0, %v16861_v2, %v5274_v5  ;;  %v5100_v28 = vmax.f32 %v4990_v32, 0.0  ;;  %7400 = vmatprep.subr.bf16.mxu0 %v13116_v8 }
 0x41c   :  { %v3317_v23 = vpop.f32.mrb[132].mxu0  ;;  %5284 = vrot.lane.b32.xlu0 %v5275_v7, %s13812_s24 }
 0x41d   :  { %v5101_v52 = vmax.f32 %v4991_v1, 0.0  ;;  %v3504_v45 = vadd.f32 %v3317_v23, %v19033_v31  ;;  %v4688_v10 = vpop.f32.mrb[132].mxu1  ;;  %v3319_v62 = vpop.f32.mrb[133].mxu0 }
 0x41e   :  { %v4690_v24 = vpop.f32.mrb[133].mxu1  ;;  %v3320_v14 = vpop.f32.mrb[134].mxu0 }
 0x41f   :  { %v5169_v33 = vpack.c.bf16 %v5101_v52, %v5100_v28  ;;  %v4875_v40 = vadd.f32 %v4688_v10, %v3504_v45  ;;  %v3505_v26 = vadd.f32 %v3320_v14, %v19034_v63  ;;  %v4691_v60 = vpop.f32.mrb[134].mxu1  ;;  %v3322_v42 = vpop.f32.mrb[135].mxu0  ;;  %v19035_v52 = vld [vmem:[#allocation54_spill] sm:$0xff] }
 0x420   :  { %v4693_v3 = vpop.f32.mrb[135].mxu1 }
 0x421   :  { %v5276_v32 = vrot.slane %v5169_v33, 4  ;;  %v4992_v1 = vadd.f32 %v16745_v54, %v4875_v40  ;;  %v4876_v7 = vadd.f32 %v4691_v60, %v3505_v26  ;;  %v19036_v3 = vld [vmem:[#allocation55_spill] sm:$0xff] }
 0x423   :  { %v4993_v23 = vadd.f32 %v16745_v54, %v4876_v7  ;;  %v5277_v31 = vsel %vm5189_vm0, %v5274_v5, %v5276_v32  ;;  %v5102_v24 = vmax.f32 %v4992_v1, 0.0 }
 0x424   :  { %v3325_v62 = vpop.f32.mrb[136].mxu0  ;;  %5286 = vrot.lane.b32.xlu0 %v5277_v31, %s13812_s24 }
 0x425   :  { %v5103_v28 = vmax.f32 %v4993_v23, 0.0  ;;  %v3506_v45 = vadd.f32 %v3325_v62, %v19035_v52  ;;  %v4696_v10 = vpop.f32.mrb[136].mxu1  ;;  %v3327_v14 = vpop.f32.mrb[137].mxu0 }
 0x426   :  { %v4698_v63 = vpop.f32.mrb[137].mxu1  ;;  %v3328_v42 = vpop.f32.mrb[138].mxu0 }
 0x427   :  { %v5170_v8 = vpack.c.bf16 %v5103_v28, %v5102_v24  ;;  %v4877_v33 = vadd.f32 %v4696_v10, %v3506_v45  ;;  %v3507_v40 = vadd.f32 %v3328_v42, %v19036_v3  ;;  %v4699_v26 = vpop.f32.mrb[138].mxu1  ;;  %v3330_v60 = vpop.f32.mrb[139].mxu0  ;;  %v19037_v24 = vld [vmem:[#allocation56_spill] sm:$0xff] }
 0x428   :  { %v4701_v7 = vpop.f32.mrb[139].mxu1 }
 0x429   :  { %v5278_v25 = vrot.slane %v5170_v8, 4  ;;  %v4994_v5 = vadd.f32 %v16745_v54, %v4877_v33  ;;  %v4878_v9 = vadd.f32 %v4699_v26, %v3507_v40  ;;  %v19038_v33 = vld [vmem:[#allocation57_spill] sm:$0xff] }
 0x42b   :  { %v4995_v1 = vadd.f32 %v16745_v54, %v4878_v9  ;;  %v5279_v23 = vsel %vm5189_vm0, %v5276_v32, %v5278_v25  ;;  %v5104_v62 = vmax.f32 %v4994_v5, 0.0 }
 0x42c   :  { %v3333_v31 = vpop.f32.mrb[140].mxu0  ;;  %5288 = vrot.lane.b32.xlu0 %v5279_v23, %s13812_s24 }
 0x42d   :  { %v5105_v52 = vmax.f32 %v4995_v1, 0.0  ;;  %v3508_v28 = vadd.f32 %v3333_v31, %v19037_v24  ;;  %v4704_v45 = vpop.f32.mrb[140].mxu1  ;;  %v3335_v10 = vpop.f32.mrb[141].mxu0 }
 0x42e   :  { %v4706_v14 = vpop.f32.mrb[141].mxu1  ;;  %v3336_v63 = vpop.f32.mrb[142].mxu0 }
 0x42f   :  { %v16901_v42 = vpack.c.bf16 %v5105_v52, %v5104_v62  ;;  %v4879_v8 = vadd.f32 %v4704_v45, %v3508_v28  ;;  %v3509_v3 = vadd.f32 %v3336_v63, %v19038_v33  ;;  %v4707_v40 = vpop.f32.mrb[142].mxu1  ;;  %v3338_v9 = vpop.f32.mrb[143].mxu0  ;;  %v19039_v52 = vld [vmem:[#allocation58_spill] sm:$0xff]  ;;  %v19040_v33 = vld [vmem:[#allocation59_spill] sm:$0xff] }
 0x430   :  { %v4709_v26 = vpop.f32.mrb[143].mxu1 }
 0x431   :  { %v5280_v32 = vrot.slane %v16901_v42, 4  ;;  %v4996_v60 = vadd.f32 %v16745_v54, %v4879_v8  ;;  %v4880_v7 = vadd.f32 %v4707_v40, %v3509_v3 }
 0x433   :  { %v4997_v5 = vadd.f32 %v16745_v54, %v4880_v7  ;;  %v5281_v1 = vsel %vm5189_vm0, %v5278_v25, %v5280_v32  ;;  %v5106_v31 = vmax.f32 %v4996_v60, 0.0 }
 0x434   :  { %v3341_v23 = vpop.f32.mrb[144].mxu0  ;;  %5290 = vrot.lane.b32.xlu0 %v5281_v1, %s13812_s24 }
 0x435   :  { %v5107_v62 = vmax.f32 %v4997_v5, 0.0  ;;  %v3510_v24 = vadd.f32 %v3341_v23, %v19039_v52  ;;  %v4712_v28 = vpop.f32.mrb[144].mxu1  ;;  %v3343_v45 = vpop.f32.mrb[145].mxu0 }
 0x436   :  { %v4714_v10 = vpop.f32.mrb[145].mxu1  ;;  %v3344_v14 = vpop.f32.mrb[146].mxu0 }
 0x437   :  { %v16912_v63 = vpack.c.bf16 %v5107_v62, %v5106_v31  ;;  %v4881_v8 = vadd.f32 %v4712_v28, %v3510_v24  ;;  %v3511_v3 = vadd.f32 %v3344_v14, %v19040_v33  ;;  %v4715_v40 = vpop.f32.mrb[146].mxu1  ;;  %v3346_v9 = vpop.f32.mrb[147].mxu0  ;;  %v19041_v31 = vld [vmem:[#allocation60_spill] sm:$0xff]  ;;  %v19042_v14 = vld [vmem:[#allocation61_spill] sm:$0xff] }
 0x438   :  { %v4717_v26 = vpop.f32.mrb[147].mxu1  ;;  %5334 = vrot.lane.b32.xlu0 %v16061_v15, %s13812_s24 }
 0x439   :  { %v4998_v25 = vadd.f32 %v16745_v54, %v4881_v8  ;;  %v4882_v60 = vadd.f32 %v4715_v40, %v3511_v3 }
 0x43b   :  { %v4999_v7 = vadd.f32 %v16745_v54, %v4882_v60  ;;  %v5108_v1 = vmax.f32 %v4998_v25, 0.0 }
 0x43c   :  { %v3349_v5 = vpop.f32.mrb[148].mxu0  ;;  %5336 = vrot.lane.b32.xlu0 %v16091_v50, %s13812_s24  ;;  %v13141_v50 = vld [vmem:[%s18894_s3 + $0x3c8] ss:$12 sps:$4 sm:$0xff]  }
 0x43d   :  { %v5109_v23 = vmax.f32 %v4999_v7, 0.0  ;;  %v3512_v62 = vadd.f32 %v3349_v5, %v19041_v31  ;;  %v4720_v52 = vpop.f32.mrb[148].mxu1  ;;  %v3351_v24 = vpop.f32.mrb[149].mxu0  ;;  %12200 = vmatprep.subr.bf16.mxu1 %v13141_v50 }
 0x43e   :  { %v4722_v28 = vpop.f32.mrb[149].mxu1  ;;  %v3352_v45 = vpop.f32.mrb[150].mxu0 }
 0x43f   :  { %v16922_v10 = vpack.c.bf16 %v5109_v23, %v5108_v1  ;;  %v4883_v15 = vadd.f32 %v4720_v52, %v3512_v62  ;;  %v3513_v8 = vadd.f32 %v3352_v45, %v19042_v14  ;;  %v4723_v33 = vpop.f32.mrb[150].mxu1  ;;  %v3354_v3 = vpop.f32.mrb[151].mxu0  ;;  %v19043_v1 = vld [vmem:[#allocation62_spill] sm:$0xff]  ;;  %v19044_v45 = vld [vmem:[#allocation63_spill] sm:$0xff] }
 0x440   :  { %v4725_v40 = vpop.f32.mrb[151].mxu1  ;;  %5338 = vrot.lane.b32.xlu0 %v16115_v59, %s13812_s24 }
 0x441   :  { %v5000_v9 = vadd.f32 %v16745_v54, %v4883_v15  ;;  %v4884_v26 = vadd.f32 %v4723_v33, %v3513_v8 }
 0x443   :  { %v5001_v25 = vadd.f32 %v16745_v54, %v4884_v26  ;;  %v5110_v7 = vmax.f32 %v5000_v9, 0.0 }
 0x444   :  { %v3357_v60 = vpop.f32.mrb[152].mxu0  ;;  %5340 = vrot.lane.b32.xlu0 %v16139_v0, %s13812_s24 }
 0x445   :  { %v5111_v5 = vmax.f32 %v5001_v25, 0.0  ;;  %v3514_v23 = vadd.f32 %v3357_v60, %v19043_v1  ;;  %v4728_v31 = vpop.f32.mrb[152].mxu1  ;;  %v3359_v59 = vpop.f32.mrb[153].mxu0  ;;  %v19045_v25 = vld [vmem:[#allocation64_spill] sm:$0xff] }
 0x446   :  { %v4730_v62 = vpop.f32.mrb[153].mxu1  ;;  %v3360_v52 = vpop.f32.mrb[154].mxu0  ;;  %v19046_v59 = vld [vmem:[#allocation65_spill] sm:$0xff] }
 0x447   :  { %v16935_v24 = vpack.c.bf16 %v5111_v5, %v5110_v7  ;;  %v4885_v28 = vadd.f32 %v4728_v31, %v3514_v23  ;;  %v3515_v15 = vadd.f32 %v3360_v52, %v19044_v45  ;;  %v4731_v14 = vpop.f32.mrb[154].mxu1  ;;  %v3362_v8 = vpop.f32.mrb[155].mxu0 }
 0x448   :  { %v4733_v33 = vpop.f32.mrb[155].mxu1  ;;  %5342 = vrot.lane.b32.xlu0 %v16166_v11, %s13812_s24 }
 0x449   :  { %v5002_v0 = vadd.f32 %v16745_v54, %v4885_v28  ;;  %v4886_v3 = vadd.f32 %v4731_v14, %v3515_v15 }
 0x44b   :  { %v5003_v40 = vadd.f32 %v16745_v54, %v4886_v3  ;;  %v5112_v9 = vmax.f32 %v5002_v0, 0.0  ;;  %v19047_v3 = vld [vmem:[#allocation66_spill] sm:$0xff] }
 0x44c   :  { %v3365_v50 = vpop.f32.mrb[156].mxu0  ;;  %5384 = vrot.lane.b32.xlu0 %v16616_v38, %s13812_s24 }
 0x44d   :  { %v5113_v26 = vmax.f32 %v5003_v40, 0.0  ;;  %v3516_v60 = vadd.f32 %v3365_v50, %v19045_v25  ;;  %v4736_v7 = vpop.f32.mrb[156].mxu1  ;;  %v3367_v5 = vpop.f32.mrb[157].mxu0 }
 0x44e   :  { %v4738_v1 = vpop.f32.mrb[157].mxu1  ;;  %v3368_v23 = vpop.f32.mrb[158].mxu0 }
 0x44f   :  { %v16945_v31 = vpack.c.bf16 %v5113_v26, %v5112_v9  ;;  %v4887_v11 = vadd.f32 %v4736_v7, %v3516_v60  ;;  %v3517_v62 = vadd.f32 %v3368_v23, %v19046_v59  ;;  %v4739_v52 = vpop.f32.mrb[158].mxu1  ;;  %v3370_v28 = vpop.f32.mrb[159].mxu0  ;;  %v19048_v7 = vld [vmem:[#allocation67_spill] sm:$0xff] }
 0x450   :  { %v4741_v45 = vpop.f32.mrb[159].mxu1  ;;  %5386 = vrot.lane.b32.xlu0 %v16628_v4, %s13812_s24 }
 0x451   :  { %v5004_v38 = vadd.f32 %v16745_v54, %v4887_v11  ;;  %v4888_v15 = vadd.f32 %v4739_v52, %v3517_v62 }
 0x453   :  { %v5005_v14 = vadd.f32 %v16745_v54, %v4888_v15  ;;  %v5114_v33 = vmax.f32 %v5004_v38, 0.0  ;;  %v19049_v38 = vld [vmem:[#allocation68_spill] sm:$0xff] }
 0x454   :  { %v3373_v8 = vpop.f32.mrb[160].mxu0  ;;  %5388 = vrot.lane.b32.xlu0 %v16637_v49, %s13812_s24 }
 0x455   :  { %v5115_v0 = vmax.f32 %v5005_v14, 0.0  ;;  %v3518_v40 = vadd.f32 %v3373_v8, %v19047_v3  ;;  %v4744_v50 = vpop.f32.mrb[160].mxu1  ;;  %v3375_v9 = vpop.f32.mrb[161].mxu0 }
 0x456   :  { %v4746_v26 = vpop.f32.mrb[161].mxu1  ;;  %v3376_v25 = vpop.f32.mrb[162].mxu0 }
 0x457   :  { %v16955_v60 = vpack.c.bf16 %v5115_v0, %v5114_v33  ;;  %v4889_v4 = vadd.f32 %v4744_v50, %v3518_v40  ;;  %v3519_v5 = vadd.f32 %v3376_v25, %v19048_v7  ;;  %v4747_v1 = vpop.f32.mrb[162].mxu1  ;;  %v3378_v23 = vpop.f32.mrb[163].mxu0  ;;  %v19050_v40 = vld [vmem:[#allocation69_spill] sm:$0xff] }
 0x458   :  { %v4749_v11 = vpop.f32.mrb[163].mxu1  ;;  %5390 = vrot.lane.b32.xlu0 %v16649_v47, %s13812_s24 }
 0x459   :  { %v5006_v49 = vadd.f32 %v16745_v54, %v4889_v4  ;;  %v4890_v59 = vadd.f32 %v4747_v1, %v3519_v5  ;;  %v19051_v11 = vld [vmem:[#allocation70_spill] sm:$0xff] }
 0x45b   :  { %v5007_v62 = vadd.f32 %v16745_v54, %v4890_v59  ;;  %v5116_v28 = vmax.f32 %v5006_v49, 0.0 }
 0x45c   :  { %v3381_v52 = vpop.f32.mrb[164].mxu0  ;;  %5392 = vrot.lane.b32.xlu0 %v16658_v18, %s13812_s24 }
 0x45d   :  { %v5117_v45 = vmax.f32 %v5007_v62, 0.0  ;;  %v3520_v15 = vadd.f32 %v3381_v52, %v19049_v38  ;;  %v4752_v14 = vpop.f32.mrb[164].mxu1  ;;  %v3383_v8 = vpop.f32.mrb[165].mxu0 }
 0x45e   :  { %v4754_v33 = vpop.f32.mrb[165].mxu1  ;;  %v3384_v0 = vpop.f32.mrb[166].mxu0 }
 0x45f   :  { %v16965_v3 = vpack.c.bf16 %v5117_v45, %v5116_v28  ;;  %v4891_v47 = vadd.f32 %v4752_v14, %v3520_v15  ;;  %v3521_v50 = vadd.f32 %v3384_v0, %v19050_v40  ;;  %v4755_v9 = vpop.f32.mrb[166].mxu1  ;;  %v3386_v26 = vpop.f32.mrb[167].mxu0  ;;  %v19052_v45 = vld [vmem:[#allocation71_spill] sm:$0xff] }
 0x460   :  { %v4757_v25 = vpop.f32.mrb[167].mxu1 }
 0x461   :  { %v5008_v4 = vadd.f32 %v16745_v54, %v4891_v47  ;;  %v4892_v7 = vadd.f32 %v4755_v9, %v3521_v50  ;;  %v5298_v9 = vrot.slane %v16965_v3, 4 }
 0x463   :  { %v5009_v18 = vadd.f32 %v16745_v54, %v4892_v7  ;;  %v5118_v1 = vmax.f32 %v5008_v4, 0.0 }
 0x464   :  { %v3389_v5 = vpop.f32.mrb[168].mxu0 }
 0x465   :  { %v5119_v23 = vmax.f32 %v5009_v18, 0.0  ;;  %v3522_v49 = vadd.f32 %v3389_v5, %v19051_v11  ;;  %v3391_v59 = vpop.f32.mrb[169].mxu0  ;;  %v4760_v62 = vpop.f32.mrb[168].mxu1  ;;  %v19053_v5 = vld [vmem:[#allocation72_spill] sm:$0xff] }
 0x466   :  { %v3392_v52 = vpop.f32.mrb[170].mxu0  ;;  %v4762_v28 = vpop.f32.mrb[169].mxu1 }
 0x467   :  { %v3523_v38 = vadd.f32 %v3392_v52, %v19052_v45  ;;  %v4893_v15 = vadd.f32 %v4760_v62, %v3522_v49  ;;  %v4763_v14 = vpop.f32.mrb[170].mxu1  ;;  %v3394_v8 = vpop.f32.mrb[171].mxu0  ;;  %v5178_v33 = vpack.c.bf16 %v5119_v23, %v5118_v1  ;;  %v19054_v52 = vld [vmem:[#allocation73_spill] sm:$0xff] }
 0x468   :  { %v4765_v0 = vpop.f32.mrb[171].mxu1 }
 0x469   :  { %v5010_v47 = vadd.f32 %v16745_v54, %v4893_v15  ;;  %v4894_v40 = vadd.f32 %v4763_v14, %v3523_v38  ;;  %v5299_v50 = vrot.slane %v5178_v33, 4 }
 0x46b   :  { %v5011_v26 = vadd.f32 %v16745_v54, %v4894_v40  ;;  %5559 = vrot.lane.b32.xlu0 %v5299_v50, %s13812_s24  ;;  %v5300_v25 = vsel %vm5189_vm0, %v5298_v9, %v5299_v50  ;;  %v5120_v7 = vmax.f32 %v5010_v47, 0.0 }
 0x46c   :  { %v3397_v4 = vpop.f32.mrb[172].mxu0  ;;  %5309 = vrot.lane.b32.xlu1 %v5300_v25, %s13812_s24 }
 0x46d   :  { %v5121_v18 = vmax.f32 %v5011_v26, 0.0  ;;  %v3524_v1 = vadd.f32 %v3397_v4, %v19053_v5  ;;  %v3399_v23 = vpop.f32.mrb[173].mxu0  ;;  %v4768_v11 = vpop.f32.mrb[172].mxu1  ;;  %v19055_v4 = vld [vmem:[#allocation74_spill] sm:$0xff] }
 0x46e   :  { %v3400_v49 = vpop.f32.mrb[174].mxu0  ;;  %v4770_v59 = vpop.f32.mrb[173].mxu1 }
 0x46f   :  { %v5179_v62 = vpack.c.bf16 %v5121_v18, %v5120_v7  ;;  %v3525_v28 = vadd.f32 %v3400_v49, %v19054_v52  ;;  %v4895_v45 = vadd.f32 %v4768_v11, %v3524_v1  ;;  %v4771_v38 = vpop.f32.mrb[174].mxu1  ;;  %v3402_v15 = vpop.f32.mrb[175].mxu0  ;;  %v19056_v49 = vld [vmem:[#allocation75_spill] sm:$0xff] }
 0x470   :  { %v4773_v14 = vpop.f32.mrb[175].mxu1 }
 0x471   :  { %v5301_v8 = vrot.slane %v5179_v62, 4  ;;  %v5012_v33 = vadd.f32 %v16745_v54, %v4895_v45  ;;  %v4896_v0 = vadd.f32 %v4771_v38, %v3525_v28 }
 0x473   :  { %v5013_v47 = vadd.f32 %v16745_v54, %v4896_v0  ;;  %v5302_v40 = vsel %vm5189_vm0, %v5299_v50, %v5301_v8  ;;  %v5122_v26 = vmax.f32 %v5012_v33, 0.0 }
 0x474   :  { %v3405_v9 = vpop.f32.mrb[176].mxu0  ;;  %5311 = vrot.lane.b32.xlu1 %v5302_v40, %s13812_s24 }
 0x475   :  { %v5123_v25 = vmax.f32 %v5013_v47, 0.0  ;;  %v3526_v7 = vadd.f32 %v3405_v9, %v19055_v4  ;;  %v3407_v18 = vpop.f32.mrb[177].mxu0  ;;  %v4776_v5 = vpop.f32.mrb[176].mxu1  ;;  %v19057_v9 = vld [vmem:[#allocation76_spill] sm:$0xff] }
 0x476   :  { %v3408_v1 = vpop.f32.mrb[178].mxu0  ;;  %v4778_v23 = vpop.f32.mrb[177].mxu1 }
 0x477   :  { %v5180_v11 = vpack.c.bf16 %v5123_v25, %v5122_v26  ;;  %v3527_v59 = vadd.f32 %v3408_v1, %v19056_v49  ;;  %v4897_v62 = vadd.f32 %v4776_v5, %v3526_v7  ;;  %v4779_v52 = vpop.f32.mrb[178].mxu1  ;;  %v3410_v28 = vpop.f32.mrb[179].mxu0  ;;  %v19058_v1 = vld [vmem:[#allocation77_spill] sm:$0xff] }
 0x478   :  { %v4781_v45 = vpop.f32.mrb[179].mxu1 }
 0x479   :  { %v5303_v38 = vrot.slane %v5180_v11, 4  ;;  %v5014_v50 = vadd.f32 %v16745_v54, %v4897_v62  ;;  %v4898_v15 = vadd.f32 %v4779_v52, %v3527_v59 }
 0x47b   :  { %v5015_v14 = vadd.f32 %v16745_v54, %v4898_v15  ;;  %v5304_v33 = vsel %vm5189_vm0, %v5301_v8, %v5303_v38  ;;  %v5124_v47 = vmax.f32 %v5014_v50, 0.0  ;;  %v5256_v15 = vpop.permute.xlu1 %5255 }
 0x47c   :  { %v3413_v0 = vpop.f32.mrb[180].mxu0  ;;  %5313 = vrot.lane.b32.xlu1 %v5304_v33, %s13812_s24 }
 0x47d   :  { %v5125_v40 = vmax.f32 %v5015_v14, 0.0  ;;  %v3528_v26 = vadd.f32 %v3413_v0, %v19057_v9  ;;  %v3415_v25 = vpop.f32.mrb[181].mxu0  ;;  %v4784_v4 = vpop.f32.mrb[180].mxu1 }
 0x47e   :  { %v3416_v7 = vpop.f32.mrb[182].mxu0  ;;  %v4786_v18 = vpop.f32.mrb[181].mxu1  ;;  %v13146_v25 = vld [vmem:[%s18894_s3 + $0x3e0] ss:$12 sps:$4 sm:$0xff]  }
 0x47f   :  { %v5181_v5 = vpack.c.bf16 %v5125_v40, %v5124_v47  ;;  %v3529_v23 = vadd.f32 %v3416_v7, %v19058_v1  ;;  %v4899_v11 = vadd.f32 %v4784_v4, %v3528_v26  ;;  %v4787_v49 = vpop.f32.mrb[182].mxu1  ;;  %v3418_v59 = vpop.f32.mrb[183].mxu0  ;;  %v13114_v47 = vld [vmem:[%s18894_s3 + $0x300] ss:$12 sps:$4 sm:$0xff]   ;;  %v13142_v40 = vld [vmem:[%s18894_s3 + $0x308] ss:$12 sps:$4 sm:$0xff]   ;;  %v5437_v26 = vsel %vm5394_vm1, %v16546_v48, %v5256_v15 }
 0x480   :  { %v4789_v62 = vpop.f32.mrb[183].mxu1  ;;  %v13117_v7 = vld [vmem:[%s18894_s3 + $0x318] ss:$12 sps:$4 sm:$0xff]   ;;  %v13147_v18 = vld [vmem:[%s18894_s3 + $0x320] ss:$12 sps:$4 sm:$0xff]  }
 0x481   :  { %v5305_v52 = vrot.slane %v5181_v5, 4  ;;  %v5016_v8 = vadd.f32 %v16745_v54, %v4899_v11  ;;  %v4900_v28 = vadd.f32 %v4787_v49, %v3529_v23  ;;  %v13122_v1 = vld [vmem:[%s18894_s3 + $0x334] ss:$12 sps:$4 sm:$0xff]   ;;  %v13151_v23 = vld [vmem:[%s18894_s3 + $0x3f8] ss:$12 sps:$4 sm:$0xff]   ;;  %v5258_v11 = vpop.permute.xlu1 %5257 }
 0x482   :  { %v13120_v59 = vld [vmem:[%s18894_s3 + $0x330] ss:$12 sps:$4 sm:$0xff]  }
 0x483   :  { %v5017_v45 = vadd.f32 %v16745_v54, %v4900_v28  ;;  %v5306_v50 = vsel %vm5189_vm0, %v5303_v38, %v5305_v52  ;;  %v5126_v14 = vmax.f32 %v5016_v8, 0.0  ;;  %v13119_v38 = vld [vmem:[%s18894_s3 + $0x31c] ss:$12 sps:$4 sm:$0xff]   ;;  %v13152_v8 = vld [vmem:[%s18894_s3 + $0x338] ss:$12 sps:$4 sm:$0xff]   ;;  %v5441_v28 = vsel %vm5394_vm1, %v16562_v41, %v5258_v11 }
 0x484   :  { %5315 = vrot.lane.b32.xlu1 %v5306_v50, %s13812_s24  ;;  %v13157_v50 = vld [vmem:[%s18894_s3 + $0x350] ss:$12 sps:$4 sm:$0xff]  }
 0x485   :  { %v5127_v33 = vmax.f32 %v5017_v45, 0.0  ;;  %v13123_v45 = vld [vmem:[%s18894_s3 + $0x348] ss:$12 sps:$4 sm:$0xff]   ;;  %v5260_v15 = vpop.permute.xlu1 %5259 }
 0x486   :  { %v5283_v0 = vpop.permute.xlu0 %5282 }
 0x487   :  { %v5457_v9 = vsel %vm5394_vm1, %v16680_v22, %v5283_v0  ;;  %v5182_v54 = vpack.c.bf16 %v5127_v33, %v5126_v14  ;;  %v13126_v33 = vld [vmem:[%s18894_s3 + $0x360] ss:$12 sps:$4 sm:$0xff]  }
 0x488   :  { %7349 = vmatprep.mubr.bf16.mxu0 %v5457_v9  ;;  %7754 = vmatprep.mubr.bf16.mxu1 %v5457_v9 }
 0x489   :  { %7350 = vmatmul.mubr.bf16.vlgmr.msra.gmra.mrb[184].mxu0 %v5437_v26  ;;  %7755 = vmatmul.mubr.bf16.vlgmr.msra.gmra.mrb[204].mxu1 %v5437_v26  ;;  %v5307_v4 = vrot.slane %v5182_v54, 4 }
 0x48a   :  { %7401 = vmatpush1.bf16.msra.mxu0 %v13114_v47  ;;  %12201 = vmatpush3.bf16.msra.mxu1 %v13142_v40  ;;  %v13131_v47 = vld [vmem:[%s18894_s3 + $0x37c] ss:$12 sps:$4 sm:$0xff]   ;;  %v5445_v40 = vsel %vm5394_vm1, %v16578_v36, %v5260_v15  ;;  %v5324_v15 = vrot.slane %v15908_v12, 4 }
 0x48b   :  { %5561 = vrot.lane.b32.xlu0 %v5307_v4, %s13812_s24  ;;  %v5308_v5 = vsel %vm5189_vm0, %v5305_v52, %v5307_v4  ;;  %7402 = vmatprep.subr.bf16.mxu0 %v13119_v38  ;;  %v13125_v52 = vld [vmem:[%s18894_s3 + $0x34c] ss:$12 sps:$4 sm:$0xff]   ;;  %v5262_v4 = vpop.permute.xlu1 %5261 }
 0x48c   :  { %5317 = vrot.lane.b32.xlu1 %v5308_v5, %s13812_s24  ;;  %12202 = vmatprep.subr.bf16.mxu1 %v13146_v25  ;;  %v13166_v38 = vld [vmem:[%s18894_s3 + $0x440] ss:$12 sps:$4 sm:$0xff]  }
 0x48d   :  { %v13134_v25 = vld [vmem:[%s18894_s3 + $0x394] ss:$12 sps:$4 sm:$0xff]  }
 0x48e   :  { %v5285_v49 = vpop.permute.xlu0 %5284  ;;  %7403 = vmatpush1.bf16.msra.mxu0 %v13117_v7  ;;  %12203 = vmatpush3.bf16.msra.mxu1 %v13147_v18  ;;  %v13132_v18 = vld [vmem:[%s18894_s3 + $0x390] ss:$12 sps:$4 sm:$0xff]  }
 0x48f   :  { %v17032_v62 = vsel %vm5394_vm1, %v16699_v39, %v5285_v49  ;;  %7404 = vmatprep.subr.bf16.mxu0 %v13122_v1  ;;  %12204 = vmatprep.subr.bf16.mxu1 %v13151_v23  ;;  %v13156_v39 = vld [vmem:[%s18894_s3 + $0x410] ss:$12 sps:$4 sm:$0xff]   ;;  %v13137_v1 = vld [vmem:[%s18894_s3 + $0x3ac] ss:$12 sps:$4 sm:$0xff]   ;;  %v5449_v23 = vsel %vm5394_vm1, %v16594_v27, %v5262_v4 }
 0x490   :  { %5359 = vrot.lane.b32.xlu1 %v16409_v30, %s13812_s24  ;;  %7359 = vmatprep.mubr.bf16.mxu0 %v17032_v62  ;;  %v13128_v30 = vld [vmem:[%s18894_s3 + $0x364] ss:$12 sps:$4 sm:$0xff]   ;;  %v5586_v9 = vrot.slane %v17032_v62, 4 }
 0x491   :  { %7762 = vmatprep.mubr.bf16.mxu1 %v17032_v62  ;;  %7360 = vmatmul.mubr.bf16.gmra.mrb[188].mxu0 %v5441_v28  ;;  %v13276_v62 = vld [vmem:[%s18894_s3 + $0x690] ss:$12 sps:$4 sm:$0xff]  }
 0x492   :  { %7763 = vmatmul.mubr.bf16.gmra.mrb[208].mxu1 %v5441_v28  ;;  %7405 = vmatpush1.bf16.msra.mxu0 %v13120_v59  ;;  %v13135_v59 = vld [vmem:[%s18894_s3 + $0x3a8] ss:$12 sps:$4 sm:$0xff]   ;;  %v5325_v28 = vrot.slane %v15932_v51, 4  ;;  %v13181_v51 = vld [vmem:[%s18894_s3 + $0x498] ss:$12 sps:$4 sm:$0xff]  }
 0x493   :  { %7406 = vmatprep.subr.bf16.mxu0 %v13125_v52  ;;  %12205 = vmatpush3.bf16.msra.mxu1 %v13152_v8  ;;  %v13172_v52 = vld [vmem:[%s18894_s3 + $0x398] ss:$12 sps:$4 sm:$0xff]   ;;  %v5264_v8 = vpop.permute.xlu1 %5263 }
 0x494   :  { %5361 = vrot.lane.b32.xlu1 %v16446_v58, %s13812_s24  ;;  %12206 = vmatprep.subr.bf16.mxu1 %v13156_v39  ;;  %v13161_v58 = vld [vmem:[%s18894_s3 + $0x428] ss:$12 sps:$4 sm:$0xff]   ;;  %v5326_v42 = vsel %vm5189_vm0, %v5324_v15, %v5325_v28 }
 0x496   :  { %v5287_v14 = vpop.permute.xlu0 %5286  ;;  %7407 = vmatpush1.bf16.msra.mxu0 %v13123_v45  ;;  %v13138_v45 = vld [vmem:[%s18894_s3 + $0x3c0] ss:$12 sps:$4 sm:$0xff]  }
 0x497   :  { %v5465_v0 = vsel %vm5394_vm1, %v16730_v43, %v5287_v14  ;;  %7408 = vmatprep.subr.bf16.mxu0 %v13128_v30  ;;  %12207 = vmatpush3.bf16.msra.mxu1 %v13157_v50  ;;  %v13162_v43 = vld [vmem:[%s18894_s3 + $0x368] ss:$12 sps:$4 sm:$0xff]   ;;  %v5453_v14 = vsel %vm5394_vm1, %v16605_v6, %v5264_v8 }
 0x498   :  { %5363 = vrot.lane.b32.xlu1 %v16475_v46, %s13812_s24  ;;  %v5591_v54 = vrot.slane %v5465_v0, 4  ;;  %7369 = vmatprep.mubr.bf16.mxu0 %v5465_v0  ;;  %v13129_v46 = vld [vmem:[%s18894_s3 + $0x378] ss:$12 sps:$4 sm:$0xff]   ;;  %v13145_v50 = vld [vmem:[%s18894_s3 + $0x3dc] ss:$12 sps:$4 sm:$0xff]  }
 0x499   :  { %7770 = vmatprep.mubr.bf16.mxu1 %v5465_v0  ;;  %7370 = vmatmul.mubr.bf16.gmra.mrb[192].mxu0 %v5445_v40 }
 0x49a   :  { %v17085_v26 = vsel %vm5189_vm0, %v5586_v9, %v5591_v54  ;;  %7771 = vmatmul.mubr.bf16.gmra.mrb[212].mxu1 %v5445_v40  ;;  %7409 = vmatpush1.bf16.msra.mxu0 %v13126_v33  ;;  %v13177_v33 = vld [vmem:[%s18894_s3 + $0x3b0] ss:$12 sps:$4 sm:$0xff]   ;;  %v13150_v40 = vld [vmem:[%s18894_s3 + $0x3f4] ss:$12 sps:$4 sm:$0xff]  }
 0x49b   :  { %7410 = vmatprep.subr.bf16.mxu0 %v13131_v47  ;;  %12208 = vmatprep.subr.bf16.mxu1 %v13161_v58  ;;  %v13187_v47 = vld [vmem:[%s18894_s3 + $0x548] ss:$12 sps:$4 sm:$0xff]  }
 0x49c   :  { %5365 = vrot.lane.b32.xlu1 %v16505_v17, %s13812_s24  ;;  %12209 = vmatpush3.bf16.msra.mxu1 %v13162_v43  ;;  %v13167_v17 = vld [vmem:[%s18894_s3 + $0x380] ss:$12 sps:$4 sm:$0xff]   ;;  %v13148_v43 = vld [vmem:[%s18894_s3 + $0x3f0] ss:$12 sps:$4 sm:$0xff]  }
 0x49d   :  { %12210 = vmatprep.subr.bf16.mxu1 %v13166_v38  ;;  %v13155_v38 = vld [vmem:[%s18894_s3 + $0x40c] ss:$12 sps:$4 sm:$0xff]  }
 0x49e   :  { %v5289_v7 = vpop.permute.xlu0 %5288  ;;  %7411 = vmatpush1.bf16.msra.mxu0 %v13129_v46 }
 0x49f   :  { %v5469_v5 = vsel %vm5394_vm1, %v16769_v35, %v5289_v7  ;;  %7412 = vmatprep.subr.bf16.mxu0 %v13134_v25  ;;  %v13171_v35 = vld [vmem:[%s18894_s3 + $0x458] ss:$12 sps:$4 sm:$0xff]  }
 0x4a0   :  { %5367 = vrot.lane.b32.xlu1 %v16523_v56, %s13812_s24  ;;  %v5595_v11 = vrot.slane %v5469_v5, 4  ;;  %7379 = vmatprep.mubr.bf16.mxu0 %v5469_v5  ;;  %v13140_v56 = vld [vmem:[%s18894_s3 + $0x3c4] ss:$12 sps:$4 sm:$0xff]  }
 0x4a1   :  { %7778 = vmatprep.mubr.bf16.mxu1 %v5469_v5  ;;  %7380 = vmatmul.mubr.bf16.gmra.mrb[196].mxu0 %v5449_v23 }
 0x4a2   :  { %v17114_v49 = vsel %vm5189_vm0, %v5591_v54, %v5595_v11  ;;  %7779 = vmatmul.mubr.bf16.gmra.mrb[216].mxu1 %v5449_v23  ;;  %7413 = vmatpush1.bf16.msra.mxu0 %v13132_v18  ;;  %v13153_v18 = vld [vmem:[%s18894_s3 + $0x408] ss:$12 sps:$4 sm:$0xff]  }
 0x4a3   :  { %7414 = vmatprep.subr.bf16.mxu0 %v13137_v1  ;;  %12211 = vmatpush3.bf16.msra.mxu1 %v13167_v17  ;;  %v13160_v1 = vld [vmem:[%s18894_s3 + $0x424] ss:$12 sps:$4 sm:$0xff]  }
 0x4a4   :  { %5555 = vrot.lane.b32.xlu1 %v16861_v2, %s13812_s24  ;;  %12212 = vmatprep.subr.bf16.mxu1 %v13171_v35  ;;  %v13176_v2 = vld [vmem:[%s18894_s3 + $0x470] ss:$12 sps:$4 sm:$0xff]   ;;  %v13158_v35 = vld [vmem:[%s18894_s3 + $0x420] ss:$12 sps:$4 sm:$0xff]  }
 0x4a6   :  { %v5291_v39 = vpop.permute.xlu0 %5290  ;;  %7415 = vmatpush1.bf16.msra.mxu0 %v13135_v59  ;;  %v13165_v59 = vld [vmem:[%s18894_s3 + $0x43c] ss:$12 sps:$4 sm:$0xff]  }
 0x4a7   :  { %v17133_v30 = vsel %vm5394_vm1, %v16803_v57, %v5291_v39  ;;  %7416 = vmatprep.subr.bf16.mxu0 %v13140_v56  ;;  %12213 = vmatpush3.bf16.msra.mxu1 %v13172_v52 }
 0x4a8   :  { %5557 = vrot.lane.b32.xlu1 %v5280_v32, %s13812_s24  ;;  %v5599_v57 = vrot.slane %v17133_v30, 4  ;;  %7389 = vmatprep.mubr.bf16.mxu0 %v17133_v30  ;;  %v13143_v32 = vld [vmem:[%s18894_s3 + $0x3d8] ss:$12 sps:$4 sm:$0xff]  }
 0x4a9   :  { %7786 = vmatprep.mubr.bf16.mxu1 %v17133_v30  ;;  %7390 = vmatmul.mubr.bf16.gmra.mrb[200].mxu0 %v5453_v14  ;;  %v13300_v30 = vld [vmem:[%s18894_s3 + $0x750] ss:$12 sps:$4 sm:$0xff]  }
 0x4aa   :  { %v17156_v12 = vsel %vm5189_vm0, %v5595_v11, %v5599_v57  ;;  %7787 = vmatmul.mubr.bf16.gmra.mrb[220].mxu1 %v5453_v14  ;;  %v5335_v0 = vpop.permute.xlu0 %5334  ;;  %7417 = vmatpush1.bf16.msra.mxu0 %v13138_v45  ;;  %v5939_v11 = vlaneseq  ;;  %v13170_v14 = vld [vmem:[%s18894_s3 + $0x454] ss:$12 sps:$4 sm:$0xff]  }
 0x4ab   :  { %v5497_v58 = vsel %vm5394_vm1, %v5326_v42, %v5335_v0  ;;  %7418 = vmatprep.subr.bf16.mxu0 %v13145_v50  ;;  %12214 = vmatprep.subr.bf16.mxu1 %v13176_v2  ;;  %v13163_v2 = vld [vmem:[%s18894_s3 + $0x438] ss:$12 sps:$4 sm:$0xff]   ;;  %v13168_v42 = vld [vmem:[%s18894_s3 + $0x450] ss:$12 sps:$4 sm:$0xff]  }
 0x4ac   :  { %7432 = vmatprep.mubr.bf16.mxu0 %v5497_v58  ;;  %7827 = vmatprep.mubr.bf16.mxu1 %v5497_v58  ;;  %v17197_v8 = vshrl.u32 %v5939_v11, 7 }
 0x4ad   :  { %12215 = vmatpush3.bf16.msra.mxu1 %v13177_v33 }
 0x4ae   :  { %v17171_v54 = vpop.permute.xlu0 %5336  ;;  %7419 = vmatpush1.bf16.msra.mxu0 %v13143_v32  ;;  %12246 = vmatprep.subr.bf16.mxu1 %v13187_v47  ;;  %v5949_v0 = vsub.s32 2, %v17197_v8  ;;  %v5937_v32 = vld [vmem:[%s18896_s4] sm:$0x7]  ;;  %v13175_v47 = vld [vmem:[%s18894_s3 + $0x46c] ss:$12 sps:$4 sm:$0xff]  }
 0x4af   :  { %7420 = vmatprep.subr.bf16.mxu0 %v13150_v40 }
 0x4b0   :  { %v12124_v46 = vpop.f32.mrb[184].mxu1 }
 0x4b1   :  { %v12125_v25 = vpop.f32.mrb[185].mxu1 }
 0x4b2   :  { %v17179_v4 = vadd.f32 %v12125_v25, %v12124_v46  ;;  %v12127_v7 = vpop.f32.mrb[186].mxu1  ;;  %7421 = vmatpush1.bf16.msra.mxu0 %v13148_v43  ;;  %v17187_v17 = vpop.permute.xlu0 %5338 }
 0x4b3   :  { %v12128_v5 = vpop.f32.mrb[187].mxu1  ;;  %7422 = vmatprep.subr.bf16.mxu0 %v13155_v38  ;;  %v17223_v38 = vrot.slane %v5937_v32, %v5949_v0 }
 0x4b4   :  { %v17189_v23 = vadd.f32 %v12128_v5, %v12127_v7  ;;  %v13173_v7 = vld [vmem:[%s18894_s3 + $0x468] ss:$12 sps:$4 sm:$0xff]   ;;  %v13180_v5 = vld [vmem:[%s18894_s3 + $0x484] ss:$12 sps:$4 sm:$0xff]  }
 0x4b6   :  { %7423 = vmatpush1.bf16.msra.mxu0 %v13153_v18  ;;  %v17199_v39 = vpop.permute.xlu0 %5340 }
 0x4b7   :  { %7424 = vmatprep.subr.bf16.mxu0 %v13160_v1 }
 0x4b8   :  { %v12130_v56 = vpop.f32.mrb[188].mxu1 }
 0x4b9   :  { %v12131_v52 = vpop.f32.mrb[189].mxu1 }
 0x4ba   :  { %v17201_v45 = vadd.f32 %v12131_v52, %v12130_v56  ;;  %v12133_v50 = vpop.f32.mrb[190].mxu1  ;;  %7425 = vmatpush1.bf16.msra.mxu0 %v13158_v35  ;;  %v17221_v58 = vpop.permute.xlu0 %5342 }
 0x4bb   :  { %v12134_v15 = vpop.f32.mrb[191].mxu1  ;;  %7426 = vmatprep.subr.bf16.mxu0 %v13165_v59 }
 0x4bc   :  { %v17209_v33 = vadd.f32 %v12134_v15, %v12133_v50 }
 0x4be   :  { %7427 = vmatpush1.bf16.msra.mxu0 %v13163_v2  ;;  %v17234_v35 = vpop.permute.xlu0 %5384 }
 0x4bf   :  { %7428 = vmatprep.subr.bf16.mxu0 %v13170_v14 }
 0x4c0   :  { %v12136_v40 = vpop.f32.mrb[192].mxu1 }
 0x4c1   :  { %v12137_v43 = vpop.f32.mrb[193].mxu1 }
 0x4c2   :  { %v12138_v46 = vadd.f32 %v12137_v43, %v12136_v40  ;;  %v12139_v25 = vpop.f32.mrb[194].mxu1  ;;  %7429 = vmatpush1.bf16.msra.mxu0 %v13168_v42  ;;  %v17239_v14 = vpop.permute.xlu0 %5386 }
 0x4c3   :  { %v12140_v18 = vpop.f32.mrb[195].mxu1  ;;  %7430 = vmatprep.subr.bf16.mxu0 %v13175_v47 }
 0x4c4   :  { %v17232_v1 = vadd.f32 %v12138_v46, %v17223_v38  ;;  %v12141_v11 = vadd.f32 %v12140_v18, %v12139_v25 }
 0x4c6   :  { %v17237_v59 = vadd.f32 %v12141_v11, %v17223_v38  ;;  %7431 = vmatpush1.bf16.msra.mxu0 %v13173_v7  ;;  %v17247_v43 = vpop.permute.xlu0 %5388 }
 0x4c7   :  { %7483 = vmatprep.subr.bf16.mxu0 %v13180_v5 }
 0x4c8   :  { %v12142_v56 = vpop.f32.mrb[196].mxu1 }
 0x4c9   :  { %v12143_v52 = vpop.f32.mrb[197].mxu1 }
 0x4ca   :  { %v12144_v50 = vadd.f32 %v12143_v52, %v12142_v56  ;;  %v12145_v2 = vpop.f32.mrb[198].mxu1  ;;  %v17255_v56 = vpop.permute.xlu0 %5390  ;;  %v5327_v52 = vrot.slane %v15956_v55, 4  ;;  %v13188_v55 = vld [vmem:[%s18894_s3 + $0x488] ss:$12 sps:$4 sm:$0xff]  }
 0x4cb   :  { %v12146_v15 = vpop.f32.mrb[199].mxu1 }
 0x4cc   :  { %v17242_v0 = vadd.f32 %v12144_v50, %v17223_v38  ;;  %v12147_v42 = vadd.f32 %v12146_v15, %v12145_v2  ;;  %v13178_v50 = vld [vmem:[%s18894_s3 + $0x480] ss:$12 sps:$4 sm:$0xff]  }
 0x4ce   :  { %v17245_v32 = vadd.f32 %v12147_v42, %v17223_v38  ;;  %v17261_v2 = vpop.permute.xlu0 %5392  ;;  %v13183_v42 = vld [vmem:[%s18894_s3 + $0x49c] ss:$12 sps:$4 sm:$0xff]  }
 0x4d0   :  { %v12148_v47 = vpop.f32.mrb[200].mxu1 }
 0x4d1   :  { %v12149_v40 = vpop.f32.mrb[201].mxu1 }
 0x4d2   :  { %v12150_v46 = vadd.f32 %v12149_v40, %v12148_v47  ;;  %v12151_v25 = vpop.f32.mrb[202].mxu1  ;;  %v5328_v40 = vsel %vm5189_vm0, %v5325_v28, %v5327_v52 }
 0x4d3   :  { %v12152_v7 = vpop.f32.mrb[203].mxu1 }
 0x4d4   :  { %v17250_v18 = vadd.f32 %v12150_v46, %v17223_v38  ;;  %v12153_v5 = vadd.f32 %v12152_v7, %v12151_v25  ;;  %v5501_v46 = vsel %vm5394_vm1, %v5328_v40, %v17171_v54  ;;  %v13192_v25 = vld [vmem:[%s18894_s3 + $0x560] ss:$12 sps:$4 sm:$0xff]  }
 0x4d5   :  { %v13186_v7 = vld [vmem:[%s18894_s3 + $0x4b4] ss:$12 sps:$4 sm:$0xff]  }
 0x4d6   :  { %v17253_v11 = vadd.f32 %v12153_v5, %v17223_v38  ;;  %v5329_v5 = vrot.slane %v15986_v13, 4  ;;  %v13193_v54 = vld [vmem:[%s18894_s3 + $0x4a0] ss:$12 sps:$4 sm:$0xff]  }
 0x4d7   :  { %v13191_v13 = vld [vmem:[%s18894_s3 + $0x4cc] ss:$12 sps:$4 sm:$0xff]  }
 0x4d8   :  { %v5330_v40 = vsel %vm5189_vm0, %v5327_v52, %v5329_v5  ;;  %v13202_v52 = vld [vmem:[%s18894_s3 + $0x590] ss:$12 sps:$4 sm:$0xff]  }
 0x4dd   :  { %v5560_v28 = vpop.permute.xlu0 %5559 }
 0x4de   :  { %v5310_v15 = vpop.permute.xlu1 %5309 }
 0x4df   :  { %v5477_v47 = vsel %vm5394_vm1, %v16912_v63, %v5310_v15  ;;  %v13184_v15 = vld [vmem:[%s18894_s3 + $0x4b0] ss:$12 sps:$4 sm:$0xff]  }
 0x4e0   :  { %7433 = vmatmul.mubr.bf16.vlgmr.msra.gmra.mrb[184].mxu0 %v5477_v47  ;;  %7828 = vmatmul.mubr.bf16.vlgmr.msra.gmra.mrb[224].mxu1 %v5477_v47 }
 0x4e1   :  { %7484 = vmatpush1.bf16.msra.mxu0 %v13178_v50  ;;  %7442 = vmatprep.mubr.bf16.mxu0 %v5501_v46  ;;  %v5569_v50 = vsel %vm5394_vm1, %v16912_v63, %v5560_v28  ;;  %v13197_v63 = vld [vmem:[%s18894_s3 + $0x578] ss:$12 sps:$4 sm:$0xff]  }
 0x4e2   :  { %7835 = vmatprep.mubr.bf16.mxu1 %v5501_v46  ;;  %7485 = vmatprep.subr.bf16.mxu0 %v13183_v42 }
 0x4e3   :  { %12247 = vmatpush3.bf16.msra.mxu1 %v13188_v55  ;;  %v5588_v55 = vrot.slane %v5569_v50, 4 }
 0x4e4   :  { %12248 = vmatprep.subr.bf16.mxu1 %v13192_v25  ;;  %v5505_v25 = vsel %vm5394_vm1, %v5330_v40, %v17187_v17  ;;  %v13196_v17 = vld [vmem:[%s18894_s3 + $0x4e4] ss:$12 sps:$4 sm:$0xff]  }
 0x4e5   :  { %7486 = vmatpush1.bf16.msra.mxu0 %v13181_v51  ;;  %v13198_v51 = vld [vmem:[%s18894_s3 + $0x4b8] ss:$12 sps:$4 sm:$0xff]  }
 0x4e6   :  { %v5312_v42 = vpop.permute.xlu1 %5311  ;;  %7487 = vmatprep.subr.bf16.mxu0 %v13186_v7  ;;  %v5331_v7 = vrot.slane %v16010_v53, 4  ;;  %v13203_v53 = vld [vmem:[%s18894_s3 + $0x4d0] ss:$12 sps:$4 sm:$0xff]  }
 0x4e7   :  { %v5481_v47 = vsel %vm5394_vm1, %v16922_v10, %v5312_v42  ;;  %12249 = vmatpush3.bf16.msra.mxu1 %v13193_v54  ;;  %v13189_v10 = vld [vmem:[%s18894_s3 + $0x4c8] ss:$12 sps:$4 sm:$0xff]   ;;  %v13194_v54 = vld [vmem:[%s18894_s3 + $0x4e0] ss:$12 sps:$4 sm:$0xff]  }
 0x4e8   :  { %v5589_v46 = vrot.slane %v5481_v47, 4  ;;  %7443 = vmatmul.mubr.bf16.gmra.mrb[188].mxu0 %v5481_v47  ;;  %7836 = vmatmul.mubr.bf16.gmra.mrb[228].mxu1 %v5481_v47 }
 0x4e9   :  { %7488 = vmatpush1.bf16.msra.mxu0 %v13184_v15  ;;  %7452 = vmatprep.mubr.bf16.mxu0 %v5505_v25  ;;  %v13201_v15 = vld [vmem:[%s18894_s3 + $0x4fc] ss:$12 sps:$4 sm:$0xff]  }
 0x4ea   :  { %7843 = vmatprep.mubr.bf16.mxu1 %v5505_v25  ;;  %7489 = vmatprep.subr.bf16.mxu0 %v13191_v13  ;;  %v17318_v28 = vsel %vm5189_vm0, %v5588_v55, %v5589_v46  ;;  %v5332_v13 = vsel %vm5189_vm0, %v5329_v5, %v5331_v7  ;;  %v13206_v5 = vld [vmem:[%s18894_s3 + $0x514] ss:$12 sps:$4 sm:$0xff]   ;;  %v13204_v25 = vld [vmem:[%s18894_s3 + $0x510] ss:$12 sps:$4 sm:$0xff]  }
 0x4eb   :  { %12250 = vmatprep.subr.bf16.mxu1 %v13197_v63  ;;  %v5509_v40 = vsel %vm5394_vm1, %v5332_v13, %v17199_v39  ;;  %v13207_v63 = vld [vmem:[%s18894_s3 + $0x5a8] ss:$12 sps:$4 sm:$0xff]   ;;  %v5375_v13 = vrot.slane %v16562_v41, 4 }
 0x4ec   :  { %12251 = vmatpush3.bf16.msra.mxu1 %v13198_v51  ;;  %v13208_v39 = vld [vmem:[%s18894_s3 + $0x4e8] ss:$12 sps:$4 sm:$0xff]  }
 0x4ed   :  { %7490 = vmatpush1.bf16.msra.mxu0 %v13189_v10  ;;  %12252 = vmatprep.subr.bf16.mxu1 %v13202_v52  ;;  %v13211_v10 = vld [vmem:[%s18894_s3 + $0x52c] ss:$12 sps:$4 sm:$0xff]   ;;  %v19059_v52 = vrot.slane %v16034_v20, 4  ;;  %v13209_v20 = vld [vmem:[%s18894_s3 + $0x528] ss:$12 sps:$4 sm:$0xff]  }
 0x4ee   :  { %v5314_v50 = vpop.permute.xlu1 %5313  ;;  %7491 = vmatprep.subr.bf16.mxu0 %v13196_v17 }
 0x4ef   :  { %v5485_v42 = vsel %vm5394_vm1, %v16935_v24, %v5314_v50  ;;  %v13199_v24 = vld [vmem:[%s18894_s3 + $0x4f8] ss:$12 sps:$4 sm:$0xff]   ;;  %v5333_v17 = vsel %vm5189_vm0, %v5331_v7, %v19059_v52  ;;  %v13233_v52 = vld [vmem:[%s18894_s3 + $0x6c8] ss:$12 sps:$4 sm:$0xff]  }
 0x4f0   :  { %v5593_v47 = vrot.slane %v5485_v42, 4  ;;  %7453 = vmatmul.mubr.bf16.gmra.mrb[192].mxu0 %v5485_v42  ;;  %7844 = vmatmul.mubr.bf16.gmra.mrb[232].mxu1 %v5485_v42  ;;  %v13213_v42 = vld [vmem:[%s18894_s3 + $0x500] ss:$12 sps:$4 sm:$0xff]  }
 0x4f1   :  { %7492 = vmatpush1.bf16.msra.mxu0 %v13194_v54  ;;  %7462 = vmatprep.mubr.bf16.mxu0 %v5509_v40  ;;  %v13212_v54 = vld [vmem:[%s18894_s3 + $0x5c0] ss:$12 sps:$4 sm:$0xff]  }
 0x4f2   :  { %7851 = vmatprep.mubr.bf16.mxu1 %v5509_v40  ;;  %7493 = vmatprep.subr.bf16.mxu0 %v13201_v15  ;;  %v17345_v55 = vsel %vm5189_vm0, %v5589_v46, %v5593_v47  ;;  %v5513_v15 = vsel %vm5394_vm1, %v5333_v17, %v17221_v58  ;;  %v13216_v58 = vld [vmem:[%s18894_s3 + $0x544] ss:$12 sps:$4 sm:$0xff]   ;;  %v13214_v40 = vld [vmem:[%s18894_s3 + $0x540] ss:$12 sps:$4 sm:$0xff]   ;;  %v5377_v17 = vrot.slane %v16578_v36, 4 }
 0x4f3   :  { %12253 = vmatpush3.bf16.msra.mxu1 %v13203_v53  ;;  %v5374_v53 = vrot.slane %v16546_v48, 4  ;;  %v13221_v48 = vld [vmem:[%s18894_s3 + $0x55c] ss:$12 sps:$4 sm:$0xff]  }
 0x4f4   :  { %12254 = vmatprep.subr.bf16.mxu1 %v13207_v63  ;;  %v13234_v36 = vld [vmem:[%s18894_s3 + $0x608] ss:$12 sps:$4 sm:$0xff]  }
 0x4f5   :  { %7494 = vmatpush1.bf16.msra.mxu0 %v13199_v24  ;;  %v13218_v24 = vld [vmem:[%s18894_s3 + $0x518] ss:$12 sps:$4 sm:$0xff]   ;;  %v5376_v41 = vsel %vm5189_vm0, %v5374_v53, %v5375_v13  ;;  %v13227_v53 = vld [vmem:[%s18894_s3 + $0x588] ss:$12 sps:$4 sm:$0xff]  }
 0x4f6   :  { %v5316_v51 = vpop.permute.xlu1 %5315  ;;  %7495 = vmatprep.subr.bf16.mxu0 %v13206_v5  ;;  %v13222_v5 = vld [vmem:[%s18894_s3 + $0x5f0] ss:$12 sps:$4 sm:$0xff]  }
 0x4f7   :  { %v5489_v46 = vsel %vm5394_vm1, %v16945_v31, %v5316_v51  ;;  %12255 = vmatpush3.bf16.msra.mxu1 %v13208_v39  ;;  %v13217_v31 = vld [vmem:[%s18894_s3 + $0x5d8] ss:$12 sps:$4 sm:$0xff]   ;;  %v13223_v51 = vld [vmem:[%s18894_s3 + $0x530] ss:$12 sps:$4 sm:$0xff]  }
 0x4f8   :  { %v5597_v50 = vrot.slane %v5489_v46, 4  ;;  %7463 = vmatmul.mubr.bf16.gmra.mrb[196].mxu0 %v5489_v46  ;;  %7852 = vmatmul.mubr.bf16.gmra.mrb[236].mxu1 %v5489_v46  ;;  %v5350_v46 = vrot.slane %v16223_v37, 4  ;;  %v13229_v37 = vld [vmem:[%s18894_s3 + $0x58c] ss:$12 sps:$4 sm:$0xff]  }
 0x4f9   :  { %7496 = vmatpush1.bf16.msra.mxu0 %v13204_v25  ;;  %7472 = vmatprep.mubr.bf16.mxu0 %v5513_v15  ;;  %v13219_v25 = vld [vmem:[%s18894_s3 + $0x558] ss:$12 sps:$4 sm:$0xff]  }
 0x4fa   :  { %7859 = vmatprep.mubr.bf16.mxu1 %v5513_v15  ;;  %7497 = vmatprep.subr.bf16.mxu0 %v13211_v10  ;;  %v17379_v7 = vsel %vm5189_vm0, %v5593_v47, %v5597_v50  ;;  %v13226_v10 = vld [vmem:[%s18894_s3 + $0x574] ss:$12 sps:$4 sm:$0xff]  }
 0x4fb   :  { %12256 = vmatprep.subr.bf16.mxu1 %v13212_v54  ;;  %v5349_v54 = vrot.slane %v16196_v19, 4 }
 0x4fc   :  { %12257 = vmatpush3.bf16.msra.mxu1 %v13213_v42  ;;  %v13224_v42 = vld [vmem:[%s18894_s3 + $0x570] ss:$12 sps:$4 sm:$0xff]  }
 0x4fd   :  { %7498 = vmatpush1.bf16.msra.mxu0 %v13209_v20  ;;  %12258 = vmatprep.subr.bf16.mxu1 %v13217_v31  ;;  %v5378_v20 = vsel %vm5189_vm0, %v5375_v13, %v5377_v17  ;;  %v13238_v31 = vld [vmem:[%s18894_s3 + $0x6e0] ss:$12 sps:$4 sm:$0xff]   ;;  %v13232_v13 = vld [vmem:[%s18894_s3 + $0x5a4] ss:$12 sps:$4 sm:$0xff]  }
 0x4fe   :  { %v5318_v63 = vpop.permute.xlu1 %5317  ;;  %7499 = vmatprep.subr.bf16.mxu0 %v13216_v58  ;;  %v17445_v58 = vsel %vm5394_vm1, %v5378_v20, %v17239_v14  ;;  %v5379_v14 = vrot.slane %v16594_v27, 4  ;;  %v13244_v27 = vld [vmem:[%s18894_s3 + $0x638] ss:$12 sps:$4 sm:$0xff]  }
 0x4ff   :  { %v17391_v47 = vsel %vm5394_vm1, %v16955_v60, %v5318_v63  ;;  %v5537_v60 = vsel %vm5394_vm1, %v5376_v41, %v17234_v35  ;;  %v13239_v63 = vld [vmem:[%s18894_s3 + $0x620] ss:$12 sps:$4 sm:$0xff]  }
 0x500   :  { %v5601_v39 = vrot.slane %v17391_v47, 4  ;;  %7473 = vmatmul.mubr.bf16.gmra.mrb[200].mxu0 %v17391_v47  ;;  %7860 = vmatmul.mubr.bf16.gmra.mrb[240].mxu1 %v17391_v47  ;;  %v13299_v47 = vld [vmem:[%s18894_s3 + $0x73c] ss:$12 sps:$4 sm:$0xff]  }
 0x501   :  { %7500 = vmatpush1.bf16.msra.mxu0 %v13214_v40  ;;  %7515 = vmatprep.mubr.bf16.mxu0 %v5537_v60  ;;  %v5352_v40 = vrot.slane %v16256_v61, 4  ;;  %v13237_v61 = vld [vmem:[%s18894_s3 + $0x5bc] ss:$12 sps:$4 sm:$0xff]  }
 0x502   :  { %12259 = vmatpush3.bf16.msra.mxu1 %v13218_v24  ;;  %7900 = vmatprep.mubr.bf16.mxu1 %v5537_v60  ;;  %v17417_v35 = vsel %vm5189_vm0, %v5597_v50, %v5601_v39  ;;  %v5360_v15 = vpop.permute.xlu1 %5359  ;;  %v5351_v50 = vsel %vm5189_vm0, %v5349_v54, %v5350_v46  ;;  %v13243_v24 = vld [vmem:[%s18894_s3 + $0x6f8] ss:$12 sps:$4 sm:$0xff]   ;;  %v13249_v54 = vld [vmem:[%s18894_s3 + $0x650] ss:$12 sps:$4 sm:$0xff]  }
 0x503   :  { %7501 = vmatprep.subr.bf16.mxu0 %v13221_v48  ;;  %12260 = vmatprep.subr.bf16.mxu1 %v13222_v5  ;;  %v17436_v19 = vsel %vm5394_vm1, %v5351_v50, %v5360_v15  ;;  %v13230_v48 = vld [vmem:[%s18894_s3 + $0x5a0] ss:$12 sps:$4 sm:$0xff]   ;;  %v5353_v5 = vsel %vm5189_vm0, %v5350_v46, %v5352_v40  ;;  %v13235_v46 = vld [vmem:[%s18894_s3 + $0x5b8] ss:$12 sps:$4 sm:$0xff]   ;;  %v13253_v15 = vld [vmem:[%s18894_s3 + $0x728] ss:$12 sps:$4 sm:$0xff]  }
 0x505   :  { %7502 = vmatpush1.bf16.msra.mxu0 %v13219_v25  ;;  %v5380_v25 = vsel %vm5189_vm0, %v5377_v17, %v5379_v14  ;;  %v5354_v17 = vrot.slane %v16283_v44, 4  ;;  %v13247_v44 = vld [vmem:[%s18894_s3 + $0x5ec] ss:$12 sps:$4 sm:$0xff]  }
 0x506   :  { %12261 = vmatpush3.bf16.msra.mxu1 %v13223_v51  ;;  %7503 = vmatprep.subr.bf16.mxu0 %v13226_v10  ;;  %v5362_v41 = vpop.permute.xlu1 %5361  ;;  %v13248_v51 = vld [vmem:[%s18894_s3 + $0x710] ss:$12 sps:$4 sm:$0xff]   ;;  %v17482_v10 = vsel %vm5394_vm1, %v5380_v25, %v17247_v43  ;;  %v5381_v43 = vrot.slane %v16605_v6, 4  ;;  %v13254_v6 = vld [vmem:[%s18894_s3 + $0x668] ss:$12 sps:$4 sm:$0xff]  }
 0x507   :  { %12292 = vmatprep.subr.bf16.mxu1 %v13233_v52  ;;  %v17473_v60 = vsel %vm5394_vm1, %v5353_v5, %v5362_v41  ;;  %v13242_v52 = vld [vmem:[%s18894_s3 + $0x5d4] ss:$12 sps:$4 sm:$0xff]   ;;  %v5355_v50 = vsel %vm5189_vm0, %v5352_v40, %v5354_v17  ;;  %v13252_v40 = vld [vmem:[%s18894_s3 + $0x604] ss:$12 sps:$4 sm:$0xff]  }
 0x508   :  { %v5382_v20 = vsel %vm5189_vm0, %v5379_v14, %v5381_v43  ;;  %v13259_v14 = vld [vmem:[%s18894_s3 + $0x680] ss:$12 sps:$4 sm:$0xff]   ;;  %v13268_v5 = vld [vmem:[%s18894_s3 + $0x770] ss:$12 sps:$4 sm:$0xff]  }
 0x509   :  { %7504 = vmatpush1.bf16.msra.mxu0 %v13224_v42  ;;  %7901 = vmatmul.mubr.bf16.vlgmr.msra.gmra.mrb[244].mxu1 %v17436_v19  ;;  %v13250_v41 = vld [vmem:[%s18894_s3 + $0x600] ss:$12 sps:$4 sm:$0xff]  }
 0x50a   :  { %7908 = vmatprep.mubr.bf16.mxu1 %v17445_v58  ;;  %7505 = vmatprep.subr.bf16.mxu0 %v13229_v37  ;;  %v5364_v42 = vpop.permute.xlu1 %5363  ;;  %v13240_v37 = vld [vmem:[%s18894_s3 + $0x5d0] ss:$12 sps:$4 sm:$0xff]  }
 0x50b   :  { %12293 = vmatpush3.bf16.msra.mxu1 %v13234_v36  ;;  %v5525_v36 = vsel %vm5394_vm1, %v5355_v50, %v5364_v42  ;;  %v13275_v50 = vld [vmem:[%s18894_s3 + $0x67c] ss:$12 sps:$4 sm:$0xff]  }
 0x50c   :  { %12294 = vmatprep.subr.bf16.mxu1 %v13238_v31  ;;  %v13258_v31 = vld [vmem:[%s18894_s3 + $0x740] ss:$12 sps:$4 sm:$0xff]  }
 0x50d   :  { %7506 = vmatpush1.bf16.msra.mxu0 %v13227_v53  ;;  %v5549_v53 = vsel %vm5394_vm1, %v5382_v20, %v17255_v56  ;;  %v13263_v56 = vld [vmem:[%s18894_s3 + $0x758] ss:$12 sps:$4 sm:$0xff]   ;;  %v13278_v20 = vld [vmem:[%s18894_s3 + $0x694] ss:$12 sps:$4 sm:$0xff]  }
 0x50e   :  { %7507 = vmatprep.subr.bf16.mxu0 %v13232_v13  ;;  %v13245_v13 = vld [vmem:[%s18894_s3 + $0x5e8] ss:$12 sps:$4 sm:$0xff]  }
 0x50f   :  { %12295 = vmatpush3.bf16.msra.mxu1 %v13239_v63  ;;  %v5366_v63 = vpop.permute.xlu1 %5365 }
 0x510   :  { %12296 = vmatprep.subr.bf16.mxu1 %v13243_v24  ;;  %v5356_v24 = vrot.slane %v16328_v34, 4  ;;  %v13264_v34 = vld [vmem:[%s18894_s3 + $0x698] ss:$12 sps:$4 sm:$0xff]  }
 0x511   :  { %7508 = vmatpush1.bf16.msra.mxu0 %v13230_v48  ;;  %7909 = vmatmul.mubr.bf16.gmra.mrb[248].mxu1 %v17473_v60  ;;  %v13257_v48 = vld [vmem:[%s18894_s3 + $0x61c] ss:$12 sps:$4 sm:$0xff]  }
 0x512   :  { %7916 = vmatprep.mubr.bf16.mxu1 %v17482_v10  ;;  %7509 = vmatprep.subr.bf16.mxu0 %v13237_v61  ;;  %v5357_v61 = vsel %vm5189_vm0, %v5354_v17, %v5356_v24  ;;  %v13262_v17 = vld [vmem:[%s18894_s3 + $0x634] ss:$12 sps:$4 sm:$0xff]  }
 0x513   :  { %12297 = vmatpush3.bf16.msra.mxu1 %v13244_v27  ;;  %v5529_v27 = vsel %vm5394_vm1, %v5357_v61, %v5366_v63  ;;  %v5368_v25 = vpop.permute.xlu1 %5367  ;;  %v13285_v63 = vld [vmem:[%s18894_s3 + $0x6d8] ss:$12 sps:$4 sm:$0xff]  }
 0x514   :  { %12298 = vmatprep.subr.bf16.mxu1 %v13248_v51  ;;  %v19060_v51 = vrot.slane %v16610_v21, 4  ;;  %v13269_v21 = vld [vmem:[%s18894_s3 + $0x6b0] ss:$12 sps:$4 sm:$0xff]  }
 0x515   :  { %7510 = vmatpush1.bf16.msra.mxu0 %v13235_v46 }
 0x516   :  { %7511 = vmatprep.subr.bf16.mxu0 %v13242_v52  ;;  %v5383_v46 = vsel %vm5189_vm0, %v5381_v43, %v19060_v51  ;;  %v13255_v52 = vld [vmem:[%s18894_s3 + $0x618] ss:$12 sps:$4 sm:$0xff]   ;;  %v19061_v43 = vrot.slane %v16370_v16, 4  ;;  %v13302_v51 = vld [vmem:[%s18894_s3 + $0x754] ss:$12 sps:$4 sm:$0xff]  }
 0x517   :  { %12299 = vmatpush3.bf16.msra.mxu1 %v13249_v54  ;;  %v5556_v54 = vpop.permute.xlu1 %5555  ;;  %v13272_v16 = vld [vmem:[%s18894_s3 + $0x664] ss:$12 sps:$4 sm:$0xff]  }
 0x518   :  { %12300 = vmatprep.subr.bf16.mxu1 %v13253_v15  ;;  %v5358_v15 = vsel %vm5189_vm0, %v5356_v24, %v19061_v43 }
 0x519   :  { %7512 = vmatpush1.bf16.msra.mxu0 %v13240_v37  ;;  %7917 = vmatmul.mubr.bf16.gmra.mrb[252].mxu1 %v5525_v36  ;;  %v5533_v42 = vsel %vm5394_vm1, %v5358_v15, %v5368_v25  ;;  %v13265_v37 = vld [vmem:[%s18894_s3 + $0x648] ss:$12 sps:$4 sm:$0xff]   ;;  %v13297_v25 = vld [vmem:[%s18894_s3 + $0x738] ss:$12 sps:$4 sm:$0xff]  }
 0x51a   :  { %7924 = vmatprep.mubr.bf16.mxu1 %v5549_v53  ;;  %7513 = vmatprep.subr.bf16.mxu0 %v13247_v44  ;;  %v5564_v44 = vsel %vm5394_vm1, %v16680_v22, %v5556_v54  ;;  %v7687_v54 = vadd.f32 %v17189_v23, %v17223_v38  ;;  %v7695_v23 = vadd.f32 %v17209_v33, %v17223_v38 }
 0x51b   :  { %12301 = vmatpush3.bf16.msra.mxu1 %v13254_v6  ;;  %v13273_v6 = vld [vmem:[%s18894_s3 + $0x678] ss:$12 sps:$4 sm:$0xff]  }
 0x51c   :  { %12302 = vmatprep.subr.bf16.mxu1 %v13258_v31  ;;  %v13284_v31 = vld [vmem:[%s18894_s3 + $0x6c4] ss:$12 sps:$4 sm:$0xff]  }
 0x51d   :  { %7514 = vmatpush1.bf16.msra.mxu0 %v13245_v13  ;;  %v13287_v13 = vld [vmem:[%s18894_s3 + $0x6dc] ss:$12 sps:$4 sm:$0xff]  }
 0x51e   :  { %7566 = vmatprep.subr.bf16.mxu0 %v13252_v40  ;;  %v5562_v40 = vpop.permute.xlu0 %5561 }
 0x51f   :  { %12303 = vmatpush3.bf16.msra.mxu1 %v13259_v14  ;;  %v13290_v14 = vld [vmem:[%s18894_s3 + $0x6f4] ss:$12 sps:$4 sm:$0xff]   ;;  %v5572_v24 = vsel %vm5394_vm1, %v16965_v3, %v5562_v40 }
 0x520   :  { %7516 = vmatmul.mubr.bf16.vlgmr.msra.gmra.mrb[184].mxu0 %v17436_v19  ;;  %12304 = vmatprep.subr.bf16.mxu1 %v13263_v56  ;;  %v5553_v19 = vsel %vm5394_vm1, %v5383_v46, %v17261_v2  ;;  %v13267_v2 = vld [vmem:[%s18894_s3 + $0x64c] ss:$12 sps:$4 sm:$0xff]   ;;  %v5605_v56 = vrot.slane %v5572_v24, 4  ;;  %v13303_v46 = vld [vmem:[%s18894_s3 + $0x768] ss:$12 sps:$4 sm:$0xff]  }
 0x521   :  { %7525 = vmatprep.mubr.bf16.mxu0 %v17445_v58  ;;  %7567 = vmatpush1.bf16.msra.mxu0 %v13250_v41  ;;  %v13260_v58 = vld [vmem:[%s18894_s3 + $0x630] ss:$12 sps:$4 sm:$0xff]   ;;  %v13293_v41 = vld [vmem:[%s18894_s3 + $0x70c] ss:$12 sps:$4 sm:$0xff]  }
 0x522   :  { %7925 = vmatmul.mubr.bf16.gmra.mrb[0].mxu1 %v5529_v27  ;;  %7568 = vmatprep.subr.bf16.mxu0 %v13257_v48  ;;  %v5558_v48 = vpop.permute.xlu1 %5557  ;;  %v17645_v61 = vsel %vm5189_vm0, %v5601_v39, %v5605_v56  ;;  %v13311_v56 = vld [vmem:[%s18897_s5 + $0x134] ss:$8 sps:$4 sm:$0xff]  }
 0x523   :  { %7932 = vmatprep.mubr.bf16.mxu1 %v5553_v19  ;;  %12305 = vmatpush3.bf16.msra.mxu1 %v13264_v34  ;;  %v13291_v34 = vld [vmem:[%s18894_s3 + $0x708] ss:$12 sps:$4 sm:$0xff]   ;;  %v5567_v3 = vsel %vm5394_vm1, %v16833_v29, %v5558_v48  ;;  %v13294_v29 = vld [vmem:[%s18894_s3 + $0x720] ss:$12 sps:$4 sm:$0xff]   ;;  %v13309_v48 = vld [vmem:[%s18897_s5 + $0x130] ss:$8 sps:$4 sm:$0xff]  }
 0x524   :  { %12306 = vmatprep.subr.bf16.mxu1 %v13268_v5  ;;  %v13296_v5 = vld [vmem:[%s18894_s3 + $0x724] ss:$12 sps:$4 sm:$0xff]  }
 0x525   :  { %7569 = vmatpush1.bf16.msra.mxu0 %v13255_v52 }
 0x526   :  { %7570 = vmatprep.subr.bf16.mxu0 %v13262_v17  ;;  %v7684_v17 = vadd.f32 %v17179_v4, %v17223_v38  ;;  %v7692_v4 = vadd.f32 %v17201_v45, %v17223_v38 }
 0x527   :  { %12307 = vmatpush3.bf16.msra.mxu1 %v13269_v21 }
 0x528   :  { %7526 = vmatmul.mubr.bf16.gmra.mrb[188].mxu0 %v17473_v60  ;;  %v5585_v60 = vrot.slane %v5564_v44, 4 }
 0x529   :  { %7535 = vmatprep.mubr.bf16.mxu0 %v17482_v10  ;;  %7571 = vmatpush1.bf16.msra.mxu0 %v13260_v58  ;;  %v13270_v10 = vld [vmem:[%s18894_s3 + $0x660] ss:$12 sps:$4 sm:$0xff]  }
 0x52a   :  { %7933 = vmatmul.mubr.bf16.gmra.mrb[4].mxu1 %v5533_v42  ;;  %7572 = vmatprep.subr.bf16.mxu0 %v13267_v2  ;;  %v17589_v22 = vsel %vm5189_vm0, %v5585_v60, %v5586_v9  ;;  %v13281_v9 = vld [vmem:[%s18894_s3 + $0x6ac] ss:$12 sps:$4 sm:$0xff]  }
 0x52b   :  { %7973 = vmatprep.mubr.bf16.mxu1 %v17318_v28 }
 0x52d   :  { %7573 = vmatpush1.bf16.msra.mxu0 %v13265_v37 }
 0x52e   :  { %7574 = vmatprep.subr.bf16.mxu0 %v13272_v16 }
 0x530   :  { %7536 = vmatmul.mubr.bf16.gmra.mrb[192].mxu0 %v5525_v36  ;;  %v13279_v36 = vld [vmem:[%s18894_s3 + $0x6a8] ss:$12 sps:$4 sm:$0xff]  }
 0x531   :  { %7545 = vmatprep.mubr.bf16.mxu0 %v5549_v53  ;;  %7575 = vmatpush1.bf16.msra.mxu0 %v13270_v10  ;;  %v13282_v53 = vld [vmem:[%s18894_s3 + $0x6c0] ss:$12 sps:$4 sm:$0xff]  }
 0x532   :  { %7974 = vmatmul.mubr.bf16.vlgmr.msra.gmra.mrb[8].mxu1 %v17589_v22  ;;  %7576 = vmatprep.subr.bf16.mxu0 %v13275_v50 }
 0x533   :  { %7981 = vmatprep.mubr.bf16.mxu1 %v17345_v55 }
 0x535   :  { %7577 = vmatpush1.bf16.msra.mxu0 %v13273_v6 }
 0x536   :  { %7578 = vmatprep.subr.bf16.mxu0 %v13278_v20 }
 0x538   :  { %7546 = vmatmul.mubr.bf16.gmra.mrb[196].mxu0 %v5529_v27  ;;  %v5603_v27 = vrot.slane %v5567_v3, 4  ;;  %v13315_v3 = vld [vmem:[%s18897_s5 + $0x140] ss:$8 sps:$4 sm:$0xff]  }
 0x539   :  { %7555 = vmatprep.mubr.bf16.mxu0 %v5553_v19  ;;  %7579 = vmatpush1.bf16.msra.mxu0 %v13276_v62 }
 0x53a   :  { %7982 = vmatmul.mubr.bf16.gmra.mrb[12].mxu1 %v17085_v26  ;;  %7580 = vmatprep.subr.bf16.mxu0 %v13281_v9  ;;  %v17660_v39 = vsel %vm5189_vm0, %v5599_v57, %v5603_v27  ;;  %v13305_v57 = vld [vmem:[%s18894_s3 + $0x76c] ss:$12 sps:$4 sm:$0xff]   ;;  %v13323_v27 = vld [vmem:[%s18897_s5 + $0x154] ss:$8 sps:$4 sm:$0xff]  }
 0x53b   :  { %7989 = vmatprep.mubr.bf16.mxu1 %v17379_v7 }
 0x53d   :  { %7581 = vmatpush1.bf16.msra.mxu0 %v13279_v36 }
 0x53e   :  { %7582 = vmatprep.subr.bf16.mxu0 %v13284_v31 }
 0x540   :  { %7556 = vmatmul.mubr.bf16.gmra.mrb[200].mxu0 %v5533_v42 }
 0x541   :  { %7583 = vmatpush1.bf16.msra.mxu0 %v13282_v53  ;;  %7598 = vmatprep.mubr.bf16.mxu0 %v17318_v28  ;;  %v13288_v28 = vld [vmem:[%s18894_s3 + $0x6f0] ss:$12 sps:$4 sm:$0xff]  }
 0x542   :  { %7990 = vmatmul.mubr.bf16.gmra.mrb[16].mxu1 %v17114_v49  ;;  %7584 = vmatprep.subr.bf16.mxu0 %v13287_v13 }
 0x543   :  { %7997 = vmatprep.mubr.bf16.mxu1 %v17417_v35 }
 0x545   :  { %7585 = vmatpush1.bf16.msra.mxu0 %v13285_v63 }
 0x546   :  { %7586 = vmatprep.subr.bf16.mxu0 %v13290_v14 }
 0x549   :  { %7587 = vmatpush1.bf16.msra.mxu0 %v13288_v28 }
 0x54a   :  { %7998 = vmatmul.mubr.bf16.gmra.mrb[20].mxu1 %v17156_v12  ;;  %7588 = vmatprep.subr.bf16.mxu0 %v13293_v41 }
 0x54b   :  { %8005 = vmatprep.mubr.bf16.mxu1 %v17645_v61 }
 0x54d   :  { %7589 = vmatpush1.bf16.msra.mxu0 %v13291_v34  ;;  %v13314_v34 = vld [vmem:[%s18897_s5 + $0x244] ss:$8 sps:$4 sm:$0xff]  }
 0x54e   :  { %7590 = vmatprep.subr.bf16.mxu0 %v13296_v5  ;;  %v13318_v5 = vld [vmem:[%s18897_s5 + $0x250] ss:$8 sps:$4 sm:$0xff]  }
 0x551   :  { %7591 = vmatpush1.bf16.msra.mxu0 %v13294_v29  ;;  %v13321_v29 = vld [vmem:[%s18897_s5 + $0x150] ss:$8 sps:$4 sm:$0xff]  }
 0x552   :  { %8006 = vmatmul.mubr.bf16.gmra.mrb[24].mxu1 %v17660_v39  ;;  %7592 = vmatprep.subr.bf16.mxu0 %v13299_v47  ;;  %v13326_v47 = vld [vmem:[%s18897_s5 + $0x264] ss:$8 sps:$4 sm:$0xff]  }
 0x555   :  { %7593 = vmatpush1.bf16.msra.mxu0 %v13297_v25  ;;  %v13329_v25 = vld [vmem:[%s18897_s5 + $0x164] ss:$8 sps:$4 sm:$0xff]  }
 0x556   :  { %7594 = vmatprep.subr.bf16.mxu0 %v13302_v51  ;;  %v13327_v51 = vld [vmem:[%s18897_s5 + $0x160] ss:$8 sps:$4 sm:$0xff]  }
 0x559   :  { %7595 = vmatpush1.bf16.msra.mxu0 %v13300_v30  ;;  %v13332_v30 = vld [vmem:[%s18897_s5 + $0x274] ss:$8 sps:$4 sm:$0xff]  }
 0x55a   :  { %7596 = vmatprep.subr.bf16.mxu0 %v13305_v57  ;;  %v13330_v57 = vld [vmem:[%s18897_s5 + $0x270] ss:$8 sps:$4 sm:$0xff]  }
 0x55c   :  { %v12170_v52 = vpop.f32.mrb[204].mxu1 }
 0x55d   :  { %7597 = vmatpush1.bf16.msra.mxu0 %v13303_v46  ;;  %v12171_v19 = vpop.f32.mrb[205].mxu1  ;;  %v13335_v46 = vld [vmem:[%s18897_s5 + $0x174] ss:$8 sps:$4 sm:$0xff]  }
 0x55e   :  { %v12172_v21 = vadd.f32 %v12171_v19, %v12170_v52  ;;  %v12173_v58 = vpop.f32.mrb[206].mxu1  ;;  %8889 = vmatprep.subr.bf16.mxu0 %v13314_v34  ;;  %v13333_v52 = vld [vmem:[%s18897_s5 + $0x170] ss:$8 sps:$4 sm:$0xff]   ;;  %v13338_v19 = vld [vmem:[%s18897_s5 + $0x284] ss:$8 sps:$4 sm:$0xff]  }
 0x55f   :  { %v12174_v2 = vpop.f32.mrb[207].mxu1  ;;  %v13384_v34 = vld [vmem:[%s18897_s5 + $0x300] ss:$8 sps:$4 sm:$0xff]  }
 0x560   :  { %v17682_v43 = vadd.f32 %v12172_v21, %v7684_v17  ;;  %7599 = vmatmul.mubr.bf16.vlgmr.msra.gmra.mrb[184].mxu0 %v17589_v22  ;;  %v12175_v15 = vadd.f32 %v12174_v2, %v12173_v58  ;;  %v13336_v17 = vld [vmem:[%s18897_s5 + $0x280] ss:$8 sps:$4 sm:$0xff]   ;;  %v13341_v21 = vld [vmem:[%s18897_s5 + $0x184] ss:$8 sps:$4 sm:$0xff]   ;;  %v13344_v2 = vld [vmem:[%s18897_s5 + $0x294] ss:$8 sps:$4 sm:$0xff]  }
 0x561   :  { %7608 = vmatprep.mubr.bf16.mxu0 %v17345_v55  ;;  %v13339_v58 = vld [vmem:[%s18897_s5 + $0x180] ss:$8 sps:$4 sm:$0xff]  }
 0x562   :  { %v17686_v42 = vadd.f32 %v12175_v15, %v7687_v54  ;;  %v13342_v54 = vld [vmem:[%s18897_s5 + $0x290] ss:$8 sps:$4 sm:$0xff]   ;;  %v13347_v15 = vld [vmem:[%s18897_s5 + $0x194] ss:$8 sps:$4 sm:$0xff]  }
 0x565   :  { %v12176_v37 = vpop.f32.mrb[208].mxu1 }
 0x566   :  { %v12177_v44 = vpop.f32.mrb[209].mxu1 }
 0x567   :  { %v12178_v16 = vadd.f32 %v12177_v44, %v12176_v37  ;;  %v12179_v60 = vpop.f32.mrb[210].mxu1  ;;  %v13345_v37 = vld [vmem:[%s18897_s5 + $0x190] ss:$8 sps:$4 sm:$0xff]   ;;  %v13350_v44 = vld [vmem:[%s18897_s5 + $0x2a4] ss:$8 sps:$4 sm:$0xff]  }
 0x568   :  { %7609 = vmatmul.mubr.bf16.gmra.mrb[188].mxu0 %v17085_v26  ;;  %v12180_v10 = vpop.f32.mrb[211].mxu1 }
 0x569   :  { %v17693_v50 = vadd.f32 %v12178_v16, %v7692_v4  ;;  %v12181_v22 = vadd.f32 %v12180_v10, %v12179_v60  ;;  %7618 = vmatprep.mubr.bf16.mxu0 %v17379_v7  ;;  %v13348_v4 = vld [vmem:[%s18897_s5 + $0x2a0] ss:$8 sps:$4 sm:$0xff]   ;;  %v13353_v16 = vld [vmem:[%s18897_s5 + $0x1a4] ss:$8 sps:$4 sm:$0xff]   ;;  %v13356_v10 = vld [vmem:[%s18897_s5 + $0x2b4] ss:$8 sps:$4 sm:$0xff]  }
 0x56a   :  { %v13351_v60 = vld [vmem:[%s18897_s5 + $0x1a0] ss:$8 sps:$4 sm:$0xff]  }
 0x56b   :  { %v17696_v55 = vadd.f32 %v12181_v22, %v7695_v23  ;;  %v13354_v23 = vld [vmem:[%s18897_s5 + $0x2b0] ss:$8 sps:$4 sm:$0xff]   ;;  %v13359_v22 = vld [vmem:[%s18897_s5 + $0x1b4] ss:$8 sps:$4 sm:$0xff]  }
 0x56d   :  { %v12182_v6 = vpop.f32.mrb[212].mxu1 }
 0x56e   :  { %v12183_v20 = vpop.f32.mrb[213].mxu1 }
 0x56f   :  { %v12184_v62 = vadd.f32 %v12183_v20, %v12182_v6  ;;  %v12185_v9 = vpop.f32.mrb[214].mxu1  ;;  %v13357_v6 = vld [vmem:[%s18897_s5 + $0x1b0] ss:$8 sps:$4 sm:$0xff]   ;;  %v13362_v20 = vld [vmem:[%s18897_s5 + $0x2c4] ss:$8 sps:$4 sm:$0xff]  }
 0x570   :  { %7619 = vmatmul.mubr.bf16.gmra.mrb[192].mxu0 %v17114_v49  ;;  %v12186_v45 = vpop.f32.mrb[215].mxu1 }
 0x571   :  { %v17700_v26 = vadd.f32 %v12184_v62, %v17232_v1  ;;  %v12187_v36 = vadd.f32 %v12186_v45, %v12185_v9  ;;  %7628 = vmatprep.mubr.bf16.mxu0 %v17417_v35  ;;  %v13360_v62 = vld [vmem:[%s18897_s5 + $0x2c0] ss:$8 sps:$4 sm:$0xff]   ;;  %v13365_v9 = vld [vmem:[%s18897_s5 + $0x1c4] ss:$8 sps:$4 sm:$0xff]  }
 0x572   :  { %v13363_v45 = vld [vmem:[%s18897_s5 + $0x1c0] ss:$8 sps:$4 sm:$0xff]  }
 0x573   :  { %v17704_v33 = vadd.f32 %v12187_v36, %v17237_v59  ;;  %v13308_v59 = vld [vmem:[%s18897_s5 + $0x124] ss:$8 sps:$4 sm:$0xff]   ;;  %v13368_v36 = vld [vmem:[%s18897_s5 + $0x2d4] ss:$8 sps:$4 sm:$0xff]  }
 0x574   :  { %8323 = vmatprep.subr.bf16.mxu1 %v13308_v59  ;;  %v13380_v59 = vld [vmem:[%s18897_s5 + $0x2f4] ss:$8 sps:$4 sm:$0xff]  }
 0x575   :  { %v12188_v38 = vpop.f32.mrb[216].mxu1 }
 0x576   :  { %v12189_v7 = vpop.f32.mrb[217].mxu1 }
 0x577   :  { %v12190_v31 = vadd.f32 %v12189_v7, %v12188_v38  ;;  %v12191_v53 = vpop.f32.mrb[218].mxu1  ;;  %v13366_v38 = vld [vmem:[%s18897_s5 + $0x2d0] ss:$8 sps:$4 sm:$0xff]   ;;  %v13371_v7 = vld [vmem:[%s18897_s5 + $0x1d4] ss:$8 sps:$4 sm:$0xff]  }
 0x578   :  { %7629 = vmatmul.mubr.bf16.gmra.mrb[196].mxu0 %v17156_v12  ;;  %v12192_v13 = vpop.f32.mrb[219].mxu1  ;;  %v13306_v12 = vld [vmem:[%s18897_s5 + $0x120] ss:$8 sps:$4 sm:$0xff]  }
 0x579   :  { %v17708_v40 = vadd.f32 %v12190_v31, %v17242_v0  ;;  %v12193_v49 = vadd.f32 %v12192_v13, %v12191_v53  ;;  %7638 = vmatprep.mubr.bf16.mxu0 %v17645_v61  ;;  %8324 = vmatpush1.bf16.msra.mxu1 %v13306_v12  ;;  %v13320_v61 = vld [vmem:[%s18897_s5 + $0x254] ss:$8 sps:$4 sm:$0xff]   ;;  %v13369_v31 = vld [vmem:[%s18897_s5 + $0x1d0] ss:$8 sps:$4 sm:$0xff]   ;;  %v13374_v53 = vld [vmem:[%s18897_s5 + $0x2e4] ss:$8 sps:$4 sm:$0xff]  }
 0x57a   :  { %8325 = vmatprep.subr.bf16.mxu1 %v13311_v56  ;;  %v13372_v13 = vld [vmem:[%s18897_s5 + $0x2e0] ss:$8 sps:$4 sm:$0xff]   ;;  %v13381_v12 = vld [vmem:[%s18897_s5 + $0x1f0] ss:$8 sps:$4 sm:$0xff]  }
 0x57b   :  { %v17712_v1 = vadd.f32 %v12193_v49, %v17245_v32  ;;  %v13377_v49 = vld [vmem:[%s18897_s5 + $0x1e4] ss:$8 sps:$4 sm:$0xff]  }
 0x57d   :  { %v12194_v35 = vpop.f32.mrb[220].mxu1  ;;  %8326 = vmatpush1.bf16.msra.mxu1 %v13309_v48 }
 0x57e   :  { %v12195_v63 = vpop.f32.mrb[221].mxu1 }
 0x57f   :  { %v12196_v14 = vadd.f32 %v12195_v63, %v12194_v35  ;;  %v12197_v24 = vpop.f32.mrb[222].mxu1  ;;  %v13375_v35 = vld [vmem:[%s18897_s5 + $0x1e0] ss:$8 sps:$4 sm:$0xff]   ;;  %v13378_v63 = vld [vmem:[%s18897_s5 + $0x2f0] ss:$8 sps:$4 sm:$0xff]  }
 0x580   :  { %7639 = vmatmul.mubr.bf16.gmra.mrb[200].mxu0 %v17660_v39  ;;  %v12198_v0 = vpop.f32.mrb[223].mxu1  ;;  %v13324_v39 = vld [vmem:[%s18897_s5 + $0x260] ss:$8 sps:$4 sm:$0xff]  }
 0x581   :  { %v17722_v28 = vadd.f32 %v12196_v14, %v17250_v18  ;;  %v12199_v32 = vadd.f32 %v12198_v0, %v12197_v24  ;;  %v13312_v18 = vld [vmem:[%s18897_s5 + $0x240] ss:$8 sps:$4 sm:$0xff]   ;;  %v13383_v14 = vld [vmem:[%s18897_s5 + $0x1f4] ss:$8 sps:$4 sm:$0xff]  }
 0x582   :  { %8890 = vmatpush1.bf16.msra.mxu0 %v13312_v18 }
 0x583   :  { %v17728_v41 = vadd.f32 %v12199_v32, %v17253_v11  ;;  %v13317_v11 = vld [vmem:[%s18897_s5 + $0x144] ss:$8 sps:$4 sm:$0xff]   ;;  %8891 = vmatprep.subr.bf16.mxu0 %v13320_v61 }
 0x584   :  { %8327 = vmatprep.subr.bf16.mxu1 %v13317_v11  ;;  %v13386_v32 = vld [vmem:[%s18897_s5 + $0x304] ss:$8 sps:$4 sm:$0xff]  }
 0x585   :  { %8328 = vmatpush1.bf16.msra.mxu1 %v13315_v3  ;;  %v13389_v11 = vld [vmem:[%s18897_s5 + $0x204] ss:$8 sps:$4 sm:$0xff]  }
 0x586   :  { %8892 = vmatpush1.bf16.msra.mxu0 %v13318_v5  ;;  %8329 = vmatprep.subr.bf16.mxu1 %v13323_v27  ;;  %v13387_v5 = vld [vmem:[%s18897_s5 + $0x200] ss:$8 sps:$4 sm:$0xff]   ;;  %v13392_v27 = vld [vmem:[%s18897_s5 + $0x314] ss:$8 sps:$4 sm:$0xff]  }
 0x587   :  { %8893 = vmatprep.subr.bf16.mxu0 %v13326_v47  ;;  %v13390_v47 = vld [vmem:[%s18897_s5 + $0x310] ss:$8 sps:$4 sm:$0xff]  }
 0x589   :  { %8330 = vmatpush1.bf16.msra.mxu1 %v13321_v29 }
 0x58a   :  { %8894 = vmatpush1.bf16.msra.mxu0 %v13324_v39  ;;  %8331 = vmatprep.subr.bf16.mxu1 %v13329_v25  ;;  %v13393_v25 = vld [vmem:[%s18897_s5 + $0x210] ss:$8 sps:$4 sm:$0xff]  }
 0x58b   :  { %8895 = vmatprep.subr.bf16.mxu0 %v13332_v30 }
 0x58d   :  { %8332 = vmatpush1.bf16.msra.mxu1 %v13327_v51 }
 0x58e   :  { %8896 = vmatpush1.bf16.msra.mxu0 %v13330_v57  ;;  %8333 = vmatprep.subr.bf16.mxu1 %v13335_v46  ;;  %v13396_v46 = vld [vmem:[%s18897_s5 + $0x320] ss:$8 sps:$4 sm:$0xff]  }
 0x58f   :  { %8897 = vmatprep.subr.bf16.mxu0 %v13338_v19  ;;  %v13401_v19 = vld [vmem:[%s18897_s5 + $0x224] ss:$8 sps:$4 sm:$0xff]  }
 0x591   :  { %8334 = vmatpush1.bf16.msra.mxu1 %v13333_v52 }
 0x592   :  { %8898 = vmatpush1.bf16.msra.mxu0 %v13336_v17  ;;  %8335 = vmatprep.subr.bf16.mxu1 %v13341_v21 }
 0x593   :  { %8899 = vmatprep.subr.bf16.mxu0 %v13344_v2 }
 0x595   :  { %8336 = vmatpush1.bf16.msra.mxu1 %v13339_v58  ;;  %v13404_v58 = vld [vmem:[%s18897_s5 + $0x334] ss:$8 sps:$4 sm:$0xff]  }
 0x596   :  { %8900 = vmatpush1.bf16.msra.mxu0 %v13342_v54  ;;  %8337 = vmatprep.subr.bf16.mxu1 %v13347_v15  ;;  %v13402_v54 = vld [vmem:[%s18897_s5 + $0x330] ss:$8 sps:$4 sm:$0xff]  }
 0x597   :  { %8901 = vmatprep.subr.bf16.mxu0 %v13350_v44 }
 0x599   :  { %8338 = vmatpush1.bf16.msra.mxu1 %v13345_v37 }
 0x59a   :  { %8902 = vmatpush1.bf16.msra.mxu0 %v13348_v4  ;;  %8339 = vmatprep.subr.bf16.mxu1 %v13353_v16 }
 0x59b   :  { %8903 = vmatprep.subr.bf16.mxu0 %v13356_v10 }
 0x59d   :  { %8340 = vmatpush1.bf16.msra.mxu1 %v13351_v60 }
 0x59e   :  { %8904 = vmatpush1.bf16.msra.mxu0 %v13354_v23  ;;  %8341 = vmatprep.subr.bf16.mxu1 %v13359_v22 }
 0x59f   :  { %8905 = vmatprep.subr.bf16.mxu0 %v13362_v20 }
 0x5a1   :  { %8342 = vmatpush1.bf16.msra.mxu1 %v13357_v6 }
 0x5a2   :  { %8906 = vmatpush1.bf16.msra.mxu0 %v13360_v62  ;;  %8343 = vmatprep.subr.bf16.mxu1 %v13365_v9 }
 0x5a3   :  { %8907 = vmatprep.subr.bf16.mxu0 %v13368_v36 }
 0x5a5   :  { %8344 = vmatpush1.bf16.msra.mxu1 %v13363_v45 }
 0x5a6   :  { %8908 = vmatpush1.bf16.msra.mxu0 %v13366_v38  ;;  %8345 = vmatprep.subr.bf16.mxu1 %v13371_v7 }
 0x5a7   :  { %8909 = vmatprep.subr.bf16.mxu0 %v13374_v53 }
 0x5a9   :  { %8346 = vmatpush1.bf16.msra.mxu1 %v13369_v31 }
 0x5aa   :  { %8910 = vmatpush1.bf16.msra.mxu0 %v13372_v13  ;;  %8347 = vmatprep.subr.bf16.mxu1 %v13377_v49 }
 0x5ab   :  { %8911 = vmatprep.subr.bf16.mxu0 %v13380_v59 }
 0x5ad   :  { %8348 = vmatpush1.bf16.msra.mxu1 %v13375_v35 }
 0x5ae   :  { %8912 = vmatpush1.bf16.msra.mxu0 %v13378_v63  ;;  %8349 = vmatprep.subr.bf16.mxu1 %v13383_v14 }
 0x5af   :  { %8913 = vmatprep.subr.bf16.mxu0 %v13386_v32 }
 0x5b1   :  { %8350 = vmatpush1.bf16.msra.mxu1 %v13381_v12 }
 0x5b2   :  { %8914 = vmatpush1.bf16.msra.mxu0 %v13384_v34  ;;  %8351 = vmatprep.subr.bf16.mxu1 %v13389_v11 }
 0x5b3   :  { %v12216_v24 = vpop.f32.mrb[224].mxu1  ;;  %8915 = vmatprep.subr.bf16.mxu0 %v13392_v27 }
 0x5b4   :  { %v12217_v0 = vpop.f32.mrb[225].mxu1 }
 0x5b5   :  { %v12218_v56 = vadd.f32 %v12217_v0, %v12216_v24  ;;  %v12219_v48 = vpop.f32.mrb[226].mxu1  ;;  %8352 = vmatpush1.bf16.msra.mxu1 %v13387_v5 }
 0x5b6   :  { %v12220_v18 = vpop.f32.mrb[227].mxu1  ;;  %8916 = vmatpush1.bf16.msra.mxu0 %v13390_v47 }
 0x5b7   :  { %v17887_v3 = vadd.f32 %v12218_v56, %v17682_v43  ;;  %v12221_v61 = vadd.f32 %v12220_v18, %v12219_v48  ;;  %v13395_v43 = vld [vmem:[%s18897_s5 + $0x214] ss:$8 sps:$4 sm:$0xff]  }
 0x5b8   :  { %8353 = vmatprep.subr.bf16.mxu1 %v13395_v43 }
 0x5b9   :  { %v7833_v29 = vadd.f32 %v12221_v61, %v17686_v42  ;;  %v13398_v42 = vld [vmem:[%s18897_s5 + $0x324] ss:$8 sps:$4 sm:$0xff]   ;;  %8354 = vmatpush1.bf16.msra.mxu1 %v13393_v25 }
 0x5ba   :  { %8917 = vmatprep.subr.bf16.mxu0 %v13398_v42  ;;  %8364 = vmatprep.subr.bf16.mxu1 %v13401_v19 }
 0x5bb   :  { %v12222_v39 = vpop.f32.mrb[228].mxu1  ;;  %8918 = vmatpush1.bf16.msra.mxu0 %v13396_v46 }
 0x5bc   :  { %v12223_v51 = vpop.f32.mrb[229].mxu1  ;;  %8919 = vmatprep.subr.bf16.mxu0 %v13404_v58 }
 0x5bd   :  { %v12224_v30 = vadd.f32 %v12223_v51, %v12222_v39  ;;  %v12225_v57 = vpop.f32.mrb[230].mxu1 }
 0x5be   :  { %v12226_v52 = vpop.f32.mrb[231].mxu1 }
 0x5bf   :  { %v7838_v17 = vadd.f32 %v12224_v30, %v17693_v50  ;;  %v12227_v21 = vadd.f32 %v12226_v52, %v12225_v57  ;;  %8920 = vmatpush1.bf16.msra.mxu0 %v13402_v54  ;;  %v13410_v50 = vld [vmem:[%s18897_s5 + $0x344] ss:$8 sps:$4 sm:$0xff]  }
 0x5c0   :  { %8930 = vmatprep.subr.bf16.mxu0 %v13410_v50 }
 0x5c1   :  { %v7841_v2 = vadd.f32 %v12227_v21, %v17696_v55 }
 0x5c3   :  { %v12228_v15 = vpop.f32.mrb[232].mxu1 }
 0x5c4   :  { %v12229_v37 = vpop.f32.mrb[233].mxu1 }
 0x5c5   :  { %v12230_v44 = vadd.f32 %v12229_v37, %v12228_v15  ;;  %v12231_v4 = vpop.f32.mrb[234].mxu1 }
 0x5c6   :  { %v12232_v16 = vpop.f32.mrb[235].mxu1 }
 0x5c7   :  { %v7846_v60 = vadd.f32 %v12230_v44, %v17700_v26  ;;  %v12233_v10 = vadd.f32 %v12232_v16, %v12231_v4 }
 0x5c9   :  { %v7849_v55 = vadd.f32 %v12233_v10, %v17704_v33 }
 0x5cb   :  { %v12234_v23 = vpop.f32.mrb[236].mxu1 }
 0x5cc   :  { %v12235_v22 = vpop.f32.mrb[237].mxu1 }
 0x5cd   :  { %v12236_v6 = vadd.f32 %v12235_v22, %v12234_v23  ;;  %v12237_v20 = vpop.f32.mrb[238].mxu1 }
 0x5ce   :  { %v12238_v62 = vpop.f32.mrb[239].mxu1 }
 0x5cf   :  { %v7854_v9 = vadd.f32 %v12236_v6, %v17708_v40  ;;  %v12239_v45 = vadd.f32 %v12238_v62, %v12237_v20 }
 0x5d1   :  { %v7857_v36 = vadd.f32 %v12239_v45, %v17712_v1 }
 0x5d3   :  { %v12240_v38 = vpop.f32.mrb[240].mxu1 }
 0x5d4   :  { %v12241_v7 = vpop.f32.mrb[241].mxu1 }
 0x5d5   :  { %v12242_v31 = vadd.f32 %v12241_v7, %v12240_v38  ;;  %v12243_v53 = vpop.f32.mrb[242].mxu1 }
 0x5d6   :  { %v12244_v13 = vpop.f32.mrb[243].mxu1 }
 0x5d7   :  { %v7862_v26 = vadd.f32 %v12242_v31, %v17722_v28  ;;  %v12245_v49 = vadd.f32 %v12244_v13, %v12243_v53 }
 0x5d9   :  { %v7865_v33 = vadd.f32 %v12245_v49, %v17728_v41 }
 0x5dc   :  { %v12262_v35 = vpop.f32.mrb[244].mxu1 }
 0x5dd   :  { %v12263_v63 = vpop.f32.mrb[245].mxu1 }
 0x5de   :  { %v12264_v59 = vadd.f32 %v12263_v63, %v12262_v35  ;;  %v12265_v14 = vpop.f32.mrb[246].mxu1 }
 0x5df   :  { %v12266_v24 = vpop.f32.mrb[247].mxu1 }
 0x5e0   :  { %v7903_v40 = vadd.f32 %v12264_v59, %v17887_v3  ;;  %v12267_v12 = vadd.f32 %v12266_v24, %v12265_v14 }
 0x5e2   :  { %v7906_v0 = vadd.f32 %v12267_v12, %v7833_v29 }
 0x5e4   :  { %v12268_v1 = vpop.f32.mrb[248].mxu1 }
 0x5e5   :  { %v12269_v32 = vpop.f32.mrb[249].mxu1 }
 0x5e6   :  { %v12270_v56 = vadd.f32 %v12269_v32, %v12268_v1  ;;  %v12271_v48 = vpop.f32.mrb[250].mxu1 }
 0x5e7   :  { %v12272_v34 = vpop.f32.mrb[251].mxu1 }
 0x5e8   :  { %v7911_v18 = vadd.f32 %v12270_v56, %v7838_v17  ;;  %v12273_v11 = vadd.f32 %v12272_v34, %v12271_v48 }
 0x5ea   :  { %v7914_v28 = vadd.f32 %v12273_v11, %v7841_v2 }
 0x5ec   :  { %v12274_v61 = vpop.f32.mrb[252].mxu1 }
 0x5ed   :  { %v12275_v5 = vpop.f32.mrb[253].mxu1 }
 0x5ee   :  { %v12276_v41 = vadd.f32 %v12275_v5, %v12274_v61  ;;  %v12277_v27 = vpop.f32.mrb[254].mxu1 }
 0x5ef   :  { %v12278_v47 = vpop.f32.mrb[255].mxu1 }
 0x5f0   :  { %v7919_v43 = vadd.f32 %v12276_v41, %v7846_v60  ;;  %v12279_v39 = vadd.f32 %v12278_v47, %v12277_v27 }
 0x5f2   :  { %v7922_v25 = vadd.f32 %v12279_v39, %v7849_v55 }
 0x5f5   :  { %v12280_v51 = vpop.f32.mrb[0].mxu1 }
 0x5f6   :  { %v12281_v3 = vpop.f32.mrb[1].mxu1 }
 0x5f7   :  { %v12282_v42 = vadd.f32 %v12281_v3, %v12280_v51  ;;  %v12283_v29 = vpop.f32.mrb[2].mxu1 }
 0x5f8   :  { %v12284_v30 = vpop.f32.mrb[3].mxu1 }
 0x5f9   :  { %v7927_v57 = vadd.f32 %v12282_v42, %v7854_v9  ;;  %v12285_v46 = vadd.f32 %v12284_v30, %v12283_v29 }
 0x5fb   :  { %v7930_v52 = vadd.f32 %v12285_v46, %v7857_v36  ;;  %v5941_v46 = vsub.s32 0, %v17197_v8 }
 0x5fd   :  { %v12286_v19 = vpop.f32.mrb[4].mxu1 }
 0x5fe   :  { %v12287_v17 = vpop.f32.mrb[5].mxu1 }
 0x5ff   :  { %v12288_v21 = vadd.f32 %v12287_v17, %v12286_v19  ;;  %v12289_v58 = vpop.f32.mrb[6].mxu1 }
 0x600   :  { %v12290_v2 = vpop.f32.mrb[7].mxu1 }
 0x601   :  { %v7935_v54 = vadd.f32 %v12288_v21, %v7862_v26  ;;  %v12291_v15 = vadd.f32 %v12290_v2, %v12289_v58 }
 0x603   :  { %v7938_v37 = vadd.f32 %v12291_v15, %v7865_v33 }
 0x605   :  { %v12308_v50 = vpop.f32.mrb[8].mxu1 }
 0x606   :  { %v12309_v44 = vpop.f32.mrb[9].mxu1 }
 0x607   :  { %v12310_v4 = vadd.f32 %v12309_v44, %v12308_v50  ;;  %v12311_v16 = vpop.f32.mrb[10].mxu1 }
 0x608   :  { %v12312_v60 = vpop.f32.mrb[11].mxu1 }
 0x609   :  { %v7976_v10 = vadd.f32 %v12310_v4, %v7903_v40  ;;  %v12313_v55 = vadd.f32 %v12312_v60, %v12311_v16 }
 0x60b   :  { %v7979_v23 = vadd.f32 %v12313_v55, %v7906_v0  ;;  %v8016_v22 = vmax.f32 %v7976_v10, 0.0 }
 0x60d   :  { %v8019_v6 = vmax.f32 %v7979_v23, 0.0  ;;  %v12314_v20 = vpop.f32.mrb[12].mxu1 }
 0x60e   :  { %v12315_v62 = vpop.f32.mrb[13].mxu1 }
 0x60f   :  { %v17932_v9 = vpack.c.bf16 %v8019_v6, %v8016_v22  ;;  %v12316_v45 = vadd.f32 %v12315_v62, %v12314_v20  ;;  %v12317_v36 = vpop.f32.mrb[14].mxu1 }
 0x610   :  { %v12318_v38 = vpop.f32.mrb[15].mxu1 }
 0x611   :  { %v7984_v7 = vadd.f32 %v12316_v45, %v7911_v18  ;;  %v12319_v31 = vadd.f32 %v12318_v38, %v12317_v36 }
 0x613   :  { %v7987_v53 = vadd.f32 %v12319_v31, %v7914_v28  ;;  %v8022_v13 = vmax.f32 %v7984_v7, 0.0 }
 0x615   :  { %v8025_v26 = vmax.f32 %v7987_v53, 0.0  ;;  %v12320_v49 = vpop.f32.mrb[16].mxu1  ;;  %v13399_v53 = vld [vmem:[%s18897_s5 + $0x220] ss:$8 sps:$4 sm:$0xff]  }
 0x616   :  { %v12321_v33 = vpop.f32.mrb[17].mxu1 }
 0x617   :  { %v17934_v35 = vpack.c.bf16 %v8025_v26, %v8022_v13  ;;  %v12322_v63 = vadd.f32 %v12321_v33, %v12320_v49  ;;  %v12323_v59 = vpop.f32.mrb[18].mxu1  ;;  %v13407_v33 = vld [vmem:[%s18897_s5 + $0x234] ss:$8 sps:$4 sm:$0xff]  }
 0x618   :  { %v12324_v14 = vpop.f32.mrb[19].mxu1 }
 0x619   :  { %v7992_v24 = vadd.f32 %v12322_v63, %v7919_v43  ;;  %v12325_v40 = vadd.f32 %v12324_v14, %v12323_v59 }
 0x61b   :  { %v7995_v12 = vadd.f32 %v12325_v40, %v7922_v25  ;;  %v8028_v0 = vmax.f32 %v7992_v24, 0.0 }
 0x61d   :  { %v8031_v1 = vmax.f32 %v7995_v12, 0.0  ;;  %v12326_v32 = vpop.f32.mrb[20].mxu1  ;;  %v13405_v12 = vld [vmem:[%s18897_s5 + $0x230] ss:$8 sps:$4 sm:$0xff]  }
 0x61e   :  { %v12327_v56 = vpop.f32.mrb[21].mxu1 }
 0x61f   :  { %v17936_v48 = vpack.c.bf16 %v8031_v1, %v8028_v0  ;;  %v12328_v34 = vadd.f32 %v12327_v56, %v12326_v32  ;;  %v12329_v18 = vpop.f32.mrb[22].mxu1  ;;  %v19062_v0 = vmov 0   ;;  %v13413_v32 = vld [vmem:[%s18897_s5 + $0x4] ss:$8 sps:$4 sm:$0xff]  }
 0x620   :  { %v12330_v11 = vpop.f32.mrb[23].mxu1 }
 0x621   :  { %v8000_v28 = vadd.f32 %v12328_v34, %v7927_v57  ;;  %v12331_v61 = vadd.f32 %v12330_v11, %v12329_v18  ;;  %v5945_v57 = vsub.s32 1, %v17197_v8  ;;  %v13408_v18 = vld [vmem:[%s18897_s5 + $0x340] ss:$8 sps:$4 sm:$0xff]  }
 0x623   :  { %v8003_v5 = vadd.f32 %v12331_v61, %v7930_v52  ;;  %v8034_v41 = vmax.f32 %v8000_v28, 0.0  ;;  %v13810_v52 = vld [vmem:[%s18896_s4] sm:$0x7]  ;;  %v13416_v61 = vld [vmem:[%s18897_s5 + $0x354] ss:$8 sps:$4 sm:$0xff]  }
 0x624   :  { %v17949_v58 = vrot.slane %v13810_v52, %v5941_v46  ;;  %v17953_v2 = vrot.slane %v13810_v52, %v5945_v57 }
 0x625   :  { %v8037_v27 = vmax.f32 %v8003_v5, 0.0  ;;  %v12332_v47 = vpop.f32.mrb[24].mxu1 }
 0x626   :  { %v12333_v39 = vpop.f32.mrb[25].mxu1 }
 0x627   :  { %v17938_v51 = vpack.c.bf16 %v8037_v27, %v8034_v41  ;;  %v12334_v43 = vadd.f32 %v12333_v39, %v12332_v47  ;;  %v12335_v25 = vpop.f32.mrb[26].mxu1  ;;  %v13411_v27 = vld [vmem:[%s18897_s5] ss:$8 sps:$4 sm:$0xff]   ;;  %v8136_v47 = vrot.slane %v17932_v9, 4 }
 0x628   :  { %v12336_v3 = vpop.f32.mrb[27].mxu1 }
 0x629   :  { %v8008_v42 = vadd.f32 %v12334_v43, %v7935_v54  ;;  %v12337_v29 = vadd.f32 %v12336_v3, %v12335_v25  ;;  %v13419_v25 = vld [vmem:[%s18897_s5 + $0x14] ss:$8 sps:$4 sm:$0xff]  }
 0x62b   :  { %v8011_v30 = vadd.f32 %v12337_v29, %v7938_v37  ;;  %v8040_v19 = vmax.f32 %v8008_v42, 0.0  ;;  %v13414_v42 = vld [vmem:[%s18897_s5 + $0x350] ss:$8 sps:$4 sm:$0xff]  }
 0x62d   :  { %v8043_v17 = vmax.f32 %v8011_v30, 0.0 }
 0x62f   :  { %v17942_v21 = vpack.c.bf16 %v8043_v17, %v8040_v19  ;;  %v13422_v19 = vld [vmem:[%s18897_s5 + $0x464] ss:$8 sps:$4 sm:$0xff]  }
 0x633   :  { %v7600_v54 = vpop.f32.mrb[184].mxu0 }
 0x634   :  { %v12360_v15 = vadd.f32 %v7600_v54, %v17949_v58  ;;  %v7602_v37 = vpop.f32.mrb[185].mxu0  ;;  %v13417_v54 = vld [vmem:[%s18897_s5 + $0x10] ss:$8 sps:$4 sm:$0xff]  }
 0x635   :  { %v12361_v50 = vadd.f32 %v7602_v37, %v17953_v2  ;;  %v7604_v44 = vpop.f32.mrb[186].mxu0  ;;  %v13425_v37 = vld [vmem:[%s18897_s5 + $0x24] ss:$8 sps:$4 sm:$0xff]  }
 0x636   :  { %v12362_v4 = vadd.f32 %v7604_v44, %v17949_v58  ;;  %v7606_v16 = vpop.f32.mrb[187].mxu0  ;;  %v8014_v10 = vmax.f32 %v12360_v15, 0.0 }
 0x637   :  { %v12363_v60 = vadd.f32 %v7606_v16, %v17953_v2  ;;  %v8015_v23 = vmax.f32 %v12361_v50, 0.0 }
 0x638   :  { %v8017_v55 = vmax.f32 %v12362_v4, 0.0  ;;  %v13420_v4 = vld [vmem:[%s18897_s5 + $0x460] ss:$8 sps:$4 sm:$0xff]  }
 0x639   :  { %v8018_v22 = vmax.f32 %v12363_v60, 0.0 }
 0x63a   :  { %v17959_v6 = vpack.c.bf16 %v8017_v55, %v8014_v10  ;;  %v13428_v10 = vld [vmem:[%s18897_s5 + $0x474] ss:$8 sps:$4 sm:$0xff]  }
 0x63b   :  { %v8045_v20 = vpack.c.bf16 %v8018_v22, %v8015_v23  ;;  %v7610_v62 = vpop.f32.mrb[188].mxu0  ;;  %v13423_v22 = vld [vmem:[%s18897_s5 + $0x20] ss:$8 sps:$4 sm:$0xff]  }
 0x63c   :  { %v12364_v45 = vadd.f32 %v7610_v62, %v17949_v58  ;;  %v7612_v36 = vpop.f32.mrb[189].mxu0  ;;  %v8134_v13 = vrot.slane %v17959_v6, 4 }
 0x63d   :  { %v12365_v38 = vadd.f32 %v7612_v36, %v17953_v2  ;;  %v7614_v7 = vpop.f32.mrb[190].mxu0  ;;  %v8135_v31 = vrot.slane %v8045_v20, 4 }
 0x63e   :  { %v12366_v26 = vadd.f32 %v7614_v7, %v17949_v58  ;;  %v7616_v49 = vpop.f32.mrb[191].mxu0  ;;  %v8020_v59 = vmax.f32 %v12364_v45, 0.0  ;;  %v13431_v45 = vld [vmem:[%s18897_s5 + $0x34] ss:$8 sps:$4 sm:$0xff]  }
 0x63f   :  { %v12367_v63 = vadd.f32 %v7616_v49, %v17953_v2  ;;  %8355 = vmatprep.mubr.bf16.mxu1 %v8135_v31  ;;  %v8021_v24 = vmax.f32 %v12365_v38, 0.0  ;;  %v13426_v38 = vld [vmem:[%s18897_s5 + $0x470] ss:$8 sps:$4 sm:$0xff]  }
 0x640   :  { %v8023_v14 = vmax.f32 %v12366_v26, 0.0  ;;  %8356 = vmatmul.mubr.bf16.vlgmr.msra.gmra.mrb[28].mxu1 %v8134_v13  ;;  %v13429_v49 = vld [vmem:[%s18897_s5 + $0x30] ss:$8 sps:$4 sm:$0xff]  }
 0x641   :  { %v8024_v40 = vmax.f32 %v12367_v63, 0.0  ;;  %8365 = vmatpush1.bf16.msra.mxu1 %v13399_v53  ;;  %8396 = vmatprep.mubr.bf16.mxu1 %v19062_v0  ;;  %v13434_v53 = vld [vmem:[%s18897_s5 + $0x484] ss:$8 sps:$4 sm:$0xff]  }
 0x642   :  { %v17976_v1 = vpack.c.bf16 %v8023_v14, %v8020_v59  ;;  %8366 = vmatprep.subr.bf16.mxu1 %v13407_v33  ;;  %v13437_v63 = vld [vmem:[%s18897_s5 + $0x44] ss:$8 sps:$4 sm:$0xff]  }
 0x643   :  { %v17981_v56 = vpack.c.bf16 %v8024_v40, %v8021_v24  ;;  %v7620_v34 = vpop.f32.mrb[192].mxu0  ;;  %v13432_v24 = vld [vmem:[%s18897_s5 + $0x480] ss:$8 sps:$4 sm:$0xff]   ;;  %v9014_v40 = vrot.slane %v17934_v35, 4 }
 0x644   :  { %v12368_v11 = vadd.f32 %v7620_v34, %v17949_v58  ;;  %v7622_v28 = vpop.f32.mrb[193].mxu0  ;;  %v13440_v34 = vld [vmem:[%s18897_s5 + $0x494] ss:$8 sps:$4 sm:$0xff]  }
 0x645   :  { %v12369_v5 = vadd.f32 %v7622_v28, %v17953_v2  ;;  %8367 = vmatpush1.bf16.msra.mxu1 %v13405_v12  ;;  %v7624_v41 = vpop.f32.mrb[194].mxu0  ;;  %8921 = vmatprep.mubr.bf16.mxu0 %v17981_v56  ;;  %v13435_v28 = vld [vmem:[%s18897_s5 + $0x40] ss:$8 sps:$4 sm:$0xff]  }
 0x646   :  { %v12370_v39 = vadd.f32 %v7624_v41, %v17949_v58  ;;  %v7626_v43 = vpop.f32.mrb[195].mxu0  ;;  %8922 = vmatmul.mubr.bf16.vlgmr.msra.gmra.mrb[204].mxu0 %v17976_v1  ;;  %8588 = vmatprep.subr.bf16.mxu1 %v13413_v32  ;;  %v8026_v29 = vmax.f32 %v12368_v11, 0.0 }
 0x647   :  { %v12371_v3 = vadd.f32 %v7626_v43, %v17953_v2  ;;  %8931 = vmatpush1.bf16.msra.mxu0 %v13408_v18  ;;  %8962 = vmatprep.mubr.bf16.mxu0 %v19062_v0  ;;  %v8027_v17 = vmax.f32 %v12369_v5, 0.0 }
 0x648   :  { %v8029_v30 = vmax.f32 %v12370_v39, 0.0  ;;  %11794 = vmatmul.mubr.msk.bf16.vlgmr.msra.gmra.mrb[32].mxu1 %vm8319_vm2, %v8136_v47  ;;  %8932 = vmatprep.subr.bf16.mxu0 %v13416_v61 }
 0x649   :  { %v8030_v52 = vmax.f32 %v12371_v3, 0.0  ;;  %8589 = vmatpush1.bf16.msra.mxu1 %v13411_v27  ;;  %8620 = vmatprep.mubr.bf16.mxu1 %v8045_v20  ;;  %v13438_v27 = vld [vmem:[%s18897_s5 + $0x490] ss:$8 sps:$4 sm:$0xff]  }
 0x64a   :  { %v18013_v15 = vpack.c.bf16 %v8029_v30, %v8026_v29  ;;  %8590 = vmatprep.subr.bf16.mxu1 %v13419_v25  ;;  %v13444_v30 = vld [vmem:[%s18897_s5 + $0x4a0] ss:$8 sps:$4 sm:$0xff]  }
 0x64b   :  { %v18018_v50 = vpack.c.bf16 %v8030_v52, %v8027_v17  ;;  %8933 = vmatpush1.bf16.msra.mxu0 %v13414_v42  ;;  %v7630_v44 = vpop.f32.mrb[196].mxu0  ;;  %v13449_v42 = vld [vmem:[%s18897_s5 + $0x64] ss:$8 sps:$4 sm:$0xff]   ;;  %v13447_v17 = vld [vmem:[%s18897_s5 + $0x60] ss:$8 sps:$4 sm:$0xff]  }
 0x64c   :  { %v12372_v16 = vadd.f32 %v7630_v44, %v17949_v58  ;;  %v7632_v60 = vpop.f32.mrb[197].mxu0  ;;  %9241 = vmatprep.subr.bf16.mxu0 %v13422_v19  ;;  %v13452_v19 = vld [vmem:[%s18897_s5 + $0x4b4] ss:$8 sps:$4 sm:$0xff]   ;;  %v13453_v44 = vld [vmem:[%s18897_s5 + $0x70] ss:$8 sps:$4 sm:$0xff]  }
 0x64d   :  { %v12373_v55 = vadd.f32 %v7632_v60, %v17953_v2  ;;  %8591 = vmatpush1.bf16.msra.mxu1 %v13417_v54  ;;  %v7634_v23 = vpop.f32.mrb[198].mxu0  ;;  %v13455_v52 = vld [vmem:[%s18897_s5 + $0x74] ss:$8 sps:$4 sm:$0xff]   ;;  %v13450_v54 = vld [vmem:[%s18897_s5 + $0x4b0] ss:$8 sps:$4 sm:$0xff]  }
 0x64e   :  { %v12374_v20 = vadd.f32 %v7634_v23, %v17949_v58  ;;  %v7636_v62 = vpop.f32.mrb[199].mxu0  ;;  %11868 = vmatmul.mubr.msk.bf16.vlgmr.msra.gmra.mrb[208].mxu0 %vm8319_vm2, %v17934_v35  ;;  %8592 = vmatprep.subr.bf16.mxu1 %v13425_v37  ;;  %v8032_v7 = vmax.f32 %v12372_v16, 0.0  ;;  %v13443_v35 = vld [vmem:[%s18897_s5 + $0x54] ss:$8 sps:$4 sm:$0xff]   ;;  %v13458_v37 = vld [vmem:[%s18897_s5 + $0x4c4] ss:$8 sps:$4 sm:$0xff]  }
 0x64f   :  { %v12375_v36 = vadd.f32 %v7636_v62, %v17953_v2  ;;  %9242 = vmatpush1.bf16.msra.mxu0 %v13420_v4  ;;  %9273 = vmatprep.mubr.bf16.mxu0 %v19062_v0  ;;  %v8033_v13 = vmax.f32 %v12373_v55, 0.0  ;;  %v13461_v4 = vld [vmem:[%s18897_s5 + $0x84] ss:$8 sps:$4 sm:$0xff]   ;;  %v13456_v16 = vld [vmem:[%s18897_s5 + $0x4c0] ss:$8 sps:$4 sm:$0xff]  }
 0x650   :  { %v8035_v31 = vmax.f32 %v12374_v20, 0.0  ;;  %9243 = vmatprep.subr.bf16.mxu0 %v13428_v10  ;;  %v13464_v60 = vld [vmem:[%s18897_s5 + $0x4d4] ss:$8 sps:$4 sm:$0xff]   ;;  %v13459_v10 = vld [vmem:[%s18897_s5 + $0x80] ss:$8 sps:$4 sm:$0xff]  }
 0x651   :  { %v8036_v26 = vmax.f32 %v12375_v36, 0.0  ;;  %8593 = vmatpush1.bf16.msra.mxu1 %v13423_v22  ;;  %v13467_v55 = vld [vmem:[%s18897_s5 + $0x94] ss:$8 sps:$4 sm:$0xff]   ;;  %v13462_v23 = vld [vmem:[%s18897_s5 + $0x4d0] ss:$8 sps:$4 sm:$0xff]  }
 0x652   :  { %v18048_v33 = vpack.c.bf16 %v8035_v31, %v8032_v7  ;;  %8594 = vmatprep.subr.bf16.mxu1 %v13431_v45  ;;  %v13470_v22 = vld [vmem:[%s18897_s5 + $0x4e4] ss:$8 sps:$4 sm:$0xff]   ;;  %v13465_v20 = vld [vmem:[%s18897_s5 + $0x90] ss:$8 sps:$4 sm:$0xff]   ;;  %v13468_v45 = vld [vmem:[%s18897_s5 + $0x4e0] ss:$8 sps:$4 sm:$0xff]  }
 0x653   :  { %v18053_v59 = vpack.c.bf16 %v8036_v26, %v8033_v13  ;;  %9244 = vmatpush1.bf16.msra.mxu0 %v13426_v38  ;;  %v7640_v14 = vpop.f32.mrb[200].mxu0  ;;  %v13473_v62 = vld [vmem:[%s18897_s5 + $0xa4] ss:$8 sps:$4 sm:$0xff]   ;;  %v13476_v36 = vld [vmem:[%s18897_s5 + $0x4f4] ss:$8 sps:$4 sm:$0xff]  }
 0x654   :  { %v12376_v12 = vadd.f32 %v7640_v14, %v17949_v58  ;;  %v7642_v32 = vpop.f32.mrb[201].mxu0  ;;  %9503 = vmatprep.subr.bf16.mxu0 %v13434_v53  ;;  %v13471_v38 = vld [vmem:[%s18897_s5 + $0xa0] ss:$8 sps:$4 sm:$0xff]   ;;  %v13479_v7 = vld [vmem:[%s18897_s5 + $0xb4] ss:$8 sps:$4 sm:$0xff]  }
 0x655   :  { %v12377_v18 = vadd.f32 %v7642_v32, %v17953_v2  ;;  %8595 = vmatpush1.bf16.msra.mxu1 %v13429_v49  ;;  %v7644_v11 = vpop.f32.mrb[202].mxu0  ;;  %v13474_v31 = vld [vmem:[%s18897_s5 + $0x4f0] ss:$8 sps:$4 sm:$0xff]   ;;  %v13482_v53 = vld [vmem:[%s18897_s5 + $0x504] ss:$8 sps:$4 sm:$0xff]  }
 0x656   :  { %v12378_v61 = vadd.f32 %v7644_v11, %v17949_v58  ;;  %v7646_v5 = vpop.f32.mrb[203].mxu0  ;;  %11905 = vmatmul.mubr.msk.bf16.vlgmr.msra.gmra.mrb[212].mxu0 %vm8319_vm2, %v9014_v40  ;;  %8596 = vmatprep.subr.bf16.mxu1 %v13437_v63  ;;  %v8038_v47 = vmax.f32 %v12376_v12, 0.0  ;;  %v13446_v58 = vld [vmem:[%s18897_s5 + $0x4a4] ss:$8 sps:$4 sm:$0xff]   ;;  %v13477_v13 = vld [vmem:[%s18897_s5 + $0xb0] ss:$8 sps:$4 sm:$0xff]  }
 0x657   :  { %v12379_v41 = vadd.f32 %v7646_v5, %v17953_v2  ;;  %9504 = vmatpush1.bf16.msra.mxu0 %v13432_v24  ;;  %9535 = vmatprep.mubr.bf16.mxu0 %v18018_v50  ;;  %v8039_v43 = vmax.f32 %v12377_v18, 0.0  ;;  %v13441_v2 = vld [vmem:[%s18897_s5 + $0x50] ss:$8 sps:$4 sm:$0xff]   ;;  %v13485_v26 = vld [vmem:[%s18897_s5 + $0xc4] ss:$8 sps:$4 sm:$0xff]  }
 0x658   :  { %v8041_v39 = vmax.f32 %v12378_v61, 0.0  ;;  %9505 = vmatprep.subr.bf16.mxu0 %v13440_v34  ;;  %v13480_v49 = vld [vmem:[%s18897_s5 + $0x500] ss:$8 sps:$4 sm:$0xff]   ;;  %v13488_v63 = vld [vmem:[%s18897_s5 + $0x514] ss:$8 sps:$4 sm:$0xff]  }
 0x659   :  { %v8042_v25 = vmax.f32 %v12379_v41, 0.0  ;;  %8597 = vmatpush1.bf16.msra.mxu1 %v13435_v28  ;;  %v13483_v14 = vld [vmem:[%s18897_s5 + $0xc0] ss:$8 sps:$4 sm:$0xff]   ;;  %v13491_v24 = vld [vmem:[%s18897_s5 + $0xd4] ss:$8 sps:$4 sm:$0xff]  }
 0x65a   :  { %v18083_v3 = vpack.c.bf16 %v8041_v39, %v8038_v47  ;;  %8598 = vmatprep.subr.bf16.mxu1 %v13443_v35  ;;  %v13486_v40 = vld [vmem:[%s18897_s5 + $0x510] ss:$8 sps:$4 sm:$0xff]   ;;  %v13494_v12 = vld [vmem:[%s18897_s5 + $0x524] ss:$8 sps:$4 sm:$0xff]   ;;  %v13492_v18 = vld [vmem:[%s18897_s5 + $0x520] ss:$8 sps:$4 sm:$0xff]  }
 0x65b   :  { %v18088_v29 = vpack.c.bf16 %v8042_v25, %v8039_v43  ;;  %9506 = vmatpush1.bf16.msra.mxu0 %v13438_v27  ;;  %v13489_v32 = vld [vmem:[%s18897_s5 + $0xd0] ss:$8 sps:$4 sm:$0xff]   ;;  %v13497_v34 = vld [vmem:[%s18897_s5 + $0xe4] ss:$8 sps:$4 sm:$0xff]   ;;  %v13500_v11 = vld [vmem:[%s18897_s5 + $0x534] ss:$8 sps:$4 sm:$0xff]  }
 0x65c   :  { %9507 = vmatprep.subr.bf16.mxu0 %v13446_v58  ;;  %v13495_v28 = vld [vmem:[%s18897_s5 + $0xe0] ss:$8 sps:$4 sm:$0xff]   ;;  %v13503_v61 = vld [vmem:[%s18897_s5 + $0xf4] ss:$8 sps:$4 sm:$0xff]   ;;  %v13498_v5 = vld [vmem:[%s18897_s5 + $0x530] ss:$8 sps:$4 sm:$0xff]  }
 0x65d   :  { %8599 = vmatpush1.bf16.msra.mxu1 %v13441_v2  ;;  %v13506_v35 = vld [vmem:[%s18897_s5 + $0x544] ss:$8 sps:$4 sm:$0xff]   ;;  %v13501_v41 = vld [vmem:[%s18897_s5 + $0xf0] ss:$8 sps:$4 sm:$0xff]   ;;  %v13504_v47 = vld [vmem:[%s18897_s5 + $0x540] ss:$8 sps:$4 sm:$0xff]  }
 0x65e   :  { %8600 = vmatprep.subr.bf16.mxu1 %v13449_v42  ;;  %v13509_v27 = vld [vmem:[%s18897_s5 + $0x104] ss:$8 sps:$4 sm:$0xff]   ;;  %v13512_v39 = vld [vmem:[%s18897_s5 + $0x554] ss:$8 sps:$4 sm:$0xff]   ;;  %v13507_v58 = vld [vmem:[%s18897_s5 + $0x100] ss:$8 sps:$4 sm:$0xff]  }
 0x65f   :  { %9508 = vmatpush1.bf16.msra.mxu0 %v13444_v30  ;;  %v13515_v43 = vld [vmem:[%s18897_s5 + $0x114] ss:$8 sps:$4 sm:$0xff]   ;;  %v13510_v25 = vld [vmem:[%s18897_s5 + $0x550] ss:$8 sps:$4 sm:$0xff]   ;;  %v13518_v2 = vld [vmem:[%s18897_s5 + $0x564] ss:$8 sps:$4 sm:$0xff]  }
 0x660   :  { %9509 = vmatprep.subr.bf16.mxu0 %v13452_v19  ;;  %v13513_v42 = vld [vmem:[%s18897_s5 + $0x110] ss:$8 sps:$4 sm:$0xff]   ;;  %v13521_v30 = vld [vmem:[%s18897_s5 + $0x364] ss:$8 sps:$4 sm:$0xff]   ;;  %v13524_v19 = vld [vmem:[%s18897_s5 + $0x574] ss:$8 sps:$4 sm:$0xff]  }
 0x661   :  { %8601 = vmatpush1.bf16.msra.mxu1 %v13447_v17  ;;  %v13519_v17 = vld [vmem:[%s18897_s5 + $0x360] ss:$8 sps:$4 sm:$0xff]  }
 0x662   :  { %8602 = vmatprep.subr.bf16.mxu1 %v13455_v52  ;;  %v13527_v52 = vld [vmem:[%s18897_s5 + $0x374] ss:$8 sps:$4 sm:$0xff]  }
 0x663   :  { %9510 = vmatpush1.bf16.msra.mxu0 %v13450_v54  ;;  %v9013_v54 = vrot.slane %v17981_v56, 4  ;;  %v13533_v56 = vld [vmem:[%s18897_s5 + $0x384] ss:$8 sps:$4 sm:$0xff]  }
 0x664   :  { %9511 = vmatprep.subr.bf16.mxu0 %v13458_v37  ;;  %v13522_v37 = vld [vmem:[%s18897_s5 + $0x570] ss:$8 sps:$4 sm:$0xff]  }
 0x665   :  { %8603 = vmatpush1.bf16.msra.mxu1 %v13453_v44  ;;  %v13530_v44 = vld [vmem:[%s18897_s5 + $0x6a4] ss:$8 sps:$4 sm:$0xff]  }
 0x666   :  { %8604 = vmatprep.subr.bf16.mxu1 %v13461_v4  ;;  %v13525_v4 = vld [vmem:[%s18897_s5 + $0x370] ss:$8 sps:$4 sm:$0xff]  }
 0x667   :  { %9512 = vmatpush1.bf16.msra.mxu0 %v13456_v16  ;;  %v13536_v16 = vld [vmem:[%s18897_s5 + $0x6b4] ss:$8 sps:$4 sm:$0xff]  }
 0x668   :  { %9513 = vmatprep.subr.bf16.mxu0 %v13464_v60  ;;  %v13531_v60 = vld [vmem:[%s18897_s5 + $0x380] ss:$8 sps:$4 sm:$0xff]  }
 0x669   :  { %8605 = vmatpush1.bf16.msra.mxu1 %v13459_v10  ;;  %v13539_v10 = vld [vmem:[%s18897_s5 + $0x394] ss:$8 sps:$4 sm:$0xff]  }
 0x66a   :  { %8606 = vmatprep.subr.bf16.mxu1 %v13467_v55  ;;  %v13534_v55 = vld [vmem:[%s18897_s5 + $0x6b0] ss:$8 sps:$4 sm:$0xff]  }
 0x66b   :  { %9514 = vmatpush1.bf16.msra.mxu0 %v13462_v23  ;;  %v13542_v23 = vld [vmem:[%s18897_s5 + $0x6c4] ss:$8 sps:$4 sm:$0xff]  }
 0x66c   :  { %9515 = vmatprep.subr.bf16.mxu0 %v13470_v22  ;;  %v13537_v22 = vld [vmem:[%s18897_s5 + $0x390] ss:$8 sps:$4 sm:$0xff]  }
 0x66d   :  { %8607 = vmatpush1.bf16.msra.mxu1 %v13465_v20  ;;  %v13545_v20 = vld [vmem:[%s18897_s5 + $0x3a4] ss:$8 sps:$4 sm:$0xff]  }
 0x66e   :  { %8608 = vmatprep.subr.bf16.mxu1 %v13473_v62  ;;  %v13540_v62 = vld [vmem:[%s18897_s5 + $0x6c0] ss:$8 sps:$4 sm:$0xff]  }
 0x66f   :  { %9516 = vmatpush1.bf16.msra.mxu0 %v13468_v45  ;;  %v9628_v45 = vrot.slane %v17936_v48, 4 }
 0x670   :  { %9517 = vmatprep.subr.bf16.mxu0 %v13476_v36  ;;  %v13548_v36 = vld [vmem:[%s18897_s5 + $0x6d4] ss:$8 sps:$4 sm:$0xff]  }
 0x671   :  { %8609 = vmatpush1.bf16.msra.mxu1 %v13471_v38  ;;  %v13543_v38 = vld [vmem:[%s18897_s5 + $0x3a0] ss:$8 sps:$4 sm:$0xff]  }
 0x672   :  { %8610 = vmatprep.subr.bf16.mxu1 %v13479_v7  ;;  %v13551_v7 = vld [vmem:[%s18897_s5 + $0x3b4] ss:$8 sps:$4 sm:$0xff]  }
 0x673   :  { %9518 = vmatpush1.bf16.msra.mxu0 %v13474_v31  ;;  %v13546_v31 = vld [vmem:[%s18897_s5 + $0x6d0] ss:$8 sps:$4 sm:$0xff]  }
 0x674   :  { %9519 = vmatprep.subr.bf16.mxu0 %v13482_v53  ;;  %v13554_v53 = vld [vmem:[%s18897_s5 + $0x6e4] ss:$8 sps:$4 sm:$0xff]  }
 0x675   :  { %8611 = vmatpush1.bf16.msra.mxu1 %v13477_v13  ;;  %v13549_v13 = vld [vmem:[%s18897_s5 + $0x3b0] ss:$8 sps:$4 sm:$0xff]  }
 0x676   :  { %8612 = vmatprep.subr.bf16.mxu1 %v13485_v26  ;;  %v13557_v26 = vld [vmem:[%s18897_s5 + $0x3c4] ss:$8 sps:$4 sm:$0xff]  }
 0x677   :  { %9520 = vmatpush1.bf16.msra.mxu0 %v13480_v49  ;;  %v13552_v49 = vld [vmem:[%s18897_s5 + $0x6e0] ss:$8 sps:$4 sm:$0xff]  }
 0x678   :  { %9521 = vmatprep.subr.bf16.mxu0 %v13488_v63  ;;  %v13560_v63 = vld [vmem:[%s18897_s5 + $0x6f4] ss:$8 sps:$4 sm:$0xff]  }
 0x679   :  { %8613 = vmatpush1.bf16.msra.mxu1 %v13483_v14  ;;  %v13555_v14 = vld [vmem:[%s18897_s5 + $0x3c0] ss:$8 sps:$4 sm:$0xff]  }
 0x67a   :  { %8614 = vmatprep.subr.bf16.mxu1 %v13491_v24  ;;  %v13563_v24 = vld [vmem:[%s18897_s5 + $0x3d4] ss:$8 sps:$4 sm:$0xff]  }
 0x67b   :  { %9522 = vmatpush1.bf16.msra.mxu0 %v13486_v40  ;;  %v13558_v40 = vld [vmem:[%s18897_s5 + $0x6f0] ss:$8 sps:$4 sm:$0xff]  }
 0x67c   :  { %9523 = vmatprep.subr.bf16.mxu0 %v13494_v12  ;;  %v13566_v12 = vld [vmem:[%s18897_s5 + $0x704] ss:$8 sps:$4 sm:$0xff]  }
 0x67d   :  { %8615 = vmatpush1.bf16.msra.mxu1 %v13489_v32  ;;  %v13561_v32 = vld [vmem:[%s18897_s5 + $0x3d0] ss:$8 sps:$4 sm:$0xff]  }
 0x67e   :  { %8616 = vmatprep.subr.bf16.mxu1 %v13497_v34  ;;  %v13569_v34 = vld [vmem:[%s18897_s5 + $0x3e4] ss:$8 sps:$4 sm:$0xff]  }
 0x67f   :  { %9524 = vmatpush1.bf16.msra.mxu0 %v13492_v18  ;;  %v13564_v18 = vld [vmem:[%s18897_s5 + $0x700] ss:$8 sps:$4 sm:$0xff]  }
 0x680   :  { %9525 = vmatprep.subr.bf16.mxu0 %v13500_v11  ;;  %v13572_v11 = vld [vmem:[%s18897_s5 + $0x714] ss:$8 sps:$4 sm:$0xff]  }
 0x681   :  { %8617 = vmatpush1.bf16.msra.mxu1 %v13495_v28  ;;  %v13567_v28 = vld [vmem:[%s18897_s5 + $0x3e0] ss:$8 sps:$4 sm:$0xff]  }
 0x682   :  { %8618 = vmatprep.subr.bf16.mxu1 %v13503_v61  ;;  %v13575_v61 = vld [vmem:[%s18897_s5 + $0x3f4] ss:$8 sps:$4 sm:$0xff]  }
 0x683   :  { %9526 = vmatpush1.bf16.msra.mxu0 %v13498_v5  ;;  %v13570_v5 = vld [vmem:[%s18897_s5 + $0x710] ss:$8 sps:$4 sm:$0xff]  }
 0x684   :  { %9527 = vmatprep.subr.bf16.mxu0 %v13506_v35  ;;  %v13578_v35 = vld [vmem:[%s18897_s5 + $0x724] ss:$8 sps:$4 sm:$0xff]  }
 0x685   :  { %8619 = vmatpush1.bf16.msra.mxu1 %v13501_v41  ;;  %v13573_v41 = vld [vmem:[%s18897_s5 + $0x3f0] ss:$8 sps:$4 sm:$0xff]  }
 0x686   :  { %8629 = vmatprep.subr.bf16.mxu1 %v13509_v27  ;;  %v13581_v27 = vld [vmem:[%s18897_s5 + $0x404] ss:$8 sps:$4 sm:$0xff]  }
 0x687   :  { %9528 = vmatpush1.bf16.msra.mxu0 %v13504_v47  ;;  %v13576_v47 = vld [vmem:[%s18897_s5 + $0x720] ss:$8 sps:$4 sm:$0xff]  }
 0x688   :  { %8621 = vmatmul.mubr.bf16.vlgmr.msra.gmra.mrb[36].mxu1 %v17959_v6  ;;  %9529 = vmatprep.subr.bf16.mxu0 %v13512_v39  ;;  %v13516_v6 = vld [vmem:[%s18897_s5 + $0x560] ss:$8 sps:$4 sm:$0xff]   ;;  %v13584_v39 = vld [vmem:[%s18897_s5 + $0x734] ss:$8 sps:$4 sm:$0xff]  }
 0x689   :  { %8630 = vmatpush1.bf16.msra.mxu1 %v13507_v58  ;;  %8661 = vmatprep.mubr.bf16.mxu1 %v19062_v0  ;;  %v13579_v58 = vld [vmem:[%s18897_s5 + $0x400] ss:$8 sps:$4 sm:$0xff]  }
 0x68a   :  { %8631 = vmatprep.subr.bf16.mxu1 %v13515_v43  ;;  %v13587_v43 = vld [vmem:[%s18897_s5 + $0x414] ss:$8 sps:$4 sm:$0xff]  }
 0x68b   :  { %9530 = vmatpush1.bf16.msra.mxu0 %v13510_v25  ;;  %v13582_v25 = vld [vmem:[%s18897_s5 + $0x730] ss:$8 sps:$4 sm:$0xff]  }
 0x68c   :  { %9531 = vmatprep.subr.bf16.mxu0 %v13518_v2  ;;  %v13590_v2 = vld [vmem:[%s18897_s5 + $0x744] ss:$8 sps:$4 sm:$0xff]  }
 0x68d   :  { %8632 = vmatpush1.bf16.msra.mxu1 %v13513_v42  ;;  %v13585_v42 = vld [vmem:[%s18897_s5 + $0x410] ss:$8 sps:$4 sm:$0xff]  }
 0x68e   :  { %9200 = vmatprep.subr.bf16.mxu1 %v13521_v30  ;;  %v13593_v30 = vld [vmem:[%s18897_s5 + $0x424] ss:$8 sps:$4 sm:$0xff]  }
 0x68f   :  { %9532 = vmatpush1.bf16.msra.mxu0 %v13516_v6  ;;  %v13588_v6 = vld [vmem:[%s18897_s5 + $0x740] ss:$8 sps:$4 sm:$0xff]  }
 0x690   :  { %11831 = vmatmul.mubr.msk.bf16.vlgmr.msra.gmra.mrb[40].mxu1 %vm8319_vm2, %v17932_v9  ;;  %9533 = vmatprep.subr.bf16.mxu0 %v13524_v19  ;;  %v13528_v9 = vld [vmem:[%s18897_s5 + $0x6a0] ss:$8 sps:$4 sm:$0xff]   ;;  %v13596_v19 = vld [vmem:[%s18897_s5 + $0x754] ss:$8 sps:$4 sm:$0xff]  }
 0x691   :  { %9201 = vmatpush1.bf16.msra.mxu1 %v13519_v17  ;;  %9232 = vmatprep.mubr.bf16.mxu1 %v9013_v54  ;;  %v13591_v17 = vld [vmem:[%s18897_s5 + $0x420] ss:$8 sps:$4 sm:$0xff]   ;;  %v13594_v54 = vld [vmem:[%s18897_s5 + $0x750] ss:$8 sps:$4 sm:$0xff]  }
 0x692   :  { %9202 = vmatprep.subr.bf16.mxu1 %v13527_v52  ;;  %v13599_v52 = vld [vmem:[%s18897_s5 + $0x434] ss:$8 sps:$4 sm:$0xff]  }
 0x693   :  { %9534 = vmatpush1.bf16.msra.mxu0 %v13522_v37  ;;  %v13602_v37 = vld [vmem:[%s18897_s5 + $0x764] ss:$8 sps:$4 sm:$0xff]  }
 0x694   :  { %9855 = vmatprep.subr.bf16.mxu0 %v13530_v44  ;;  %v13597_v44 = vld [vmem:[%s18897_s5 + $0x430] ss:$8 sps:$4 sm:$0xff]  }
 0x695   :  { %9203 = vmatpush1.bf16.msra.mxu1 %v13525_v4  ;;  %v13605_v4 = vld [vmem:[%s18897_s5 + $0x444] ss:$8 sps:$4 sm:$0xff]  }
 0x696   :  { %9536 = vmatmul.mubr.bf16.vlgmr.msra.gmra.mrb[216].mxu0 %v18013_v15  ;;  %9204 = vmatprep.subr.bf16.mxu1 %v13533_v56  ;;  %v13600_v56 = vld [vmem:[%s18897_s5 + $0x760] ss:$8 sps:$4 sm:$0xff]  }
 0x697   :  { %9856 = vmatpush1.bf16.msra.mxu0 %v13528_v9  ;;  %9887 = vmatprep.mubr.bf16.mxu0 %v19062_v0  ;;  %v13608_v9 = vld [vmem:[%s18897_s5 + $0x774] ss:$8 sps:$4 sm:$0xff]  }
 0x698   :  { %9857 = vmatprep.subr.bf16.mxu0 %v13536_v16  ;;  %v13603_v16 = vld [vmem:[%s18897_s5 + $0x440] ss:$8 sps:$4 sm:$0xff]  }
 0x699   :  { %9205 = vmatpush1.bf16.msra.mxu1 %v13531_v60  ;;  %v13611_v60 = vld [vmem:[%s18897_s5 + $0x454] ss:$8 sps:$4 sm:$0xff]  }
 0x69a   :  { %9206 = vmatprep.subr.bf16.mxu1 %v13539_v10  ;;  %v13606_v10 = vld [vmem:[%s18897_s5 + $0x770] ss:$8 sps:$4 sm:$0xff]  }
 0x69b   :  { %9858 = vmatpush1.bf16.msra.mxu0 %v13534_v55  ;;  %v13614_v55 = vld [vmem:[%s18897_s5 + $0x784] ss:$8 sps:$4 sm:$0xff]  }
 0x69c   :  { %10117 = vmatprep.subr.bf16.mxu0 %v13542_v23  ;;  %v13609_v23 = vld [vmem:[%s18897_s5 + $0x450] ss:$8 sps:$4 sm:$0xff]  }
 0x69d   :  { %9207 = vmatpush1.bf16.msra.mxu1 %v13537_v22  ;;  %v13617_v22 = vld [vmem:[%s18897_s5 + $0x584] ss:$8 sps:$4 sm:$0xff]  }
 0x69e   :  { %11979 = vmatmul.mubr.msk.bf16.vlgmr.msra.gmra.mrb[220].mxu0 %vm8319_vm2, %v9628_v45  ;;  %9208 = vmatprep.subr.bf16.mxu1 %v13545_v20  ;;  %v13612_v20 = vld [vmem:[%s18897_s5 + $0x780] ss:$8 sps:$4 sm:$0xff]  }
 0x69f   :  { %10118 = vmatpush1.bf16.msra.mxu0 %v13540_v62  ;;  %10149 = vmatprep.mubr.bf16.mxu0 %v18053_v59  ;;  %v13620_v62 = vld [vmem:[%s18897_s5 + $0x794] ss:$8 sps:$4 sm:$0xff]   ;;  %v13615_v45 = vld [vmem:[%s18897_s5 + $0x580] ss:$8 sps:$4 sm:$0xff]  }
 0x6a0   :  { %10119 = vmatprep.subr.bf16.mxu0 %v13548_v36  ;;  %v9012_v36 = vrot.slane %v17976_v1, 4  ;;  %v13621_v1 = vld [vmem:[%s18897_s5 + $0x590] ss:$8 sps:$4 sm:$0xff]  }
 0x6a1   :  { %9209 = vmatpush1.bf16.msra.mxu1 %v13543_v38  ;;  %v13623_v38 = vld [vmem:[%s18897_s5 + $0x594] ss:$8 sps:$4 sm:$0xff]  }
 0x6a2   :  { %9210 = vmatprep.subr.bf16.mxu1 %v13551_v7  ;;  %v13618_v7 = vld [vmem:[%s18897_s5 + $0x790] ss:$8 sps:$4 sm:$0xff]  }
 0x6a3   :  { %10120 = vmatpush1.bf16.msra.mxu0 %v13546_v31  ;;  %v13626_v31 = vld [vmem:[%s18897_s5 + $0x7a4] ss:$8 sps:$4 sm:$0xff]  }
 0x6a4   :  { %10121 = vmatprep.subr.bf16.mxu0 %v13554_v53  ;;  %v13629_v53 = vld [vmem:[%s18897_s5 + $0x5a4] ss:$8 sps:$4 sm:$0xff]  }
 0x6a5   :  { %9211 = vmatpush1.bf16.msra.mxu1 %v13549_v13  ;;  %v13624_v13 = vld [vmem:[%s18897_s5 + $0x7a0] ss:$8 sps:$4 sm:$0xff]  }
 0x6a6   :  { %9212 = vmatprep.subr.bf16.mxu1 %v13557_v26  ;;  %v13632_v26 = vld [vmem:[%s18897_s5 + $0x7b4] ss:$8 sps:$4 sm:$0xff]  }
 0x6a7   :  { %10122 = vmatpush1.bf16.msra.mxu0 %v13552_v49  ;;  %v13627_v49 = vld [vmem:[%s18897_s5 + $0x5a0] ss:$8 sps:$4 sm:$0xff]  }
 0x6a8   :  { %10123 = vmatprep.subr.bf16.mxu0 %v13560_v63  ;;  %v13635_v63 = vld [vmem:[%s18897_s5 + $0x5b4] ss:$8 sps:$4 sm:$0xff]  }
 0x6a9   :  { %9213 = vmatpush1.bf16.msra.mxu1 %v13555_v14  ;;  %v9627_v14 = vrot.slane %v18018_v50, 4  ;;  %v13641_v50 = vld [vmem:[%s18897_s5 + $0x5c4] ss:$8 sps:$4 sm:$0xff]  }
 0x6aa   :  { %9214 = vmatprep.subr.bf16.mxu1 %v13563_v24  ;;  %v13630_v24 = vld [vmem:[%s18897_s5 + $0x7b0] ss:$8 sps:$4 sm:$0xff]  }
 0x6ab   :  { %10124 = vmatpush1.bf16.msra.mxu0 %v13558_v40  ;;  %v13638_v40 = vld [vmem:[%s18897_s5 + $0x8e4] ss:$8 sps:$4 sm:$0xff]  }
 0x6ac   :  { %10125 = vmatprep.subr.bf16.mxu0 %v13566_v12  ;;  %v13633_v12 = vld [vmem:[%s18897_s5 + $0x5b0] ss:$8 sps:$4 sm:$0xff]  }
 0x6ad   :  { %9215 = vmatpush1.bf16.msra.mxu1 %v13561_v32  ;;  %v13644_v32 = vld [vmem:[%s18897_s5 + $0x8f4] ss:$8 sps:$4 sm:$0xff]  }
 0x6ae   :  { %9216 = vmatprep.subr.bf16.mxu1 %v13569_v34  ;;  %v13639_v34 = vld [vmem:[%s18897_s5 + $0x5c0] ss:$8 sps:$4 sm:$0xff]  }
 0x6af   :  { %10126 = vmatpush1.bf16.msra.mxu0 %v13564_v18  ;;  %v13647_v18 = vld [vmem:[%s18897_s5 + $0x5d4] ss:$8 sps:$4 sm:$0xff]  }
 0x6b0   :  { %10127 = vmatprep.subr.bf16.mxu0 %v13572_v11  ;;  %v13642_v11 = vld [vmem:[%s18897_s5 + $0x8f0] ss:$8 sps:$4 sm:$0xff]  }
 0x6b1   :  { %9217 = vmatpush1.bf16.msra.mxu1 %v13567_v28  ;;  %v13650_v28 = vld [vmem:[%s18897_s5 + $0x904] ss:$8 sps:$4 sm:$0xff]  }
 0x6b2   :  { %9218 = vmatprep.subr.bf16.mxu1 %v13575_v61  ;;  %v13645_v61 = vld [vmem:[%s18897_s5 + $0x5d0] ss:$8 sps:$4 sm:$0xff]  }
 0x6b3   :  { %10128 = vmatpush1.bf16.msra.mxu0 %v13570_v5  ;;  %v13653_v5 = vld [vmem:[%s18897_s5 + $0x5e4] ss:$8 sps:$4 sm:$0xff]  }
 0x6b4   :  { %10129 = vmatprep.subr.bf16.mxu0 %v13578_v35  ;;  %v13648_v35 = vld [vmem:[%s18897_s5 + $0x900] ss:$8 sps:$4 sm:$0xff]  }
 0x6b5   :  { %9219 = vmatpush1.bf16.msra.mxu1 %v13573_v41  ;;  %v10242_v41 = vrot.slane %v17938_v51, 4 }
 0x6b6   :  { %9220 = vmatprep.subr.bf16.mxu1 %v13581_v27  ;;  %v13656_v27 = vld [vmem:[%s18897_s5 + $0x914] ss:$8 sps:$4 sm:$0xff]  }
 0x6b7   :  { %10130 = vmatpush1.bf16.msra.mxu0 %v13576_v47  ;;  %v13651_v47 = vld [vmem:[%s18897_s5 + $0x5e0] ss:$8 sps:$4 sm:$0xff]  }
 0x6b8   :  { %10131 = vmatprep.subr.bf16.mxu0 %v13584_v39  ;;  %v13659_v39 = vld [vmem:[%s18897_s5 + $0x5f4] ss:$8 sps:$4 sm:$0xff]  }
 0x6b9   :  { %9221 = vmatpush1.bf16.msra.mxu1 %v13579_v58  ;;  %v13654_v58 = vld [vmem:[%s18897_s5 + $0x910] ss:$8 sps:$4 sm:$0xff]  }
 0x6ba   :  { %9222 = vmatprep.subr.bf16.mxu1 %v13587_v43  ;;  %v13662_v43 = vld [vmem:[%s18897_s5 + $0x924] ss:$8 sps:$4 sm:$0xff]  }
 0x6bb   :  { %10132 = vmatpush1.bf16.msra.mxu0 %v13582_v25  ;;  %v13657_v25 = vld [vmem:[%s18897_s5 + $0x5f0] ss:$8 sps:$4 sm:$0xff]  }
 0x6bc   :  { %10133 = vmatprep.subr.bf16.mxu0 %v13590_v2  ;;  %v13665_v2 = vld [vmem:[%s18897_s5 + $0x604] ss:$8 sps:$4 sm:$0xff]  }
 0x6bd   :  { %9223 = vmatpush1.bf16.msra.mxu1 %v13585_v42  ;;  %v13668_v42 = vld [vmem:[%s18897_s5 + $0x934] ss:$8 sps:$4 sm:$0xff]  }
 0x6be   :  { %9224 = vmatprep.subr.bf16.mxu1 %v13593_v30  ;;  %v13663_v30 = vld [vmem:[%s18897_s5 + $0x600] ss:$8 sps:$4 sm:$0xff]  }
 0x6bf   :  { %10134 = vmatpush1.bf16.msra.mxu0 %v13588_v6  ;;  %v13671_v6 = vld [vmem:[%s18897_s5 + $0x614] ss:$8 sps:$4 sm:$0xff]  }
 0x6c0   :  { %10135 = vmatprep.subr.bf16.mxu0 %v13596_v19  ;;  %v13666_v19 = vld [vmem:[%s18897_s5 + $0x930] ss:$8 sps:$4 sm:$0xff]  }
 0x6c1   :  { %9225 = vmatpush1.bf16.msra.mxu1 %v13591_v17  ;;  %v13674_v17 = vld [vmem:[%s18897_s5 + $0x944] ss:$8 sps:$4 sm:$0xff]  }
 0x6c2   :  { %9226 = vmatprep.subr.bf16.mxu1 %v13599_v52  ;;  %v13669_v52 = vld [vmem:[%s18897_s5 + $0x610] ss:$8 sps:$4 sm:$0xff]  }
 0x6c3   :  { %10136 = vmatpush1.bf16.msra.mxu0 %v13594_v54  ;;  %v13677_v54 = vld [vmem:[%s18897_s5 + $0x624] ss:$8 sps:$4 sm:$0xff]  }
 0x6c4   :  { %10137 = vmatprep.subr.bf16.mxu0 %v13602_v37  ;;  %v13672_v37 = vld [vmem:[%s18897_s5 + $0x940] ss:$8 sps:$4 sm:$0xff]  }
 0x6c5   :  { %9227 = vmatpush1.bf16.msra.mxu1 %v13597_v44  ;;  %v13680_v44 = vld [vmem:[%s18897_s5 + $0x954] ss:$8 sps:$4 sm:$0xff]  }
 0x6c6   :  { %9228 = vmatprep.subr.bf16.mxu1 %v13605_v4  ;;  %v13675_v4 = vld [vmem:[%s18897_s5 + $0x620] ss:$8 sps:$4 sm:$0xff]  }
 0x6c7   :  { %10138 = vmatpush1.bf16.msra.mxu0 %v13600_v56  ;;  %v13683_v56 = vld [vmem:[%s18897_s5 + $0x634] ss:$8 sps:$4 sm:$0xff]  }
 0x6c8   :  { %10139 = vmatprep.subr.bf16.mxu0 %v13608_v9  ;;  %v13678_v9 = vld [vmem:[%s18897_s5 + $0x950] ss:$8 sps:$4 sm:$0xff]  }
 0x6c9   :  { %9229 = vmatpush1.bf16.msra.mxu1 %v13603_v16  ;;  %v13686_v16 = vld [vmem:[%s18897_s5 + $0x964] ss:$8 sps:$4 sm:$0xff]  }
 0x6ca   :  { %9230 = vmatprep.subr.bf16.mxu1 %v13611_v60  ;;  %v13681_v60 = vld [vmem:[%s18897_s5 + $0x630] ss:$8 sps:$4 sm:$0xff]  }
 0x6cb   :  { %10140 = vmatpush1.bf16.msra.mxu0 %v13606_v10  ;;  %v13689_v10 = vld [vmem:[%s18897_s5 + $0x644] ss:$8 sps:$4 sm:$0xff]  }
 0x6cc   :  { %10141 = vmatprep.subr.bf16.mxu0 %v13614_v55  ;;  %v13684_v55 = vld [vmem:[%s18897_s5 + $0x960] ss:$8 sps:$4 sm:$0xff]  }
 0x6cd   :  { %9231 = vmatpush1.bf16.msra.mxu1 %v13609_v23  ;;  %v13692_v23 = vld [vmem:[%s18897_s5 + $0x974] ss:$8 sps:$4 sm:$0xff]  }
 0x6ce   :  { %9544 = vmatprep.subr.bf16.mxu1 %v13617_v22  ;;  %v13687_v22 = vld [vmem:[%s18897_s5 + $0x640] ss:$8 sps:$4 sm:$0xff]  }
 0x6cf   :  { %10142 = vmatpush1.bf16.msra.mxu0 %v13612_v20  ;;  %v13695_v20 = vld [vmem:[%s18897_s5 + $0x654] ss:$8 sps:$4 sm:$0xff]  }
 0x6d0   :  { %9233 = vmatmul.mubr.bf16.vlgmr.msra.gmra.mrb[44].mxu1 %v9012_v36  ;;  %10143 = vmatprep.subr.bf16.mxu0 %v13620_v62  ;;  %v13690_v62 = vld [vmem:[%s18897_s5 + $0x970] ss:$8 sps:$4 sm:$0xff]  }
 0x6d1   :  { %9545 = vmatpush1.bf16.msra.mxu1 %v13615_v45  ;;  %9576 = vmatprep.mubr.bf16.mxu1 %v19062_v0  ;;  %v13698_v45 = vld [vmem:[%s18897_s5 + $0x984] ss:$8 sps:$4 sm:$0xff]   ;;  %v13693_v36 = vld [vmem:[%s18897_s5 + $0x650] ss:$8 sps:$4 sm:$0xff]  }
 0x6d2   :  { %9546 = vmatprep.subr.bf16.mxu1 %v13623_v38  ;;  %v13701_v38 = vld [vmem:[%s18897_s5 + $0x664] ss:$8 sps:$4 sm:$0xff]  }
 0x6d3   :  { %10144 = vmatpush1.bf16.msra.mxu0 %v13618_v7  ;;  %v13696_v7 = vld [vmem:[%s18897_s5 + $0x980] ss:$8 sps:$4 sm:$0xff]  }
 0x6d4   :  { %10145 = vmatprep.subr.bf16.mxu0 %v13626_v31  ;;  %v13704_v31 = vld [vmem:[%s18897_s5 + $0x994] ss:$8 sps:$4 sm:$0xff]  }
 0x6d5   :  { %9547 = vmatpush1.bf16.msra.mxu1 %v13621_v1  ;;  %v13699_v1 = vld [vmem:[%s18897_s5 + $0x660] ss:$8 sps:$4 sm:$0xff]  }
 0x6d6   :  { %9814 = vmatprep.subr.bf16.mxu1 %v13629_v53  ;;  %v13707_v53 = vld [vmem:[%s18897_s5 + $0x674] ss:$8 sps:$4 sm:$0xff]  }
 0x6d7   :  { %10146 = vmatpush1.bf16.msra.mxu0 %v13624_v13  ;;  %v13702_v13 = vld [vmem:[%s18897_s5 + $0x990] ss:$8 sps:$4 sm:$0xff]  }
 0x6d8   :  { %11942 = vmatmul.mubr.msk.bf16.vlgmr.msra.gmra.mrb[48].mxu1 %vm8319_vm2, %v17936_v48  ;;  %10147 = vmatprep.subr.bf16.mxu0 %v13632_v26  ;;  %v13636_v48 = vld [vmem:[%s18897_s5 + $0x8e0] ss:$8 sps:$4 sm:$0xff]   ;;  %v13710_v26 = vld [vmem:[%s18897_s5 + $0x9a4] ss:$8 sps:$4 sm:$0xff]  }
 0x6d9   :  { %9815 = vmatpush1.bf16.msra.mxu1 %v13627_v49  ;;  %9846 = vmatprep.mubr.bf16.mxu1 %v9627_v14  ;;  %v13705_v49 = vld [vmem:[%s18897_s5 + $0x670] ss:$8 sps:$4 sm:$0xff]   ;;  %v13708_v14 = vld [vmem:[%s18897_s5 + $0x9a0] ss:$8 sps:$4 sm:$0xff]  }
 0x6da   :  { %9816 = vmatprep.subr.bf16.mxu1 %v13635_v63  ;;  %v13713_v63 = vld [vmem:[%s18897_s5 + $0x684] ss:$8 sps:$4 sm:$0xff]  }
 0x6db   :  { %10148 = vmatpush1.bf16.msra.mxu0 %v13630_v24  ;;  %v13716_v24 = vld [vmem:[%s18897_s5 + $0x9b4] ss:$8 sps:$4 sm:$0xff]  }
 0x6dc   :  { %10469 = vmatprep.subr.bf16.mxu0 %v13638_v40  ;;  %v13711_v40 = vld [vmem:[%s18897_s5 + $0x680] ss:$8 sps:$4 sm:$0xff]  }
 0x6dd   :  { %9817 = vmatpush1.bf16.msra.mxu1 %v13633_v12  ;;  %v13719_v12 = vld [vmem:[%s18897_s5 + $0x694] ss:$8 sps:$4 sm:$0xff]  }
 0x6de   :  { %10150 = vmatmul.mubr.bf16.vlgmr.msra.gmra.mrb[224].mxu0 %v18048_v33  ;;  %9818 = vmatprep.subr.bf16.mxu1 %v13641_v50  ;;  %v13714_v50 = vld [vmem:[%s18897_s5 + $0x9b0] ss:$8 sps:$4 sm:$0xff]  }
 0x6df   :  { %10470 = vmatpush1.bf16.msra.mxu0 %v13636_v48  ;;  %10501 = vmatprep.mubr.bf16.mxu0 %v19062_v0  ;;  %v13722_v48 = vld [vmem:[%s18897_s5 + $0x9c4] ss:$8 sps:$4 sm:$0xff]  }
 0x6e0   :  { %10471 = vmatprep.subr.bf16.mxu0 %v13644_v32  ;;  %v13717_v32 = vld [vmem:[%s18897_s5 + $0x690] ss:$8 sps:$4 sm:$0xff]  }
 0x6e1   :  { %9819 = vmatpush1.bf16.msra.mxu1 %v13639_v34  ;;  %v13725_v34 = vld [vmem:[%s18897_s5 + $0x7c4] ss:$8 sps:$4 sm:$0xff]  }
 0x6e2   :  { %9820 = vmatprep.subr.bf16.mxu1 %v13647_v18 }
 0x6e3   :  { %10472 = vmatpush1.bf16.msra.mxu0 %v13642_v11  ;;  %v13720_v11 = vld [vmem:[%s18897_s5 + $0x9c0] ss:$8 sps:$4 sm:$0xff]  }
 0x6e4   :  { %10731 = vmatprep.subr.bf16.mxu0 %v13650_v28 }
 0x6e5   :  { %9821 = vmatpush1.bf16.msra.mxu1 %v13645_v61  ;;  %v13728_v61 = vld [vmem:[%s18897_s5 + $0x9d4] ss:$8 sps:$4 sm:$0xff]  }
 0x6e6   :  { %12053 = vmatmul.mubr.msk.bf16.vlgmr.msra.gmra.mrb[228].mxu0 %vm8319_vm2, %v10242_v41  ;;  %9822 = vmatprep.subr.bf16.mxu1 %v13653_v5  ;;  %v9626_v41 = vrot.slane %v18013_v15, 4  ;;  %v13729_v15 = vld [vmem:[%s18897_s5 + $0x7d0] ss:$8 sps:$4 sm:$0xff]  }
 0x6e7   :  { %10732 = vmatpush1.bf16.msra.mxu0 %v13648_v35  ;;  %10763 = vmatprep.mubr.bf16.mxu0 %v18088_v29  ;;  %v13660_v29 = vld [vmem:[%s18897_s5 + $0x920] ss:$8 sps:$4 sm:$0xff]  }
 0x6e8   :  { %10733 = vmatprep.subr.bf16.mxu0 %v13656_v27  ;;  %v13723_v35 = vld [vmem:[%s18897_s5 + $0x7c0] ss:$8 sps:$4 sm:$0xff]  }
 0x6e9   :  { %9823 = vmatpush1.bf16.msra.mxu1 %v13651_v47  ;;  %v13731_v47 = vld [vmem:[%s18897_s5 + $0x7d4] ss:$8 sps:$4 sm:$0xff]  }
 0x6ea   :  { %9824 = vmatprep.subr.bf16.mxu1 %v13659_v39  ;;  %v13726_v39 = vld [vmem:[%s18897_s5 + $0x9d0] ss:$8 sps:$4 sm:$0xff]  }
 0x6eb   :  { %10734 = vmatpush1.bf16.msra.mxu0 %v13654_v58  ;;  %v13734_v58 = vld [vmem:[%s18897_s5 + $0x9e4] ss:$8 sps:$4 sm:$0xff]  }
 0x6ec   :  { %10735 = vmatprep.subr.bf16.mxu0 %v13662_v43 }
 0x6ed   :  { %9825 = vmatpush1.bf16.msra.mxu1 %v13657_v25 }
 0x6ee   :  { %9826 = vmatprep.subr.bf16.mxu1 %v13665_v2  ;;  %v13737_v2 = vld [vmem:[%s18897_s5 + $0x7e4] ss:$8 sps:$4 sm:$0xff]  }
 0x6ef   :  { %10736 = vmatpush1.bf16.msra.mxu0 %v13660_v29 }
 0x6f0   :  { %10737 = vmatprep.subr.bf16.mxu0 %v13668_v42 }
 0x6f1   :  { %9827 = vmatpush1.bf16.msra.mxu1 %v13663_v30  ;;  %v13732_v30 = vld [vmem:[%s18897_s5 + $0x9e0] ss:$8 sps:$4 sm:$0xff]  }
 0x6f2   :  { %9828 = vmatprep.subr.bf16.mxu1 %v13671_v6 }
 0x6f3   :  { %10738 = vmatpush1.bf16.msra.mxu0 %v13666_v19 }
 0x6f4   :  { %10739 = vmatprep.subr.bf16.mxu0 %v13674_v17 }
 0x6f5   :  { %9829 = vmatpush1.bf16.msra.mxu1 %v13669_v52  ;;  %v13740_v52 = vld [vmem:[%s18897_s5 + $0x9f4] ss:$8 sps:$4 sm:$0xff]  }
 0x6f6   :  { %9830 = vmatprep.subr.bf16.mxu1 %v13677_v54 }
 0x6f7   :  { %10740 = vmatpush1.bf16.msra.mxu0 %v13672_v37 }
 0x6f8   :  { %10741 = vmatprep.subr.bf16.mxu0 %v13680_v44  ;;  %v13735_v44 = vld [vmem:[%s18897_s5 + $0x7e0] ss:$8 sps:$4 sm:$0xff]  }
 0x6f9   :  { %9831 = vmatpush1.bf16.msra.mxu1 %v13675_v4 }
 0x6fa   :  { %9832 = vmatprep.subr.bf16.mxu1 %v13683_v56  ;;  %v13743_v56 = vld [vmem:[%s18897_s5 + $0x7f4] ss:$8 sps:$4 sm:$0xff]  }
 0x6fb   :  { %10742 = vmatpush1.bf16.msra.mxu0 %v13678_v9  ;;  %v10241_v9 = vrot.slane %v18053_v59, 4  ;;  %v13746_v59 = vld [vmem:[%s18897_s5 + $0x804] ss:$8 sps:$4 sm:$0xff]  }
 0x6fc   :  { %10743 = vmatprep.subr.bf16.mxu0 %v13686_v16  ;;  %v13738_v16 = vld [vmem:[%s18897_s5 + $0x9f0] ss:$8 sps:$4 sm:$0xff]  }
 0x6fd   :  { %9833 = vmatpush1.bf16.msra.mxu1 %v13681_v60 }
 0x6fe   :  { %9834 = vmatprep.subr.bf16.mxu1 %v13689_v10  ;;  %v13741_v10 = vld [vmem:[%s18897_s5 + $0x7f0] ss:$8 sps:$4 sm:$0xff]  }
 0x6ff   :  { %10744 = vmatpush1.bf16.msra.mxu0 %v13684_v55 }
 0x700   :  { %10745 = vmatprep.subr.bf16.mxu0 %v13692_v23 }
 0x701   :  { %9835 = vmatpush1.bf16.msra.mxu1 %v13687_v22 }
 0x702   :  { %9836 = vmatprep.subr.bf16.mxu1 %v13695_v20 }
 0x703   :  { %10746 = vmatpush1.bf16.msra.mxu0 %v13690_v62  ;;  %v13744_v62 = vld [vmem:[%s18897_s5 + $0x800] ss:$8 sps:$4 sm:$0xff]  }
 0x704   :  { %10747 = vmatprep.subr.bf16.mxu0 %v13698_v45  ;;  %v13749_v45 = vld [vmem:[%s18897_s5 + $0x814] ss:$8 sps:$4 sm:$0xff]  }
 0x705   :  { %9837 = vmatpush1.bf16.msra.mxu1 %v13693_v36 }
 0x706   :  { %9838 = vmatprep.subr.bf16.mxu1 %v13701_v38  ;;  %v13747_v38 = vld [vmem:[%s18897_s5 + $0x810] ss:$8 sps:$4 sm:$0xff]  }
 0x707   :  { %10748 = vmatpush1.bf16.msra.mxu0 %v13696_v7 }
 0x708   :  { %10749 = vmatprep.subr.bf16.mxu0 %v13704_v31  ;;  %v13752_v31 = vld [vmem:[%s18897_s5 + $0x824] ss:$8 sps:$4 sm:$0xff]  }
 0x709   :  { %9839 = vmatpush1.bf16.msra.mxu1 %v13699_v1 }
 0x70a   :  { %9840 = vmatprep.subr.bf16.mxu1 %v13707_v53  ;;  %v13750_v53 = vld [vmem:[%s18897_s5 + $0x820] ss:$8 sps:$4 sm:$0xff]  }
 0x70b   :  { %10750 = vmatpush1.bf16.msra.mxu0 %v13702_v13  ;;  %v13755_v13 = vld [vmem:[%s18897_s5 + $0x834] ss:$8 sps:$4 sm:$0xff]  }
 0x70c   :  { %10751 = vmatprep.subr.bf16.mxu0 %v13710_v26  ;;  %v13753_v26 = vld [vmem:[%s18897_s5 + $0x830] ss:$8 sps:$4 sm:$0xff]  }
 0x70d   :  { %9841 = vmatpush1.bf16.msra.mxu1 %v13705_v49  ;;  %v13758_v49 = vld [vmem:[%s18897_s5 + $0x844] ss:$8 sps:$4 sm:$0xff]  }
 0x70e   :  { %9842 = vmatprep.subr.bf16.mxu1 %v13713_v63  ;;  %v13756_v63 = vld [vmem:[%s18897_s5 + $0x840] ss:$8 sps:$4 sm:$0xff]  }
 0x70f   :  { %10752 = vmatpush1.bf16.msra.mxu0 %v13708_v14  ;;  %v13761_v14 = vld [vmem:[%s18897_s5 + $0x854] ss:$8 sps:$4 sm:$0xff]  }
 0x710   :  { %10753 = vmatprep.subr.bf16.mxu0 %v13716_v24  ;;  %v13759_v24 = vld [vmem:[%s18897_s5 + $0x850] ss:$8 sps:$4 sm:$0xff]  }
 0x711   :  { %9843 = vmatpush1.bf16.msra.mxu1 %v13711_v40  ;;  %v13764_v40 = vld [vmem:[%s18897_s5 + $0x864] ss:$8 sps:$4 sm:$0xff]  }
 0x712   :  { %9844 = vmatprep.subr.bf16.mxu1 %v13719_v12  ;;  %v13762_v12 = vld [vmem:[%s18897_s5 + $0x860] ss:$8 sps:$4 sm:$0xff]  }
 0x713   :  { %10754 = vmatpush1.bf16.msra.mxu0 %v13714_v50  ;;  %v8357_v18 = vpop.f32.mrb[28].mxu1  ;;  %v13767_v50 = vld [vmem:[%s18897_s5 + $0x874] ss:$8 sps:$4 sm:$0xff]  }
 0x714   :  { %v8359_v28 = vpop.f32.mrb[29].mxu1  ;;  %10755 = vmatprep.subr.bf16.mxu0 %v13722_v48  ;;  %v13765_v48 = vld [vmem:[%s18897_s5 + $0x870] ss:$8 sps:$4 sm:$0xff]  }
 0x715   :  { %9845 = vmatpush1.bf16.msra.mxu1 %v13717_v32  ;;  %v8361_v5 = vpop.f32.mrb[30].mxu1  ;;  %v13770_v32 = vld [vmem:[%s18897_s5 + $0x884] ss:$8 sps:$4 sm:$0xff]  }
 0x716   :  { %v8362_v27 = vpop.f32.mrb[31].mxu1  ;;  %10158 = vmatprep.subr.bf16.mxu1 %v13725_v34  ;;  %v13768_v34 = vld [vmem:[%s18897_s5 + $0x880] ss:$8 sps:$4 sm:$0xff]   ;;  %v13779_v5 = vld [vmem:[%s18897_s5 + $0x8b4] ss:$8 sps:$4 sm:$0xff]  }
 0x717   :  { %10756 = vmatpush1.bf16.msra.mxu0 %v13720_v11  ;;  %v13771_v11 = vld [vmem:[%s18897_s5 + $0x890] ss:$8 sps:$4 sm:$0xff]   ;;  %v13780_v27 = vld [vmem:[%s18897_s5 + $0x8c0] ss:$8 sps:$4 sm:$0xff]  }
 0x718   :  { %9847 = vmatmul.mubr.bf16.vlgmr.msra.gmra.mrb[52].mxu1 %v9626_v41  ;;  %10757 = vmatprep.subr.bf16.mxu0 %v13728_v61  ;;  %v13774_v61 = vld [vmem:[%s18897_s5 + $0x8a0] ss:$8 sps:$4 sm:$0xff]   ;;  %v13782_v41 = vld [vmem:[%s18897_s5 + $0x8c4] ss:$8 sps:$4 sm:$0xff]  }
 0x719   :  { %10159 = vmatpush1.bf16.msra.mxu1 %v13723_v35  ;;  %v8923_v43 = vpop.f32.mrb[204].mxu0  ;;  %10190 = vmatprep.mubr.bf16.mxu1 %v19062_v0  ;;  %v13777_v35 = vld [vmem:[%s18897_s5 + $0x8b0] ss:$8 sps:$4 sm:$0xff]  }
 0x71a   :  { %v8925_v25 = vpop.f32.mrb[205].mxu0  ;;  %10160 = vmatprep.subr.bf16.mxu1 %v13731_v47  ;;  %v13785_v47 = vld [vmem:[%s18897_s5 + $0x8d4] ss:$8 sps:$4 sm:$0xff]  }
 0x71b   :  { %10758 = vmatpush1.bf16.msra.mxu0 %v13726_v39  ;;  %v8398_v29 = vpop.f32.mrb[32].mxu1  ;;  %v8927_v42 = vpop.f32.mrb[206].mxu0  ;;  %v13783_v39 = vld [vmem:[%s18897_s5 + $0x8d0] ss:$8 sps:$4 sm:$0xff]  }
 0x71c   :  { %v18691_v6 = vadd.f32 %v8398_v29, %v8357_v18  ;;  %v8400_v19 = vpop.f32.mrb[33].mxu1  ;;  %v8928_v17 = vpop.f32.mrb[207].mxu0  ;;  %10759 = vmatprep.subr.bf16.mxu0 %v13734_v58  ;;  %v13773_v18 = vld [vmem:[%s18897_s5 + $0x894] ss:$8 sps:$4 sm:$0xff]   ;;  %v13788_v58 = vld [vmem:[%s18897_s5 + $0xa04] ss:$8 sps:$4 sm:$0xff]  }
 0x71d   :  { %v18696_v54 = vadd.f32 %v8400_v19, %v8359_v28  ;;  %10161 = vmatpush1.bf16.msra.mxu1 %v13729_v15  ;;  %v8402_v37 = vpop.f32.mrb[34].mxu1  ;;  %v13776_v28 = vld [vmem:[%s18897_s5 + $0x8a4] ss:$8 sps:$4 sm:$0xff]   ;;  %v13786_v42 = vld [vmem:[%s18897_s5 + $0xa00] ss:$8 sps:$4 sm:$0xff]  }
 0x71e   :  { %v8403_v4 = vpop.f32.mrb[35].mxu1  ;;  %10428 = vmatprep.subr.bf16.mxu1 %v13737_v2  ;;  %v13791_v17 = vld [vmem:[%s18897_s5 + $0xa14] ss:$8 sps:$4 sm:$0xff]  }
 0x71f   :  { %10760 = vmatpush1.bf16.msra.mxu0 %v13732_v30  ;;  %v10240_v30 = vrot.slane %v18048_v33, 4 }
 0x720   :  { %12016 = vmatmul.mubr.msk.bf16.vlgmr.msra.gmra.mrb[56].mxu1 %vm8319_vm2, %v17938_v51  ;;  %10761 = vmatprep.subr.bf16.mxu0 %v13740_v52 }
 0x721   :  { %10429 = vmatpush1.bf16.msra.mxu1 %v13735_v44  ;;  %10460 = vmatprep.mubr.bf16.mxu1 %v10241_v9  ;;  %v8964_v60 = vpop.f32.mrb[208].mxu0 }
 0x722   :  { %v18713_v55 = vadd.f32 %v8964_v60, %v8923_v43  ;;  %v8966_v23 = vpop.f32.mrb[209].mxu0  ;;  %10430 = vmatprep.subr.bf16.mxu1 %v13743_v56 }
 0x723   :  { %v18718_v22 = vadd.f32 %v8966_v23, %v8925_v25  ;;  %10762 = vmatpush1.bf16.msra.mxu0 %v13738_v16  ;;  %v8968_v51 = vpop.f32.mrb[210].mxu0 }
 0x724   :  { %v8969_v20 = vpop.f32.mrb[211].mxu0 }
 0x725   :  { %10431 = vmatpush1.bf16.msra.mxu1 %v13741_v10 }
 0x726   :  { %10764 = vmatmul.mubr.bf16.vlgmr.msra.gmra.mrb[232].mxu0 %v18083_v3  ;;  %10432 = vmatprep.subr.bf16.mxu1 %v13746_v59 }
 0x729   :  { %10433 = vmatpush1.bf16.msra.mxu1 %v13744_v62  ;;  %v18727_v36 = vpop.f32.mrb[212].mxu0  ;;  %v13792_v62 = vld [vmem:[%s18898_s7 + $0x40] sm:$0xff]  }
 0x72a   :  { %v18732_v7 = vpop.f32.mrb[213].mxu0  ;;  %10434 = vmatprep.subr.bf16.mxu1 %v13749_v45  ;;  %v13796_v45 = vld [vmem:[%s18898_s7 + $0x50] sm:$0xff]  }
 0x72b   :  { %v9279_v3 = vpop.f32.mrb[214].mxu0 }
 0x72c   :  { %v9280_v1 = vpop.f32.mrb[215].mxu0 }
 0x72d   :  { %10435 = vmatpush1.bf16.msra.mxu1 %v13747_v38  ;;  %v13797_v38 = vld [vmem:[%s18898_s7 + $0x10] sm:$0xff]  }
 0x72e   :  { %10436 = vmatprep.subr.bf16.mxu1 %v13752_v31 }
 0x731   :  { %10437 = vmatpush1.bf16.msra.mxu1 %v13750_v53 }
 0x732   :  { %10438 = vmatprep.subr.bf16.mxu1 %v13755_v13 }
 0x735   :  { %10439 = vmatpush1.bf16.msra.mxu1 %v13753_v26 }
 0x736   :  { %10440 = vmatprep.subr.bf16.mxu1 %v13758_v49 }
 0x739   :  { %10441 = vmatpush1.bf16.msra.mxu1 %v13756_v63 }
 0x73a   :  { %10442 = vmatprep.subr.bf16.mxu1 %v13761_v14 }
 0x73d   :  { %10443 = vmatpush1.bf16.msra.mxu1 %v13759_v24 }
 0x73e   :  { %10444 = vmatprep.subr.bf16.mxu1 %v13764_v40 }
 0x741   :  { %10445 = vmatpush1.bf16.msra.mxu1 %v13762_v12 }
 0x742   :  { %10446 = vmatprep.subr.bf16.mxu1 %v13767_v50 }
 0x745   :  { %10447 = vmatpush1.bf16.msra.mxu1 %v13765_v48 }
 0x746   :  { %10448 = vmatprep.subr.bf16.mxu1 %v13770_v32 }
 0x749   :  { %10449 = vmatpush1.bf16.msra.mxu1 %v13768_v34 }
 0x74a   :  { %10450 = vmatprep.subr.bf16.mxu1 %v13773_v18 }
 0x74d   :  { %10451 = vmatpush1.bf16.msra.mxu1 %v13771_v11 }
 0x74e   :  { %10452 = vmatprep.subr.bf16.mxu1 %v13776_v28 }
 0x751   :  { %10453 = vmatpush1.bf16.msra.mxu1 %v13774_v61 }
 0x752   :  { %10454 = vmatprep.subr.bf16.mxu1 %v13779_v5  ;;  %v13800_v5 = vld [vmem:[%s18898_s7 + $0x60] sm:$0xff]  }
 0x755   :  { %10455 = vmatpush1.bf16.msra.mxu1 %v13777_v35  ;;  %v13801_v35 = vld [vmem:[%s18898_s7 + $0x20] sm:$0xff]  }
 0x756   :  { %10456 = vmatprep.subr.bf16.mxu1 %v13782_v41 }
 0x759   :  { %10457 = vmatpush1.bf16.msra.mxu1 %v13780_v27 }
 0x75a   :  { %10458 = vmatprep.subr.bf16.mxu1 %v13785_v47  ;;  %v13802_v47 = vld [vmem:[%s18898_s7 + $0x68] sm:$0xff]  }
 0x75b   :  { %v8622_v43 = vpop.f32.mrb[36].mxu1 }
 0x75c   :  { %v8623_v15 = vadd.f32 %v8622_v43, %v18691_v6  ;;  %v8624_v25 = vpop.f32.mrb[37].mxu1  ;;  %v13789_v6 = vld [vmem:[%s18897_s5 + $0xa10] ss:$8 sps:$4 sm:$0xff]  }
 0x75d   :  { %v8625_v2 = vadd.f32 %v8624_v25, %v18696_v54  ;;  %v8626_v29 = vpop.f32.mrb[38].mxu1  ;;  %10459 = vmatpush1.bf16.msra.mxu1 %v13783_v39  ;;  %v13805_v25 = vld [vmem:[%s18898_s7 + $0x30] sm:$0xff]  }
 0x75e   :  { %v8627_v19 = vpop.f32.mrb[39].mxu1  ;;  %10772 = vmatprep.subr.bf16.mxu1 %v13788_v58  ;;  %v13803_v58 = vld [vmem:[%s18898_s7 + $0x28] sm:$0xff]   ;;  %v13807_v29 = vld [vmem:[%s18898_s7 + $0x38] sm:$0xff]  }
 0x760   :  { %10461 = vmatmul.mubr.bf16.vlgmr.msra.gmra.mrb[60].mxu1 %v10240_v30 }
 0x761   :  { %10773 = vmatpush1.bf16.msra.mxu1 %v13786_v42  ;;  %10804 = vmatprep.mubr.bf16.mxu1 %v19062_v0 }
 0x762   :  { %10774 = vmatprep.subr.bf16.mxu1 %v13791_v17 }
 0x763   :  { %v8663_v52 = vpop.f32.mrb[40].mxu1 }
 0x764   :  { %v8664_v54 = vadd.f32 %v8663_v52, %v8623_v15  ;;  %v8665_v37 = vpop.f32.mrb[41].mxu1  ;;  %v13804_v15 = vld [vmem:[%s18898_s7 + $0x70] sm:$0xff]  }
 0x765   :  { %v8666_v44 = vadd.f32 %v8665_v37, %v8625_v2  ;;  %v8667_v33 = vpop.f32.mrb[42].mxu1  ;;  %10775 = vmatpush1.bf16.msra.mxu1 %v13789_v6  ;;  %v13806_v2 = vld [vmem:[%s18898_s7 + $0x78] sm:$0xff]  }
 0x766   :  { %v8971_v4 = vadd.f32 %v18713_v55, %v8664_v54  ;;  %v8668_v56 = vpop.f32.mrb[43].mxu1  ;;  %v13793_v55 = vld [vmem:[%s18898_s7] sm:$0xff]   ;;  %12338 = vmatprep.subr.bf16.mxu1 %v13792_v62 }
 0x767   :  { %v8972_v9 = vadd.f32 %v18718_v22, %v8666_v44  ;;  %v13795_v22 = vld [vmem:[%s18898_s7 + $0x8] sm:$0xff]  }
 0x768   :  { %12090 = vmatmul.mubr.msk.bf16.vlgmr.msra.gmra.mrb[64].mxu1 %vm8319_vm2, %v17942_v21  ;;  %v13794_v21 = vld [vmem:[%s18898_s7 + $0x48] sm:$0xff]  }
 0x769   :  { %v9537_v16 = vpop.f32.mrb[216].mxu0  ;;  %12339 = vmatpush3.bf16.msra.mxu1 %v13793_v55 }
 0x76a   :  { %v9539_v60 = vpop.f32.mrb[217].mxu0  ;;  %12340 = vmatprep.subr.bf16.mxu1 %v13794_v21 }
 0x76b   :  { %v9541_v10 = vpop.f32.mrb[218].mxu0 }
 0x76c   :  { %v9542_v23 = vpop.f32.mrb[219].mxu0 }
 0x76d   :  { %12341 = vmatpush3.bf16.msra.mxu1 %v13795_v22 }
 0x76e   :  { %12342 = vmatprep.subr.bf16.mxu1 %v13796_v45 }
 0x771   :  { %v9889_v0 = vpop.f32.mrb[220].mxu0  ;;  %12343 = vmatpush3.bf16.msra.mxu1 %v13797_v38 }
 0x772   :  { %v18826_v59 = vpop.f32.mrb[221].mxu0 }
 0x773   :  { %v9893_v51 = vpop.f32.mrb[222].mxu0 }
 0x774   :  { %v9894_v20 = vpop.f32.mrb[223].mxu0 }
 0x7a3   :  { %v9234_v31 = vpop.f32.mrb[44].mxu1 }
 0x7a4   :  { %v9276_v3 = vadd.f32 %v18727_v36, %v9234_v31  ;;  %v9236_v1 = vpop.f32.mrb[45].mxu1  ;;  %v13798_v36 = vld [vmem:[%s18898_s7 + $0x58] sm:$0xff]  }
 0x7a5   :  { %v9278_v53 = vadd.f32 %v18732_v7, %v9236_v1  ;;  %v9238_v13 = vpop.f32.mrb[46].mxu1  ;;  %v13799_v7 = vld [vmem:[%s18898_s7 + $0x18] sm:$0xff]   ;;  %12344 = vmatprep.subr.bf16.mxu1 %v13798_v36 }
 0x7a6   :  { %v9282_v26 = vadd.f32 %v9276_v3, %v8971_v4  ;;  %v9239_v49 = vpop.f32.mrb[47].mxu1  ;;  %12345 = vmatpush3.bf16.msra.mxu1 %v13799_v7  ;;  %v10815_v3 = vld [vmem:[%s18899_s6] sm:$0x3] }
 0x7a7   :  { %v9283_v63 = vadd.f32 %v9278_v53, %v8972_v9  ;;  %12346 = vmatprep.subr.bf16.mxu1 %v13800_v5  ;;  %v10820_v13 = vrot.slane %v10815_v3, %v5941_v46  ;;  %v12091_v46 = vld [vmem:[%s18900_s8] ss:$0 sm:$0xff] }
 0x7aa   :  { %12347 = vmatpush3.bf16.msra.mxu1 %v13801_v35 }
 0x7ab   :  { %v9578_v14 = vpop.f32.mrb[48].mxu1  ;;  %12348 = vmatprep.subr.bf16.mxu1 %v13802_v47 }
 0x7ac   :  { %v9579_v24 = vadd.f32 %v9578_v14, %v9537_v16  ;;  %v9580_v40 = vpop.f32.mrb[49].mxu1 }
 0x7ad   :  { %v9581_v12 = vadd.f32 %v9580_v40, %v9539_v60  ;;  %v9582_v50 = vpop.f32.mrb[50].mxu1 }
 0x7ae   :  { %v9585_v48 = vadd.f32 %v9579_v24, %v9282_v26  ;;  %v9583_v32 = vpop.f32.mrb[51].mxu1  ;;  %12349 = vmatpush3.bf16.msra.mxu1 %v13803_v58 }
 0x7af   :  { %v9586_v34 = vadd.f32 %v9581_v12, %v9283_v63  ;;  %12350 = vmatprep.subr.bf16.mxu1 %v13804_v15  ;;  %v10824_v63 = vrot.slane %v10815_v3, %v5945_v57 }
 0x7b1   :  { %v10151_v18 = vpop.f32.mrb[224].mxu0 }
 0x7b2   :  { %v10153_v11 = vpop.f32.mrb[225].mxu0  ;;  %12351 = vmatpush3.bf16.msra.mxu1 %v13805_v25 }
 0x7b3   :  { %v10155_v28 = vpop.f32.mrb[226].mxu0  ;;  %12352 = vmatprep.subr.bf16.mxu1 %v13806_v2 }
 0x7b4   :  { %v10156_v61 = vpop.f32.mrb[227].mxu0 }
 0x7b6   :  { %12353 = vmatpush3.bf16.msra.mxu1 %v13807_v29 }
 0x7b9   :  { %v10503_v41 = vpop.f32.mrb[228].mxu0 }
 0x7ba   :  { %v10505_v27 = vpop.f32.mrb[229].mxu0 }
 0x7bb   :  { %v10507_v39 = vpop.f32.mrb[230].mxu0 }
 0x7bc   :  { %v10508_v43 = vpop.f32.mrb[231].mxu0 }
 0x7eb   :  { %v9848_v42 = vpop.f32.mrb[52].mxu1 }
 0x7ec   :  { %v9890_v30 = vadd.f32 %v9889_v0, %v9848_v42  ;;  %v9850_v19 = vpop.f32.mrb[53].mxu1 }
 0x7ed   :  { %v9892_v17 = vadd.f32 %v18826_v59, %v9850_v19  ;;  %v9852_v6 = vpop.f32.mrb[54].mxu1 }
 0x7ee   :  { %v9896_v52 = vadd.f32 %v9890_v30, %v9585_v48  ;;  %v9853_v54 = vpop.f32.mrb[55].mxu1 }
 0x7ef   :  { %v9897_v37 = vadd.f32 %v9892_v17, %v9586_v34 }
 0x7f3   :  { %v10192_v44 = vpop.f32.mrb[56].mxu1 }
 0x7f4   :  { %v10193_v33 = vadd.f32 %v10192_v44, %v10151_v18  ;;  %v10194_v4 = vpop.f32.mrb[57].mxu1 }
 0x7f5   :  { %v10195_v56 = vadd.f32 %v10194_v4, %v10153_v11  ;;  %v10196_v9 = vpop.f32.mrb[58].mxu1 }
 0x7f6   :  { %v10199_v16 = vadd.f32 %v10193_v33, %v9896_v52  ;;  %v10197_v60 = vpop.f32.mrb[59].mxu1 }
 0x7f7   :  { %v10200_v10 = vadd.f32 %v10195_v56, %v9897_v37 }
 0x7f9   :  { %v10765_v23 = vpop.f32.mrb[232].mxu0 }
 0x7fa   :  { %v10767_v51 = vpop.f32.mrb[233].mxu0 }
 0x7fb   :  { %v10769_v20 = vpop.f32.mrb[234].mxu0 }
 0x7fc   :  { %v10770_v62 = vpop.f32.mrb[235].mxu0 }
 0x833   :  { %v10462_v0 = vpop.f32.mrb[60].mxu1 }
 0x834   :  { %v10504_v55 = vadd.f32 %v10503_v41, %v10462_v0  ;;  %v10464_v21 = vpop.f32.mrb[61].mxu1 }
 0x835   :  { %v10506_v59 = vadd.f32 %v10505_v27, %v10464_v21  ;;  %v10466_v22 = vpop.f32.mrb[62].mxu1 }
 0x836   :  { %v10510_v45 = vadd.f32 %v10504_v55, %v10199_v16  ;;  %v10467_v38 = vpop.f32.mrb[63].mxu1 }
 0x837   :  { %v10511_v31 = vadd.f32 %v10506_v59, %v10200_v10 }
 0x83b   :  { %v10806_v1 = vpop.f32.mrb[64].mxu1 }
 0x83c   :  { %v10807_v53 = vadd.f32 %v10806_v1, %v10765_v23  ;;  %v10808_v26 = vpop.f32.mrb[65].mxu1 }
 0x83d   :  { %v10809_v49 = vadd.f32 %v10808_v26, %v10767_v51  ;;  %v10810_v14 = vpop.f32.mrb[66].mxu1 }
 0x83e   :  { %v10813_v24 = vadd.f32 %v10807_v53, %v10510_v45  ;;  %v10811_v40 = vpop.f32.mrb[67].mxu1 }
 0x83f   :  { %v10814_v12 = vadd.f32 %v10809_v49, %v10511_v31 }
 0x840   :  { %v10827_v50 = vadd.f32 %v10820_v13, %v10813_v24 }
 0x841   :  { %v10828_v48 = vadd.f32 %v10824_v63, %v10814_v12 }
 0x842   :  { %v10829_v32 = vmax.f32 %v10827_v50, 0.0 }
 0x843   :  { %v10830_v34 = vmax.f32 %v10828_v48, 0.0 }
 0x844   :  { %v10831_v11 = vpack.c.bf16 %v10829_v32, %v10829_v32 }
 0x845   :  { %v10832_v18 = vpack.c.bf16 %v10830_v34, %v10830_v34 }
 0x847   :  { %11000 = vmatprep.mubr.bf16.mxu1 %v10832_v18 }
 0x848   :  { %11001 = vmatmul.mubr.bf16.vlgmr.msra.gmra.mrb[68].mxu1 %v10831_v11 }
 0x91b   :  { %v12354_v36 = vpop.f32.mrb[68].mxu1 }
 0x91c   :  { %v12355_v28 = vpop.f32.mrb[69].mxu1 }
 0x91d   :  { %v12356_v8 = vadd.f32 %v12355_v28, %v12354_v36  ;;  %v12357_v57 = vpop.f32.mrb[70].mxu1 }
 0x91e   :  { %v12358_v7 = vpop.f32.mrb[71].mxu1 }
 0x91f   :  { %v11003_v61 = vadd.f32 %v12356_v8, %v12091_v46 }
 0x921   :  { %11008 = vst [vmem:[%s18901_s9] sm:$0xff] %v11003_v61 }

</bundles_post_ra>
